<compile_context>
chip_gen: v7x
topology: tpu7x:2x2x1
jax: 0.10.0
libtpu: 0.0.40
codegen_flags: <defaults>
</compile_context>

<pallas_src>
import jax
import jax.numpy as jnp
from jax import lax
from jax.experimental import pallas as pl
from jax.experimental.pallas import tpu as pltpu

K = 7                     # kernel size
DIL = 2                   # dilation
PAD = 6                   # padding -> output spatial == input spatial
HALO = (K - 1) * DIL      # 12 extra input rows needed below each row tile
HALO_BLK = 16             # halo row-block size (multiple of 8, >= HALO)
LANES = 128


def _round_up(x, m):
    return -(-x // m) * m


def _row_chunk(Th, W, Ct, vreg_budget=24):
    """Largest divisor of Th whose f32 accumulator stays within vreg_budget."""
    vregs_per_row = (-(-W // 8)) * (-(-Ct // LANES))
    cap = max(1, vreg_budget // max(1, vregs_per_row))
    for c in range(min(Th, cap), 0, -1):
        if Th % c == 0:
            return c
    return 1


def _pick_row_tile(H, W, Wp, Ct, in_itemsize, out_itemsize,
                   budget_bytes=28 * 1024 * 1024):
    """Largest Th (multiple of HALO_BLK) whose double-buffered blocks plus the
    f32 strip scratch fit a VMEM budget sized for v7x's 64 MiB (also well under
    v5e/v6e's 128 MiB)."""
    h_cap = _round_up(max(H, 1), HALO_BLK)
    best = HALO_BLK
    th = HALO_BLK
    while th <= h_cap:
        tot = (2 * th * Wp * Ct * in_itemsize          # main input blocks (x2)
               + 2 * HALO_BLK * Wp * Ct * in_itemsize  # halo blocks (x2)
               + 2 * th * W * Ct * out_itemsize        # output blocks (x2)
               + (th + HALO_BLK) * Wp * Ct * 4)        # f32 strip scratch
        if tot <= budget_bytes:
            best = th
        th += HALO_BLK
    return min(best, h_cap)


def _dwconv_kernel(x_main_ref, x_halo_ref, w_ref, b_ref, o_ref, strip_ref):
    # x_main_ref: (1, Th, Wp, Ct)        padded-input rows for this row tile
    # x_halo_ref: (1, HALO_BLK, Wp, Ct)  next rows (halo) of the same array
    # w_ref:      (K*K, Ct)              per-tap weights as channel lane-vectors
    # b_ref:      (1, Ct)                bias lane-vector
    # o_ref:      (1, Th, W, Ct)
    # strip_ref:  (Th + HALO_BLK, Wp, Ct) f32 scratch
    Th, W, Ct = o_ref.shape[1], o_ref.shape[2], o_ref.shape[3]
    hb = x_halo_ref.shape[1]

    # Assemble the halo'd row strip once per block.  This also hoists any
    # bf16->f32 upcast out of the 49-tap loop (1 cast/element instead of 49).
    strip_ref[pl.ds(0, Th), :, :] = x_main_ref[0].astype(jnp.float32)
    strip_ref[pl.ds(Th, hb), :, :] = x_halo_ref[0].astype(jnp.float32)

    # Hoist weight / bias loads out of the row-chunk loop (JAX does not CSE
    # loads/broadcasts issued inside the fori_loop body).
    w_all = w_ref[...].astype(jnp.float32)      # (K*K, Ct), ~7 vregs
    bias = b_ref[0, :].astype(jnp.float32)      # (Ct,) lane vector

    chunk = _row_chunk(Th, W, Ct)
    n_chunks = Th // chunk

    def body(rc, carry):
        row0 = pl.multiple_of(rc * chunk, chunk)
        acc = jnp.zeros((chunk, W, Ct), dtype=jnp.float32)
        # 49 dilated taps: H shift = plane addressing into the strip, W shift =
        # sublane-offset load; the channel (lane) axis is never shifted.
        # TODO(synk): if a bundle dump shows vld as the binding slot, load one
        # aligned (chunk, W + HALO, Ct) slab per kh and derive the 7 kw shifts
        # with pltpu.roll (XLU) instead of 7 offset loads.
        for kh in range(K):
            for kw in range(K):
                patch = strip_ref[pl.ds(row0 + kh * DIL, chunk),
                                  pl.ds(kw * DIL, W), :]
                acc = acc + patch * w_all[kh * K + kw]
        acc = acc + bias
        o_ref[0, pl.ds(row0, chunk), :, :] = acc.astype(o_ref.dtype)
        return carry

    lax.fori_loop(0, n_chunks, body, 0, unroll=2)


def depthwise_conv2d(x, weight, bias):
    """x: (N, C, H, W), weight: (C, 1, K, K), bias: (C,)  -> (N, C, H, W)."""
    N, C, H, W = x.shape
    in_itemsize = jnp.dtype(x.dtype).itemsize

    # Lane-dense channel tiling: pad C up to a multiple of 128.
    Cp = _round_up(C, LANES)
    Ct = LANES
    n_ct = Cp // Ct

    Wp = W + 2 * PAD
    Th = _pick_row_tile(H, W, Wp, Ct, in_itemsize, in_itemsize)
    n_rt = -(-H // Th)
    H_out = n_rt * Th                 # row-padded output extent
    R_in = (n_rt + 1) * Th            # padded-input rows (divisible by Th & 16)
    pad_bot = R_in - PAD - H          # >= PAD by construction
    th16 = Th // HALO_BLK

    # NCHW -> NHWC; the spatial (+6) and channel pads fuse into this single
    # relayout copy.
    # TODO(synk): keep activations NHWC in the surrounding graph to drop both
    # transposes and fold the zero-pad into a halo-masked index_map.
    x_nhwc = jnp.transpose(x, (0, 2, 3, 1))
    xp = jnp.pad(x_nhwc, ((0, 0), (PAD, pad_bot), (PAD, PAD), (0, Cp - C)))

    w2 = jnp.pad(jnp.transpose(weight.reshape(C, K * K), (1, 0)),
                 ((0, 0), (0, Cp - C)))                      # (K*K, Cp)
    b2 = jnp.pad(bias.reshape(1, C), ((0, 0), (0, Cp - C)))  # (1, Cp)

    # Explicit VMEM budget from the actual block sizes (+25% slack).
    vmem_bytes = int(1.25 * (
        2 * Th * Wp * Ct * in_itemsize
        + 2 * HALO_BLK * Wp * Ct * in_itemsize
        + 2 * Th * W * Ct * in_itemsize
        + (Th + HALO_BLK) * Wp * Ct * 4
        + 2 * (K * K + 1) * Ct * 4)) + (2 << 20)

    out_nhwc = pl.pallas_call(
        _dwconv_kernel,
        out_shape=jax.ShapeDtypeStruct((N, H_out, W, Cp), x.dtype),
        grid_spec=pltpu.PrefetchScalarGridSpec(
            num_scalar_prefetch=0,
            # channel tile outermost (weights/bias stay resident), row tile
            # innermost; all axes are independent -> "parallel" everywhere so
            # v7x's second TensorCore has work even at N=1, C<=128.
            grid=(n_ct, N, n_rt),
            in_specs=[
                pl.BlockSpec((1, Th, Wp, Ct),
                             lambda c, n, r: (n, r, 0, c)),
                pl.BlockSpec((1, HALO_BLK, Wp, Ct),
                             lambda c, n, r: (n, (r + 1) * th16, 0, c)),
                pl.BlockSpec((K * K, Ct), lambda c, n, r: (0, c)),
                pl.BlockSpec((1, Ct), lambda c, n, r: (0, c)),
            ],
            out_specs=pl.BlockSpec((1, Th, W, Ct),
                                   lambda c, n, r: (n, r, 0, c)),
            scratch_shapes=[pltpu.VMEM((Th + HALO_BLK, Wp, Ct), jnp.float32)],
        ),
        compiler_params=pltpu.CompilerParams(
            dimension_semantics=("parallel", "parallel", "parallel"),
            vmem_limit_bytes=vmem_bytes),
    )(xp, xp, w2, b2)

    out = out_nhwc[:, :H, :, :C]
    return jnp.transpose(out, (0, 3, 1, 2))


def _reference(x, weight, bias):
    # jax reference: grouped (depthwise) dilated conv, NCHW / OIHW
    out = lax.conv_general_dilated(
        x, weight,
        window_strides=(1, 1),
        padding=((PAD, PAD), (PAD, PAD)),
        rhs_dilation=(DIL, DIL),
        dimension_numbers=("NCHW", "OIHW", "NCHW"),
        feature_group_count=x.shape[1],
    )
    return out + bias.reshape(1, -1, 1, 1)


if __name__ == "__main__":
    key = jax.random.PRNGKey(0)
    kx, kw_key, kb_key = jax.random.split(key, 3)

    N, C, H, W = 2, 4, 16, 16
    x = jax.random.normal(kx, (N, C, H, W), dtype=jnp.float32)

    # Parameter init matching nn.Conv2d(dim, dim, 7, groups=dim, dilation=2):
    # weight (C, 1, 7, 7), bias (C,), uniform(-1/sqrt(fan_in), 1/sqrt(fan_in)).
    fan_in = 1 * K * K
    bound = 1.0 / (fan_in ** 0.5)
    weight = jax.random.uniform(kw_key, (C, 1, K, K), minval=-bound,
                                maxval=bound, dtype=jnp.float32)
    bias = jax.random.uniform(kb_key, (C,), minval=-bound, maxval=bound,
                              dtype=jnp.float32)

    out = depthwise_conv2d(x, weight, bias)
    out = jax.block_until_ready(out)

    ref = _reference(x, weight, bias)
    assert out.shape == (N, C, H, W)
    assert jnp.allclose(out, ref, atol=1e-5, rtol=1e-5), "mismatch vs reference"

    print("KERNEL_OK")
</pallas_src>

<mosaic_0001>
module attributes {stable_mosaic.version = 11 : i64} {
  func.func @_dwconv_kernel(%arg0: i32, %arg1: i32, %arg2: i32, %arg3: memref<1x16x28x128xf32, #tpu.memory_space<vmem>>, %arg4: memref<1x16x28x128xf32, #tpu.memory_space<vmem>>, %arg5: memref<49x128xf32, #tpu.memory_space<vmem>>, %arg6: memref<1x128xf32, #tpu.memory_space<vmem>>, %arg7: memref<1x16x16x128xf32, #tpu.memory_space<vmem>>, %arg8: memref<32x28x128xf32, #tpu.memory_space<vmem>>) attributes {dimension_semantics = [#tpu.dimension_semantics<parallel>, #tpu.dimension_semantics<parallel>, #tpu.dimension_semantics<parallel>], iteration_bounds = array<i64: 1, 2, 1>, scalar_prefetch = 0 : i64, scratch_operands = 1 : i64, tpu.core_type = #tpu.core_type<tc>, window_params = [{transform_indices = @transform_0, window_bounds = array<i64: 1, 16, 28, 128>}, {transform_indices = @transform_1, window_bounds = array<i64: 1, 16, 28, 128>}, {transform_indices = @transform_2, window_bounds = array<i64: 49, 128>}, {transform_indices = @transform_3, window_bounds = array<i64: 1, 128>}, {transform_indices = @transform_4, window_bounds = array<i64: 1, 16, 16, 128>}]} {
    %c0 = arith.constant 0 : index
    %c0_0 = arith.constant 0 : index
    %c0_1 = arith.constant 0 : index
    %c0_2 = arith.constant 0 : index
    %0 = vector.load %arg3[%c0, %c0_0, %c0_1, %c0_2] : memref<1x16x28x128xf32, #tpu.memory_space<vmem>>, vector<1x16x28x128xf32>
    %1 = vector.shape_cast %0 : vector<1x16x28x128xf32> to vector<16x28x128xf32>
    %c0_3 = arith.constant 0 : index
    %c0_4 = arith.constant 0 : index
    %c0_5 = arith.constant 0 : index
    %2 = vector.load %arg8[%c0_3, %c0_4, %c0_5] : memref<32x28x128xf32, #tpu.memory_space<vmem>>, vector<16x28x128xf32>
    tpu.vector_store %arg8[%c0_3, %c0_4, %c0_5], %1 {strides = array<i32>} : memref<32x28x128xf32, #tpu.memory_space<vmem>>, vector<16x28x128xf32>,
    %c0_6 = arith.constant 0 : index
    %c0_7 = arith.constant 0 : index
    %c0_8 = arith.constant 0 : index
    %c0_9 = arith.constant 0 : index
    %3 = vector.load %arg4[%c0_6, %c0_7, %c0_8, %c0_9] : memref<1x16x28x128xf32, #tpu.memory_space<vmem>>, vector<1x16x28x128xf32>
    %4 = vector.shape_cast %3 : vector<1x16x28x128xf32> to vector<16x28x128xf32>
    %c16 = arith.constant 16 : index
    %c0_10 = arith.constant 0 : index
    %c0_11 = arith.constant 0 : index
    %5 = vector.load %arg8[%c16, %c0_10, %c0_11] : memref<32x28x128xf32, #tpu.memory_space<vmem>>, vector<16x28x128xf32>
    tpu.vector_store %arg8[%c16, %c0_10, %c0_11], %4 {strides = array<i32>} : memref<32x28x128xf32, #tpu.memory_space<vmem>>, vector<16x28x128xf32>,
    %c0_12 = arith.constant 0 : index
    %c0_13 = arith.constant 0 : index
    %6 = vector.load %arg5[%c0_12, %c0_13] : memref<49x128xf32, #tpu.memory_space<vmem>>, vector<49x128xf32>
    %c0_14 = arith.constant 0 : index
    %c0_15 = arith.constant 0 : index
    %7 = vector.load %arg6[%c0_14, %c0_15] : memref<1x128xf32, #tpu.memory_space<vmem>>, vector<1x128xf32>
    %8 = vector.shape_cast %7 : vector<1x128xf32> to vector<128xf32>
    %c0_i32 = arith.constant 0 : i32
    %c8_i32 = arith.constant 8 : i32
    %9 = arith.muli %c0_i32, %c8_i32 : i32
    %10 = tpu.assume_multiple %9, 8 : i32
    %cst = arith.constant 0.000000e+00 : f32
    %11 = vector.broadcast %cst : f32 to vector<8x16x128xf32>
    %c0_i32_16 = arith.constant 0 : i32
    %12 = arith.addi %10, %c0_i32_16 : i32
    %13 = arith.index_cast %12 : i32 to index
    %c0_17 = arith.constant 0 : index
    %c0_18 = arith.constant 0 : index
    %14 = vector.load %arg8[%13, %c0_17, %c0_18] : memref<32x28x128xf32, #tpu.memory_space<vmem>>, vector<8x16x128xf32>
    %15 = vector.extract_strided_slice %6 {offsets = [0, 0], sizes = [1, 128], strides = [1, 1]} : vector<49x128xf32> to vector<1x128xf32>
    %16 = vector.shape_cast %15 : vector<1x128xf32> to vector<128xf32>
    %17 = vector.shape_cast %16 : vector<128xf32> to vector<1x1x128xf32>
    %18 = vector.broadcast %17 : vector<1x1x128xf32> to vector<8x16x128xf32>
    %19 = arith.mulf %14, %18 : vector<8x16x128xf32>
    %20 = arith.addf %11, %19 : vector<8x16x128xf32>
    %c0_i32_19 = arith.constant 0 : i32
    %21 = arith.addi %10, %c0_i32_19 : i32
    %22 = arith.index_cast %21 : i32 to index
    %c2 = arith.constant 2 : index
    %c0_20 = arith.constant 0 : index
    %23 = vector.load %arg8[%22, %c2, %c0_20] : memref<32x28x128xf32, #tpu.memory_space<vmem>>, vector<8x16x128xf32>
    %24 = vector.extract_strided_slice %6 {offsets = [1, 0], sizes = [1, 128], strides = [1, 1]} : vector<49x128xf32> to vector<1x128xf32>
    %25 = vector.shape_cast %24 : vector<1x128xf32> to vector<128xf32>
    %26 = vector.shape_cast %25 : vector<128xf32> to vector<1x1x128xf32>
    %27 = vector.broadcast %26 : vector<1x1x128xf32> to vector<8x16x128xf32>
    %28 = arith.mulf %23, %27 : vector<8x16x128xf32>
    %29 = arith.addf %20, %28 : vector<8x16x128xf32>
    %c0_i32_21 = arith.constant 0 : i32
    %30 = arith.addi %10, %c0_i32_21 : i32
    %31 = arith.index_cast %30 : i32 to index
    %c4 = arith.constant 4 : index
    %c0_22 = arith.constant 0 : index
    %32 = vector.load %arg8[%31, %c4, %c0_22] : memref<32x28x128xf32, #tpu.memory_space<vmem>>, vector<8x16x128xf32>
    %33 = vector.extract_strided_slice %6 {offsets = [2, 0], sizes = [1, 128], strides = [1, 1]} : vector<49x128xf32> to vector<1x128xf32>
    %34 = vector.shape_cast %33 : vector<1x128xf32> to vector<128xf32>
    %35 = vector.shape_cast %34 : vector<128xf32> to vector<1x1x128xf32>
    %36 = vector.broadcast %35 : vector<1x1x128xf32> to vector<8x16x128xf32>
    %37 = arith.mulf %32, %36 : vector<8x16x128xf32>
    %38 = arith.addf %29, %37 : vector<8x16x128xf32>
    %c0_i32_23 = arith.constant 0 : i32
    %39 = arith.addi %10, %c0_i32_23 : i32
    %40 = arith.index_cast %39 : i32 to index
    %c6 = arith.constant 6 : index
    %c0_24 = arith.constant 0 : index
    %41 = vector.load %arg8[%40, %c6, %c0_24] : memref<32x28x128xf32, #tpu.memory_space<vmem>>, vector<8x16x128xf32>
    %42 = vector.extract_strided_slice %6 {offsets = [3, 0], sizes = [1, 128], strides = [1, 1]} : vector<49x128xf32> to vector<1x128xf32>
    %43 = vector.shape_cast %42 : vector<1x128xf32> to vector<128xf32>
    %44 = vector.shape_cast %43 : vector<128xf32> to vector<1x1x128xf32>
    %45 = vector.broadcast %44 : vector<1x1x128xf32> to vector<8x16x128xf32>
    %46 = arith.mulf %41, %45 : vector<8x16x128xf32>
    %47 = arith.addf %38, %46 : vector<8x16x128xf32>
    %c0_i32_25 = arith.constant 0 : i32
    %48 = arith.addi %10, %c0_i32_25 : i32
    %49 = arith.index_cast %48 : i32 to index
    %c8 = arith.constant 8 : index
    %c0_26 = arith.constant 0 : index
    %50 = vector.load %arg8[%49, %c8, %c0_26] : memref<32x28x128xf32, #tpu.memory_space<vmem>>, vector<8x16x128xf32>
    %51 = vector.extract_strided_slice %6 {offsets = [4, 0], sizes = [1, 128], strides = [1, 1]} : vector<49x128xf32> to vector<1x128xf32>
    %52 = vector.shape_cast %51 : vector<1x128xf32> to vector<128xf32>
    %53 = vector.shape_cast %52 : vector<128xf32> to vector<1x1x128xf32>
    %54 = vector.broadcast %53 : vector<1x1x128xf32> to vector<8x16x128xf32>
    %55 = arith.mulf %50, %54 : vector<8x16x128xf32>
    %56 = arith.addf %47, %55 : vector<8x16x128xf32>
    %c0_i32_27 = arith.constant 0 : i32
    %57 = arith.addi %10, %c0_i32_27 : i32
    %58 = arith.index_cast %57 : i32 to index
    %c10 = arith.constant 10 : index
    %c0_28 = arith.constant 0 : index
    %59 = vector.load %arg8[%58, %c10, %c0_28] : memref<32x28x128xf32, #tpu.memory_space<vmem>>, vector<8x16x128xf32>
    %60 = vector.extract_strided_slice %6 {offsets = [5, 0], sizes = [1, 128], strides = [1, 1]} : vector<49x128xf32> to vector<1x128xf32>
    %61 = vector.shape_cast %60 : vector<1x128xf32> to vector<128xf32>
    %62 = vector.shape_cast %61 : vector<128xf32> to vector<1x1x128xf32>
    %63 = vector.broadcast %62 : vector<1x1x128xf32> to vector<8x16x128xf32>
    %64 = arith.mulf %59, %63 : vector<8x16x128xf32>
    %65 = arith.addf %56, %64 : vector<8x16x128xf32>
    %c0_i32_29 = arith.constant 0 : i32
    %66 = arith.addi %10, %c0_i32_29 : i32
    %67 = arith.index_cast %66 : i32 to index
    %c12 = arith.constant 12 : index
    %c0_30 = arith.constant 0 : index
    %68 = vector.load %arg8[%67, %c12, %c0_30] : memref<32x28x128xf32, #tpu.memory_space<vmem>>, vector<8x16x128xf32>
    %69 = vector.extract_strided_slice %6 {offsets = [6, 0], sizes = [1, 128], strides = [1, 1]} : vector<49x128xf32> to vector<1x128xf32>
    %70 = vector.shape_cast %69 : vector<1x128xf32> to vector<128xf32>
    %71 = vector.shape_cast %70 : vector<128xf32> to vector<1x1x128xf32>
    %72 = vector.broadcast %71 : vector<1x1x128xf32> to vector<8x16x128xf32>
    %73 = arith.mulf %68, %72 : vector<8x16x128xf32>
    %74 = arith.addf %65, %73 : vector<8x16x128xf32>
    %c2_i32 = arith.constant 2 : i32
    %75 = arith.addi %10, %c2_i32 : i32
    %76 = arith.index_cast %75 : i32 to index
    %c0_31 = arith.constant 0 : index
    %c0_32 = arith.constant 0 : index
    %77 = vector.load %arg8[%76, %c0_31, %c0_32] : memref<32x28x128xf32, #tpu.memory_space<vmem>>, vector<8x16x128xf32>
    %78 = vector.extract_strided_slice %6 {offsets = [7, 0], sizes = [1, 128], strides = [1, 1]} : vector<49x128xf32> to vector<1x128xf32>
    %79 = vector.shape_cast %78 : vector<1x128xf32> to vector<128xf32>
    %80 = vector.shape_cast %79 : vector<128xf32> to vector<1x1x128xf32>
    %81 = vector.broadcast %80 : vector<1x1x128xf32> to vector<8x16x128xf32>
    %82 = arith.mulf %77, %81 : vector<8x16x128xf32>
    %83 = arith.addf %74, %82 : vector<8x16x128xf32>
    %c2_i32_33 = arith.constant 2 : i32
    %84 = arith.addi %10, %c2_i32_33 : i32
    %85 = arith.index_cast %84 : i32 to index
    %c2_34 = arith.constant 2 : index
    %c0_35 = arith.constant 0 : index
    %86 = vector.load %arg8[%85, %c2_34, %c0_35] : memref<32x28x128xf32, #tpu.memory_space<vmem>>, vector<8x16x128xf32>
    %87 = vector.extract_strided_slice %6 {offsets = [8, 0], sizes = [1, 128], strides = [1, 1]} : vector<49x128xf32> to vector<1x128xf32>
    %88 = vector.shape_cast %87 : vector<1x128xf32> to vector<128xf32>
    %89 = vector.shape_cast %88 : vector<128xf32> to vector<1x1x128xf32>
    %90 = vector.broadcast %89 : vector<1x1x128xf32> to vector<8x16x128xf32>
    %91 = arith.mulf %86, %90 : vector<8x16x128xf32>
    %92 = arith.addf %83, %91 : vector<8x16x128xf32>
    %c2_i32_36 = arith.constant 2 : i32
    %93 = arith.addi %10, %c2_i32_36 : i32
    %94 = arith.index_cast %93 : i32 to index
    %c4_37 = arith.constant 4 : index
    %c0_38 = arith.constant 0 : index
    %95 = vector.load %arg8[%94, %c4_37, %c0_38] : memref<32x28x128xf32, #tpu.memory_space<vmem>>, vector<8x16x128xf32>
    %96 = vector.extract_strided_slice %6 {offsets = [9, 0], sizes = [1, 128], strides = [1, 1]} : vector<49x128xf32> to vector<1x128xf32>
    %97 = vector.shape_cast %96 : vector<1x128xf32> to vector<128xf32>
    %98 = vector.shape_cast %97 : vector<128xf32> to vector<1x1x128xf32>
    %99 = vector.broadcast %98 : vector<1x1x128xf32> to vector<8x16x128xf32>
    %100 = arith.mulf %95, %99 : vector<8x16x128xf32>
    %101 = arith.addf %92, %100 : vector<8x16x128xf32>
    %c2_i32_39 = arith.constant 2 : i32
    %102 = arith.addi %10, %c2_i32_39 : i32
    %103 = arith.index_cast %102 : i32 to index
    %c6_40 = arith.constant 6 : index
    %c0_41 = arith.constant 0 : index
    %104 = vector.load %arg8[%103, %c6_40, %c0_41] : memref<32x28x128xf32, #tpu.memory_space<vmem>>, vector<8x16x128xf32>
    %105 = vector.extract_strided_slice %6 {offsets = [10, 0], sizes = [1, 128], strides = [1, 1]} : vector<49x128xf32> to vector<1x128xf32>
    %106 = vector.shape_cast %105 : vector<1x128xf32> to vector<128xf32>
    %107 = vector.shape_cast %106 : vector<128xf32> to vector<1x1x128xf32>
    %108 = vector.broadcast %107 : vector<1x1x128xf32> to vector<8x16x128xf32>
    %109 = arith.mulf %104, %108 : vector<8x16x128xf32>
    %110 = arith.addf %101, %109 : vector<8x16x128xf32>
    %c2_i32_42 = arith.constant 2 : i32
    %111 = arith.addi %10, %c2_i32_42 : i32
    %112 = arith.index_cast %111 : i32 to index
    %c8_43 = arith.constant 8 : index
    %c0_44 = arith.constant 0 : index
    %113 = vector.load %arg8[%112, %c8_43, %c0_44] : memref<32x28x128xf32, #tpu.memory_space<vmem>>, vector<8x16x128xf32>
    %114 = vector.extract_strided_slice %6 {offsets = [11, 0], sizes = [1, 128], strides = [1, 1]} : vector<49x128xf32> to vector<1x128xf32>
    %115 = vector.shape_cast %114 : vector<1x128xf32> to vector<128xf32>
    %116 = vector.shape_cast %115 : vector<128xf32> to vector<1x1x128xf32>
    %117 = vector.broadcast %116 : vector<1x1x128xf32> to vector<8x16x128xf32>
    %118 = arith.mulf %113, %117 : vector<8x16x128xf32>
    %119 = arith.addf %110, %118 : vector<8x16x128xf32>
    %c2_i32_45 = arith.constant 2 : i32
    %120 = arith.addi %10, %c2_i32_45 : i32
    %121 = arith.index_cast %120 : i32 to index
    %c10_46 = arith.constant 10 : index
    %c0_47 = arith.constant 0 : index
    %122 = vector.load %arg8[%121, %c10_46, %c0_47] : memref<32x28x128xf32, #tpu.memory_space<vmem>>, vector<8x16x128xf32>
    %123 = vector.extract_strided_slice %6 {offsets = [12, 0], sizes = [1, 128], strides = [1, 1]} : vector<49x128xf32> to vector<1x128xf32>
    %124 = vector.shape_cast %123 : vector<1x128xf32> to vector<128xf32>
    %125 = vector.shape_cast %124 : vector<128xf32> to vector<1x1x128xf32>
    %126 = vector.broadcast %125 : vector<1x1x128xf32> to vector<8x16x128xf32>
    %127 = arith.mulf %122, %126 : vector<8x16x128xf32>
    %128 = arith.addf %119, %127 : vector<8x16x128xf32>
    %c2_i32_48 = arith.constant 2 : i32
    %129 = arith.addi %10, %c2_i32_48 : i32
    %130 = arith.index_cast %129 : i32 to index
    %c12_49 = arith.constant 12 : index
    %c0_50 = arith.constant 0 : index
    %131 = vector.load %arg8[%130, %c12_49, %c0_50] : memref<32x28x128xf32, #tpu.memory_space<vmem>>, vector<8x16x128xf32>
    %132 = vector.extract_strided_slice %6 {offsets = [13, 0], sizes = [1, 128], strides = [1, 1]} : vector<49x128xf32> to vector<1x128xf32>
    %133 = vector.shape_cast %132 : vector<1x128xf32> to vector<128xf32>
    %134 = vector.shape_cast %133 : vector<128xf32> to vector<1x1x128xf32>
    %135 = vector.broadcast %134 : vector<1x1x128xf32> to vector<8x16x128xf32>
    %136 = arith.mulf %131, %135 : vector<8x16x128xf32>
    %137 = arith.addf %128, %136 : vector<8x16x128xf32>
    %c4_i32 = arith.constant 4 : i32
    %138 = arith.addi %10, %c4_i32 : i32
    %139 = arith.index_cast %138 : i32 to index
    %c0_51 = arith.constant 0 : index
    %c0_52 = arith.constant 0 : index
    %140 = vector.load %arg8[%139, %c0_51, %c0_52] : memref<32x28x128xf32, #tpu.memory_space<vmem>>, vector<8x16x128xf32>
    %141 = vector.extract_strided_slice %6 {offsets = [14, 0], sizes = [1, 128], strides = [1, 1]} : vector<49x128xf32> to vector<1x128xf32>
    %142 = vector.shape_cast %141 : vector<1x128xf32> to vector<128xf32>
    %143 = vector.shape_cast %142 : vector<128xf32> to vector<1x1x128xf32>
    %144 = vector.broadcast %143 : vector<1x1x128xf32> to vector<8x16x128xf32>
    %145 = arith.mulf %140, %144 : vector<8x16x128xf32>
    %146 = arith.addf %137, %145 : vector<8x16x128xf32>
    %c4_i32_53 = arith.constant 4 : i32
    %147 = arith.addi %10, %c4_i32_53 : i32
    %148 = arith.index_cast %147 : i32 to index
    %c2_54 = arith.constant 2 : index
    %c0_55 = arith.constant 0 : index
    %149 = vector.load %arg8[%148, %c2_54, %c0_55] : memref<32x28x128xf32, #tpu.memory_space<vmem>>, vector<8x16x128xf32>
    %150 = vector.extract_strided_slice %6 {offsets = [15, 0], sizes = [1, 128], strides = [1, 1]} : vector<49x128xf32> to vector<1x128xf32>
    %151 = vector.shape_cast %150 : vector<1x128xf32> to vector<128xf32>
    %152 = vector.shape_cast %151 : vector<128xf32> to vector<1x1x128xf32>
    %153 = vector.broadcast %152 : vector<1x1x128xf32> to vector<8x16x128xf32>
    %154 = arith.mulf %149, %153 : vector<8x16x128xf32>
    %155 = arith.addf %146, %154 : vector<8x16x128xf32>
    %c4_i32_56 = arith.constant 4 : i32
    %156 = arith.addi %10, %c4_i32_56 : i32
    %157 = arith.index_cast %156 : i32 to index
    %c4_57 = arith.constant 4 : index
    %c0_58 = arith.constant 0 : index
    %158 = vector.load %arg8[%157, %c4_57, %c0_58] : memref<32x28x128xf32, #tpu.memory_space<vmem>>, vector<8x16x128xf32>
    %159 = vector.extract_strided_slice %6 {offsets = [16, 0], sizes = [1, 128], strides = [1, 1]} : vector<49x128xf32> to vector<1x128xf32>
    %160 = vector.shape_cast %159 : vector<1x128xf32> to vector<128xf32>
    %161 = vector.shape_cast %160 : vector<128xf32> to vector<1x1x128xf32>
    %162 = vector.broadcast %161 : vector<1x1x128xf32> to vector<8x16x128xf32>
    %163 = arith.mulf %158, %162 : vector<8x16x128xf32>
    %164 = arith.addf %155, %163 : vector<8x16x128xf32>
    %c4_i32_59 = arith.constant 4 : i32
    %165 = arith.addi %10, %c4_i32_59 : i32
    %166 = arith.index_cast %165 : i32 to index
    %c6_60 = arith.constant 6 : index
    %c0_61 = arith.constant 0 : index
    %167 = vector.load %arg8[%166, %c6_60, %c0_61] : memref<32x28x128xf32, #tpu.memory_space<vmem>>, vector<8x16x128xf32>
    %168 = vector.extract_strided_slice %6 {offsets = [17, 0], sizes = [1, 128], strides = [1, 1]} : vector<49x128xf32> to vector<1x128xf32>
    %169 = vector.shape_cast %168 : vector<1x128xf32> to vector<128xf32>
    %170 = vector.shape_cast %169 : vector<128xf32> to vector<1x1x128xf32>
    %171 = vector.broadcast %170 : vector<1x1x128xf32> to vector<8x16x128xf32>
    %172 = arith.mulf %167, %171 : vector<8x16x128xf32>
    %173 = arith.addf %164, %172 : vector<8x16x128xf32>
    %c4_i32_62 = arith.constant 4 : i32
    %174 = arith.addi %10, %c4_i32_62 : i32
    %175 = arith.index_cast %174 : i32 to index
    %c8_63 = arith.constant 8 : index
    %c0_64 = arith.constant 0 : index
    %176 = vector.load %arg8[%175, %c8_63, %c0_64] : memref<32x28x128xf32, #tpu.memory_space<vmem>>, vector<8x16x128xf32>
    %177 = vector.extract_strided_slice %6 {offsets = [18, 0], sizes = [1, 128], strides = [1, 1]} : vector<49x128xf32> to vector<1x128xf32>
    %178 = vector.shape_cast %177 : vector<1x128xf32> to vector<128xf32>
    %179 = vector.shape_cast %178 : vector<128xf32> to vector<1x1x128xf32>
    %180 = vector.broadcast %179 : vector<1x1x128xf32> to vector<8x16x128xf32>
    %181 = arith.mulf %176, %180 : vector<8x16x128xf32>
    %182 = arith.addf %173, %181 : vector<8x16x128xf32>
    %c4_i32_65 = arith.constant 4 : i32
    %183 = arith.addi %10, %c4_i32_65 : i32
    %184 = arith.index_cast %183 : i32 to index
    %c10_66 = arith.constant 10 : index
    %c0_67 = arith.constant 0 : index
    %185 = vector.load %arg8[%184, %c10_66, %c0_67] : memref<32x28x128xf32, #tpu.memory_space<vmem>>, vector<8x16x128xf32>
    %186 = vector.extract_strided_slice %6 {offsets = [19, 0], sizes = [1, 128], strides = [1, 1]} : vector<49x128xf32> to vector<1x128xf32>
    %187 = vector.shape_cast %186 : vector<1x128xf32> to vector<128xf32>
    %188 = vector.shape_cast %187 : vector<128xf32> to vector<1x1x128xf32>
    %189 = vector.broadcast %188 : vector<1x1x128xf32> to vector<8x16x128xf32>
    %190 = arith.mulf %185, %189 : vector<8x16x128xf32>
    %191 = arith.addf %182, %190 : vector<8x16x128xf32>
    %c4_i32_68 = arith.constant 4 : i32
    %192 = arith.addi %10, %c4_i32_68 : i32
    %193 = arith.index_cast %192 : i32 to index
    %c12_69 = arith.constant 12 : index
    %c0_70 = arith.constant 0 : index
    %194 = vector.load %arg8[%193, %c12_69, %c0_70] : memref<32x28x128xf32, #tpu.memory_space<vmem>>, vector<8x16x128xf32>
    %195 = vector.extract_strided_slice %6 {offsets = [20, 0], sizes = [1, 128], strides = [1, 1]} : vector<49x128xf32> to vector<1x128xf32>
    %196 = vector.shape_cast %195 : vector<1x128xf32> to vector<128xf32>
    %197 = vector.shape_cast %196 : vector<128xf32> to vector<1x1x128xf32>
    %198 = vector.broadcast %197 : vector<1x1x128xf32> to vector<8x16x128xf32>
    %199 = arith.mulf %194, %198 : vector<8x16x128xf32>
    %200 = arith.addf %191, %199 : vector<8x16x128xf32>
    %c6_i32 = arith.constant 6 : i32
    %201 = arith.addi %10, %c6_i32 : i32
    %202 = arith.index_cast %201 : i32 to index
    %c0_71 = arith.constant 0 : index
    %c0_72 = arith.constant 0 : index
    %203 = vector.load %arg8[%202, %c0_71, %c0_72] : memref<32x28x128xf32, #tpu.memory_space<vmem>>, vector<8x16x128xf32>
    %204 = vector.extract_strided_slice %6 {offsets = [21, 0], sizes = [1, 128], strides = [1, 1]} : vector<49x128xf32> to vector<1x128xf32>
    %205 = vector.shape_cast %204 : vector<1x128xf32> to vector<128xf32>
    %206 = vector.shape_cast %205 : vector<128xf32> to vector<1x1x128xf32>
    %207 = vector.broadcast %206 : vector<1x1x128xf32> to vector<8x16x128xf32>
    %208 = arith.mulf %203, %207 : vector<8x16x128xf32>
    %209 = arith.addf %200, %208 : vector<8x16x128xf32>
    %c6_i32_73 = arith.constant 6 : i32
    %210 = arith.addi %10, %c6_i32_73 : i32
    %211 = arith.index_cast %210 : i32 to index
    %c2_74 = arith.constant 2 : index
    %c0_75 = arith.constant 0 : index
    %212 = vector.load %arg8[%211, %c2_74, %c0_75] : memref<32x28x128xf32, #tpu.memory_space<vmem>>, vector<8x16x128xf32>
    %213 = vector.extract_strided_slice %6 {offsets = [22, 0], sizes = [1, 128], strides = [1, 1]} : vector<49x128xf32> to vector<1x128xf32>
    %214 = vector.shape_cast %213 : vector<1x128xf32> to vector<128xf32>
    %215 = vector.shape_cast %214 : vector<128xf32> to vector<1x1x128xf32>
    %216 = vector.broadcast %215 : vector<1x1x128xf32> to vector<8x16x128xf32>
    %217 = arith.mulf %212, %216 : vector<8x16x128xf32>
    %218 = arith.addf %209, %217 : vector<8x16x128xf32>
    %c6_i32_76 = arith.constant 6 : i32
    %219 = arith.addi %10, %c6_i32_76 : i32
    %220 = arith.index_cast %219 : i32 to index
    %c4_77 = arith.constant 4 : index
    %c0_78 = arith.constant 0 : index
    %221 = vector.load %arg8[%220, %c4_77, %c0_78] : memref<32x28x128xf32, #tpu.memory_space<vmem>>, vector<8x16x128xf32>
    %222 = vector.extract_strided_slice %6 {offsets = [23, 0], sizes = [1, 128], strides = [1, 1]} : vector<49x128xf32> to vector<1x128xf32>
    %223 = vector.shape_cast %222 : vector<1x128xf32> to vector<128xf32>
    %224 = vector.shape_cast %223 : vector<128xf32> to vector<1x1x128xf32>
    %225 = vector.broadcast %224 : vector<1x1x128xf32> to vector<8x16x128xf32>
    %226 = arith.mulf %221, %225 : vector<8x16x128xf32>
    %227 = arith.addf %218, %226 : vector<8x16x128xf32>
    %c6_i32_79 = arith.constant 6 : i32
    %228 = arith.addi %10, %c6_i32_79 : i32
    %229 = arith.index_cast %228 : i32 to index
    %c6_80 = arith.constant 6 : index
    %c0_81 = arith.constant 0 : index
    %230 = vector.load %arg8[%229, %c6_80, %c0_81] : memref<32x28x128xf32, #tpu.memory_space<vmem>>, vector<8x16x128xf32>
    %231 = vector.extract_strided_slice %6 {offsets = [24, 0], sizes = [1, 128], strides = [1, 1]} : vector<49x128xf32> to vector<1x128xf32>
    %232 = vector.shape_cast %231 : vector<1x128xf32> to vector<128xf32>
    %233 = vector.shape_cast %232 : vector<128xf32> to vector<1x1x128xf32>
    %234 = vector.broadcast %233 : vector<1x1x128xf32> to vector<8x16x128xf32>
    %235 = arith.mulf %230, %234 : vector<8x16x128xf32>
    %236 = arith.addf %227, %235 : vector<8x16x128xf32>
    %c6_i32_82 = arith.constant 6 : i32
    %237 = arith.addi %10, %c6_i32_82 : i32
    %238 = arith.index_cast %237 : i32 to index
    %c8_83 = arith.constant 8 : index
    %c0_84 = arith.constant 0 : index
    %239 = vector.load %arg8[%238, %c8_83, %c0_84] : memref<32x28x128xf32, #tpu.memory_space<vmem>>, vector<8x16x128xf32>
    %240 = vector.extract_strided_slice %6 {offsets = [25, 0], sizes = [1, 128], strides = [1, 1]} : vector<49x128xf32> to vector<1x128xf32>
    %241 = vector.shape_cast %240 : vector<1x128xf32> to vector<128xf32>
    %242 = vector.shape_cast %241 : vector<128xf32> to vector<1x1x128xf32>
    %243 = vector.broadcast %242 : vector<1x1x128xf32> to vector<8x16x128xf32>
    %244 = arith.mulf %239, %243 : vector<8x16x128xf32>
    %245 = arith.addf %236, %244 : vector<8x16x128xf32>
    %c6_i32_85 = arith.constant 6 : i32
    %246 = arith.addi %10, %c6_i32_85 : i32
    %247 = arith.index_cast %246 : i32 to index
    %c10_86 = arith.constant 10 : index
    %c0_87 = arith.constant 0 : index
    %248 = vector.load %arg8[%247, %c10_86, %c0_87] : memref<32x28x128xf32, #tpu.memory_space<vmem>>, vector<8x16x128xf32>
    %249 = vector.extract_strided_slice %6 {offsets = [26, 0], sizes = [1, 128], strides = [1, 1]} : vector<49x128xf32> to vector<1x128xf32>
    %250 = vector.shape_cast %249 : vector<1x128xf32> to vector<128xf32>
    %251 = vector.shape_cast %250 : vector<128xf32> to vector<1x1x128xf32>
    %252 = vector.broadcast %251 : vector<1x1x128xf32> to vector<8x16x128xf32>
    %253 = arith.mulf %248, %252 : vector<8x16x128xf32>
    %254 = arith.addf %245, %253 : vector<8x16x128xf32>
    %c6_i32_88 = arith.constant 6 : i32
    %255 = arith.addi %10, %c6_i32_88 : i32
    %256 = arith.index_cast %255 : i32 to index
    %c12_89 = arith.constant 12 : index
    %c0_90 = arith.constant 0 : index
    %257 = vector.load %arg8[%256, %c12_89, %c0_90] : memref<32x28x128xf32, #tpu.memory_space<vmem>>, vector<8x16x128xf32>
    %258 = vector.extract_strided_slice %6 {offsets = [27, 0], sizes = [1, 128], strides = [1, 1]} : vector<49x128xf32> to vector<1x128xf32>
    %259 = vector.shape_cast %258 : vector<1x128xf32> to vector<128xf32>
    %260 = vector.shape_cast %259 : vector<128xf32> to vector<1x1x128xf32>
    %261 = vector.broadcast %260 : vector<1x1x128xf32> to vector<8x16x128xf32>
    %262 = arith.mulf %257, %261 : vector<8x16x128xf32>
    %263 = arith.addf %254, %262 : vector<8x16x128xf32>
    %c8_i32_91 = arith.constant 8 : i32
    %264 = arith.addi %10, %c8_i32_91 : i32
    %265 = arith.index_cast %264 : i32 to index
    %c0_92 = arith.constant 0 : index
    %c0_93 = arith.constant 0 : index
    %266 = vector.load %arg8[%265, %c0_92, %c0_93] : memref<32x28x128xf32, #tpu.memory_space<vmem>>, vector<8x16x128xf32>
    %267 = vector.extract_strided_slice %6 {offsets = [28, 0], sizes = [1, 128], strides = [1, 1]} : vector<49x128xf32> to vector<1x128xf32>
    %268 = vector.shape_cast %267 : vector<1x128xf32> to vector<128xf32>
    %269 = vector.shape_cast %268 : vector<128xf32> to vector<1x1x128xf32>
    %270 = vector.broadcast %269 : vector<1x1x128xf32> to vector<8x16x128xf32>
    %271 = arith.mulf %266, %270 : vector<8x16x128xf32>
    %272 = arith.addf %263, %271 : vector<8x16x128xf32>
    %c8_i32_94 = arith.constant 8 : i32
    %273 = arith.addi %10, %c8_i32_94 : i32
    %274 = arith.index_cast %273 : i32 to index
    %c2_95 = arith.constant 2 : index
    %c0_96 = arith.constant 0 : index
    %275 = vector.load %arg8[%274, %c2_95, %c0_96] : memref<32x28x128xf32, #tpu.memory_space<vmem>>, vector<8x16x128xf32>
    %276 = vector.extract_strided_slice %6 {offsets = [29, 0], sizes = [1, 128], strides = [1, 1]} : vector<49x128xf32> to vector<1x128xf32>
    %277 = vector.shape_cast %276 : vector<1x128xf32> to vector<128xf32>
    %278 = vector.shape_cast %277 : vector<128xf32> to vector<1x1x128xf32>
    %279 = vector.broadcast %278 : vector<1x1x128xf32> to vector<8x16x128xf32>
    %280 = arith.mulf %275, %279 : vector<8x16x128xf32>
    %281 = arith.addf %272, %280 : vector<8x16x128xf32>
    %c8_i32_97 = arith.constant 8 : i32
    %282 = arith.addi %10, %c8_i32_97 : i32
    %283 = arith.index_cast %282 : i32 to index
    %c4_98 = arith.constant 4 : index
    %c0_99 = arith.constant 0 : index
    %284 = vector.load %arg8[%283, %c4_98, %c0_99] : memref<32x28x128xf32, #tpu.memory_space<vmem>>, vector<8x16x128xf32>
    %285 = vector.extract_strided_slice %6 {offsets = [30, 0], sizes = [1, 128], strides = [1, 1]} : vector<49x128xf32> to vector<1x128xf32>
    %286 = vector.shape_cast %285 : vector<1x128xf32> to vector<128xf32>
    %287 = vector.shape_cast %286 : vector<128xf32> to vector<1x1x128xf32>
    %288 = vector.broadcast %287 : vector<1x1x128xf32> to vector<8x16x128xf32>
    %289 = arith.mulf %284, %288 : vector<8x16x128xf32>
    %290 = arith.addf %281, %289 : vector<8x16x128xf32>
    %c8_i32_100 = arith.constant 8 : i32
    %291 = arith.addi %10, %c8_i32_100 : i32
    %292 = arith.index_cast %291 : i32 to index
    %c6_101 = arith.constant 6 : index
    %c0_102 = arith.constant 0 : index
    %293 = vector.load %arg8[%292, %c6_101, %c0_102] : memref<32x28x128xf32, #tpu.memory_space<vmem>>, vector<8x16x128xf32>
    %294 = vector.extract_strided_slice %6 {offsets = [31, 0], sizes = [1, 128], strides = [1, 1]} : vector<49x128xf32> to vector<1x128xf32>
    %295 = vector.shape_cast %294 : vector<1x128xf32> to vector<128xf32>
    %296 = vector.shape_cast %295 : vector<128xf32> to vector<1x1x128xf32>
    %297 = vector.broadcast %296 : vector<1x1x128xf32> to vector<8x16x128xf32>
    %298 = arith.mulf %293, %297 : vector<8x16x128xf32>
    %299 = arith.addf %290, %298 : vector<8x16x128xf32>
    %c8_i32_103 = arith.constant 8 : i32
    %300 = arith.addi %10, %c8_i32_103 : i32
    %301 = arith.index_cast %300 : i32 to index
    %c8_104 = arith.constant 8 : index
    %c0_105 = arith.constant 0 : index
    %302 = vector.load %arg8[%301, %c8_104, %c0_105] : memref<32x28x128xf32, #tpu.memory_space<vmem>>, vector<8x16x128xf32>
    %303 = vector.extract_strided_slice %6 {offsets = [32, 0], sizes = [1, 128], strides = [1, 1]} : vector<49x128xf32> to vector<1x128xf32>
    %304 = vector.shape_cast %303 : vector<1x128xf32> to vector<128xf32>
    %305 = vector.shape_cast %304 : vector<128xf32> to vector<1x1x128xf32>
    %306 = vector.broadcast %305 : vector<1x1x128xf32> to vector<8x16x128xf32>
    %307 = arith.mulf %302, %306 : vector<8x16x128xf32>
    %308 = arith.addf %299, %307 : vector<8x16x128xf32>
    %c8_i32_106 = arith.constant 8 : i32
    %309 = arith.addi %10, %c8_i32_106 : i32
    %310 = arith.index_cast %309 : i32 to index
    %c10_107 = arith.constant 10 : index
    %c0_108 = arith.constant 0 : index
    %311 = vector.load %arg8[%310, %c10_107, %c0_108] : memref<32x28x128xf32, #tpu.memory_space<vmem>>, vector<8x16x128xf32>
    %312 = vector.extract_strided_slice %6 {offsets = [33, 0], sizes = [1, 128], strides = [1, 1]} : vector<49x128xf32> to vector<1x128xf32>
    %313 = vector.shape_cast %312 : vector<1x128xf32> to vector<128xf32>
    %314 = vector.shape_cast %313 : vector<128xf32> to vector<1x1x128xf32>
    %315 = vector.broadcast %314 : vector<1x1x128xf32> to vector<8x16x128xf32>
    %316 = arith.mulf %311, %315 : vector<8x16x128xf32>
    %317 = arith.addf %308, %316 : vector<8x16x128xf32>
    %c8_i32_109 = arith.constant 8 : i32
    %318 = arith.addi %10, %c8_i32_109 : i32
    %319 = arith.index_cast %318 : i32 to index
    %c12_110 = arith.constant 12 : index
    %c0_111 = arith.constant 0 : index
    %320 = vector.load %arg8[%319, %c12_110, %c0_111] : memref<32x28x128xf32, #tpu.memory_space<vmem>>, vector<8x16x128xf32>
    %321 = vector.extract_strided_slice %6 {offsets = [34, 0], sizes = [1, 128], strides = [1, 1]} : vector<49x128xf32> to vector<1x128xf32>
    %322 = vector.shape_cast %321 : vector<1x128xf32> to vector<128xf32>
    %323 = vector.shape_cast %322 : vector<128xf32> to vector<1x1x128xf32>
    %324 = vector.broadcast %323 : vector<1x1x128xf32> to vector<8x16x128xf32>
    %325 = arith.mulf %320, %324 : vector<8x16x128xf32>
    %326 = arith.addf %317, %325 : vector<8x16x128xf32>
    %c10_i32 = arith.constant 10 : i32
    %327 = arith.addi %10, %c10_i32 : i32
    %328 = arith.index_cast %327 : i32 to index
    %c0_112 = arith.constant 0 : index
    %c0_113 = arith.constant 0 : index
    %329 = vector.load %arg8[%328, %c0_112, %c0_113] : memref<32x28x128xf32, #tpu.memory_space<vmem>>, vector<8x16x128xf32>
    %330 = vector.extract_strided_slice %6 {offsets = [35, 0], sizes = [1, 128], strides = [1, 1]} : vector<49x128xf32> to vector<1x128xf32>
    %331 = vector.shape_cast %330 : vector<1x128xf32> to vector<128xf32>
    %332 = vector.shape_cast %331 : vector<128xf32> to vector<1x1x128xf32>
    %333 = vector.broadcast %332 : vector<1x1x128xf32> to vector<8x16x128xf32>
    %334 = arith.mulf %329, %333 : vector<8x16x128xf32>
    %335 = arith.addf %326, %334 : vector<8x16x128xf32>
    %c10_i32_114 = arith.constant 10 : i32
    %336 = arith.addi %10, %c10_i32_114 : i32
    %337 = arith.index_cast %336 : i32 to index
    %c2_115 = arith.constant 2 : index
    %c0_116 = arith.constant 0 : index
    %338 = vector.load %arg8[%337, %c2_115, %c0_116] : memref<32x28x128xf32, #tpu.memory_space<vmem>>, vector<8x16x128xf32>
    %339 = vector.extract_strided_slice %6 {offsets = [36, 0], sizes = [1, 128], strides = [1, 1]} : vector<49x128xf32> to vector<1x128xf32>
    %340 = vector.shape_cast %339 : vector<1x128xf32> to vector<128xf32>
    %341 = vector.shape_cast %340 : vector<128xf32> to vector<1x1x128xf32>
    %342 = vector.broadcast %341 : vector<1x1x128xf32> to vector<8x16x128xf32>
    %343 = arith.mulf %338, %342 : vector<8x16x128xf32>
    %344 = arith.addf %335, %343 : vector<8x16x128xf32>
    %c10_i32_117 = arith.constant 10 : i32
    %345 = arith.addi %10, %c10_i32_117 : i32
    %346 = arith.index_cast %345 : i32 to index
    %c4_118 = arith.constant 4 : index
    %c0_119 = arith.constant 0 : index
    %347 = vector.load %arg8[%346, %c4_118, %c0_119] : memref<32x28x128xf32, #tpu.memory_space<vmem>>, vector<8x16x128xf32>
    %348 = vector.extract_strided_slice %6 {offsets = [37, 0], sizes = [1, 128], strides = [1, 1]} : vector<49x128xf32> to vector<1x128xf32>
    %349 = vector.shape_cast %348 : vector<1x128xf32> to vector<128xf32>
    %350 = vector.shape_cast %349 : vector<128xf32> to vector<1x1x128xf32>
    %351 = vector.broadcast %350 : vector<1x1x128xf32> to vector<8x16x128xf32>
    %352 = arith.mulf %347, %351 : vector<8x16x128xf32>
    %353 = arith.addf %344, %352 : vector<8x16x128xf32>
    %c10_i32_120 = arith.constant 10 : i32
    %354 = arith.addi %10, %c10_i32_120 : i32
    %355 = arith.index_cast %354 : i32 to index
    %c6_121 = arith.constant 6 : index
    %c0_122 = arith.constant 0 : index
    %356 = vector.load %arg8[%355, %c6_121, %c0_122] : memref<32x28x128xf32, #tpu.memory_space<vmem>>, vector<8x16x128xf32>
    %357 = vector.extract_strided_slice %6 {offsets = [38, 0], sizes = [1, 128], strides = [1, 1]} : vector<49x128xf32> to vector<1x128xf32>
    %358 = vector.shape_cast %357 : vector<1x128xf32> to vector<128xf32>
    %359 = vector.shape_cast %358 : vector<128xf32> to vector<1x1x128xf32>
    %360 = vector.broadcast %359 : vector<1x1x128xf32> to vector<8x16x128xf32>
    %361 = arith.mulf %356, %360 : vector<8x16x128xf32>
    %362 = arith.addf %353, %361 : vector<8x16x128xf32>
    %c10_i32_123 = arith.constant 10 : i32
    %363 = arith.addi %10, %c10_i32_123 : i32
    %364 = arith.index_cast %363 : i32 to index
    %c8_124 = arith.constant 8 : index
    %c0_125 = arith.constant 0 : index
    %365 = vector.load %arg8[%364, %c8_124, %c0_125] : memref<32x28x128xf32, #tpu.memory_space<vmem>>, vector<8x16x128xf32>
    %366 = vector.extract_strided_slice %6 {offsets = [39, 0], sizes = [1, 128], strides = [1, 1]} : vector<49x128xf32> to vector<1x128xf32>
    %367 = vector.shape_cast %366 : vector<1x128xf32> to vector<128xf32>
    %368 = vector.shape_cast %367 : vector<128xf32> to vector<1x1x128xf32>
    %369 = vector.broadcast %368 : vector<1x1x128xf32> to vector<8x16x128xf32>
    %370 = arith.mulf %365, %369 : vector<8x16x128xf32>
    %371 = arith.addf %362, %370 : vector<8x16x128xf32>
    %c10_i32_126 = arith.constant 10 : i32
    %372 = arith.addi %10, %c10_i32_126 : i32
    %373 = arith.index_cast %372 : i32 to index
    %c10_127 = arith.constant 10 : index
    %c0_128 = arith.constant 0 : index
    %374 = vector.load %arg8[%373, %c10_127, %c0_128] : memref<32x28x128xf32, #tpu.memory_space<vmem>>, vector<8x16x128xf32>
    %375 = vector.extract_strided_slice %6 {offsets = [40, 0], sizes = [1, 128], strides = [1, 1]} : vector<49x128xf32> to vector<1x128xf32>
    %376 = vector.shape_cast %375 : vector<1x128xf32> to vector<128xf32>
    %377 = vector.shape_cast %376 : vector<128xf32> to vector<1x1x128xf32>
    %378 = vector.broadcast %377 : vector<1x1x128xf32> to vector<8x16x128xf32>
    %379 = arith.mulf %374, %378 : vector<8x16x128xf32>
    %380 = arith.addf %371, %379 : vector<8x16x128xf32>
    %c10_i32_129 = arith.constant 10 : i32
    %381 = arith.addi %10, %c10_i32_129 : i32
    %382 = arith.index_cast %381 : i32 to index
    %c12_130 = arith.constant 12 : index
    %c0_131 = arith.constant 0 : index
    %383 = vector.load %arg8[%382, %c12_130, %c0_131] : memref<32x28x128xf32, #tpu.memory_space<vmem>>, vector<8x16x128xf32>
    %384 = vector.extract_strided_slice %6 {offsets = [41, 0], sizes = [1, 128], strides = [1, 1]} : vector<49x128xf32> to vector<1x128xf32>
    %385 = vector.shape_cast %384 : vector<1x128xf32> to vector<128xf32>
    %386 = vector.shape_cast %385 : vector<128xf32> to vector<1x1x128xf32>
    %387 = vector.broadcast %386 : vector<1x1x128xf32> to vector<8x16x128xf32>
    %388 = arith.mulf %383, %387 : vector<8x16x128xf32>
    %389 = arith.addf %380, %388 : vector<8x16x128xf32>
    %c12_i32 = arith.constant 12 : i32
    %390 = arith.addi %10, %c12_i32 : i32
    %391 = arith.index_cast %390 : i32 to index
    %c0_132 = arith.constant 0 : index
    %c0_133 = arith.constant 0 : index
    %392 = vector.load %arg8[%391, %c0_132, %c0_133] : memref<32x28x128xf32, #tpu.memory_space<vmem>>, vector<8x16x128xf32>
    %393 = vector.extract_strided_slice %6 {offsets = [42, 0], sizes = [1, 128], strides = [1, 1]} : vector<49x128xf32> to vector<1x128xf32>
    %394 = vector.shape_cast %393 : vector<1x128xf32> to vector<128xf32>
    %395 = vector.shape_cast %394 : vector<128xf32> to vector<1x1x128xf32>
    %396 = vector.broadcast %395 : vector<1x1x128xf32> to vector<8x16x128xf32>
    %397 = arith.mulf %392, %396 : vector<8x16x128xf32>
    %398 = arith.addf %389, %397 : vector<8x16x128xf32>
    %c12_i32_134 = arith.constant 12 : i32
    %399 = arith.addi %10, %c12_i32_134 : i32
    %400 = arith.index_cast %399 : i32 to index
    %c2_135 = arith.constant 2 : index
    %c0_136 = arith.constant 0 : index
    %401 = vector.load %arg8[%400, %c2_135, %c0_136] : memref<32x28x128xf32, #tpu.memory_space<vmem>>, vector<8x16x128xf32>
    %402 = vector.extract_strided_slice %6 {offsets = [43, 0], sizes = [1, 128], strides = [1, 1]} : vector<49x128xf32> to vector<1x128xf32>
    %403 = vector.shape_cast %402 : vector<1x128xf32> to vector<128xf32>
    %404 = vector.shape_cast %403 : vector<128xf32> to vector<1x1x128xf32>
    %405 = vector.broadcast %404 : vector<1x1x128xf32> to vector<8x16x128xf32>
    %406 = arith.mulf %401, %405 : vector<8x16x128xf32>
    %407 = arith.addf %398, %406 : vector<8x16x128xf32>
    %c12_i32_137 = arith.constant 12 : i32
    %408 = arith.addi %10, %c12_i32_137 : i32
    %409 = arith.index_cast %408 : i32 to index
    %c4_138 = arith.constant 4 : index
    %c0_139 = arith.constant 0 : index
    %410 = vector.load %arg8[%409, %c4_138, %c0_139] : memref<32x28x128xf32, #tpu.memory_space<vmem>>, vector<8x16x128xf32>
    %411 = vector.extract_strided_slice %6 {offsets = [44, 0], sizes = [1, 128], strides = [1, 1]} : vector<49x128xf32> to vector<1x128xf32>
    %412 = vector.shape_cast %411 : vector<1x128xf32> to vector<128xf32>
    %413 = vector.shape_cast %412 : vector<128xf32> to vector<1x1x128xf32>
    %414 = vector.broadcast %413 : vector<1x1x128xf32> to vector<8x16x128xf32>
    %415 = arith.mulf %410, %414 : vector<8x16x128xf32>
    %416 = arith.addf %407, %415 : vector<8x16x128xf32>
    %c12_i32_140 = arith.constant 12 : i32
    %417 = arith.addi %10, %c12_i32_140 : i32
    %418 = arith.index_cast %417 : i32 to index
    %c6_141 = arith.constant 6 : index
    %c0_142 = arith.constant 0 : index
    %419 = vector.load %arg8[%418, %c6_141, %c0_142] : memref<32x28x128xf32, #tpu.memory_space<vmem>>, vector<8x16x128xf32>
    %420 = vector.extract_strided_slice %6 {offsets = [45, 0], sizes = [1, 128], strides = [1, 1]} : vector<49x128xf32> to vector<1x128xf32>
    %421 = vector.shape_cast %420 : vector<1x128xf32> to vector<128xf32>
    %422 = vector.shape_cast %421 : vector<128xf32> to vector<1x1x128xf32>
    %423 = vector.broadcast %422 : vector<1x1x128xf32> to vector<8x16x128xf32>
    %424 = arith.mulf %419, %423 : vector<8x16x128xf32>
    %425 = arith.addf %416, %424 : vector<8x16x128xf32>
    %c12_i32_143 = arith.constant 12 : i32
    %426 = arith.addi %10, %c12_i32_143 : i32
    %427 = arith.index_cast %426 : i32 to index
    %c8_144 = arith.constant 8 : index
    %c0_145 = arith.constant 0 : index
    %428 = vector.load %arg8[%427, %c8_144, %c0_145] : memref<32x28x128xf32, #tpu.memory_space<vmem>>, vector<8x16x128xf32>
    %429 = vector.extract_strided_slice %6 {offsets = [46, 0], sizes = [1, 128], strides = [1, 1]} : vector<49x128xf32> to vector<1x128xf32>
    %430 = vector.shape_cast %429 : vector<1x128xf32> to vector<128xf32>
    %431 = vector.shape_cast %430 : vector<128xf32> to vector<1x1x128xf32>
    %432 = vector.broadcast %431 : vector<1x1x128xf32> to vector<8x16x128xf32>
    %433 = arith.mulf %428, %432 : vector<8x16x128xf32>
    %434 = arith.addf %425, %433 : vector<8x16x128xf32>
    %c12_i32_146 = arith.constant 12 : i32
    %435 = arith.addi %10, %c12_i32_146 : i32
    %436 = arith.index_cast %435 : i32 to index
    %c10_147 = arith.constant 10 : index
    %c0_148 = arith.constant 0 : index
    %437 = vector.load %arg8[%436, %c10_147, %c0_148] : memref<32x28x128xf32, #tpu.memory_space<vmem>>, vector<8x16x128xf32>
    %438 = vector.extract_strided_slice %6 {offsets = [47, 0], sizes = [1, 128], strides = [1, 1]} : vector<49x128xf32> to vector<1x128xf32>
    %439 = vector.shape_cast %438 : vector<1x128xf32> to vector<128xf32>
    %440 = vector.shape_cast %439 : vector<128xf32> to vector<1x1x128xf32>
    %441 = vector.broadcast %440 : vector<1x1x128xf32> to vector<8x16x128xf32>
    %442 = arith.mulf %437, %441 : vector<8x16x128xf32>
    %443 = arith.addf %434, %442 : vector<8x16x128xf32>
    %c12_i32_149 = arith.constant 12 : i32
    %444 = arith.addi %10, %c12_i32_149 : i32
    %445 = arith.index_cast %444 : i32 to index
    %c12_150 = arith.constant 12 : index
    %c0_151 = arith.constant 0 : index
    %446 = vector.load %arg8[%445, %c12_150, %c0_151] : memref<32x28x128xf32, #tpu.memory_space<vmem>>, vector<8x16x128xf32>
    %447 = vector.extract_strided_slice %6 {offsets = [48, 0], sizes = [1, 128], strides = [1, 1]} : vector<49x128xf32> to vector<1x128xf32>
    %448 = vector.shape_cast %447 : vector<1x128xf32> to vector<128xf32>
    %449 = vector.shape_cast %448 : vector<128xf32> to vector<1x1x128xf32>
    %450 = vector.broadcast %449 : vector<1x1x128xf32> to vector<8x16x128xf32>
    %451 = arith.mulf %446, %450 : vector<8x16x128xf32>
    %452 = arith.addf %443, %451 : vector<8x16x128xf32>
    %453 = vector.shape_cast %8 : vector<128xf32> to vector<1x1x128xf32>
    %454 = vector.broadcast %453 : vector<1x1x128xf32> to vector<8x16x128xf32>
    %455 = arith.addf %452, %454 : vector<8x16x128xf32>
    %c0_152 = arith.constant 0 : index
    %456 = arith.index_cast %10 : i32 to index
    %c0_153 = arith.constant 0 : index
    %c0_154 = arith.constant 0 : index
    %457 = vector.load %arg7[%c0_152, %456, %c0_153, %c0_154] : memref<1x16x16x128xf32, #tpu.memory_space<vmem>>, vector<1x8x16x128xf32>
    %458 = vector.shape_cast %457 : vector<1x8x16x128xf32> to vector<8x16x128xf32>
    %459 = vector.shape_cast %455 : vector<8x16x128xf32> to vector<1x8x16x128xf32>
    tpu.vector_store %arg7[%c0_152, %456, %c0_153, %c0_154], %459 {strides = array<i32>} : memref<1x16x16x128xf32, #tpu.memory_space<vmem>>, vector<1x8x16x128xf32>,
    %c1_i32 = arith.constant 1 : i32
    %c8_i32_155 = arith.constant 8 : i32
    %460 = arith.muli %c1_i32, %c8_i32_155 : i32
    %461 = tpu.assume_multiple %460, 8 : i32
    %cst_156 = arith.constant 0.000000e+00 : f32
    %462 = vector.broadcast %cst_156 : f32 to vector<8x16x128xf32>
    %c0_i32_157 = arith.constant 0 : i32
    %463 = arith.addi %461, %c0_i32_157 : i32
    %464 = arith.index_cast %463 : i32 to index
    %c0_158 = arith.constant 0 : index
    %c0_159 = arith.constant 0 : index
    %465 = vector.load %arg8[%464, %c0_158, %c0_159] : memref<32x28x128xf32, #tpu.memory_space<vmem>>, vector<8x16x128xf32>
    %466 = vector.extract_strided_slice %6 {offsets = [0, 0], sizes = [1, 128], strides = [1, 1]} : vector<49x128xf32> to vector<1x128xf32>
    %467 = vector.shape_cast %466 : vector<1x128xf32> to vector<128xf32>
    %468 = vector.shape_cast %467 : vector<128xf32> to vector<1x1x128xf32>
    %469 = vector.broadcast %468 : vector<1x1x128xf32> to vector<8x16x128xf32>
    %470 = arith.mulf %465, %469 : vector<8x16x128xf32>
    %471 = arith.addf %462, %470 : vector<8x16x128xf32>
    %c0_i32_160 = arith.constant 0 : i32
    %472 = arith.addi %461, %c0_i32_160 : i32
    %473 = arith.index_cast %472 : i32 to index
    %c2_161 = arith.constant 2 : index
    %c0_162 = arith.constant 0 : index
    %474 = vector.load %arg8[%473, %c2_161, %c0_162] : memref<32x28x128xf32, #tpu.memory_space<vmem>>, vector<8x16x128xf32>
    %475 = vector.extract_strided_slice %6 {offsets = [1, 0], sizes = [1, 128], strides = [1, 1]} : vector<49x128xf32> to vector<1x128xf32>
    %476 = vector.shape_cast %475 : vector<1x128xf32> to vector<128xf32>
    %477 = vector.shape_cast %476 : vector<128xf32> to vector<1x1x128xf32>
    %478 = vector.broadcast %477 : vector<1x1x128xf32> to vector<8x16x128xf32>
    %479 = arith.mulf %474, %478 : vector<8x16x128xf32>
    %480 = arith.addf %471, %479 : vector<8x16x128xf32>
    %c0_i32_163 = arith.constant 0 : i32
    %481 = arith.addi %461, %c0_i32_163 : i32
    %482 = arith.index_cast %481 : i32 to index
    %c4_164 = arith.constant 4 : index
    %c0_165 = arith.constant 0 : index
    %483 = vector.load %arg8[%482, %c4_164, %c0_165] : memref<32x28x128xf32, #tpu.memory_space<vmem>>, vector<8x16x128xf32>
    %484 = vector.extract_strided_slice %6 {offsets = [2, 0], sizes = [1, 128], strides = [1, 1]} : vector<49x128xf32> to vector<1x128xf32>
    %485 = vector.shape_cast %484 : vector<1x128xf32> to vector<128xf32>
    %486 = vector.shape_cast %485 : vector<128xf32> to vector<1x1x128xf32>
    %487 = vector.broadcast %486 : vector<1x1x128xf32> to vector<8x16x128xf32>
    %488 = arith.mulf %483, %487 : vector<8x16x128xf32>
    %489 = arith.addf %480, %488 : vector<8x16x128xf32>
    %c0_i32_166 = arith.constant 0 : i32
    %490 = arith.addi %461, %c0_i32_166 : i32
    %491 = arith.index_cast %490 : i32 to index
    %c6_167 = arith.constant 6 : index
    %c0_168 = arith.constant 0 : index
    %492 = vector.load %arg8[%491, %c6_167, %c0_168] : memref<32x28x128xf32, #tpu.memory_space<vmem>>, vector<8x16x128xf32>
    %493 = vector.extract_strided_slice %6 {offsets = [3, 0], sizes = [1, 128], strides = [1, 1]} : vector<49x128xf32> to vector<1x128xf32>
    %494 = vector.shape_cast %493 : vector<1x128xf32> to vector<128xf32>
    %495 = vector.shape_cast %494 : vector<128xf32> to vector<1x1x128xf32>
    %496 = vector.broadcast %495 : vector<1x1x128xf32> to vector<8x16x128xf32>
    %497 = arith.mulf %492, %496 : vector<8x16x128xf32>
    %498 = arith.addf %489, %497 : vector<8x16x128xf32>
    %c0_i32_169 = arith.constant 0 : i32
    %499 = arith.addi %461, %c0_i32_169 : i32
    %500 = arith.index_cast %499 : i32 to index
    %c8_170 = arith.constant 8 : index
    %c0_171 = arith.constant 0 : index
    %501 = vector.load %arg8[%500, %c8_170, %c0_171] : memref<32x28x128xf32, #tpu.memory_space<vmem>>, vector<8x16x128xf32>
    %502 = vector.extract_strided_slice %6 {offsets = [4, 0], sizes = [1, 128], strides = [1, 1]} : vector<49x128xf32> to vector<1x128xf32>
    %503 = vector.shape_cast %502 : vector<1x128xf32> to vector<128xf32>
    %504 = vector.shape_cast %503 : vector<128xf32> to vector<1x1x128xf32>
    %505 = vector.broadcast %504 : vector<1x1x128xf32> to vector<8x16x128xf32>
    %506 = arith.mulf %501, %505 : vector<8x16x128xf32>
    %507 = arith.addf %498, %506 : vector<8x16x128xf32>
    %c0_i32_172 = arith.constant 0 : i32
    %508 = arith.addi %461, %c0_i32_172 : i32
    %509 = arith.index_cast %508 : i32 to index
    %c10_173 = arith.constant 10 : index
    %c0_174 = arith.constant 0 : index
    %510 = vector.load %arg8[%509, %c10_173, %c0_174] : memref<32x28x128xf32, #tpu.memory_space<vmem>>, vector<8x16x128xf32>
    %511 = vector.extract_strided_slice %6 {offsets = [5, 0], sizes = [1, 128], strides = [1, 1]} : vector<49x128xf32> to vector<1x128xf32>
    %512 = vector.shape_cast %511 : vector<1x128xf32> to vector<128xf32>
    %513 = vector.shape_cast %512 : vector<128xf32> to vector<1x1x128xf32>
    %514 = vector.broadcast %513 : vector<1x1x128xf32> to vector<8x16x128xf32>
    %515 = arith.mulf %510, %514 : vector<8x16x128xf32>
    %516 = arith.addf %507, %515 : vector<8x16x128xf32>
    %c0_i32_175 = arith.constant 0 : i32
    %517 = arith.addi %461, %c0_i32_175 : i32
    %518 = arith.index_cast %517 : i32 to index
    %c12_176 = arith.constant 12 : index
    %c0_177 = arith.constant 0 : index
    %519 = vector.load %arg8[%518, %c12_176, %c0_177] : memref<32x28x128xf32, #tpu.memory_space<vmem>>, vector<8x16x128xf32>
    %520 = vector.extract_strided_slice %6 {offsets = [6, 0], sizes = [1, 128], strides = [1, 1]} : vector<49x128xf32> to vector<1x128xf32>
    %521 = vector.shape_cast %520 : vector<1x128xf32> to vector<128xf32>
    %522 = vector.shape_cast %521 : vector<128xf32> to vector<1x1x128xf32>
    %523 = vector.broadcast %522 : vector<1x1x128xf32> to vector<8x16x128xf32>
    %524 = arith.mulf %519, %523 : vector<8x16x128xf32>
    %525 = arith.addf %516, %524 : vector<8x16x128xf32>
    %c2_i32_178 = arith.constant 2 : i32
    %526 = arith.addi %461, %c2_i32_178 : i32
    %527 = arith.index_cast %526 : i32 to index
    %c0_179 = arith.constant 0 : index
    %c0_180 = arith.constant 0 : index
    %528 = vector.load %arg8[%527, %c0_179, %c0_180] : memref<32x28x128xf32, #tpu.memory_space<vmem>>, vector<8x16x128xf32>
    %529 = vector.extract_strided_slice %6 {offsets = [7, 0], sizes = [1, 128], strides = [1, 1]} : vector<49x128xf32> to vector<1x128xf32>
    %530 = vector.shape_cast %529 : vector<1x128xf32> to vector<128xf32>
    %531 = vector.shape_cast %530 : vector<128xf32> to vector<1x1x128xf32>
    %532 = vector.broadcast %531 : vector<1x1x128xf32> to vector<8x16x128xf32>
    %533 = arith.mulf %528, %532 : vector<8x16x128xf32>
    %534 = arith.addf %525, %533 : vector<8x16x128xf32>
    %c2_i32_181 = arith.constant 2 : i32
    %535 = arith.addi %461, %c2_i32_181 : i32
    %536 = arith.index_cast %535 : i32 to index
    %c2_182 = arith.constant 2 : index
    %c0_183 = arith.constant 0 : index
    %537 = vector.load %arg8[%536, %c2_182, %c0_183] : memref<32x28x128xf32, #tpu.memory_space<vmem>>, vector<8x16x128xf32>
    %538 = vector.extract_strided_slice %6 {offsets = [8, 0], sizes = [1, 128], strides = [1, 1]} : vector<49x128xf32> to vector<1x128xf32>
    %539 = vector.shape_cast %538 : vector<1x128xf32> to vector<128xf32>
    %540 = vector.shape_cast %539 : vector<128xf32> to vector<1x1x128xf32>
    %541 = vector.broadcast %540 : vector<1x1x128xf32> to vector<8x16x128xf32>
    %542 = arith.mulf %537, %541 : vector<8x16x128xf32>
    %543 = arith.addf %534, %542 : vector<8x16x128xf32>
    %c2_i32_184 = arith.constant 2 : i32
    %544 = arith.addi %461, %c2_i32_184 : i32
    %545 = arith.index_cast %544 : i32 to index
    %c4_185 = arith.constant 4 : index
    %c0_186 = arith.constant 0 : index
    %546 = vector.load %arg8[%545, %c4_185, %c0_186] : memref<32x28x128xf32, #tpu.memory_space<vmem>>, vector<8x16x128xf32>
    %547 = vector.extract_strided_slice %6 {offsets = [9, 0], sizes = [1, 128], strides = [1, 1]} : vector<49x128xf32> to vector<1x128xf32>
    %548 = vector.shape_cast %547 : vector<1x128xf32> to vector<128xf32>
    %549 = vector.shape_cast %548 : vector<128xf32> to vector<1x1x128xf32>
    %550 = vector.broadcast %549 : vector<1x1x128xf32> to vector<8x16x128xf32>
    %551 = arith.mulf %546, %550 : vector<8x16x128xf32>
    %552 = arith.addf %543, %551 : vector<8x16x128xf32>
    %c2_i32_187 = arith.constant 2 : i32
    %553 = arith.addi %461, %c2_i32_187 : i32
    %554 = arith.index_cast %553 : i32 to index
    %c6_188 = arith.constant 6 : index
    %c0_189 = arith.constant 0 : index
    %555 = vector.load %arg8[%554, %c6_188, %c0_189] : memref<32x28x128xf32, #tpu.memory_space<vmem>>, vector<8x16x128xf32>
    %556 = vector.extract_strided_slice %6 {offsets = [10, 0], sizes = [1, 128], strides = [1, 1]} : vector<49x128xf32> to vector<1x128xf32>
    %557 = vector.shape_cast %556 : vector<1x128xf32> to vector<128xf32>
    %558 = vector.shape_cast %557 : vector<128xf32> to vector<1x1x128xf32>
    %559 = vector.broadcast %558 : vector<1x1x128xf32> to vector<8x16x128xf32>
    %560 = arith.mulf %555, %559 : vector<8x16x128xf32>
    %561 = arith.addf %552, %560 : vector<8x16x128xf32>
    %c2_i32_190 = arith.constant 2 : i32
    %562 = arith.addi %461, %c2_i32_190 : i32
    %563 = arith.index_cast %562 : i32 to index
    %c8_191 = arith.constant 8 : index
    %c0_192 = arith.constant 0 : index
    %564 = vector.load %arg8[%563, %c8_191, %c0_192] : memref<32x28x128xf32, #tpu.memory_space<vmem>>, vector<8x16x128xf32>
    %565 = vector.extract_strided_slice %6 {offsets = [11, 0], sizes = [1, 128], strides = [1, 1]} : vector<49x128xf32> to vector<1x128xf32>
    %566 = vector.shape_cast %565 : vector<1x128xf32> to vector<128xf32>
    %567 = vector.shape_cast %566 : vector<128xf32> to vector<1x1x128xf32>
    %568 = vector.broadcast %567 : vector<1x1x128xf32> to vector<8x16x128xf32>
    %569 = arith.mulf %564, %568 : vector<8x16x128xf32>
    %570 = arith.addf %561, %569 : vector<8x16x128xf32>
    %c2_i32_193 = arith.constant 2 : i32
    %571 = arith.addi %461, %c2_i32_193 : i32
    %572 = arith.index_cast %571 : i32 to index
    %c10_194 = arith.constant 10 : index
    %c0_195 = arith.constant 0 : index
    %573 = vector.load %arg8[%572, %c10_194, %c0_195] : memref<32x28x128xf32, #tpu.memory_space<vmem>>, vector<8x16x128xf32>
    %574 = vector.extract_strided_slice %6 {offsets = [12, 0], sizes = [1, 128], strides = [1, 1]} : vector<49x128xf32> to vector<1x128xf32>
    %575 = vector.shape_cast %574 : vector<1x128xf32> to vector<128xf32>
    %576 = vector.shape_cast %575 : vector<128xf32> to vector<1x1x128xf32>
    %577 = vector.broadcast %576 : vector<1x1x128xf32> to vector<8x16x128xf32>
    %578 = arith.mulf %573, %577 : vector<8x16x128xf32>
    %579 = arith.addf %570, %578 : vector<8x16x128xf32>
    %c2_i32_196 = arith.constant 2 : i32
    %580 = arith.addi %461, %c2_i32_196 : i32
    %581 = arith.index_cast %580 : i32 to index
    %c12_197 = arith.constant 12 : index
    %c0_198 = arith.constant 0 : index
    %582 = vector.load %arg8[%581, %c12_197, %c0_198] : memref<32x28x128xf32, #tpu.memory_space<vmem>>, vector<8x16x128xf32>
    %583 = vector.extract_strided_slice %6 {offsets = [13, 0], sizes = [1, 128], strides = [1, 1]} : vector<49x128xf32> to vector<1x128xf32>
    %584 = vector.shape_cast %583 : vector<1x128xf32> to vector<128xf32>
    %585 = vector.shape_cast %584 : vector<128xf32> to vector<1x1x128xf32>
    %586 = vector.broadcast %585 : vector<1x1x128xf32> to vector<8x16x128xf32>
    %587 = arith.mulf %582, %586 : vector<8x16x128xf32>
    %588 = arith.addf %579, %587 : vector<8x16x128xf32>
    %c4_i32_199 = arith.constant 4 : i32
    %589 = arith.addi %461, %c4_i32_199 : i32
    %590 = arith.index_cast %589 : i32 to index
    %c0_200 = arith.constant 0 : index
    %c0_201 = arith.constant 0 : index
    %591 = vector.load %arg8[%590, %c0_200, %c0_201] : memref<32x28x128xf32, #tpu.memory_space<vmem>>, vector<8x16x128xf32>
    %592 = vector.extract_strided_slice %6 {offsets = [14, 0], sizes = [1, 128], strides = [1, 1]} : vector<49x128xf32> to vector<1x128xf32>
    %593 = vector.shape_cast %592 : vector<1x128xf32> to vector<128xf32>
    %594 = vector.shape_cast %593 : vector<128xf32> to vector<1x1x128xf32>
    %595 = vector.broadcast %594 : vector<1x1x128xf32> to vector<8x16x128xf32>
    %596 = arith.mulf %591, %595 : vector<8x16x128xf32>
    %597 = arith.addf %588, %596 : vector<8x16x128xf32>
    %c4_i32_202 = arith.constant 4 : i32
    %598 = arith.addi %461, %c4_i32_202 : i32
    %599 = arith.index_cast %598 : i32 to index
    %c2_203 = arith.constant 2 : index
    %c0_204 = arith.constant 0 : index
    %600 = vector.load %arg8[%599, %c2_203, %c0_204] : memref<32x28x128xf32, #tpu.memory_space<vmem>>, vector<8x16x128xf32>
    %601 = vector.extract_strided_slice %6 {offsets = [15, 0], sizes = [1, 128], strides = [1, 1]} : vector<49x128xf32> to vector<1x128xf32>
    %602 = vector.shape_cast %601 : vector<1x128xf32> to vector<128xf32>
    %603 = vector.shape_cast %602 : vector<128xf32> to vector<1x1x128xf32>
    %604 = vector.broadcast %603 : vector<1x1x128xf32> to vector<8x16x128xf32>
    %605 = arith.mulf %600, %604 : vector<8x16x128xf32>
    %606 = arith.addf %597, %605 : vector<8x16x128xf32>
    %c4_i32_205 = arith.constant 4 : i32
    %607 = arith.addi %461, %c4_i32_205 : i32
    %608 = arith.index_cast %607 : i32 to index
    %c4_206 = arith.constant 4 : index
    %c0_207 = arith.constant 0 : index
    %609 = vector.load %arg8[%608, %c4_206, %c0_207] : memref<32x28x128xf32, #tpu.memory_space<vmem>>, vector<8x16x128xf32>
    %610 = vector.extract_strided_slice %6 {offsets = [16, 0], sizes = [1, 128], strides = [1, 1]} : vector<49x128xf32> to vector<1x128xf32>
    %611 = vector.shape_cast %610 : vector<1x128xf32> to vector<128xf32>
    %612 = vector.shape_cast %611 : vector<128xf32> to vector<1x1x128xf32>
    %613 = vector.broadcast %612 : vector<1x1x128xf32> to vector<8x16x128xf32>
    %614 = arith.mulf %609, %613 : vector<8x16x128xf32>
    %615 = arith.addf %606, %614 : vector<8x16x128xf32>
    %c4_i32_208 = arith.constant 4 : i32
    %616 = arith.addi %461, %c4_i32_208 : i32
    %617 = arith.index_cast %616 : i32 to index
    %c6_209 = arith.constant 6 : index
    %c0_210 = arith.constant 0 : index
    %618 = vector.load %arg8[%617, %c6_209, %c0_210] : memref<32x28x128xf32, #tpu.memory_space<vmem>>, vector<8x16x128xf32>
    %619 = vector.extract_strided_slice %6 {offsets = [17, 0], sizes = [1, 128], strides = [1, 1]} : vector<49x128xf32> to vector<1x128xf32>
    %620 = vector.shape_cast %619 : vector<1x128xf32> to vector<128xf32>
    %621 = vector.shape_cast %620 : vector<128xf32> to vector<1x1x128xf32>
    %622 = vector.broadcast %621 : vector<1x1x128xf32> to vector<8x16x128xf32>
    %623 = arith.mulf %618, %622 : vector<8x16x128xf32>
    %624 = arith.addf %615, %623 : vector<8x16x128xf32>
    %c4_i32_211 = arith.constant 4 : i32
    %625 = arith.addi %461, %c4_i32_211 : i32
    %626 = arith.index_cast %625 : i32 to index
    %c8_212 = arith.constant 8 : index
    %c0_213 = arith.constant 0 : index
    %627 = vector.load %arg8[%626, %c8_212, %c0_213] : memref<32x28x128xf32, #tpu.memory_space<vmem>>, vector<8x16x128xf32>
    %628 = vector.extract_strided_slice %6 {offsets = [18, 0], sizes = [1, 128], strides = [1, 1]} : vector<49x128xf32> to vector<1x128xf32>
    %629 = vector.shape_cast %628 : vector<1x128xf32> to vector<128xf32>
    %630 = vector.shape_cast %629 : vector<128xf32> to vector<1x1x128xf32>
    %631 = vector.broadcast %630 : vector<1x1x128xf32> to vector<8x16x128xf32>
    %632 = arith.mulf %627, %631 : vector<8x16x128xf32>
    %633 = arith.addf %624, %632 : vector<8x16x128xf32>
    %c4_i32_214 = arith.constant 4 : i32
    %634 = arith.addi %461, %c4_i32_214 : i32
    %635 = arith.index_cast %634 : i32 to index
    %c10_215 = arith.constant 10 : index
    %c0_216 = arith.constant 0 : index
    %636 = vector.load %arg8[%635, %c10_215, %c0_216] : memref<32x28x128xf32, #tpu.memory_space<vmem>>, vector<8x16x128xf32>
    %637 = vector.extract_strided_slice %6 {offsets = [19, 0], sizes = [1, 128], strides = [1, 1]} : vector<49x128xf32> to vector<1x128xf32>
    %638 = vector.shape_cast %637 : vector<1x128xf32> to vector<128xf32>
    %639 = vector.shape_cast %638 : vector<128xf32> to vector<1x1x128xf32>
    %640 = vector.broadcast %639 : vector<1x1x128xf32> to vector<8x16x128xf32>
    %641 = arith.mulf %636, %640 : vector<8x16x128xf32>
    %642 = arith.addf %633, %641 : vector<8x16x128xf32>
    %c4_i32_217 = arith.constant 4 : i32
    %643 = arith.addi %461, %c4_i32_217 : i32
    %644 = arith.index_cast %643 : i32 to index
    %c12_218 = arith.constant 12 : index
    %c0_219 = arith.constant 0 : index
    %645 = vector.load %arg8[%644, %c12_218, %c0_219] : memref<32x28x128xf32, #tpu.memory_space<vmem>>, vector<8x16x128xf32>
    %646 = vector.extract_strided_slice %6 {offsets = [20, 0], sizes = [1, 128], strides = [1, 1]} : vector<49x128xf32> to vector<1x128xf32>
    %647 = vector.shape_cast %646 : vector<1x128xf32> to vector<128xf32>
    %648 = vector.shape_cast %647 : vector<128xf32> to vector<1x1x128xf32>
    %649 = vector.broadcast %648 : vector<1x1x128xf32> to vector<8x16x128xf32>
    %650 = arith.mulf %645, %649 : vector<8x16x128xf32>
    %651 = arith.addf %642, %650 : vector<8x16x128xf32>
    %c6_i32_220 = arith.constant 6 : i32
    %652 = arith.addi %461, %c6_i32_220 : i32
    %653 = arith.index_cast %652 : i32 to index
    %c0_221 = arith.constant 0 : index
    %c0_222 = arith.constant 0 : index
    %654 = vector.load %arg8[%653, %c0_221, %c0_222] : memref<32x28x128xf32, #tpu.memory_space<vmem>>, vector<8x16x128xf32>
    %655 = vector.extract_strided_slice %6 {offsets = [21, 0], sizes = [1, 128], strides = [1, 1]} : vector<49x128xf32> to vector<1x128xf32>
    %656 = vector.shape_cast %655 : vector<1x128xf32> to vector<128xf32>
    %657 = vector.shape_cast %656 : vector<128xf32> to vector<1x1x128xf32>
    %658 = vector.broadcast %657 : vector<1x1x128xf32> to vector<8x16x128xf32>
    %659 = arith.mulf %654, %658 : vector<8x16x128xf32>
    %660 = arith.addf %651, %659 : vector<8x16x128xf32>
    %c6_i32_223 = arith.constant 6 : i32
    %661 = arith.addi %461, %c6_i32_223 : i32
    %662 = arith.index_cast %661 : i32 to index
    %c2_224 = arith.constant 2 : index
    %c0_225 = arith.constant 0 : index
    %663 = vector.load %arg8[%662, %c2_224, %c0_225] : memref<32x28x128xf32, #tpu.memory_space<vmem>>, vector<8x16x128xf32>
    %664 = vector.extract_strided_slice %6 {offsets = [22, 0], sizes = [1, 128], strides = [1, 1]} : vector<49x128xf32> to vector<1x128xf32>
    %665 = vector.shape_cast %664 : vector<1x128xf32> to vector<128xf32>
    %666 = vector.shape_cast %665 : vector<128xf32> to vector<1x1x128xf32>
    %667 = vector.broadcast %666 : vector<1x1x128xf32> to vector<8x16x128xf32>
    %668 = arith.mulf %663, %667 : vector<8x16x128xf32>
    %669 = arith.addf %660, %668 : vector<8x16x128xf32>
    %c6_i32_226 = arith.constant 6 : i32
    %670 = arith.addi %461, %c6_i32_226 : i32
    %671 = arith.index_cast %670 : i32 to index
    %c4_227 = arith.constant 4 : index
    %c0_228 = arith.constant 0 : index
    %672 = vector.load %arg8[%671, %c4_227, %c0_228] : memref<32x28x128xf32, #tpu.memory_space<vmem>>, vector<8x16x128xf32>
    %673 = vector.extract_strided_slice %6 {offsets = [23, 0], sizes = [1, 128], strides = [1, 1]} : vector<49x128xf32> to vector<1x128xf32>
    %674 = vector.shape_cast %673 : vector<1x128xf32> to vector<128xf32>
    %675 = vector.shape_cast %674 : vector<128xf32> to vector<1x1x128xf32>
    %676 = vector.broadcast %675 : vector<1x1x128xf32> to vector<8x16x128xf32>
    %677 = arith.mulf %672, %676 : vector<8x16x128xf32>
    %678 = arith.addf %669, %677 : vector<8x16x128xf32>
    %c6_i32_229 = arith.constant 6 : i32
    %679 = arith.addi %461, %c6_i32_229 : i32
    %680 = arith.index_cast %679 : i32 to index
    %c6_230 = arith.constant 6 : index
    %c0_231 = arith.constant 0 : index
    %681 = vector.load %arg8[%680, %c6_230, %c0_231] : memref<32x28x128xf32, #tpu.memory_space<vmem>>, vector<8x16x128xf32>
    %682 = vector.extract_strided_slice %6 {offsets = [24, 0], sizes = [1, 128], strides = [1, 1]} : vector<49x128xf32> to vector<1x128xf32>
    %683 = vector.shape_cast %682 : vector<1x128xf32> to vector<128xf32>
    %684 = vector.shape_cast %683 : vector<128xf32> to vector<1x1x128xf32>
    %685 = vector.broadcast %684 : vector<1x1x128xf32> to vector<8x16x128xf32>
    %686 = arith.mulf %681, %685 : vector<8x16x128xf32>
    %687 = arith.addf %678, %686 : vector<8x16x128xf32>
    %c6_i32_232 = arith.constant 6 : i32
    %688 = arith.addi %461, %c6_i32_232 : i32
    %689 = arith.index_cast %688 : i32 to index
    %c8_233 = arith.constant 8 : index
    %c0_234 = arith.constant 0 : index
    %690 = vector.load %arg8[%689, %c8_233, %c0_234] : memref<32x28x128xf32, #tpu.memory_space<vmem>>, vector<8x16x128xf32>
    %691 = vector.extract_strided_slice %6 {offsets = [25, 0], sizes = [1, 128], strides = [1, 1]} : vector<49x128xf32> to vector<1x128xf32>
    %692 = vector.shape_cast %691 : vector<1x128xf32> to vector<128xf32>
    %693 = vector.shape_cast %692 : vector<128xf32> to vector<1x1x128xf32>
    %694 = vector.broadcast %693 : vector<1x1x128xf32> to vector<8x16x128xf32>
    %695 = arith.mulf %690, %694 : vector<8x16x128xf32>
    %696 = arith.addf %687, %695 : vector<8x16x128xf32>
    %c6_i32_235 = arith.constant 6 : i32
    %697 = arith.addi %461, %c6_i32_235 : i32
    %698 = arith.index_cast %697 : i32 to index
    %c10_236 = arith.constant 10 : index
    %c0_237 = arith.constant 0 : index
    %699 = vector.load %arg8[%698, %c10_236, %c0_237] : memref<32x28x128xf32, #tpu.memory_space<vmem>>, vector<8x16x128xf32>
    %700 = vector.extract_strided_slice %6 {offsets = [26, 0], sizes = [1, 128], strides = [1, 1]} : vector<49x128xf32> to vector<1x128xf32>
    %701 = vector.shape_cast %700 : vector<1x128xf32> to vector<128xf32>
    %702 = vector.shape_cast %701 : vector<128xf32> to vector<1x1x128xf32>
    %703 = vector.broadcast %702 : vector<1x1x128xf32> to vector<8x16x128xf32>
    %704 = arith.mulf %699, %703 : vector<8x16x128xf32>
    %705 = arith.addf %696, %704 : vector<8x16x128xf32>
    %c6_i32_238 = arith.constant 6 : i32
    %706 = arith.addi %461, %c6_i32_238 : i32
    %707 = arith.index_cast %706 : i32 to index
    %c12_239 = arith.constant 12 : index
    %c0_240 = arith.constant 0 : index
    %708 = vector.load %arg8[%707, %c12_239, %c0_240] : memref<32x28x128xf32, #tpu.memory_space<vmem>>, vector<8x16x128xf32>
    %709 = vector.extract_strided_slice %6 {offsets = [27, 0], sizes = [1, 128], strides = [1, 1]} : vector<49x128xf32> to vector<1x128xf32>
    %710 = vector.shape_cast %709 : vector<1x128xf32> to vector<128xf32>
    %711 = vector.shape_cast %710 : vector<128xf32> to vector<1x1x128xf32>
    %712 = vector.broadcast %711 : vector<1x1x128xf32> to vector<8x16x128xf32>
    %713 = arith.mulf %708, %712 : vector<8x16x128xf32>
    %714 = arith.addf %705, %713 : vector<8x16x128xf32>
    %c8_i32_241 = arith.constant 8 : i32
    %715 = arith.addi %461, %c8_i32_241 : i32
    %716 = arith.index_cast %715 : i32 to index
    %c0_242 = arith.constant 0 : index
    %c0_243 = arith.constant 0 : index
    %717 = vector.load %arg8[%716, %c0_242, %c0_243] : memref<32x28x128xf32, #tpu.memory_space<vmem>>, vector<8x16x128xf32>
    %718 = vector.extract_strided_slice %6 {offsets = [28, 0], sizes = [1, 128], strides = [1, 1]} : vector<49x128xf32> to vector<1x128xf32>
    %719 = vector.shape_cast %718 : vector<1x128xf32> to vector<128xf32>
    %720 = vector.shape_cast %719 : vector<128xf32> to vector<1x1x128xf32>
    %721 = vector.broadcast %720 : vector<1x1x128xf32> to vector<8x16x128xf32>
    %722 = arith.mulf %717, %721 : vector<8x16x128xf32>
    %723 = arith.addf %714, %722 : vector<8x16x128xf32>
    %c8_i32_244 = arith.constant 8 : i32
    %724 = arith.addi %461, %c8_i32_244 : i32
    %725 = arith.index_cast %724 : i32 to index
    %c2_245 = arith.constant 2 : index
    %c0_246 = arith.constant 0 : index
    %726 = vector.load %arg8[%725, %c2_245, %c0_246] : memref<32x28x128xf32, #tpu.memory_space<vmem>>, vector<8x16x128xf32>
    %727 = vector.extract_strided_slice %6 {offsets = [29, 0], sizes = [1, 128], strides = [1, 1]} : vector<49x128xf32> to vector<1x128xf32>
    %728 = vector.shape_cast %727 : vector<1x128xf32> to vector<128xf32>
    %729 = vector.shape_cast %728 : vector<128xf32> to vector<1x1x128xf32>
    %730 = vector.broadcast %729 : vector<1x1x128xf32> to vector<8x16x128xf32>
    %731 = arith.mulf %726, %730 : vector<8x16x128xf32>
    %732 = arith.addf %723, %731 : vector<8x16x128xf32>
    %c8_i32_247 = arith.constant 8 : i32
    %733 = arith.addi %461, %c8_i32_247 : i32
    %734 = arith.index_cast %733 : i32 to index
    %c4_248 = arith.constant 4 : index
    %c0_249 = arith.constant 0 : index
    %735 = vector.load %arg8[%734, %c4_248, %c0_249] : memref<32x28x128xf32, #tpu.memory_space<vmem>>, vector<8x16x128xf32>
    %736 = vector.extract_strided_slice %6 {offsets = [30, 0], sizes = [1, 128], strides = [1, 1]} : vector<49x128xf32> to vector<1x128xf32>
    %737 = vector.shape_cast %736 : vector<1x128xf32> to vector<128xf32>
    %738 = vector.shape_cast %737 : vector<128xf32> to vector<1x1x128xf32>
    %739 = vector.broadcast %738 : vector<1x1x128xf32> to vector<8x16x128xf32>
    %740 = arith.mulf %735, %739 : vector<8x16x128xf32>
    %741 = arith.addf %732, %740 : vector<8x16x128xf32>
    %c8_i32_250 = arith.constant 8 : i32
    %742 = arith.addi %461, %c8_i32_250 : i32
    %743 = arith.index_cast %742 : i32 to index
    %c6_251 = arith.constant 6 : index
    %c0_252 = arith.constant 0 : index
    %744 = vector.load %arg8[%743, %c6_251, %c0_252] : memref<32x28x128xf32, #tpu.memory_space<vmem>>, vector<8x16x128xf32>
    %745 = vector.extract_strided_slice %6 {offsets = [31, 0], sizes = [1, 128], strides = [1, 1]} : vector<49x128xf32> to vector<1x128xf32>
    %746 = vector.shape_cast %745 : vector<1x128xf32> to vector<128xf32>
    %747 = vector.shape_cast %746 : vector<128xf32> to vector<1x1x128xf32>
    %748 = vector.broadcast %747 : vector<1x1x128xf32> to vector<8x16x128xf32>
    %749 = arith.mulf %744, %748 : vector<8x16x128xf32>
    %750 = arith.addf %741, %749 : vector<8x16x128xf32>
    %c8_i32_253 = arith.constant 8 : i32
    %751 = arith.addi %461, %c8_i32_253 : i32
    %752 = arith.index_cast %751 : i32 to index
    %c8_254 = arith.constant 8 : index
    %c0_255 = arith.constant 0 : index
    %753 = vector.load %arg8[%752, %c8_254, %c0_255] : memref<32x28x128xf32, #tpu.memory_space<vmem>>, vector<8x16x128xf32>
    %754 = vector.extract_strided_slice %6 {offsets = [32, 0], sizes = [1, 128], strides = [1, 1]} : vector<49x128xf32> to vector<1x128xf32>
    %755 = vector.shape_cast %754 : vector<1x128xf32> to vector<128xf32>
    %756 = vector.shape_cast %755 : vector<128xf32> to vector<1x1x128xf32>
    %757 = vector.broadcast %756 : vector<1x1x128xf32> to vector<8x16x128xf32>
    %758 = arith.mulf %753, %757 : vector<8x16x128xf32>
    %759 = arith.addf %750, %758 : vector<8x16x128xf32>
    %c8_i32_256 = arith.constant 8 : i32
    %760 = arith.addi %461, %c8_i32_256 : i32
    %761 = arith.index_cast %760 : i32 to index
    %c10_257 = arith.constant 10 : index
    %c0_258 = arith.constant 0 : index
    %762 = vector.load %arg8[%761, %c10_257, %c0_258] : memref<32x28x128xf32, #tpu.memory_space<vmem>>, vector<8x16x128xf32>
    %763 = vector.extract_strided_slice %6 {offsets = [33, 0], sizes = [1, 128], strides = [1, 1]} : vector<49x128xf32> to vector<1x128xf32>
    %764 = vector.shape_cast %763 : vector<1x128xf32> to vector<128xf32>
    %765 = vector.shape_cast %764 : vector<128xf32> to vector<1x1x128xf32>
    %766 = vector.broadcast %765 : vector<1x1x128xf32> to vector<8x16x128xf32>
    %767 = arith.mulf %762, %766 : vector<8x16x128xf32>
    %768 = arith.addf %759, %767 : vector<8x16x128xf32>
    %c8_i32_259 = arith.constant 8 : i32
    %769 = arith.addi %461, %c8_i32_259 : i32
    %770 = arith.index_cast %769 : i32 to index
    %c12_260 = arith.constant 12 : index
    %c0_261 = arith.constant 0 : index
    %771 = vector.load %arg8[%770, %c12_260, %c0_261] : memref<32x28x128xf32, #tpu.memory_space<vmem>>, vector<8x16x128xf32>
    %772 = vector.extract_strided_slice %6 {offsets = [34, 0], sizes = [1, 128], strides = [1, 1]} : vector<49x128xf32> to vector<1x128xf32>
    %773 = vector.shape_cast %772 : vector<1x128xf32> to vector<128xf32>
    %774 = vector.shape_cast %773 : vector<128xf32> to vector<1x1x128xf32>
    %775 = vector.broadcast %774 : vector<1x1x128xf32> to vector<8x16x128xf32>
    %776 = arith.mulf %771, %775 : vector<8x16x128xf32>
    %777 = arith.addf %768, %776 : vector<8x16x128xf32>
    %c10_i32_262 = arith.constant 10 : i32
    %778 = arith.addi %461, %c10_i32_262 : i32
    %779 = arith.index_cast %778 : i32 to index
    %c0_263 = arith.constant 0 : index
    %c0_264 = arith.constant 0 : index
    %780 = vector.load %arg8[%779, %c0_263, %c0_264] : memref<32x28x128xf32, #tpu.memory_space<vmem>>, vector<8x16x128xf32>
    %781 = vector.extract_strided_slice %6 {offsets = [35, 0], sizes = [1, 128], strides = [1, 1]} : vector<49x128xf32> to vector<1x128xf32>
    %782 = vector.shape_cast %781 : vector<1x128xf32> to vector<128xf32>
    %783 = vector.shape_cast %782 : vector<128xf32> to vector<1x1x128xf32>
    %784 = vector.broadcast %783 : vector<1x1x128xf32> to vector<8x16x128xf32>
    %785 = arith.mulf %780, %784 : vector<8x16x128xf32>
    %786 = arith.addf %777, %785 : vector<8x16x128xf32>
    %c10_i32_265 = arith.constant 10 : i32
    %787 = arith.addi %461, %c10_i32_265 : i32
    %788 = arith.index_cast %787 : i32 to index
    %c2_266 = arith.constant 2 : index
    %c0_267 = arith.constant 0 : index
    %789 = vector.load %arg8[%788, %c2_266, %c0_267] : memref<32x28x128xf32, #tpu.memory_space<vmem>>, vector<8x16x128xf32>
    %790 = vector.extract_strided_slice %6 {offsets = [36, 0], sizes = [1, 128], strides = [1, 1]} : vector<49x128xf32> to vector<1x128xf32>
    %791 = vector.shape_cast %790 : vector<1x128xf32> to vector<128xf32>
    %792 = vector.shape_cast %791 : vector<128xf32> to vector<1x1x128xf32>
    %793 = vector.broadcast %792 : vector<1x1x128xf32> to vector<8x16x128xf32>
    %794 = arith.mulf %789, %793 : vector<8x16x128xf32>
    %795 = arith.addf %786, %794 : vector<8x16x128xf32>
    %c10_i32_268 = arith.constant 10 : i32
    %796 = arith.addi %461, %c10_i32_268 : i32
    %797 = arith.index_cast %796 : i32 to index
    %c4_269 = arith.constant 4 : index
    %c0_270 = arith.constant 0 : index
    %798 = vector.load %arg8[%797, %c4_269, %c0_270] : memref<32x28x128xf32, #tpu.memory_space<vmem>>, vector<8x16x128xf32>
    %799 = vector.extract_strided_slice %6 {offsets = [37, 0], sizes = [1, 128], strides = [1, 1]} : vector<49x128xf32> to vector<1x128xf32>
    %800 = vector.shape_cast %799 : vector<1x128xf32> to vector<128xf32>
    %801 = vector.shape_cast %800 : vector<128xf32> to vector<1x1x128xf32>
    %802 = vector.broadcast %801 : vector<1x1x128xf32> to vector<8x16x128xf32>
    %803 = arith.mulf %798, %802 : vector<8x16x128xf32>
    %804 = arith.addf %795, %803 : vector<8x16x128xf32>
    %c10_i32_271 = arith.constant 10 : i32
    %805 = arith.addi %461, %c10_i32_271 : i32
    %806 = arith.index_cast %805 : i32 to index
    %c6_272 = arith.constant 6 : index
    %c0_273 = arith.constant 0 : index
    %807 = vector.load %arg8[%806, %c6_272, %c0_273] : memref<32x28x128xf32, #tpu.memory_space<vmem>>, vector<8x16x128xf32>
    %808 = vector.extract_strided_slice %6 {offsets = [38, 0], sizes = [1, 128], strides = [1, 1]} : vector<49x128xf32> to vector<1x128xf32>
    %809 = vector.shape_cast %808 : vector<1x128xf32> to vector<128xf32>
    %810 = vector.shape_cast %809 : vector<128xf32> to vector<1x1x128xf32>
    %811 = vector.broadcast %810 : vector<1x1x128xf32> to vector<8x16x128xf32>
    %812 = arith.mulf %807, %811 : vector<8x16x128xf32>
    %813 = arith.addf %804, %812 : vector<8x16x128xf32>
    %c10_i32_274 = arith.constant 10 : i32
    %814 = arith.addi %461, %c10_i32_274 : i32
    %815 = arith.index_cast %814 : i32 to index
    %c8_275 = arith.constant 8 : index
    %c0_276 = arith.constant 0 : index
    %816 = vector.load %arg8[%815, %c8_275, %c0_276] : memref<32x28x128xf32, #tpu.memory_space<vmem>>, vector<8x16x128xf32>
    %817 = vector.extract_strided_slice %6 {offsets = [39, 0], sizes = [1, 128], strides = [1, 1]} : vector<49x128xf32> to vector<1x128xf32>
    %818 = vector.shape_cast %817 : vector<1x128xf32> to vector<128xf32>
    %819 = vector.shape_cast %818 : vector<128xf32> to vector<1x1x128xf32>
    %820 = vector.broadcast %819 : vector<1x1x128xf32> to vector<8x16x128xf32>
    %821 = arith.mulf %816, %820 : vector<8x16x128xf32>
    %822 = arith.addf %813, %821 : vector<8x16x128xf32>
    %c10_i32_277 = arith.constant 10 : i32
    %823 = arith.addi %461, %c10_i32_277 : i32
    %824 = arith.index_cast %823 : i32 to index
    %c10_278 = arith.constant 10 : index
    %c0_279 = arith.constant 0 : index
    %825 = vector.load %arg8[%824, %c10_278, %c0_279] : memref<32x28x128xf32, #tpu.memory_space<vmem>>, vector<8x16x128xf32>
    %826 = vector.extract_strided_slice %6 {offsets = [40, 0], sizes = [1, 128], strides = [1, 1]} : vector<49x128xf32> to vector<1x128xf32>
    %827 = vector.shape_cast %826 : vector<1x128xf32> to vector<128xf32>
    %828 = vector.shape_cast %827 : vector<128xf32> to vector<1x1x128xf32>
    %829 = vector.broadcast %828 : vector<1x1x128xf32> to vector<8x16x128xf32>
    %830 = arith.mulf %825, %829 : vector<8x16x128xf32>
    %831 = arith.addf %822, %830 : vector<8x16x128xf32>
    %c10_i32_280 = arith.constant 10 : i32
    %832 = arith.addi %461, %c10_i32_280 : i32
    %833 = arith.index_cast %832 : i32 to index
    %c12_281 = arith.constant 12 : index
    %c0_282 = arith.constant 0 : index
    %834 = vector.load %arg8[%833, %c12_281, %c0_282] : memref<32x28x128xf32, #tpu.memory_space<vmem>>, vector<8x16x128xf32>
    %835 = vector.extract_strided_slice %6 {offsets = [41, 0], sizes = [1, 128], strides = [1, 1]} : vector<49x128xf32> to vector<1x128xf32>
    %836 = vector.shape_cast %835 : vector<1x128xf32> to vector<128xf32>
    %837 = vector.shape_cast %836 : vector<128xf32> to vector<1x1x128xf32>
    %838 = vector.broadcast %837 : vector<1x1x128xf32> to vector<8x16x128xf32>
    %839 = arith.mulf %834, %838 : vector<8x16x128xf32>
    %840 = arith.addf %831, %839 : vector<8x16x128xf32>
    %c12_i32_283 = arith.constant 12 : i32
    %841 = arith.addi %461, %c12_i32_283 : i32
    %842 = arith.index_cast %841 : i32 to index
    %c0_284 = arith.constant 0 : index
    %c0_285 = arith.constant 0 : index
    %843 = vector.load %arg8[%842, %c0_284, %c0_285] : memref<32x28x128xf32, #tpu.memory_space<vmem>>, vector<8x16x128xf32>
    %844 = vector.extract_strided_slice %6 {offsets = [42, 0], sizes = [1, 128], strides = [1, 1]} : vector<49x128xf32> to vector<1x128xf32>
    %845 = vector.shape_cast %844 : vector<1x128xf32> to vector<128xf32>
    %846 = vector.shape_cast %845 : vector<128xf32> to vector<1x1x128xf32>
    %847 = vector.broadcast %846 : vector<1x1x128xf32> to vector<8x16x128xf32>
    %848 = arith.mulf %843, %847 : vector<8x16x128xf32>
    %849 = arith.addf %840, %848 : vector<8x16x128xf32>
    %c12_i32_286 = arith.constant 12 : i32
    %850 = arith.addi %461, %c12_i32_286 : i32
    %851 = arith.index_cast %850 : i32 to index
    %c2_287 = arith.constant 2 : index
    %c0_288 = arith.constant 0 : index
    %852 = vector.load %arg8[%851, %c2_287, %c0_288] : memref<32x28x128xf32, #tpu.memory_space<vmem>>, vector<8x16x128xf32>
    %853 = vector.extract_strided_slice %6 {offsets = [43, 0], sizes = [1, 128], strides = [1, 1]} : vector<49x128xf32> to vector<1x128xf32>
    %854 = vector.shape_cast %853 : vector<1x128xf32> to vector<128xf32>
    %855 = vector.shape_cast %854 : vector<128xf32> to vector<1x1x128xf32>
    %856 = vector.broadcast %855 : vector<1x1x128xf32> to vector<8x16x128xf32>
    %857 = arith.mulf %852, %856 : vector<8x16x128xf32>
    %858 = arith.addf %849, %857 : vector<8x16x128xf32>
    %c12_i32_289 = arith.constant 12 : i32
    %859 = arith.addi %461, %c12_i32_289 : i32
    %860 = arith.index_cast %859 : i32 to index
    %c4_290 = arith.constant 4 : index
    %c0_291 = arith.constant 0 : index
    %861 = vector.load %arg8[%860, %c4_290, %c0_291] : memref<32x28x128xf32, #tpu.memory_space<vmem>>, vector<8x16x128xf32>
    %862 = vector.extract_strided_slice %6 {offsets = [44, 0], sizes = [1, 128], strides = [1, 1]} : vector<49x128xf32> to vector<1x128xf32>
    %863 = vector.shape_cast %862 : vector<1x128xf32> to vector<128xf32>
    %864 = vector.shape_cast %863 : vector<128xf32> to vector<1x1x128xf32>
    %865 = vector.broadcast %864 : vector<1x1x128xf32> to vector<8x16x128xf32>
    %866 = arith.mulf %861, %865 : vector<8x16x128xf32>
    %867 = arith.addf %858, %866 : vector<8x16x128xf32>
    %c12_i32_292 = arith.constant 12 : i32
    %868 = arith.addi %461, %c12_i32_292 : i32
    %869 = arith.index_cast %868 : i32 to index
    %c6_293 = arith.constant 6 : index
    %c0_294 = arith.constant 0 : index
    %870 = vector.load %arg8[%869, %c6_293, %c0_294] : memref<32x28x128xf32, #tpu.memory_space<vmem>>, vector<8x16x128xf32>
    %871 = vector.extract_strided_slice %6 {offsets = [45, 0], sizes = [1, 128], strides = [1, 1]} : vector<49x128xf32> to vector<1x128xf32>
    %872 = vector.shape_cast %871 : vector<1x128xf32> to vector<128xf32>
    %873 = vector.shape_cast %872 : vector<128xf32> to vector<1x1x128xf32>
    %874 = vector.broadcast %873 : vector<1x1x128xf32> to vector<8x16x128xf32>
    %875 = arith.mulf %870, %874 : vector<8x16x128xf32>
    %876 = arith.addf %867, %875 : vector<8x16x128xf32>
    %c12_i32_295 = arith.constant 12 : i32
    %877 = arith.addi %461, %c12_i32_295 : i32
    %878 = arith.index_cast %877 : i32 to index
    %c8_296 = arith.constant 8 : index
    %c0_297 = arith.constant 0 : index
    %879 = vector.load %arg8[%878, %c8_296, %c0_297] : memref<32x28x128xf32, #tpu.memory_space<vmem>>, vector<8x16x128xf32>
    %880 = vector.extract_strided_slice %6 {offsets = [46, 0], sizes = [1, 128], strides = [1, 1]} : vector<49x128xf32> to vector<1x128xf32>
    %881 = vector.shape_cast %880 : vector<1x128xf32> to vector<128xf32>
    %882 = vector.shape_cast %881 : vector<128xf32> to vector<1x1x128xf32>
    %883 = vector.broadcast %882 : vector<1x1x128xf32> to vector<8x16x128xf32>
    %884 = arith.mulf %879, %883 : vector<8x16x128xf32>
    %885 = arith.addf %876, %884 : vector<8x16x128xf32>
    %c12_i32_298 = arith.constant 12 : i32
    %886 = arith.addi %461, %c12_i32_298 : i32
    %887 = arith.index_cast %886 : i32 to index
    %c10_299 = arith.constant 10 : index
    %c0_300 = arith.constant 0 : index
    %888 = vector.load %arg8[%887, %c10_299, %c0_300] : memref<32x28x128xf32, #tpu.memory_space<vmem>>, vector<8x16x128xf32>
    %889 = vector.extract_strided_slice %6 {offsets = [47, 0], sizes = [1, 128], strides = [1, 1]} : vector<49x128xf32> to vector<1x128xf32>
    %890 = vector.shape_cast %889 : vector<1x128xf32> to vector<128xf32>
    %891 = vector.shape_cast %890 : vector<128xf32> to vector<1x1x128xf32>
    %892 = vector.broadcast %891 : vector<1x1x128xf32> to vector<8x16x128xf32>
    %893 = arith.mulf %888, %892 : vector<8x16x128xf32>
    %894 = arith.addf %885, %893 : vector<8x16x128xf32>
    %c12_i32_301 = arith.constant 12 : i32
    %895 = arith.addi %461, %c12_i32_301 : i32
    %896 = arith.index_cast %895 : i32 to index
    %c12_302 = arith.constant 12 : index
    %c0_303 = arith.constant 0 : index
    %897 = vector.load %arg8[%896, %c12_302, %c0_303] : memref<32x28x128xf32, #tpu.memory_space<vmem>>, vector<8x16x128xf32>
    %898 = vector.extract_strided_slice %6 {offsets = [48, 0], sizes = [1, 128], strides = [1, 1]} : vector<49x128xf32> to vector<1x128xf32>
    %899 = vector.shape_cast %898 : vector<1x128xf32> to vector<128xf32>
    %900 = vector.shape_cast %899 : vector<128xf32> to vector<1x1x128xf32>
    %901 = vector.broadcast %900 : vector<1x1x128xf32> to vector<8x16x128xf32>
    %902 = arith.mulf %897, %901 : vector<8x16x128xf32>
    %903 = arith.addf %894, %902 : vector<8x16x128xf32>
    %904 = vector.shape_cast %8 : vector<128xf32> to vector<1x1x128xf32>
    %905 = vector.broadcast %904 : vector<1x1x128xf32> to vector<8x16x128xf32>
    %906 = arith.addf %903, %905 : vector<8x16x128xf32>
    %c0_304 = arith.constant 0 : index
    %907 = arith.index_cast %461 : i32 to index
    %c0_305 = arith.constant 0 : index
    %c0_306 = arith.constant 0 : index
    %908 = vector.load %arg7[%c0_304, %907, %c0_305, %c0_306] : memref<1x16x16x128xf32, #tpu.memory_space<vmem>>, vector<1x8x16x128xf32>
    %909 = vector.shape_cast %908 : vector<1x8x16x128xf32> to vector<8x16x128xf32>
    %910 = vector.shape_cast %906 : vector<8x16x128xf32> to vector<1x8x16x128xf32>
    tpu.vector_store %arg7[%c0_304, %907, %c0_305, %c0_306], %910 {strides = array<i32>} : memref<1x16x16x128xf32, #tpu.memory_space<vmem>>, vector<1x8x16x128xf32>,
    %c2_i32_307 = arith.constant 2 : i32
    return
  }
  func.func @transform_0(%arg0: i32, %arg1: i32, %arg2: i32) -> (i32, i32, i32, i32) {
    %c0_i32 = arith.constant 0 : i32
    %c0_i32_0 = arith.constant 0 : i32
    return %arg1, %arg2, %c0_i32, %arg0 : i32, i32, i32, i32
  }
  func.func @transform_1(%arg0: i32, %arg1: i32, %arg2: i32) -> (i32, i32, i32, i32) {
    %c1_i32 = arith.constant 1 : i32
    %0 = arith.addi %arg2, %c1_i32 : i32
    %c1_i32_0 = arith.constant 1 : i32
    %1 = arith.muli %0, %c1_i32_0 : i32
    %c0_i32 = arith.constant 0 : i32
    %c0_i32_1 = arith.constant 0 : i32
    return %arg1, %1, %c0_i32, %arg0 : i32, i32, i32, i32
  }
  func.func @transform_2(%arg0: i32, %arg1: i32, %arg2: i32) -> (i32, i32) {
    %c0_i32 = arith.constant 0 : i32
    %c0_i32_0 = arith.constant 0 : i32
    return %c0_i32, %arg0 : i32, i32
  }
  func.func @transform_3(%arg0: i32, %arg1: i32, %arg2: i32) -> (i32, i32) {
    %c0_i32 = arith.constant 0 : i32
    %c0_i32_0 = arith.constant 0 : i32
    return %c0_i32, %arg0 : i32, i32
  }
  func.func @transform_4(%arg0: i32, %arg1: i32, %arg2: i32) -> (i32, i32, i32, i32) {
    %c0_i32 = arith.constant 0 : i32
    %c0_i32_0 = arith.constant 0 : i32
    return %arg1, %arg2, %c0_i32, %arg0 : i32, i32, i32, i32
  }
}

</mosaic_0001>

<bundles_post_ra>
// kernel: tpu_custom_call.1
= control target key start
LH: loop header
LB: loop body
LE: loop exit
PB: predicated region body
PF: predicated region fallthrough
CT: control target
= control target key end

     0   :  { %9 = vsyncpa [#allocation4], 0  ;;  %s9793_s0 = inlined_call_operand.vmem [shape: f32[2,32,28,128], index: 0, kind: input, shape index: {}]   ;;  %s9794_s1 = inlined_call_operand.vmem [shape: f32[2,32,28,128], index: 1, kind: input, shape index: {}]   ;;  %s9795_s2 = inlined_call_operand.vmem [shape: f32[49,128], index: 2, kind: input, shape index: {}]   ;;  %s9796_s3 = inlined_call_operand.vmem [shape: f32[1,128], index: 3, kind: input, shape index: {}]   ;;  %s9797_s4 = inlined_call_operand.hbm [shape: f32[2,16,16,128], index: 4, kind: output, shape index: {}]  }
   0x1   :  { %11 = vsyncpa [#allocation4 + $0x1], 0  ;;  %s5742_s15 = smov 0   ;;  %s5744_s16 = smov 0  }
   0x2   :  { %s5746_s17 = smov 0   ;;  %s5748_s18 = smov 0  }
   0x3   :  { %s5750_s19 = smov 0   ;;  %s5752_s20 = smov 0  }
   0x4 LB: > { %s5453_s21 = sadd.s32 4294967295, %s5712_s20   ;;  %s5454_s22 = sadd.s32 4294967294, %s5712_s20   ;;  %s5712_s20 = sphi %s5752_s20, %s17_s20   ;;  %s5708_s19 = sphi %s5750_s19, %s10371_s19   ;;  %s5704_s18 = sphi %s5748_s18, %s10370_s18   ;;  %s5700_s17 = sphi %s5746_s17, %s10369_s17   ;;  %s5696_s16 = sphi %s5744_s16, %s10368_s16   ;;  %s5692_s15 = sphi %s5742_s15, %s10367_s15  }
   0x5   : > { %s32_s23 = sadd.s32 1, %s5708_s19  ;;  %s161_s24 = sadd.s32 1, %s5700_s17 }
   0x6   : > { %p34_p0 = scmp.ge.s32.totalorder %s32_s23, 2  ;;  %p171_p1 = scmp.ne.s32.totalorder %s5700_s17, %s5696_s16 }
   0x7   : > { %p172_p2 = scmp.eq.s32.totalorder %s5453_s21, 1  ;;  %p177_p3 = scmp.ne.s32.totalorder %s5696_s16, %s5692_s15 }
   0x8   : > { %s10373_s23 = smov (%p34_p0, %s32_s23), 0  ;;  %p178_p5 = scmp.eq.s32.totalorder %s5454_s22, 1 }
   0x9   : > { %p5782_p4 = por %p172_p2, %p171_p1  ;;  %s154_s26 = ssub.s32 %s5708_s19, %s10373_s23 }
   0xa   : > { %p5459_p6 = scmp.ge.s32.totalorder %s5712_s20, 1  ;;  %p159_p7 = scmp.eq.s32.totalorder %s154_s26, 0 }
   0xb   : > { %p5789_p8 = por %p178_p5, %p177_p3  ;;  %p245_p9 = scmp.lt.s32.totalorder %s5712_s20, 3 }
   0xc   : > { %s5795_s28 = scalar_select %p159_p7, %s5700_s17, %s161_s24  }
   0xd   : > { %p246_p10 = pnand %p5459_p6, %p245_p9 }
   0xf   : > { %249 = sbr.rel (%p246_p10) target bundleno = 871 (0x367), region = 36 }
  0x16   : > { %p301_p11 = scmp.lt.s32.totalorder %s5704_s18, 1  ;;  %v621_v0 = vlaneseq  ;;  %v595_v2 = vld [vmem:[%s9795_s2] sm:$0xff]  ;;  %v5858_v26 = vld [vmem:[%s9795_s2 + $0x8] sm:$0xff]  ;;  %s297_s12 = sand.u32 1, %s5696_s16  }
  0x17   : > { %9922 = vst [vmem:[#allocation19_spill] sm:$0xff] %v5858_v26  ;;  %s8535_s13 = sshll.u32 %s297_s12, 8  ;;  %s9747_s21 = scalar_lea.sflag [#allocation4], %s297_s12 }
  0x18   : > { %s5799_s29 = scalar_select %p301_p11, %s5704_s18, 1  ;;  %v622_v1 = vshrl.u32 %v621_v0, 7 }
  0x19   : > { %s8568_s22 = scalar_lea.vmem [#allocation3], %s8535_s13  ;;  %s5714_s24 = smov [#allocation3]  }
  0x1a   : > { %s5488_s6 = sshll.u32 %s5799_s29, 10  ;;  %v5805_v3 = vsub.s32 0, %v622_v1  ;;  %v5814_v4 = vsub.s32 1, %v622_v1  ;;  %v5816_v5 = vsub.s32 2, %v622_v1  ;;  %v5818_v6 = vsub.s32 4, %v622_v1  ;;  %s5299_s10 = sshll.u32 %s8568_s22, 4  ;;  %s9741_s10 = int_to_ptr.vmem [resolvable:$true] %s5299_s10 }
  0x1b   : > { %s5812_s9 = scalar_lea.vmem %s9793_s0, %s5488_s6  ;;  %v5825_v10 = vsub.s32 3, %v622_v1  ;;  %v5828_v12 = vsub.s32 5, %v622_v1  ;;  %v5830_v13 = vsub.s32 6, %v622_v1  ;;  %v5838_v18 = vsub.s32 7, %v622_v1  ;;  %s5490_s26 = sadd.s32 512, %s5488_s6 }
  0x1c   : > { %9909 = vst [vmem:[#allocation6_spill] sm:$0xff] %v5805_v3  ;;  %9910 = vst [vmem:[#allocation7_spill] sm:$0xff] %v5814_v4  ;;  %v338_v7 = vld [vmem:[%s5812_s9] sm:$0xff]  ;;  %v5822_v8 = vrot.slane %v595_v2, %v5805_v3  ;;  %v339_v9 = vld [vmem:[%s5812_s9 + $0x8] sm:$0xff]  ;;  %v5833_v14 = vrot.slane %v595_v2, %v5818_v6  ;;  %v5844_v22 = vrot.slane %v595_v2, %v5814_v4  ;;  %s7242_s7 = scalar_lea.vmem %s9794_s1, %s5490_s26  ;;  %s5638_s26 = sshll.u32 %s5714_s24, 4  ;;  %s5639_s26 = int_to_ptr.vmem [resolvable:$false] %s5638_s26 }
  0x1d   : > { %9911 = vst [vmem:[#allocation8_spill] sm:$0xff] %v5816_v5  ;;  %9912 = vst [vmem:[#allocation9_spill] sm:$0xff] %v5818_v6  ;;  %v340_v11 = vld [vmem:[%s5812_s9 + $0x10] sm:$0xff]  ;;  %v341_v15 = vld [vmem:[%s5812_s9 + $0x18] sm:$0xf]  ;;  %v5847_v23 = vrot.slane %v595_v2, %v5816_v5  ;;  %v5850_v24 = vrot.slane %v595_v2, %v5838_v18  ;;  %v5868_v30 = vrot.slane %v595_v2, %v5825_v10  ;;  %s5640_s30 = scalar_lea.vmem %s5639_s26, 8192  ;;  %p5641_p1 = scmp.lt.s32.totalorder %s9741_s10, %s5639_s26 }
  0x1e   : > { %9913 = vst [vmem:[#allocation10_spill] sm:$0xff] %v5822_v8  ;;  %9914 = vst [vmem:[#allocation11_spill] sm:$0xff] %v5825_v10  ;;  %v342_v16 = vld [vmem:[%s5812_s9 + $0x20] sm:$0xff]  ;;  %v343_v17 = vld [vmem:[%s5812_s9 + $0x28] sm:$0xff]  ;;  %v5865_v29 = vmul.f32 %v5822_v8, %v338_v7  ;;  %v5871_v31 = vrot.slane %v595_v2, %v5828_v12  ;;  %v5874_v32 = vrot.slane %v595_v2, %v5830_v13 }
  0x1f   : > { %9915 = vst [vmem:[#allocation12_spill] sm:$0xff] %v5828_v12  ;;  %9916 = vst [vmem:[#allocation13_spill] sm:$0xff] %v5830_v13  ;;  %v344_v19 = vld [vmem:[%s5812_s9 + $0x30] sm:$0xff]  ;;  %v345_v20 = vld [vmem:[%s5812_s9 + $0x38] sm:$0xf]  ;;  %v626_v36 = vmul.f32 %v5822_v8, %v339_v9  ;;  %v5887_v37 = vmul.f32 %v5833_v14, %v339_v9  ;;  %v5890_v38 = vmul.f32 %v5822_v8, %v342_v16 }
  0x20   : > { %402 = vst [vmem:[#allocation2] sm:$0xff] %v338_v7  ;;  %403 = vst [vmem:[#allocation2 + $0x8] sm:$0xff] %v339_v9  ;;  %v346_v21 = vld [vmem:[%s5812_s9 + $0x40] sm:$0xff]  ;;  %v5853_v25 = vld [vmem:[%s5812_s9 + $0x48] sm:$0xff]  ;;  %v5893_v39 = vmul.f32 %v5822_v8, %v343_v17  ;;  %v5905_v43 = vmul.f32 %v5833_v14, %v340_v11  ;;  %v5908_v44 = vmul.f32 %v5833_v14, %v343_v17 }
  0x21   : > { %9917 = vst [vmem:[#allocation14_spill] sm:$0xff] %v5833_v14  ;;  %404 = vst [vmem:[#allocation2 + $0x10] sm:$0xff] %v340_v11  ;;  %v5861_v27 = vld [vmem:[%s5812_s9 + $0x50] sm:$0xff]  ;;  %v349_v28 = vld [vmem:[%s5812_s9 + $0x58] sm:$0xf]  ;;  %v5911_v45 = vmul.f32 %v5833_v14, %v344_v19  ;;  %v5914_v46 = vmul.f32 %v5822_v8, %v346_v21  ;;  %v5926_v50 = vmul.f32 %v5850_v24, %v346_v21 }
  0x22   : > { %9918 = vst [vmem:[#allocation15_spill] sm:$0xff] %v5838_v18  ;;  %405 = vst [vmem:[#allocation2 + $0x18] sm:$0xf] %v341_v15  ;;  %v350_v33 = vld [vmem:[%s5812_s9 + $0x60] sm:$0xff]  ;;  %v5880_v34 = vld [vmem:[%s5812_s9 + $0x68] sm:$0xff]  ;;  %v5930_v51 = vmul.f32 %v5822_v8, %v5853_v25  ;;  %v5934_v52 = vmul.f32 %v5833_v14, %v5853_v25  ;;  %v5938_v53 = vmul.f32 %v5850_v24, %v5853_v25 }
  0x23   : > { %406 = vst [vmem:[#allocation2 + $0x20] sm:$0xff] %v342_v16  ;;  %407 = vst [vmem:[#allocation2 + $0x28] sm:$0xff] %v343_v17  ;;  %v5883_v35 = vld [vmem:[%s5812_s9 + $0x70] sm:$0xff]  ;;  %v353_v40 = vld [vmem:[%s5812_s9 + $0x78] sm:$0xf]  ;;  %v5951_v60 = vrot.slane %v5858_v26, %v5805_v3  ;;  %v5955_v61 = vrot.slane %v5858_v26, %v5814_v4  ;;  %v5959_v62 = vrot.slane %v5858_v26, %v5816_v5 }
  0x24   : > { %9919 = vst [vmem:[#allocation16_spill] sm:$0xff] %v5844_v22  ;;  %9920 = vst [vmem:[#allocation17_spill] sm:$0xff] %v5847_v23  ;;  %v5899_v41 = vld [vmem:[%s5812_s9 + $0x80] sm:$0xff]  ;;  %v5902_v42 = vld [vmem:[%s5812_s9 + $0x88] sm:$0xff]  ;;  %v5963_v63 = vrot.slane %v5858_v26, %v5825_v10  ;;  %v5970_v9 = vmul.f32 %v5833_v14, %v5861_v27  ;;  %v5974_v11 = vrot.slane %v5858_v26, %v5818_v6 }
  0x25   : > { %408 = vst [vmem:[#allocation2 + $0x30] sm:$0xff] %v344_v19  ;;  %409 = vst [vmem:[#allocation2 + $0x38] sm:$0xf] %v345_v20  ;;  %v5919_v47 = vld [vmem:[%s5812_s9 + $0x90] sm:$0xff]  ;;  %v357_v48 = vld [vmem:[%s5812_s9 + $0x98] sm:$0xf]  ;;  %v5978_v15 = vrot.slane %v5858_v26, %v5828_v12  ;;  %v5982_v20 = vmul.f32 %v5822_v8, %v350_v33 }
  0x26   : > { %410 = vst [vmem:[#allocation2 + $0x40] sm:$0xff] %v346_v21  ;;  %9921 = vst [vmem:[#allocation18_spill] sm:$0xff] %v5850_v24  ;;  %v5923_v49 = vld [vmem:[%s5812_s9 + $0xa0] sm:$0xff]  ;;  %v5943_v54 = vld [vmem:[%s5812_s9 + $0xa8] sm:$0xff]  ;;  %v5985_v21 = vmul.f32 %v5850_v24, %v350_v33 }
  0x27   : > { %9923 = vst [vmem:[#allocation20_spill] sm:$0xff] %v5868_v30  ;;  %411 = vst [vmem:[#allocation2 + $0x48] sm:$0xff] %v5853_v25  ;;  %v5946_v55 = vld [vmem:[%s5812_s9 + $0xb0] sm:$0xff]  ;;  %v361_v56 = vld [vmem:[%s5812_s9 + $0xb8] sm:$0xf] }
  0x28   : > { %412 = vst [vmem:[#allocation2 + $0x50] sm:$0xff] %v5861_v27  ;;  %413 = vst [vmem:[#allocation2 + $0x58] sm:$0xf] %v349_v28  ;;  %v657_v57 = vld [vmem:[#allocation2 + $0x2] sm:$0xff]  ;;  %v658_v1 = vld [vmem:[#allocation2 + $0xa] sm:$0xff]  ;;  %v5989_v28 = vmul.f32 %v5822_v8, %v5880_v34 }
  0x29   : > { %414 = vst [vmem:[#allocation2 + $0x60] sm:$0xff] %v350_v33  ;;  %415 = vst [vmem:[#allocation2 + $0x68] sm:$0xff] %v5880_v34  ;;  %v709_v58 = vld [vmem:[#allocation2 + $0x4] sm:$0xff]  ;;  %v677_v0 = vmul.f32 %v5844_v22, %v657_v57  ;;  %v710_v2 = vld [vmem:[#allocation2 + $0xc] sm:$0xff]  ;;  %v678_v16 = vmul.f32 %v5844_v22, %v658_v1  ;;  %v869_v33 = vmul.f32 %v5871_v31, %v658_v1 }
  0x2a   : > { %416 = vst [vmem:[#allocation2 + $0x70] sm:$0xff] %v5883_v35  ;;  %9924 = vst [vmem:[#allocation21_spill] sm:$0xff] %v5902_v42  ;;  %v761_v59 = vld [vmem:[#allocation2 + $0x6] sm:$0xff]  ;;  %v762_v7 = vld [vmem:[#allocation2 + $0xe] sm:$0xff]  ;;  %v730_v57 = vmul.f32 %v5847_v23, %v710_v2 }
  0x2b   : > { %417 = vst [vmem:[#allocation2 + $0x78] sm:$0xf] %v353_v40  ;;  %418 = vst [vmem:[#allocation2 + $0x80] sm:$0xff] %v5899_v41  ;;  %v857_v17 = vld [vmem:[#allocation2 + $0x12] sm:$0xff]  ;;  %v659_v19 = vld [vmem:[#allocation2 + $0x22] sm:$0xff]  ;;  %v693_v40 = vadd.f32 %v677_v0, %v5865_v29  ;;  %v782_v6 = vmul.f32 %v5868_v30, %v762_v7  ;;  %v913_v29 = vmul.f32 %v5874_v32, %v710_v2 }
  0x2c   : > { %419 = vst [vmem:[#allocation2 + $0x88] sm:$0xff] %v5902_v42  ;;  %9925 = vst [vmem:[#allocation22_spill] sm:$0xff] %v5919_v47  ;;  %v901_v12 = vld [vmem:[#allocation2 + $0x14] sm:$0xff]  ;;  %v679_v10 = vmul.f32 %v5844_v22, %v659_v19  ;;  %v712_v5 = vld [vmem:[#allocation2 + $0x2c] sm:$0xff] }
  0x2d   : > { %9926 = vst [vmem:[#allocation23_spill] sm:$0xff] %v5923_v49  ;;  %420 = vst [vmem:[#allocation2 + $0x90] sm:$0xff] %v5919_v47  ;;  %v763_v47 = vld [vmem:[#allocation2 + $0x26] sm:$0xff]  ;;  %v764_v0 = vld [vmem:[#allocation2 + $0x2e] sm:$0xff]  ;;  %v732_v2 = vmul.f32 %v5847_v23, %v712_v5 }
  0x2e   : > { %421 = vst [vmem:[#allocation2 + $0x98] sm:$0xf] %v357_v48  ;;  %422 = vst [vmem:[#allocation2 + $0xa0] sm:$0xff] %v5923_v49  ;;  %v729_v48 = vmul.f32 %v5847_v23, %v709_v58  ;;  %v694_v49 = vadd.f32 %v678_v16, %v626_v36  ;;  %v870_v58 = vmul.f32 %v5871_v31, %v857_v17  ;;  %v661_v3 = vld [vmem:[#allocation2 + $0x42] sm:$0xff]  ;;  %v858_v13 = vld [vmem:[#allocation2 + $0x32] sm:$0xff] }
  0x2f   : > { %9927 = vst [vmem:[#allocation24_spill] sm:$0xff] %v5943_v54  ;;  %9928 = vst [vmem:[#allocation25_spill] sm:$0xff] %v5946_v55  ;;  %v914_v36 = vmul.f32 %v5874_v32, %v901_v12  ;;  %v695_v7 = vadd.f32 %v679_v10, %v5890_v38  ;;  %v783_v19 = vmul.f32 %v5868_v30, %v763_v47  ;;  %v6009_v12 = vld [vmem:[#allocation2 + $0x4a] sm:$0xff] }
  0x30   : > { %423 = vst [vmem:[#allocation2 + $0xa8] sm:$0xff] %v5943_v54  ;;  %424 = vst [vmem:[#allocation2 + $0xb0] sm:$0xff] %v5946_v55  ;;  %v711_v55 = vld [vmem:[#allocation2 + $0x24] sm:$0xff]  ;;  %v745_v4 = vadd.f32 %v729_v48, %v693_v40  ;;  %v746_v18 = vadd.f32 %v730_v57, %v694_v49  ;;  %v784_v26 = vmul.f32 %v5868_v30, %v764_v0  ;;  %v6017_v57 = vld [vmem:[#allocation2 + $0x4c] sm:$0xff] }
  0x31   : > { %425 = vst [vmem:[#allocation2 + $0xb8] sm:$0xf] %v361_v56  ;;  %9929 = vst [vmem:[#allocation26_spill] sm:$0xff] %v5974_v11  ;;  %v781_v56 = vmul.f32 %v5868_v30, %v761_v59  ;;  %v660_v54 = vld [vmem:[#allocation2 + $0x2a] sm:$0xff]  ;;  %v731_v1 = vmul.f32 %v5847_v23, %v711_v55  ;;  %v681_v49 = vmul.f32 %v5844_v22, %v661_v3 }
  0x32   : > { %9930 = vst [vmem:[#allocation27_spill] sm:$0xff] %v5978_v15  ;;  %v680_v59 = vmul.f32 %v5844_v22, %v660_v54  ;;  %v713_v48 = vld [vmem:[#allocation2 + $0x44] sm:$0xff]  ;;  %v798_v17 = vadd.f32 %v782_v6, %v746_v18  ;;  %v915_v47 = vmul.f32 %v5874_v32, %v712_v5 }
  0x33   : > { %v797_v16 = vadd.f32 %v781_v56, %v745_v4  ;;  %v747_v42 = vadd.f32 %v731_v1, %v695_v7  ;;  %v871_v4 = vmul.f32 %v5871_v31, %v660_v54  ;;  %v697_v6 = vadd.f32 %v681_v49, %v5914_v46 }
  0x34   : > { %v696_v40 = vadd.f32 %v680_v59, %v5893_v39  ;;  %v765_v39 = vld [vmem:[#allocation2 + $0x46] sm:$0xff]  ;;  %v842_v55 = vadd.f32 %v5905_v43, %v798_v17  ;;  %v733_v18 = vmul.f32 %v5847_v23, %v713_v48  ;;  %v872_v7 = vmul.f32 %v5871_v31, %v858_v13 }
  0x35   : > { %v841_v10 = vadd.f32 %v5887_v37, %v797_v16  ;;  %v799_v56 = vadd.f32 %v783_v19, %v747_v42  ;;  %v682_v37 = vmul.f32 %v5844_v22, %v6009_v12  ;;  %v785_v43 = vmul.f32 %v5868_v30, %v765_v39  ;;  %v766_v42 = vld [vmem:[#allocation2 + $0x4e] sm:$0xff] }
  0x36   : > { %v748_v38 = vadd.f32 %v732_v2, %v696_v40  ;;  %v886_v54 = vadd.f32 %v870_v58, %v842_v55  ;;  %v749_v1 = vadd.f32 %v733_v18, %v697_v6  ;;  %v902_v19 = vld [vmem:[#allocation2 + $0x34] sm:$0xff]  ;;  %v734_v13 = vmul.f32 %v5847_v23, %v6017_v57  ;;  %v6054_v18 = vld [vmem:[%s5812_s9 + $0xe8] sm:$0xff] }
  0x37   : > { %v885_v59 = vadd.f32 %v869_v33, %v841_v10  ;;  %v843_v5 = vadd.f32 %v5908_v44, %v799_v56  ;;  %v1020_v44 = vmul.f32 %v5951_v60, %v661_v3  ;;  %v916_v49 = vmul.f32 %v5874_v32, %v902_v19  ;;  %v6040_v3 = vld [vmem:[%s5812_s9 + $0xc8] sm:$0xff]  ;;  %9934 = vst [vmem:[#allocation31_spill] sm:$0xff] %v6054_v18  ;;  %v372_v19 = vld [vmem:[%s5812_s9 + $0x110] sm:$0xff] }
  0x38   : > { %v800_v0 = vadd.f32 %v784_v26, %v748_v38  ;;  %v698_v26 = vadd.f32 %v682_v37, %v5930_v51  ;;  %v930_v33 = vadd.f32 %v914_v36, %v886_v54  ;;  %v801_v40 = vadd.f32 %v785_v43, %v749_v1  ;;  %v6037_v38 = vld [vmem:[%s5812_s9 + $0xc0] sm:$0xff]  ;;  %9931 = vst [vmem:[#allocation28_spill] sm:$0xff] %v6040_v3  ;;  %v369_v37 = vld [vmem:[%s5812_s9 + $0xf8] sm:$0xf] }
  0x39   : > { %v929_v16 = vadd.f32 %v913_v29, %v885_v59  ;;  %v887_v58 = vadd.f32 %v871_v4, %v843_v5  ;;  %v1021_v36 = vmul.f32 %v5951_v60, %v6009_v12  ;;  %v1072_v56 = vmul.f32 %v5955_v61, %v713_v48  ;;  %426 = vst [vmem:[#allocation2 + $0xc0] sm:$0xff] %v6037_v38  ;;  %v370_v54 = vld [vmem:[%s5812_s9 + $0x100] sm:$0xff] }
  0x3a   : > { %v844_v46 = vadd.f32 %v5911_v45, %v800_v0  ;;  %v750_v29 = vadd.f32 %v734_v13, %v698_v26  ;;  %v786_v45 = vmul.f32 %v5868_v30, %v766_v42  ;;  %v845_v51 = vadd.f32 %v5934_v52, %v801_v40  ;;  %427 = vst [vmem:[#allocation2 + $0xc8] sm:$0xff] %v6040_v3  ;;  %v365_v52 = vld [vmem:[%s5812_s9 + $0xd8] sm:$0xf]  ;;  %v715_v40 = vld [vmem:[#allocation2 + $0x64] sm:$0xff] }
  0x3b   : > { %v984_v17 = vadd.f32 %v5926_v50, %v929_v16  ;;  %v985_v10 = vadd.f32 %v5938_v53, %v930_v33  ;;  %v6043_v50 = vld [vmem:[%s5812_s9 + $0xd0] sm:$0xff]  ;;  %v931_v4 = vadd.f32 %v915_v47, %v887_v58  ;;  %v6051_v53 = vld [vmem:[%s5812_s9 + $0xe0] sm:$0xff]  ;;  %v1168_v47 = vmul.f32 %v5963_v63, %v5853_v25  ;;  %429 = vst [vmem:[#allocation2 + $0xd8] sm:$0xf] %v365_v52 }
  0x3c   : > { %v888_v2 = vadd.f32 %v872_v7, %v844_v46  ;;  %9932 = vst [vmem:[#allocation29_spill] sm:$0xff] %v6043_v50  ;;  %v802_v6 = vadd.f32 %v786_v45, %v750_v29  ;;  %428 = vst [vmem:[#allocation2 + $0xd0] sm:$0xff] %v6043_v50  ;;  %v1073_v48 = vmul.f32 %v5955_v61, %v6017_v57  ;;  %v6065_v7 = vld [vmem:[%s5812_s9 + $0xf0] sm:$0xff]  ;;  %v663_v16 = vld [vmem:[#allocation2 + $0x62] sm:$0xff] }
  0x3d   : > { %v1036_v55 = vadd.f32 %v1020_v44, %v984_v17  ;;  %9933 = vst [vmem:[#allocation30_spill] sm:$0xff] %v6051_v53  ;;  %v1037_v59 = vadd.f32 %v1021_v36, %v985_v10  ;;  %v971_v0 = vmul.f32 %v5850_v24, %v5880_v34  ;;  %430 = vst [vmem:[#allocation2 + $0xe0] sm:$0xff] %v6051_v53  ;;  %v371_v46 = vld [vmem:[%s5812_s9 + $0x108] sm:$0xff]  ;;  %v859_v10 = vld [vmem:[#allocation2 + $0x52] sm:$0xff] }
  0x3e   : > { %431 = vst [vmem:[#allocation2 + $0xe8] sm:$0xff] %v6054_v18  ;;  %9935 = vst [vmem:[#allocation32_spill] sm:$0xff] %v6065_v7  ;;  %v932_v5 = vadd.f32 %v916_v49, %v888_v2  ;;  %v1124_v1 = vmul.f32 %v5959_v62, %v765_v39  ;;  %v846_v43 = vadd.f32 %v5970_v9, %v802_v6  ;;  %v767_v36 = vld [vmem:[#allocation2 + $0x66] sm:$0xff] }
  0x3f   : > { %v1088_v25 = vadd.f32 %v1072_v56, %v1036_v55  ;;  %432 = vst [vmem:[#allocation2 + $0xf0] sm:$0xff] %v6065_v7  ;;  %433 = vst [vmem:[#allocation2 + $0xf8] sm:$0xf] %v369_v37  ;;  %v873_v26 = vmul.f32 %v5871_v31, %v6009_v12  ;;  %v1089_v13 = vadd.f32 %v1073_v48, %v1037_v59  ;;  %v716_v52 = vld [vmem:[#allocation2 + $0x6c] sm:$0xff]  ;;  %v903_v59 = vld [vmem:[#allocation2 + $0x54] sm:$0xff] }
  0x40   : > { %434 = vst [vmem:[#allocation2 + $0x100] sm:$0xff] %v370_v54  ;;  %v1125_v33 = vmul.f32 %v5959_v62, %v766_v42  ;;  %v1169_v58 = vmul.f32 %v5963_v63, %v5861_v27  ;;  %435 = vst [vmem:[#allocation2 + $0x108] sm:$0xff] %v371_v46  ;;  %v986_v9 = vadd.f32 %v5985_v21, %v931_v4  ;;  %v6085_v42 = vld [vmem:[#allocation2 + $0x6a] sm:$0xff] }
  0x41   : > { %436 = vst [vmem:[#allocation2 + $0x110] sm:$0xff] %v372_v19  ;;  %v1140_v39 = vadd.f32 %v1124_v1, %v1088_v25  ;;  %v831_v44 = vmul.f32 %v5833_v14, %v5880_v34  ;;  %v1170_v2 = vmul.f32 %v5963_v63, %v5880_v34  ;;  %v889_v17 = vadd.f32 %v873_v26, %v845_v51 }
  0x42   : > { %v1141_v29 = vadd.f32 %v1125_v33, %v1089_v13  ;;  %v683_v45 = vmul.f32 %v5844_v22, %v663_v16  ;;  %v832_v27 = vmul.f32 %v5833_v14, %v5883_v35  ;;  %v917_v21 = vmul.f32 %v5874_v32, %v6017_v57 }
  0x43   : > { %v1184_v49 = vadd.f32 %v1168_v47, %v1140_v39  ;;  %v987_v4 = vadd.f32 %v971_v0, %v932_v5  ;;  %v1022_v55 = vmul.f32 %v5951_v60, %v663_v16  ;;  %v1212_v34 = vmul.f32 %v5974_v11, %v6009_v12 }
  0x44   : > { %v1185_v56 = vadd.f32 %v1169_v58, %v1141_v29  ;;  %v699_v51 = vadd.f32 %v683_v45, %v5982_v20  ;;  %v735_v6 = vmul.f32 %v5847_v23, %v715_v40  ;;  %v1256_v47 = vmul.f32 %v5978_v15, %v6017_v57  ;;  %v768_v20 = vld [vmem:[#allocation2 + $0x6e] sm:$0xff] }
  0x45   : > { %v1038_v48 = vadd.f32 %v1022_v55, %v986_v9  ;;  %v1074_v37 = vmul.f32 %v5955_v61, %v715_v40  ;;  %v684_v0 = vmul.f32 %v5844_v22, %v6085_v42  ;;  %v933_v54 = vadd.f32 %v917_v21, %v889_v17 }
  0x46   : > { %v874_v5 = vmul.f32 %v5871_v31, %v859_v10  ;;  %v751_v25 = vadd.f32 %v735_v6, %v699_v51  ;;  %v787_v12 = vmul.f32 %v5868_v30, %v767_v36  ;;  %v1126_v16 = vmul.f32 %v5959_v62, %v767_v36  ;;  %v373_v51 = vld [vmem:[%s5812_s9 + $0x118] sm:$0xf]  ;;  %v374_v6 = vld [vmem:[%s5812_s9 + $0x120] sm:$0xff] }
  0x47   : > { %v1090_v1 = vadd.f32 %v1074_v37, %v1038_v48  ;;  %v700_v46 = vadd.f32 %v684_v0, %v5989_v28  ;;  %v736_v57 = vmul.f32 %v5847_v23, %v716_v52  ;;  %v918_v26 = vmul.f32 %v5874_v32, %v903_v59  ;;  %437 = vst [vmem:[#allocation2 + $0x118] sm:$0xf] %v373_v51  ;;  %v375_v0 = vld [vmem:[%s5812_s9 + $0x128] sm:$0xff] }
  0x48   : > { %v890_v19 = vadd.f32 %v874_v5, %v846_v43  ;;  %v803_v13 = vadd.f32 %v787_v12, %v751_v25  ;;  %v1023_v33 = vmul.f32 %v5951_v60, %v6085_v42  ;;  %v1213_v58 = vmul.f32 %v5974_v11, %v859_v10  ;;  %438 = vst [vmem:[#allocation2 + $0x120] sm:$0xff] %v374_v6  ;;  %v9936_v12 = vld [vmem:[#allocation13_spill] sm:$0xff]  ;;  %v6168_v6 = vld [vmem:[#allocation2 + $0x8a] sm:$0xff] }
  0x49   : > { %v1142_v39 = vadd.f32 %v1126_v16, %v1090_v1  ;;  %v752_v9 = vadd.f32 %v736_v57, %v700_v46  ;;  %v788_v40 = vmul.f32 %v5868_v30, %v768_v20  ;;  %v1228_v17 = vadd.f32 %v1212_v34, %v1184_v49  ;;  %v665_v49 = vld [vmem:[#allocation2 + $0x82] sm:$0xff]  ;;  %439 = vst [vmem:[#allocation2 + $0x128] sm:$0xff] %v375_v0 }
  0x4a   : > { %v6111_v29 = vadd.f32 %v831_v44, %v803_v13  ;;  %v1039_v28 = vadd.f32 %v1023_v33, %v987_v4  ;;  %v1075_v43 = vmul.f32 %v5955_v61, %v716_v52  ;;  %v1229_v45 = vadd.f32 %v1213_v58, %v1185_v56  ;;  %v6126_v56 = vld [vmem:[#allocation2 + $0x72] sm:$0xff]  ;;  %v717_v1 = vld [vmem:[#allocation2 + $0x84] sm:$0xff] }
  0x4b   : > { %v1257_v21 = vmul.f32 %v5978_v15, %v903_v59  ;;  %v6115_v36 = vadd.f32 %v1170_v2, %v1142_v39  ;;  %v804_v55 = vadd.f32 %v788_v40, %v752_v9  ;;  %v934_v10 = vadd.f32 %v918_v26, %v890_v19  ;;  %v769_v26 = vld [vmem:[#allocation2 + $0x86] sm:$0xff]  ;;  %v9939_v39 = vld [vmem:[#allocation21_spill] sm:$0xff] }
  0x4c   : > { %v1091_v48 = vadd.f32 %v1075_v43, %v1039_v28  ;;  %v1127_v37 = vmul.f32 %v5959_v62, %v768_v20  ;;  %v1171_v44 = vmul.f32 %v5963_v63, %v5883_v35  ;;  %v875_v2 = vmul.f32 %v5871_v31, %v6085_v42 }
  0x4d   : > { %v6122_v4 = vadd.f32 %v832_v27, %v804_v55  ;;  %v633_v34 = vmul.f32 %v5822_v8, %v5899_v41  ;;  %v972_v59 = vmul.f32 %v5850_v24, %v5899_v41  ;;  %v1272_v5 = vadd.f32 %v1256_v47, %v1228_v17  ;;  %v9937_v27 = vld [vmem:[#allocation19_spill] sm:$0xff] }
  0x4e   : > { %v6134_v35 = vmul.f32 %v5874_v32, %v716_v52  ;;  %v1143_v25 = vadd.f32 %v1127_v37, %v1091_v48  ;;  %v6138_v20 = vrot.slane %v9937_v27, %v9936_v12  ;;  %v1273_v16 = vadd.f32 %v1257_v21, %v1229_v45  ;;  %v904_v48 = vld [vmem:[#allocation2 + $0x74] sm:$0xff] }
  0x4f   : > { %v1214_v46 = vmul.f32 %v5974_v11, %v6085_v42  ;;  %v988_v57 = vadd.f32 %v972_v59, %v933_v54  ;;  %v685_v19 = vmul.f32 %v5844_v22, %v665_v49  ;;  %v6146_v47 = vmul.f32 %v5978_v15, %v716_v52  ;;  %v6160_v52 = vld [vmem:[%s9795_s2 + $0x10] sm:$0xff]  ;;  %v9940_v59 = vld [vmem:[#allocation15_spill] sm:$0xff] }
  0x50   : > { %9938 = vst [vmem:[#allocation19_spill] sm:$0xff] %v6138_v20  ;;  %v6143_v13 = vadd.f32 %v1171_v44, %v1143_v25  ;;  %v876_v33 = vmul.f32 %v5871_v31, %v6126_v56  ;;  %v1311_v58 = vmul.f32 %v6138_v20, %v5899_v41  ;;  %v634_v9 = vmul.f32 %v5822_v8, %v9939_v39 }
  0x51   : > { %v701_v40 = vadd.f32 %v685_v19, %v633_v34  ;;  %v737_v42 = vmul.f32 %v5847_v23, %v717_v1  ;;  %v973_v54 = vmul.f32 %v5850_v24, %v9939_v39  ;;  %v789_v28 = vmul.f32 %v5868_v30, %v769_v26  ;;  %v9942_v19 = vld [vmem:[#allocation7_spill] sm:$0xff] }
  0x52   : > { %v1327_v17 = vadd.f32 %v1311_v58, %v1272_v5  ;;  %v833_v41 = vmul.f32 %v5833_v14, %v9939_v39  ;;  %v1024_v43 = vmul.f32 %v5951_v60, %v665_v49  ;;  %v1076_v55 = vmul.f32 %v5955_v61, %v717_v1 }
  0x53   : > { %v753_v45 = vadd.f32 %v737_v42, %v701_v40  ;;  %v989_v21 = vadd.f32 %v973_v54, %v934_v10  ;;  %v1128_v51 = vmul.f32 %v5959_v62, %v769_v26  ;;  %v1172_v44 = vmul.f32 %v5963_v63, %v9939_v39  ;;  %v9941_v10 = vld [vmem:[#allocation6_spill] sm:$0xff]  ;;  %v6190_v42 = vld [vmem:[#allocation2 + $0x8c] sm:$0xff] }
  0x54   : > { %v1040_v37 = vadd.f32 %v1024_v43, %v988_v57  ;;  %v1312_v34 = vmul.f32 %v6138_v20, %v9939_v39  ;;  %v6176_v0 = vrot.slane %v9937_v27, %v9940_v59  ;;  %v6180_v25 = vrot.slane %v6160_v52, %v9941_v10  ;;  %v9944_v57 = vld [vmem:[#allocation8_spill] sm:$0xff] }
  0x55   : > { %v805_v5 = vadd.f32 %v789_v28, %v753_v45  ;;  %v6184_v58 = vrot.slane %v6160_v52, %v9942_v19  ;;  %v6188_v40 = vrot.slane %v6160_v52, %v9944_v57  ;;  %v686_v28 = vmul.f32 %v5844_v22, %v6168_v6  ;;  %v770_v45 = vld [vmem:[#allocation2 + $0x8e] sm:$0xff] }
  0x56   : > { %v1092_v54 = vadd.f32 %v1076_v55, %v1040_v37  ;;  %v1328_v43 = vadd.f32 %v1312_v34, %v1273_v16  ;;  %v1363_v27 = vmul.f32 %v6176_v0, %v665_v49  ;;  %v891_v7 = vadd.f32 %v875_v2, %v6111_v29  ;;  %v376_v16 = vld [vmem:[%s5812_s9 + $0x130] sm:$0xff]  ;;  %v9946_v29 = vld [vmem:[#allocation22_spill] sm:$0xff] }
  0x57   : > { %9943 = vst [vmem:[#allocation21_spill] sm:$0xff] %v6184_v58  ;;  %9945 = vst [vmem:[#allocation33_spill] sm:$0xff] %v6188_v40  ;;  %v920_v18 = vmul.f32 %v5874_v32, %v904_v48  ;;  %v849_v53 = vadd.f32 %v833_v41, %v805_v5  ;;  %v1415_v50 = vmul.f32 %v6180_v25, %v717_v1 }
  0x58   : > { %v1144_v19 = vadd.f32 %v1128_v51, %v1092_v54  ;;  %v1379_v57 = vadd.f32 %v1363_v27, %v1327_v17  ;;  %v702_v10 = vadd.f32 %v686_v28, %v634_v9  ;;  %v738_v55 = vmul.f32 %v5847_v23, %v6190_v42  ;;  %440 = vst [vmem:[#allocation2 + $0x130] sm:$0xff] %v376_v16 }
  0x59   : > { %v1467_v49 = vmul.f32 %v6184_v58, %v769_v26  ;;  %v1511_v37 = vmul.f32 %v6188_v40, %v9939_v39  ;;  %v790_v34 = vmul.f32 %v5868_v30, %v770_v45  ;;  %v834_v2 = vmul.f32 %v5833_v14, %v9946_v29 }
  0x5a   : > { %v1188_v41 = vadd.f32 %v1172_v44, %v1144_v19  ;;  %v1431_v1 = vadd.f32 %v1415_v50, %v1379_v57  ;;  %v754_v51 = vadd.f32 %v738_v55, %v702_v10  ;;  %v1025_v9 = vmul.f32 %v5951_v60, %v6168_v6 }
  0x5b   : > { %v1230_v17 = vadd.f32 %v1214_v46, %v6115_v36  ;;  %v892_v5 = vadd.f32 %v876_v33, %v6122_v4  ;;  %v1215_v26 = vmul.f32 %v5974_v11, %v6126_v56  ;;  %v1259_v39 = vmul.f32 %v5978_v15, %v904_v48 }
  0x5c   : > { %v1483_v54 = vadd.f32 %v1467_v49, %v1431_v1  ;;  %v806_v27 = vadd.f32 %v790_v34, %v754_v51  ;;  %v1041_v28 = vadd.f32 %v1025_v9, %v989_v21  ;;  %v1077_v44 = vmul.f32 %v5955_v61, %v6190_v42  ;;  %v9947_v9 = vld [vmem:[#allocation11_spill] sm:$0xff] }
  0x5d   : > { %v877_v50 = vmul.f32 %v5871_v31, %v6168_v6  ;;  %v1129_v10 = vmul.f32 %v5959_v62, %v770_v45  ;;  %v1173_v36 = vmul.f32 %v5963_v63, %v9946_v29  ;;  %v1364_v4 = vmul.f32 %v6176_v0, %v6168_v6 }
  0x5e   : > { %v6223_v56 = vadd.f32 %v1511_v37, %v1483_v54  ;;  %v850_v46 = vadd.f32 %v834_v2, %v806_v27  ;;  %v1093_v33 = vadd.f32 %v1077_v44, %v1041_v28  ;;  %v1216_v21 = vmul.f32 %v5974_v11, %v6168_v6  ;;  %v667_v44 = vld [vmem:[#allocation2 + $0xa2] sm:$0xff] }
  0x5f   : > { %v1231_v48 = vadd.f32 %v1215_v26, %v6143_v13  ;;  %v893_v19 = vadd.f32 %v877_v50, %v849_v53  ;;  %v1380_v57 = vadd.f32 %v1364_v4, %v1328_v43  ;;  %v1416_v55 = vmul.f32 %v6180_v25, %v6190_v42  ;;  %v861_v13 = vld [vmem:[#allocation2 + $0x92] sm:$0xff] }
  0x60   : > { %v935_v16 = vadd.f32 %v6134_v35, %v891_v7  ;;  %v921_v49 = vmul.f32 %v5874_v32, %v6190_v42  ;;  %v1145_v34 = vadd.f32 %v1129_v10, %v1093_v33  ;;  %v1232_v37 = vadd.f32 %v1216_v21, %v1188_v41  ;;  %v9948_v35 = vld [vmem:[#allocation9_spill] sm:$0xff]  ;;  %v719_v33 = vld [vmem:[#allocation2 + $0xa4] sm:$0xff] }
  0x61   : > { %v1432_v1 = vadd.f32 %v1416_v55, %v1380_v57  ;;  %v1468_v2 = vmul.f32 %v6184_v58, %v770_v45  ;;  %v1512_v51 = vmul.f32 %v6188_v40, %v9946_v29  ;;  %v6238_v53 = vrot.slane %v6160_v52, %v9947_v9  ;;  %v905_v45 = vld [vmem:[#allocation2 + $0x94] sm:$0xff]  ;;  %v771_v55 = vld [vmem:[#allocation2 + $0xa6] sm:$0xff] }
  0x62   : > { %v1274_v43 = vadd.f32 %v6146_v47, %v1230_v17  ;;  %v6241_v26 = vadd.f32 %v1173_v36, %v1145_v34  ;;  %v1260_v7 = vmul.f32 %v5978_v15, %v6190_v42  ;;  %v6247_v41 = vrot.slane %v6160_v52, %v9948_v35  ;;  %v9952_v17 = vld [vmem:[#allocation23_spill] sm:$0xff] }
  0x63   : > { %v936_v54 = vadd.f32 %v920_v18, %v892_v5  ;;  %v1275_v27 = vadd.f32 %v1259_v39, %v1231_v48  ;;  %v6249_v29 = vadd.f32 %v921_v49, %v893_v19  ;;  %v1484_v28 = vadd.f32 %v1468_v2, %v1432_v1  ;;  %v377_v2 = vld [vmem:[%s5812_s9 + $0x138] sm:$0xf]  ;;  %v6292_v35 = vld [vmem:[#allocation2 + $0xac] sm:$0xff] }
  0x64   : > { %9949 = vst [vmem:[#allocation22_spill] sm:$0xff] %v6247_v41  ;;  %v6251_v50 = vadd.f32 %v1260_v7, %v1232_v37  ;;  %v878_v47 = vmul.f32 %v5871_v31, %v861_v13  ;;  %v635_v10 = vmul.f32 %v5822_v8, %v9952_v17  ;;  %v974_v36 = vmul.f32 %v5850_v24, %v9952_v17  ;;  %v9953_v37 = vld [vmem:[#allocation24_spill] sm:$0xff] }
  0x65   : > { %9950 = vst [vmem:[#allocation34_spill] sm:$0xff] %v6249_v29  ;;  %v1528_v4 = vadd.f32 %v1512_v51, %v1484_v28  ;;  %v1555_v18 = vmul.f32 %v6238_v53, %v6168_v6  ;;  %v6261_v5 = vmul.f32 %v5874_v32, %v905_v45  ;;  %v1313_v39 = vmul.f32 %v6138_v20, %v9952_v17  ;;  %v6289_v17 = vld [vmem:[#allocation2 + $0xaa] sm:$0xff] }
  0x66   : > { %9951 = vst [vmem:[#allocation35_spill] sm:$0xff] %v6251_v50  ;;  %v6267_v21 = vmul.f32 %v6247_v41, %v6190_v42  ;;  %v1217_v48 = vmul.f32 %v5974_v11, %v861_v13  ;;  %v990_v19 = vadd.f32 %v974_v36, %v935_v16  ;;  %v687_v57 = vmul.f32 %v5844_v22, %v667_v44 }
  0x67   : > { %v6271_v49 = vadd.f32 %v878_v47, %v850_v46  ;;  %v6274_v6 = vmul.f32 %v5978_v15, %v905_v45  ;;  %v1329_v34 = vadd.f32 %v1313_v39, %v1274_v43  ;;  %v636_v1 = vmul.f32 %v5822_v8, %v9953_v37  ;;  %441 = vst [vmem:[#allocation2 + $0x138] sm:$0xf] %v377_v2 }
  0x68   : > { %v703_v51 = vadd.f32 %v687_v57, %v635_v10  ;;  %v739_v42 = vmul.f32 %v5847_v23, %v719_v33  ;;  %v975_v7 = vmul.f32 %v5850_v24, %v9953_v37  ;;  %v1026_v16 = vmul.f32 %v5951_v60, %v667_v44 }
  0x69   : > { %v791_v46 = vmul.f32 %v5868_v30, %v771_v55  ;;  %v835_v28 = vmul.f32 %v5833_v14, %v9953_v37  ;;  %v1078_v43 = vmul.f32 %v5955_v61, %v719_v33  ;;  %v1314_v47 = vmul.f32 %v6138_v20, %v9953_v37 }
  0x6a   : > { %v755_v10 = vadd.f32 %v739_v42, %v703_v51  ;;  %v991_v36 = vadd.f32 %v975_v7, %v936_v54  ;;  %v1042_v39 = vadd.f32 %v1026_v16, %v990_v19  ;;  %v1365_v57 = vmul.f32 %v6176_v0, %v667_v44  ;;  %v378_v19 = vld [vmem:[%s5812_s9 + $0x140] sm:$0xff] }
  0x6b   : > { %v1130_v2 = vmul.f32 %v5959_v62, %v771_v55  ;;  %v1174_v9 = vmul.f32 %v5963_v63, %v9953_v37  ;;  %v1330_v59 = vadd.f32 %v1314_v47, %v1275_v27  ;;  %v1417_v12 = vmul.f32 %v6180_v25, %v719_v33  ;;  %442 = vst [vmem:[#allocation2 + $0x140] sm:$0xff] %v378_v19 }
  0x6c   : > { %v807_v3 = vadd.f32 %v791_v46, %v755_v10  ;;  %v1094_v50 = vadd.f32 %v1078_v43, %v1042_v39  ;;  %v1381_v29 = vadd.f32 %v1365_v57, %v1329_v34  ;;  %v688_v54 = vmul.f32 %v5844_v22, %v6289_v17  ;;  %v772_v34 = vld [vmem:[#allocation2 + $0xae] sm:$0xff] }
  0x6d   : > { %v1556_v44 = vmul.f32 %v6238_v53, %v861_v13  ;;  %v1469_v51 = vmul.f32 %v6184_v58, %v771_v55  ;;  %v1513_v42 = vmul.f32 %v6188_v40, %v9953_v37  ;;  %v740_v27 = vmul.f32 %v5847_v23, %v6292_v35  ;;  %v379_v43 = vld [vmem:[%s5812_s9 + $0x148] sm:$0xff] }
  0x6e   : > { %v851_v33 = vadd.f32 %v835_v28, %v807_v3  ;;  %v1146_v7 = vadd.f32 %v1130_v2, %v1094_v50  ;;  %v1433_v16 = vadd.f32 %v1417_v12, %v1381_v29  ;;  %v704_v46 = vadd.f32 %v688_v54, %v636_v1  ;;  %443 = vst [vmem:[#allocation2 + $0x148] sm:$0xff] %v379_v43  ;;  %v9954_v50 = vld [vmem:[#allocation25_spill] sm:$0xff] }
  0x6f   : > { %v1571_v47 = vadd.f32 %v1555_v18, %v6223_v56  ;;  %v1233_v10 = vadd.f32 %v1217_v48, %v6241_v26  ;;  %v1600_v13 = vmul.f32 %v6247_v41, %v905_v45  ;;  %v1027_v55 = vmul.f32 %v5951_v60, %v6289_v17  ;;  %v862_v43 = vld [vmem:[#allocation2 + $0xb2] sm:$0xff] }
  0x70   : > { %v1572_v37 = vadd.f32 %v1556_v44, %v1528_v4  ;;  %v1190_v39 = vadd.f32 %v1174_v9, %v1146_v7  ;;  %v1485_v57 = vadd.f32 %v1469_v51, %v1433_v16  ;;  %v756_v19 = vadd.f32 %v740_v27, %v704_v46 }
  0x71   : > { %v792_v3 = vmul.f32 %v5868_v30, %v772_v34  ;;  %v879_v12 = vmul.f32 %v5871_v31, %v6289_v17  ;;  %v1043_v29 = vadd.f32 %v1027_v55, %v991_v36  ;;  %v1079_v56 = vmul.f32 %v5955_v61, %v6292_v35  ;;  %v669_v55 = vld [vmem:[#allocation2 + $0xc2] sm:$0xff] }
  0x72   : > { %v1529_v26 = vadd.f32 %v1513_v42, %v1485_v57  ;;  %v836_v45 = vmul.f32 %v5833_v14, %v9954_v50  ;;  %v1218_v18 = vmul.f32 %v5974_v11, %v6289_v17  ;;  %v1366_v9 = vmul.f32 %v6176_v0, %v6289_v17 }
  0x73   : > { %v808_v4 = vadd.f32 %v792_v3, %v756_v19  ;;  %v895_v48 = vadd.f32 %v879_v12, %v851_v33  ;;  %v1095_v1 = vadd.f32 %v1079_v56, %v1043_v29  ;;  %v1131_v28 = vmul.f32 %v5959_v62, %v772_v34  ;;  %v380_v12 = vld [vmem:[%s5812_s9 + $0x150] sm:$0xff] }
  0x74   : > { %v1175_v36 = vmul.f32 %v5963_v63, %v9954_v50  ;;  %v1234_v2 = vadd.f32 %v1218_v18, %v1190_v39  ;;  %v1382_v54 = vadd.f32 %v1366_v9, %v1330_v59  ;;  %v1418_v44 = vmul.f32 %v6180_v25, %v6292_v35  ;;  %v721_v18 = vld [vmem:[#allocation2 + $0xc4] sm:$0xff]  ;;  %444 = vst [vmem:[#allocation2 + $0x150] sm:$0xff] %v380_v12 }
  0x75   : > { %v1615_v51 = vadd.f32 %v6267_v21, %v1571_v47  ;;  %v6332_v42 = vadd.f32 %v6261_v5, %v6271_v49  ;;  %v923_v27 = vmul.f32 %v5874_v32, %v6292_v35  ;;  %v1147_v33 = vadd.f32 %v1131_v28, %v1095_v1  ;;  %v9958_v28 = vld [vmem:[#allocation35_spill] sm:$0xff] }
  0x76   : > { %v6337_v7 = vadd.f32 %v6274_v6, %v1233_v10  ;;  %v6339_v16 = vadd.f32 %v1600_v13, %v1572_v37  ;;  %v1262_v59 = vmul.f32 %v5978_v15, %v6292_v35  ;;  %v1434_v46 = vadd.f32 %v1418_v44, %v1382_v54  ;;  %v906_v13 = vld [vmem:[#allocation2 + $0xb4] sm:$0xff] }
  0x77   : > { %v852_v21 = vadd.f32 %v836_v45, %v808_v4  ;;  %v6343_v47 = vadd.f32 %v923_v27, %v895_v48  ;;  %v1470_v5 = vmul.f32 %v6184_v58, %v772_v34  ;;  %v1514_v49 = vmul.f32 %v6188_v40, %v9954_v50  ;;  %v9955_v50 = vld [vmem:[#allocation12_spill] sm:$0xff]  ;;  %v9957_v48 = vld [vmem:[#allocation34_spill] sm:$0xff] }
  0x78   : > { %v1191_v39 = vadd.f32 %v1175_v36, %v1147_v33  ;;  %v6348_v6 = vadd.f32 %v1262_v59, %v1234_v2  ;;  %v1557_v10 = vmul.f32 %v6238_v53, %v6289_v17  ;;  %v637_v37 = vmul.f32 %v5822_v8, %v6037_v38 }
  0x79   : > { %v1486_v57 = vadd.f32 %v1470_v5, %v1434_v46  ;;  %v880_v19 = vmul.f32 %v5871_v31, %v862_v43  ;;  %v976_v34 = vmul.f32 %v5850_v24, %v6037_v38  ;;  %v1315_v3 = vmul.f32 %v6138_v20, %v6037_v38 }
  0x7a   : > { %v1573_v29 = vadd.f32 %v1557_v10, %v1529_v26  ;;  %v1219_v56 = vmul.f32 %v5974_v11, %v862_v43  ;;  %v6363_v17 = vrot.slane %v6160_v52, %v9955_v50  ;;  %v689_v45 = vmul.f32 %v5844_v22, %v669_v55 }
  0x7b   : > { %v1601_v9 = vmul.f32 %v6247_v41, %v6292_v35  ;;  %v924_v4 = vmul.f32 %v5874_v32, %v906_v13  ;;  %v992_v1 = vadd.f32 %v976_v34, %v9957_v48  ;;  %v1331_v36 = vadd.f32 %v1315_v3, %v9958_v28  ;;  %v9961_v28 = vld [vmem:[#allocation13_spill] sm:$0xff] }
  0x7c   : > { %9956 = vst [vmem:[#allocation23_spill] sm:$0xff] %v6363_v17  ;;  %v896_v26 = vadd.f32 %v880_v19, %v852_v21  ;;  %v1235_v2 = vadd.f32 %v1219_v56, %v1191_v39  ;;  %v1654_v54 = vmul.f32 %v6363_v17, %v6037_v38  ;;  %v705_v44 = vadd.f32 %v689_v45, %v637_v37  ;;  %v773_v21 = vld [vmem:[#allocation2 + $0xc6] sm:$0xff]  ;;  %v9959_v19 = vld [vmem:[#allocation28_spill] sm:$0xff] }
  0x7d   : > { %v1530_v27 = vadd.f32 %v1514_v49, %v1486_v57  ;;  %v1263_v33 = vmul.f32 %v5978_v15, %v906_v13  ;;  %v741_v59 = vmul.f32 %v5847_v23, %v721_v18  ;;  %v1028_v46 = vmul.f32 %v5951_v60, %v669_v55  ;;  %v6393_v45 = vld [vmem:[#allocation2 + $0xca] sm:$0xff] }
  0x7e   : > { %v6376_v35 = vadd.f32 %v1601_v9, %v1573_v29  ;;  %v1558_v5 = vmul.f32 %v6238_v53, %v862_v43  ;;  %v1602_v10 = vmul.f32 %v6247_v41, %v906_v13  ;;  %v1670_v34 = vadd.f32 %v1654_v54, %v1615_v51  ;;  %v6398_v9 = vld [vmem:[%s9795_s2 + $0x18] sm:$0xff] }
  0x7f   : > { %v757_v39 = vadd.f32 %v741_v59, %v705_v44  ;;  %v977_v38 = vmul.f32 %v5850_v24, %v9959_v19  ;;  %v1044_v37 = vadd.f32 %v1028_v46, %v992_v1  ;;  %v1080_v49 = vmul.f32 %v5955_v61, %v721_v18  ;;  %v9963_v46 = vld [vmem:[#allocation15_spill] sm:$0xff] }
  0x80   : > { %v6383_v57 = vadd.f32 %v924_v4, %v896_v26  ;;  %v6385_v3 = vadd.f32 %v1263_v33, %v1235_v2  ;;  %v638_v12 = vmul.f32 %v5822_v8, %v9959_v19  ;;  %v1367_v43 = vmul.f32 %v6176_v0, %v669_v55 }
  0x81   : > { %v1574_v29 = vadd.f32 %v1558_v5, %v1530_v27  ;;  %v793_v51 = vmul.f32 %v5868_v30, %v773_v21  ;;  %v837_v13 = vmul.f32 %v5833_v14, %v9959_v19  ;;  %v1096_v56 = vadd.f32 %v1080_v49, %v1044_v37  ;;  %v9967_v49 = vld [vmem:[#allocation7_spill] sm:$0xff] }
  0x82   : > { %9960 = vst [vmem:[#allocation24_spill] sm:$0xff] %v6385_v3  ;;  %v1132_v4 = vmul.f32 %v5959_v62, %v773_v21  ;;  %v1383_v48 = vadd.f32 %v1367_v43, %v1331_v36  ;;  %v1419_v1 = vmul.f32 %v6180_v25, %v721_v18  ;;  %v6404_v26 = vrot.slane %v6160_v52, %v9961_v28 }
  0x83   : > { %v809_v2 = vadd.f32 %v793_v51, %v757_v39  ;;  %v993_v54 = vadd.f32 %v977_v38, %v6332_v42  ;;  %v1316_v44 = vmul.f32 %v6138_v20, %v9959_v19  ;;  %v1655_v27 = vmul.f32 %v6363_v17, %v9959_v19  ;;  %v9965_v39 = vld [vmem:[#allocation6_spill] sm:$0xff] }
  0x84   : > { %9962 = vst [vmem:[#allocation25_spill] sm:$0xff] %v6404_v26  ;;  %v1435_v33 = vadd.f32 %v1419_v1, %v1383_v48  ;;  %v1706_v59 = vmul.f32 %v6404_v26, %v669_v55  ;;  %v6414_v36 = vrot.slane %v6160_v52, %v9963_v46  ;;  %v690_v5 = vmul.f32 %v5844_v22, %v6393_v45  ;;  %v6428_v55 = vld [vmem:[#allocation2 + $0xcc] sm:$0xff] }
  0x85   : > { %v1148_v37 = vadd.f32 %v1132_v4, %v1096_v56  ;;  %v1176_v42 = vmul.f32 %v5963_v63, %v9959_v19  ;;  %v6422_v38 = vrot.slane %v6398_v9, %v9965_v39  ;;  %v6426_v43 = vrot.slane %v6398_v9, %v9967_v49 }
  0x86   : > { %9964 = vst [vmem:[#allocation34_spill] sm:$0xff] %v6414_v36  ;;  %v6430_v52 = vadd.f32 %v1602_v10, %v1574_v29  ;;  %v1471_v51 = vmul.f32 %v6184_v58, %v773_v21  ;;  %v1722_v48 = vadd.f32 %v1706_v59, %v1670_v34  ;;  %v706_v56 = vadd.f32 %v690_v5, %v638_v12  ;;  %v774_v29 = vld [vmem:[#allocation2 + $0xce] sm:$0xff]  ;;  %v381_v34 = vld [vmem:[%s5812_s9 + $0x158] sm:$0xf] }
  0x87   : > { %9966 = vst [vmem:[#allocation35_spill] sm:$0xff] %v6422_v38  ;;  %9968 = vst [vmem:[#allocation28_spill] sm:$0xff] %v6426_v43  ;;  %v853_v4 = vadd.f32 %v837_v13, %v809_v2  ;;  %v1332_v1 = vadd.f32 %v1316_v44, %v6337_v7  ;;  %v1515_v39 = vmul.f32 %v6188_v40, %v9959_v19  ;;  %v9970_v59 = vld [vmem:[#allocation29_spill] sm:$0xff] }
  0x88   : > { %9969 = vst [vmem:[#allocation36_spill] sm:$0xff] %v6430_v52  ;;  %v1029_v46 = vmul.f32 %v5951_v60, %v6393_v45  ;;  %v1487_v28 = vadd.f32 %v1471_v51, %v1435_v33  ;;  %v1671_v49 = vadd.f32 %v1655_v27, %v6339_v16  ;;  %v1758_v50 = vmul.f32 %v6414_v36, %v721_v18 }
  0x89   : > { %v742_v10 = vmul.f32 %v5847_v23, %v6428_v55  ;;  %v1192_v12 = vadd.f32 %v1176_v42, %v1148_v37  ;;  %v1810_v13 = vmul.f32 %v6422_v38, %v773_v21  ;;  %v1854_v7 = vmul.f32 %v6426_v43, %v9959_v19  ;;  %445 = vst [vmem:[#allocation2 + $0x158] sm:$0xf] %v381_v34 }
  0x8a   : > { %v1045_v2 = vadd.f32 %v1029_v46, %v993_v54  ;;  %v1774_v44 = vadd.f32 %v1758_v50, %v1722_v48  ;;  %v881_v16 = vmul.f32 %v5871_v31, %v6393_v45  ;;  %v1081_v18 = vmul.f32 %v5955_v61, %v6428_v55 }
  0x8b   : > { %v758_v33 = vadd.f32 %v742_v10, %v706_v56  ;;  %v794_v27 = vmul.f32 %v5868_v30, %v774_v29  ;;  %v838_v5 = vmul.f32 %v5833_v14, %v9970_v59  ;;  %v925_v21 = vmul.f32 %v5874_v32, %v6428_v55  ;;  %v382_v10 = vld [vmem:[%s5812_s9 + $0x160] sm:$0xff] }
  0x8c   : > { %v1368_v50 = vmul.f32 %v6176_v0, %v6393_v45  ;;  %v1531_v19 = vadd.f32 %v1515_v39, %v1487_v28  ;;  %v897_v54 = vadd.f32 %v881_v16, %v853_v4  ;;  %v1097_v46 = vadd.f32 %v1081_v18, %v1045_v2  ;;  %446 = vst [vmem:[#allocation2 + $0x160] sm:$0xff] %v382_v10  ;;  %v383_v4 = vld [vmem:[%s5812_s9 + $0x168] sm:$0xff]  ;;  %v9971_v10 = vld [vmem:[#allocation8_spill] sm:$0xff] }
  0x8d   : > { %v1133_v37 = vmul.f32 %v5959_v62, %v774_v29  ;;  %v1177_v42 = vmul.f32 %v5963_v63, %v9970_v59  ;;  %v1220_v51 = vmul.f32 %v5974_v11, %v6393_v45  ;;  %v1420_v56 = vmul.f32 %v6180_v25, %v6428_v55  ;;  %447 = vst [vmem:[#allocation2 + $0x168] sm:$0xff] %v383_v4 }
  0x8e   : > { %v1384_v48 = vadd.f32 %v1368_v50, %v1332_v1  ;;  %v1826_v34 = vadd.f32 %v1810_v13, %v1774_v44  ;;  %v810_v52 = vadd.f32 %v794_v27, %v758_v33  ;;  %v1264_v28 = vmul.f32 %v5978_v15, %v6428_v55 }
  0x8f   : > { %v1707_v39 = vmul.f32 %v6404_v26, %v6393_v45  ;;  %v1236_v2 = vadd.f32 %v1220_v51, %v1192_v12  ;;  %v1472_v18 = vmul.f32 %v6184_v58, %v774_v29  ;;  %v1559_v1 = vmul.f32 %v6238_v53, %v6393_v45  ;;  %v9972_v51 = vld [vmem:[#allocation11_spill] sm:$0xff] }
  0x90   : > { %v1436_v16 = vadd.f32 %v1420_v56, %v1384_v48  ;;  %v1149_v50 = vadd.f32 %v1133_v37, %v1097_v46  ;;  %v1516_v13 = vmul.f32 %v6188_v40, %v9970_v59  ;;  %v1759_v33 = vmul.f32 %v6414_v36, %v6428_v55  ;;  %v863_v56 = vld [vmem:[#allocation2 + $0xd2] sm:$0xff] }
  0x91   : > { %v1723_v44 = vadd.f32 %v1707_v39, %v1671_v49  ;;  %v1575_v3 = vadd.f32 %v1559_v1, %v1531_v19  ;;  %v6479_v12 = vrot.slane %v6398_v9, %v9971_v10  ;;  %v6483_v48 = vrot.slane %v6398_v9, %v9972_v51  ;;  %v907_v39 = vld [vmem:[#allocation2 + $0xd4] sm:$0xff]  ;;  %v775_v10 = vld [vmem:[#allocation2 + $0xe6] sm:$0xff] }
  0x92   : > { %v1488_v27 = vadd.f32 %v1472_v18, %v1436_v16  ;;  %v854_v4 = vadd.f32 %v838_v5, %v810_v52  ;;  %v6485_v46 = vadd.f32 %v925_v21, %v897_v54  ;;  %v1811_v49 = vmul.f32 %v6422_v38, %v774_v29  ;;  %v671_v54 = vld [vmem:[#allocation2 + $0xe2] sm:$0xff] }
  0x93   : > { %v1775_v37 = vadd.f32 %v1759_v33, %v1723_v44  ;;  %v1870_v40 = vadd.f32 %v1854_v7, %v1826_v34  ;;  %v6488_v36 = vadd.f32 %v1264_v28, %v1236_v2  ;;  %v1603_v19 = vmul.f32 %v6247_v41, %v6428_v55 }
  0x94   : > { %v1855_v16 = vmul.f32 %v6426_v43, %v9970_v59  ;;  %v1193_v18 = vadd.f32 %v1177_v42, %v1149_v50  ;;  %v1532_v1 = vadd.f32 %v1516_v13, %v1488_v27  ;;  %v882_v52 = vmul.f32 %v5871_v31, %v863_v56  ;;  %v9973_v42 = vld [vmem:[#allocation30_spill] sm:$0xff] }
  0x95   : > { %v1827_v51 = vadd.f32 %v1811_v49, %v1775_v37  ;;  %v6495_v5 = vadd.f32 %v1603_v19, %v1575_v3  ;;  %v1898_v29 = vmul.f32 %v6479_v12, %v6393_v45  ;;  %v1942_v7 = vmul.f32 %v6483_v48, %v6428_v55  ;;  %v723_v13 = vld [vmem:[#allocation2 + $0xe4] sm:$0xff] }
  0x96   : > { %v926_v21 = vmul.f32 %v5874_v32, %v907_v39  ;;  %v898_v34 = vadd.f32 %v882_v52, %v854_v4  ;;  %v1221_v28 = vmul.f32 %v5974_v11, %v863_v56  ;;  %v1560_v59 = vmul.f32 %v6238_v53, %v863_v56 }
  0x97   : > { %v639_v2 = vmul.f32 %v5822_v8, %v9973_v42  ;;  %v1871_v50 = vadd.f32 %v1855_v16, %v1827_v51  ;;  %v1914_v3 = vadd.f32 %v1898_v29, %v1870_v40  ;;  %v978_v45 = vmul.f32 %v5850_v24, %v9973_v42  ;;  %v384_v29 = vld [vmem:[%s5812_s9 + $0x170] sm:$0xff] }
  0x98   : > { %v1317_v55 = vmul.f32 %v6138_v20, %v9973_v42  ;;  %v1237_v44 = vadd.f32 %v1221_v28, %v1193_v18  ;;  %v1265_v33 = vmul.f32 %v5978_v15, %v907_v39  ;;  %v1576_v27 = vadd.f32 %v1560_v59, %v1532_v1  ;;  %448 = vst [vmem:[#allocation2 + $0x170] sm:$0xff] %v384_v29 }
  0x99   : > { %v691_v4 = vmul.f32 %v5844_v22, %v671_v54  ;;  %v1604_v37 = vmul.f32 %v6247_v41, %v907_v39  ;;  %v1899_v49 = vmul.f32 %v6479_v12, %v863_v56  ;;  %v994_v40 = vadd.f32 %v978_v45, %v6343_v47 }
  0x9a   : > { %v1656_v51 = vmul.f32 %v6363_v17, %v9973_v42  ;;  %v6517_v19 = vadd.f32 %v926_v21, %v898_v34  ;;  %v1333_v16 = vadd.f32 %v1317_v55, %v6348_v6  ;;  %v743_v18 = vmul.f32 %v5847_v23, %v723_v13 }
  0x9b   : > { %v707_v52 = vadd.f32 %v691_v4, %v639_v2  ;;  %v6522_v1 = vadd.f32 %v1942_v7, %v1914_v3  ;;  %v1915_v28 = vadd.f32 %v1899_v49, %v1871_v50  ;;  %v1943_v59 = vmul.f32 %v6483_v48, %v907_v39  ;;  %v9976_v2 = vld [vmem:[#allocation31_spill] sm:$0xff] }
  0x9c   : > { %v1030_v56 = vmul.f32 %v5951_v60, %v671_v54  ;;  %v6526_v47 = vadd.f32 %v1265_v33, %v1237_v44  ;;  %v6528_v42 = vadd.f32 %v1604_v37, %v1576_v27  ;;  %v1369_v6 = vmul.f32 %v6176_v0, %v671_v54  ;;  %v6539_v33 = vld [vmem:[#allocation2 + $0xea] sm:$0xff] }
  0x9d   : > { %v759_v21 = vadd.f32 %v743_v18, %v707_v52  ;;  %v1672_v34 = vadd.f32 %v1656_v51, %v6376_v35  ;;  %v640_v7 = vmul.f32 %v5822_v8, %v9976_v2  ;;  %v1082_v50 = vmul.f32 %v5955_v61, %v723_v13 }
  0x9e   : > { %9974 = vst [vmem:[#allocation29_spill] sm:$0xff] %v6526_v47  ;;  %9975 = vst [vmem:[#allocation30_spill] sm:$0xff] %v6528_v42  ;;  %v1046_v3 = vadd.f32 %v1030_v56, %v994_v40  ;;  %v795_v39 = vmul.f32 %v5868_v30, %v775_v10  ;;  %v979_v45 = vmul.f32 %v5850_v24, %v9976_v2  ;;  %v776_v47 = vld [vmem:[#allocation2 + $0xee] sm:$0xff] }
  0x9f   : > { %v1385_v55 = vadd.f32 %v1369_v6, %v1333_v16  ;;  %v1421_v44 = vmul.f32 %v6180_v25, %v723_v13  ;;  %v6541_v27 = vadd.f32 %v1943_v59, %v1915_v28  ;;  %v1318_v35 = vmul.f32 %v6138_v20, %v9976_v2  ;;  %v6555_v59 = vld [vmem:[#allocation2 + $0xec] sm:$0xff]  ;;  %v9978_v6 = vld [vmem:[#allocation33_spill] sm:$0xff] }
  0xa0   : > { %v1098_v4 = vadd.f32 %v1082_v50, %v1046_v3  ;;  %v1708_v37 = vmul.f32 %v6404_v26, %v671_v54  ;;  %v811_v49 = vadd.f32 %v795_v39, %v759_v21  ;;  %v839_v40 = vmul.f32 %v5833_v14, %v9976_v2  ;;  %v9979_v50 = vld [vmem:[#allocation24_spill] sm:$0xff] }
  0xa1   : > { %9977 = vst [vmem:[#allocation31_spill] sm:$0xff] %v6541_v27  ;;  %v1134_v51 = vmul.f32 %v5959_v62, %v775_v10  ;;  %v1437_v52 = vadd.f32 %v1421_v44, %v1385_v55  ;;  %v1178_v16 = vmul.f32 %v5963_v63, %v9976_v2  ;;  %v1657_v18 = vmul.f32 %v6363_v17, %v9976_v2  ;;  %v9980_v55 = vld [vmem:[#allocation34_spill] sm:$0xff] }
  0xa2   : > { %v1724_v29 = vadd.f32 %v1708_v37, %v1672_v34  ;;  %v692_v28 = vmul.f32 %v5844_v22, %v6539_v33  ;;  %v995_v54 = vadd.f32 %v979_v45, %v6383_v57  ;;  %v1473_v21 = vmul.f32 %v6184_v58, %v775_v10  ;;  %v9981_v45 = vld [vmem:[#allocation36_spill] sm:$0xff] }
  0xa3   : > { %v1150_v56 = vadd.f32 %v1134_v51, %v1098_v4  ;;  %v1517_v3 = vmul.f32 %v9978_v6, %v9976_v2  ;;  %v1334_v39 = vadd.f32 %v1318_v35, %v9979_v50  ;;  %v1760_v44 = vmul.f32 %v9980_v55, %v723_v13 }
  0xa4   : > { %v1812_v27 = vmul.f32 %v6422_v38, %v775_v10  ;;  %v708_v34 = vadd.f32 %v692_v28, %v640_v7  ;;  %v855_v37 = vadd.f32 %v839_v40, %v811_v49  ;;  %v1489_v42 = vadd.f32 %v1473_v21, %v1437_v52  ;;  %v9982_v28 = vld [vmem:[#allocation32_spill] sm:$0xff] }
  0xa5   : > { %v744_v22 = vmul.f32 %v5847_v23, %v6555_v59  ;;  %v1031_v57 = vmul.f32 %v5951_v60, %v6539_v33  ;;  %v1673_v4 = vadd.f32 %v1657_v18, %v9981_v45  ;;  %v1776_v51 = vadd.f32 %v1760_v44, %v1724_v29 }
  0xa6   : > { %v1856_v35 = vmul.f32 %v6426_v43, %v9976_v2  ;;  %v883_v13 = vmul.f32 %v5871_v31, %v6539_v33  ;;  %v1194_v10 = vadd.f32 %v1178_v16, %v1150_v56  ;;  %v1083_v40 = vmul.f32 %v5955_v61, %v6555_v59 }
  0xa7   : > { %v760_v7 = vadd.f32 %v744_v22, %v708_v34  ;;  %v1047_v49 = vadd.f32 %v1031_v57, %v995_v54  ;;  %v796_v52 = vmul.f32 %v5868_v30, %v776_v47  ;;  %v840_v21 = vmul.f32 %v5833_v14, %v9982_v28  ;;  %v385_v57 = vld [vmem:[%s5812_s9 + $0x178] sm:$0xf] }
  0xa8   : > { %v927_v18 = vmul.f32 %v5874_v32, %v6555_v59  ;;  %v1370_v2 = vmul.f32 %v6176_v0, %v6539_v33  ;;  %v1533_v29 = vadd.f32 %v1517_v3, %v1489_v42  ;;  %v899_v50 = vadd.f32 %v883_v13, %v855_v37  ;;  %449 = vst [vmem:[#allocation2 + $0x178] sm:$0xf] %v385_v57 }
  0xa9   : > { %v1099_v16 = vadd.f32 %v1083_v40, %v1047_v49  ;;  %v1222_v22 = vmul.f32 %v5974_v11, %v6539_v33  ;;  %v1828_v54 = vadd.f32 %v1812_v27, %v1776_v51  ;;  %v1135_v56 = vmul.f32 %v5959_v62, %v776_v47 }
  0xaa   : > { %v1386_v44 = vadd.f32 %v1370_v2, %v1334_v39  ;;  %v1422_v34 = vmul.f32 %v6180_v25, %v6555_v59  ;;  %v812_v45 = vadd.f32 %v796_v52, %v760_v7  ;;  %v1179_v14 = vmul.f32 %v5963_v63, %v9982_v28 }
  0xab   : > { %v1238_v30 = vadd.f32 %v1222_v22, %v1194_v10  ;;  %v1709_v42 = vmul.f32 %v6404_v26, %v6539_v33  ;;  %v1151_v3 = vadd.f32 %v1135_v56, %v1099_v16  ;;  %v1474_v27 = vmul.f32 %v6184_v58, %v776_v47  ;;  %v864_v16 = vld [vmem:[#allocation2 + $0xf2] sm:$0xff] }
  0xac   : > { %v1438_v37 = vadd.f32 %v1422_v34, %v1386_v44  ;;  %v1561_v39 = vmul.f32 %v6238_v53, %v6539_v33  ;;  %v6595_v51 = vadd.f32 %v927_v18, %v899_v50  ;;  %v1518_v13 = vmul.f32 %v9978_v6, %v9982_v28  ;;  %v5550_v50 = vld [vmem:[#allocation2 + $0xf0] sm:$0xff]  ;;  %v386_v28 = vld [vmem:[%s5812_s9 + $0x180] sm:$0xff] }
  0xad   : > { %v1725_v7 = vadd.f32 %v1709_v42, %v1673_v4  ;;  %v1761_v10 = vmul.f32 %v9980_v55, %v6555_v59  ;;  %v1872_v49 = vadd.f32 %v1856_v35, %v1828_v54  ;;  %v1266_v40 = vmul.f32 %v5978_v15, %v6555_v59  ;;  %450 = vst [vmem:[#allocation2 + $0x180] sm:$0xff] %v386_v28 }
  0xae   : > { %9983 = vst [vmem:[#allocation24_spill] sm:$0xff] %v6595_v51  ;;  %v1490_v52 = vadd.f32 %v1474_v27, %v1438_v37  ;;  %v1577_v2 = vadd.f32 %v1561_v39, %v1533_v29  ;;  %v856_v22 = vadd.f32 %v840_v21, %v812_v45  ;;  %v1813_v18 = vmul.f32 %v6422_v38, %v776_v47  ;;  %v387_v29 = vld [vmem:[%s5812_s9 + $0x188] sm:$0xff]  ;;  %v5551_v37 = vld [vmem:[#allocation2 + $0x100] sm:$0xff] }
  0xaf   : > { %v1777_v56 = vadd.f32 %v1761_v10, %v1725_v7  ;;  %v1857_v44 = vmul.f32 %v5550_v50, %v6426_v43  ;;  %v1195_v4 = vadd.f32 %v1179_v14, %v1151_v3  ;;  %v6606_v34 = vadd.f32 %v1266_v40, %v1238_v30  ;;  %451 = vst [vmem:[#allocation2 + $0x188] sm:$0xff] %v387_v29  ;;  %v908_v30 = vld [vmem:[#allocation2 + $0xf4] sm:$0xff]  ;;  %v1012_v10 = vld [vmem:[#allocation2 + $0x102] sm:$0xff] }
  0xb0   : > { %v1605_v35 = vmul.f32 %v6247_v41, %v6555_v59  ;;  %v1900_v54 = vmul.f32 %v6479_v12, %v6539_v33  ;;  %v1534_v57 = vadd.f32 %v1518_v13, %v1490_v52  ;;  %v1944_v47 = vmul.f32 %v6483_v48, %v6555_v59 }
  0xb1   : > { %9984 = vst [vmem:[#allocation34_spill] sm:$0xff] %v6606_v34  ;;  %v1829_v21 = vadd.f32 %v1813_v18, %v1777_v56  ;;  %v884_v45 = vmul.f32 %v5871_v31, %v864_v16  ;;  %v1223_v3 = vmul.f32 %v5974_v11, %v864_v16  ;;  %v980_v27 = vmul.f32 %v5551_v37, %v5850_v24 }
  0xb2   : > { %v6616_v42 = vadd.f32 %v1605_v35, %v1577_v2  ;;  %v1916_v14 = vadd.f32 %v1900_v54, %v1872_v49  ;;  %v1562_v13 = vmul.f32 %v6238_v53, %v864_v16  ;;  %v1319_v7 = vmul.f32 %v5551_v37, %v6138_v20  ;;  %v9986_v2 = vld [vmem:[#allocation9_spill] sm:$0xff]  ;;  %v1064_v35 = vld [vmem:[#allocation2 + $0x104] sm:$0xff] }
  0xb3   : > { %v1873_v33 = vadd.f32 %v1857_v44, %v1829_v21  ;;  %v900_v39 = vadd.f32 %v884_v45, %v856_v22  ;;  %v1239_v59 = vadd.f32 %v1223_v3, %v1195_v4  ;;  %v1901_v40 = vmul.f32 %v6479_v12, %v864_v16  ;;  %v6639_v21 = vld [vmem:[#allocation2 + $0x108] sm:$0xff] }
  0xb4   : > { %9985 = vst [vmem:[#allocation36_spill] sm:$0xff] %v6616_v42  ;;  %v996_v52 = vadd.f32 %v980_v27, %v6485_v46  ;;  %v6626_v49 = vrot.slane %v6398_v9, %v9986_v2  ;;  %v928_v56 = vmul.f32 %v5874_v32, %v908_v30  ;;  %v1267_v18 = vmul.f32 %v5978_v15, %v908_v30  ;;  %v1116_v45 = vld [vmem:[#allocation2 + $0x106] sm:$0xff] }
  0xb5   : > { %v1578_v50 = vadd.f32 %v1562_v13, %v1534_v57  ;;  %v1658_v22 = vmul.f32 %v5551_v37, %v6363_v17  ;;  %v1606_v44 = vmul.f32 %v6247_v41, %v908_v30  ;;  %v1917_v28 = vadd.f32 %v1901_v40, %v1873_v33  ;;  %v6681_v2 = vld [vmem:[#allocation2 + $0x10a] sm:$0xff] }
  0xb6   : > { %9987 = vst [vmem:[#allocation32_spill] sm:$0xff] %v6626_v49  ;;  %v1335_v4 = vadd.f32 %v1319_v7, %v6488_v36  ;;  %v1032_v16 = vmul.f32 %v5951_v60, %v1012_v10  ;;  %v6634_v46 = vadd.f32 %v1944_v47, %v1916_v14  ;;  %v6636_v54 = vadd.f32 %v928_v56, %v900_v39 }
  0xb7   : > { %v1945_v29 = vmul.f32 %v6483_v48, %v908_v30  ;;  %v981_v57 = vmul.f32 %v6639_v21, %v5850_v24  ;;  %v6643_v3 = vadd.f32 %v1267_v18, %v1239_v59  ;;  %v1997_v27 = vmul.f32 %v5551_v37, %v6626_v49 }
  0xb8   : > { %9988 = vst [vmem:[#allocation37_spill] sm:$0xff] %v6634_v46  ;;  %9989 = vst [vmem:[#allocation38_spill] sm:$0xff] %v6636_v54  ;;  %v1048_v36 = vadd.f32 %v1032_v16, %v996_v52  ;;  %v1371_v33 = vmul.f32 %v6176_v0, %v1012_v10  ;;  %v6647_v13 = vadd.f32 %v1606_v44, %v1578_v50  ;;  %v9994_v16 = vld [vmem:[#allocation29_spill] sm:$0xff]  ;;  %v10000_v54 = vld [vmem:[#allocation6_spill] sm:$0xff] }
  0xb9   : > { %9990 = vst [vmem:[#allocation39_spill] sm:$0xff] %v6643_v3  ;;  %v1674_v47 = vadd.f32 %v1658_v22, %v6495_v5  ;;  %v1084_v14 = vmul.f32 %v5955_v61, %v1064_v35  ;;  %v1320_v30 = vmul.f32 %v6639_v21, %v6138_v20  ;;  %v6653_v39 = vadd.f32 %v1945_v29, %v1917_v28  ;;  %v9993_v28 = vld [vmem:[#allocation12_spill] sm:$0xff] }
  0xba   : > { %9991 = vst [vmem:[#allocation40_spill] sm:$0xff] %v6647_v13  ;;  %v3061_v7 = vmul.f32 %v5551_v37, %v5822_v8  ;;  %v1136_v59 = vmul.f32 %v5959_v62, %v1116_v45  ;;  %v1387_v40 = vadd.f32 %v1371_v33, %v1335_v4  ;;  %v997_v52 = vadd.f32 %v981_v57, %v6517_v19  ;;  %v388_v4 = vld [vmem:[%s5812_s9 + $0x190] sm:$0xff] }
  0xbb   : > { %9992 = vst [vmem:[#allocation41_spill] sm:$0xff] %v6653_v39  ;;  %v1100_v56 = vadd.f32 %v1084_v14, %v1048_v36  ;;  %v1659_v18 = vmul.f32 %v6639_v21, %v6363_v17  ;;  %v1710_v5 = vmul.f32 %v6404_v26, %v1012_v10  ;;  %v2013_v50 = vadd.f32 %v1997_v27, %v6522_v1  ;;  %v9995_v36 = vld [vmem:[#allocation13_spill] sm:$0xff]  ;;  %v10002_v20 = vld [vmem:[#allocation20_spill] sm:$0xff] }
  0xbc   : > { %v1180_v22 = vmul.f32 %v6639_v21, %v5963_v63  ;;  %v1423_v44 = vmul.f32 %v6180_v25, %v1064_v35  ;;  %v6667_v37 = vrot.slane %v6398_v9, %v9993_v28  ;;  %v1336_v19 = vadd.f32 %v1320_v30, %v9994_v16  ;;  %452 = vst [vmem:[#allocation2 + $0x190] sm:$0xff] %v388_v4  ;;  %v9996_v16 = vld [vmem:[#allocation30_spill] sm:$0xff] }
  0xbd   : > { %v1475_v29 = vmul.f32 %v6184_v58, %v1116_v45  ;;  %v1726_v57 = vadd.f32 %v1710_v5, %v1674_v47  ;;  %v6674_v33 = vrot.slane %v6398_v9, %v9995_v36  ;;  %v1519_v27 = vmul.f32 %v6639_v21, %v9978_v6  ;;  %v9997_v36 = vld [vmem:[#allocation15_spill] sm:$0xff] }
  0xbe   : > { %v1439_v1 = vadd.f32 %v1423_v44, %v1387_v40  ;;  %v1998_v14 = vmul.f32 %v6639_v21, %v6626_v49  ;;  %v2049_v28 = vmul.f32 %v6667_v37, %v1012_v10  ;;  %v1152_v30 = vadd.f32 %v1136_v59, %v1100_v56  ;;  %v6689_v40 = vld [vmem:[%s9795_s2 + $0x20] sm:$0xff]  ;;  %v9999_v59 = vld [vmem:[#allocation16_spill] sm:$0xff] }
  0xbf   : > { %v1675_v39 = vadd.f32 %v1659_v18, %v9996_v16  ;;  %v1762_v47 = vmul.f32 %v9980_v55, %v1064_v35  ;;  %v1814_v5 = vmul.f32 %v6422_v38, %v1116_v45  ;;  %v1858_v44 = vmul.f32 %v6639_v21, %v6426_v43  ;;  %v6698_v18 = vld [vmem:[#allocation2 + $0x10c] sm:$0xff] }
  0xc0   : > { %v2065_v4 = vadd.f32 %v2049_v28, %v2013_v50  ;;  %v6695_v13 = vrot.slane %v6398_v9, %v9997_v36  ;;  %v3109_v56 = vmul.f32 %v1012_v10, %v9999_v59  ;;  %v2101_v3 = vmul.f32 %v6674_v33, %v1064_v35  ;;  %v10001_v50 = vld [vmem:[#allocation31_spill] sm:$0xff] }
  0xc1   : > { %v1778_v16 = vadd.f32 %v1762_v47, %v1726_v57  ;;  %v6703_v46 = vrot.slane %v6689_v40, %v10000_v54  ;;  %v1033_v42 = vmul.f32 %v5951_v60, %v6681_v2  ;;  %v1491_v49 = vadd.f32 %v1475_v29, %v1439_v1  ;;  %v1117_v47 = vld [vmem:[#allocation2 + $0x10e] sm:$0xff] }
  0xc2   : > { %9998 = vst [vmem:[#allocation29_spill] sm:$0xff] %v6695_v13  ;;  %v2014_v28 = vadd.f32 %v1998_v14, %v10001_v50  ;;  %v3125_v34 = vadd.f32 %v3109_v56, %v3061_v7  ;;  %v3157_v9 = vmul.f32 %v1064_v35, %v5847_v23  ;;  %v1196_v36 = vadd.f32 %v1180_v22, %v1152_v30 }
  0xc3   : > { %v2117_v10 = vadd.f32 %v2101_v3, %v2065_v4  ;;  %v1049_v51 = vadd.f32 %v1033_v42, %v997_v52  ;;  %v1085_v57 = vmul.f32 %v5955_v61, %v6698_v18  ;;  %v2153_v17 = vmul.f32 %v6695_v13, %v1116_v45 }
  0xc4   : > { %v3173_v54 = vadd.f32 %v3157_v9, %v3125_v34  ;;  %v3205_v24 = vmul.f32 %v1116_v45, %v10002_v20  ;;  %v1372_v29 = vmul.f32 %v6176_v0, %v6681_v2  ;;  %v1830_v1 = vadd.f32 %v1814_v5, %v1778_v16  ;;  %v10003_v34 = vld [vmem:[#allocation14_spill] sm:$0xff]  ;;  %v5553_v16 = vld [vmem:[#allocation2 + $0x110] sm:$0xff] }
  0xc5   : > { %v2197_v7 = vmul.f32 %v6639_v21, %v6703_v46  ;;  %v1101_v35 = vadd.f32 %v1085_v57, %v1049_v51  ;;  %v1224_v42 = vmul.f32 %v5974_v11, %v6681_v2  ;;  %v1535_v3 = vadd.f32 %v1519_v27, %v1491_v49 }
  0xc6   : > { %v3221_v52 = vadd.f32 %v3205_v24, %v3173_v54  ;;  %v1137_v22 = vmul.f32 %v5959_v62, %v1117_v47  ;;  %v1388_v14 = vadd.f32 %v1372_v29, %v1336_v19  ;;  %v2169_v30 = vadd.f32 %v2153_v17, %v2117_v10 }
  0xc7   : > { %v3245_v45 = vmul.f32 %v6639_v21, %v10003_v34  ;;  %v1240_v4 = vadd.f32 %v1224_v42, %v1196_v36  ;;  %v1424_v5 = vmul.f32 %v6180_v25, %v6698_v18  ;;  %v1181_v51 = vmul.f32 %v5553_v16, %v5963_v63 }
  0xc8   : > { %v1153_v56 = vadd.f32 %v1137_v22, %v1101_v35  ;;  %v1563_v49 = vmul.f32 %v6238_v53, %v6681_v2  ;;  %v1711_v24 = vmul.f32 %v6404_v26, %v6681_v2  ;;  %v1874_v54 = vadd.f32 %v1858_v44, %v1830_v1  ;;  %v389_v1 = vld [vmem:[%s5812_s9 + $0x198] sm:$0xf] }
  0xc9   : > { %v3062_v17 = vmul.f32 %v6639_v21, %v5822_v8  ;;  %v1268_v19 = vmul.f32 %v5978_v15, %v6698_v18  ;;  %v1440_v36 = vadd.f32 %v1424_v5, %v1388_v14  ;;  %v1476_v27 = vmul.f32 %v6184_v58, %v1117_v47  ;;  %453 = vst [vmem:[#allocation2 + $0x198] sm:$0xf] %v389_v1  ;;  %v1206_v1 = vld [vmem:[#allocation2 + $0x112] sm:$0xff] }
  0xca   : > { %v1579_v50 = vadd.f32 %v1563_v49, %v1535_v3  ;;  %v1727_v9 = vadd.f32 %v1711_v24, %v1675_v39  ;;  %v1763_v10 = vmul.f32 %v9980_v55, %v6698_v18  ;;  %v6736_v57 = vadd.f32 %v2197_v7, %v2169_v30 }
  0xcb   : > { %v6738_v29 = vadd.f32 %v1268_v19, %v1240_v4  ;;  %v1520_v44 = vmul.f32 %v5553_v16, %v9978_v6  ;;  %v1607_v21 = vmul.f32 %v6247_v41, %v6698_v18  ;;  %v3261_v35 = vadd.f32 %v3245_v45, %v3221_v52 }
  0xcc   : > { %10004 = vst [vmem:[#allocation30_spill] sm:$0xff] %v6736_v57  ;;  %v1197_v42 = vadd.f32 %v1181_v51, %v1153_v56  ;;  %v1779_v22 = vadd.f32 %v1763_v10, %v1727_v9  ;;  %v1902_v3 = vmul.f32 %v6479_v12, %v6681_v2  ;;  %v1492_v39 = vadd.f32 %v1476_v27, %v1440_v36  ;;  %v10007_v27 = vld [vmem:[#allocation7_spill] sm:$0xff]  ;;  %v390_v9 = vld [vmem:[%s5812_s9 + $0x1a0] sm:$0xff] }
  0xcd   : > { %10005 = vst [vmem:[#allocation31_spill] sm:$0xff] %v6738_v29  ;;  %v1815_v7 = vmul.f32 %v6422_v38, %v1117_v47  ;;  %v2050_v14 = vmul.f32 %v6667_v37, %v6681_v2  ;;  %v3110_v30 = vmul.f32 %v6681_v2, %v9999_v59  ;;  %v6751_v4 = vadd.f32 %v1607_v21, %v1579_v50 }
  0xce   : > { %v1859_v52 = vmul.f32 %v5553_v16, %v6426_v43  ;;  %v1918_v45 = vadd.f32 %v1902_v3, %v1874_v54  ;;  %v1946_v5 = vmul.f32 %v6483_v48, %v6698_v18  ;;  %v3158_v24 = vmul.f32 %v6698_v18, %v5847_v23  ;;  %454 = vst [vmem:[#allocation2 + $0x1a0] sm:$0xff] %v390_v9 }
  0xcf   : > { %10006 = vst [vmem:[#allocation20_spill] sm:$0xff] %v6751_v4  ;;  %v1831_v56 = vadd.f32 %v1815_v7, %v1779_v22  ;;  %v2066_v51 = vadd.f32 %v2050_v14, %v2014_v28  ;;  %v3126_v49 = vadd.f32 %v3110_v30, %v3062_v17  ;;  %v2102_v19 = vmul.f32 %v6674_v33, %v6698_v18  ;;  %v391_v22 = vld [vmem:[%s5812_s9 + $0x1a8] sm:$0xff]  ;;  %v10010_v7 = vld [vmem:[#allocation8_spill] sm:$0xff] }
  0xd0   : > { %v2154_v36 = vmul.f32 %v6695_v13, %v1117_v47  ;;  %v6763_v50 = vrot.slane %v6689_v40, %v10007_v27  ;;  %v3285_v54 = vmul.f32 %v6681_v2, %v5871_v31  ;;  %v1536_v10 = vadd.f32 %v1520_v44, %v1492_v39  ;;  %455 = vst [vmem:[#allocation2 + $0x1a8] sm:$0xff] %v391_v22 }
  0xd1   : > { %v3174_v21 = vadd.f32 %v3158_v24, %v3126_v49  ;;  %v3206_v28 = vmul.f32 %v1117_v47, %v10002_v20  ;;  %v3246_v17 = vmul.f32 %v5553_v16, %v10003_v34  ;;  %v6772_v3 = vmul.f32 %v5553_v16, %v6703_v46 }
  0xd2   : > { %10008 = vst [vmem:[#allocation42_spill] sm:$0xff] %v6763_v50  ;;  %v6776_v14 = vrot.slane %v6689_v40, %v10010_v7  ;;  %v3301_v30 = vadd.f32 %v3285_v54, %v3261_v35  ;;  %v3325_v27 = vmul.f32 %v6698_v18, %v5874_v32  ;;  %v1875_v44 = vadd.f32 %v1859_v52, %v1831_v56  ;;  %v1250_v54 = vld [vmem:[#allocation2 + $0x114] sm:$0xff] }
  0xd3   : > { %10009 = vst [vmem:[#allocation43_spill] sm:$0xff] %v6772_v3  ;;  %v6780_v39 = vadd.f32 %v1946_v5, %v1918_v45  ;;  %v2118_v47 = vadd.f32 %v2102_v19, %v2066_v51  ;;  %v3222_v49 = vadd.f32 %v3206_v28, %v3174_v21  ;;  %v6784_v24 = vmul.f32 %v6763_v50, %v6681_v2  ;;  %v5554_v45 = vld [vmem:[#allocation2 + $0x120] sm:$0xff]  ;;  %v10018_v28 = vld [vmem:[#allocation23_spill] sm:$0xff] }
  0xd4   : > { %10011 = vst [vmem:[#allocation44_spill] sm:$0xff] %v6776_v14  ;;  %v6786_v16 = vadd.f32 %v3325_v27, %v3301_v30  ;;  %v1225_v9 = vmul.f32 %v5974_v11, %v1206_v1  ;;  %v1564_v40 = vmul.f32 %v6238_v53, %v1206_v1  ;;  %v1903_v7 = vmul.f32 %v6479_v12, %v1206_v1  ;;  %v10015_v5 = vld [vmem:[#allocation18_spill] sm:$0xff]  ;;  %v10017_v27 = vld [vmem:[#allocation19_spill] sm:$0xff] }
  0xd5   : > { %10012 = vst [vmem:[#allocation45_spill] sm:$0xff] %v6780_v39  ;;  %10013 = vst [vmem:[#allocation46_spill] sm:$0xff] %v6784_v24  ;;  %v3262_v35 = vadd.f32 %v3246_v17, %v3222_v49  ;;  %v3286_v52 = vmul.f32 %v1206_v1, %v5871_v31  ;;  %v982_v56 = vmul.f32 %v5554_v45, %v10015_v5  ;;  %v1014_v51 = vld [vmem:[#allocation2 + $0x122] sm:$0xff]  ;;  %v10019_v24 = vld [vmem:[#allocation24_spill] sm:$0xff] }
  0xd6   : > { %10014 = vst [vmem:[#allocation47_spill] sm:$0xff] %v6786_v16  ;;  %v6795_v2 = vmul.f32 %v6776_v14, %v6698_v18  ;;  %v1241_v19 = vadd.f32 %v1225_v9, %v1197_v42  ;;  %v1321_v21 = vmul.f32 %v5554_v45, %v10017_v27  ;;  %v1660_v22 = vmul.f32 %v5554_v45, %v10018_v28  ;;  %v10022_v9 = vld [vmem:[#allocation34_spill] sm:$0xff] }
  0xd7   : > { %v1580_v30 = vadd.f32 %v1564_v40, %v1536_v10  ;;  %v1919_v17 = vadd.f32 %v1903_v7, %v1875_v44  ;;  %v3302_v49 = vadd.f32 %v3286_v52, %v3262_v35  ;;  %v998_v57 = vadd.f32 %v982_v56, %v10019_v24  ;;  %v10023_v10 = vld [vmem:[#allocation32_spill] sm:$0xff]  ;;  %v1066_v44 = vld [vmem:[#allocation2 + $0x124] sm:$0xff] }
  0xd8   : > { %10016 = vst [vmem:[#allocation48_spill] sm:$0xff] %v6795_v2  ;;  %v6800_v3 = vadd.f32 %v2154_v36, %v2118_v47  ;;  %v1269_v16 = vmul.f32 %v5978_v15, %v1250_v54  ;;  %v1608_v39 = vmul.f32 %v6247_v41, %v1250_v54  ;;  %v1034_v4 = vmul.f32 %v5951_v60, %v1014_v51  ;;  %v10025_v47 = vld [vmem:[#allocation36_spill] sm:$0xff]  ;;  %v1118_v52 = vld [vmem:[#allocation2 + $0x126] sm:$0xff] }
  0xd9   : > { %v1947_v18 = vmul.f32 %v6483_v48, %v1250_v54  ;;  %v6807_v42 = vmul.f32 %v6763_v50, %v1206_v1  ;;  %v1337_v2 = vadd.f32 %v1321_v21, %v10022_v9  ;;  %v1999_v7 = vmul.f32 %v5554_v45, %v10023_v10  ;;  %v5555_v1 = vld [vmem:[#allocation2 + $0x128] sm:$0xff] }
  0xda   : > { %10020 = vst [vmem:[#allocation24_spill] sm:$0xff] %v6800_v3  ;;  %v6811_v40 = vadd.f32 %v1269_v16, %v1241_v19  ;;  %v3326_v36 = vmul.f32 %v1250_v54, %v5874_v32  ;;  %v1676_v24 = vadd.f32 %v1660_v22, %v10025_v47  ;;  %v1050_v35 = vadd.f32 %v1034_v4, %v998_v57  ;;  %v10029_v22 = vld [vmem:[#allocation37_spill] sm:$0xff] }
  0xdb   : > { %10021 = vst [vmem:[#allocation49_spill] sm:$0xff] %v6807_v42  ;;  %v6815_v56 = vadd.f32 %v1608_v39, %v1580_v30  ;;  %v6817_v3 = vadd.f32 %v1947_v18, %v1919_v17  ;;  %v983_v42 = vmul.f32 %v5555_v1, %v10015_v5  ;;  %v1373_v21 = vmul.f32 %v6176_v0, %v1014_v51  ;;  %v392_v17 = vld [vmem:[%s5812_s9 + $0x1b0] sm:$0xff] }
  0xdc   : > { %10024 = vst [vmem:[#allocation34_spill] sm:$0xff] %v6811_v40  ;;  %v6821_v9 = vadd.f32 %v3326_v36, %v3302_v49  ;;  %v3063_v16 = vmul.f32 %v5554_v45, %v5822_v8  ;;  %v1086_v54 = vmul.f32 %v5955_v61, %v1066_v44  ;;  %v1712_v19 = vmul.f32 %v6404_v26, %v1014_v51  ;;  %v10030_v45 = vld [vmem:[#allocation38_spill] sm:$0xff] }
  0xdd   : > { %10026 = vst [vmem:[#allocation36_spill] sm:$0xff] %v6815_v56  ;;  %10027 = vst [vmem:[#allocation50_spill] sm:$0xff] %v6817_v3  ;;  %v2015_v57 = vadd.f32 %v1999_v7, %v10029_v22  ;;  %v1138_v4 = vmul.f32 %v5959_v62, %v1118_v52  ;;  %v1322_v39 = vmul.f32 %v5555_v1, %v10017_v27 }
  0xde   : > { %10028 = vst [vmem:[#allocation51_spill] sm:$0xff] %v6821_v9  ;;  %v1389_v30 = vadd.f32 %v1373_v21, %v1337_v2  ;;  %v1102_v18 = vadd.f32 %v1086_v54, %v1050_v35  ;;  %v1425_v47 = vmul.f32 %v6180_v25, %v1066_v44  ;;  %v1728_v3 = vadd.f32 %v1712_v19, %v1676_v24  ;;  %v6838_v21 = vld [vmem:[#allocation2 + $0x12a] sm:$0xff] }
  0xdf   : > { %v1764_v49 = vmul.f32 %v9980_v55, %v1066_v44  ;;  %456 = vst [vmem:[#allocation2 + $0x1b0] sm:$0xff] %v392_v17  ;;  %v999_v36 = vadd.f32 %v983_v42, %v10030_v45  ;;  %v1182_v9 = vmul.f32 %v5555_v1, %v5963_v63  ;;  %v1661_v56 = vmul.f32 %v5555_v1, %v10018_v28  ;;  %v10031_v24 = vld [vmem:[#allocation39_spill] sm:$0xff]  ;;  %v10032_v28 = vld [vmem:[#allocation40_spill] sm:$0xff] }
  0xe0   : > { %v2051_v7 = vmul.f32 %v6667_v37, %v1014_v51  ;;  %v1441_v22 = vadd.f32 %v1425_v47, %v1389_v30  ;;  %v1477_v40 = vmul.f32 %v6184_v58, %v1118_v52  ;;  %v1521_v2 = vmul.f32 %v5555_v1, %v9978_v6  ;;  %v6846_v47 = vld [vmem:[#allocation2 + $0x12c] sm:$0xff] }
  0xe1   : > { %v1780_v35 = vadd.f32 %v1764_v49, %v1728_v3  ;;  %v1338_v54 = vadd.f32 %v1322_v39, %v10031_v24  ;;  %v1816_v19 = vmul.f32 %v6422_v38, %v1118_v52  ;;  %v3111_v42 = vmul.f32 %v1014_v51, %v9999_v59 }
  0xe2   : > { %v2067_v17 = vadd.f32 %v2051_v7, %v2015_v57  ;;  %v1154_v45 = vadd.f32 %v1138_v4, %v1102_v18  ;;  %v1860_v5 = vmul.f32 %v5555_v1, %v6426_v43  ;;  %v2000_v29 = vmul.f32 %v5555_v1, %v10023_v10 }
  0xe3   : > { %v2103_v30 = vmul.f32 %v6674_v33, %v1066_v44  ;;  %v1677_v3 = vadd.f32 %v1661_v56, %v10032_v28  ;;  %v3127_v49 = vadd.f32 %v3111_v42, %v3063_v16  ;;  %v3159_v27 = vmul.f32 %v1066_v44, %v5847_v23  ;;  %v10033_v28 = vld [vmem:[#allocation41_spill] sm:$0xff]  ;;  %v1119_v16 = vld [vmem:[#allocation2 + $0x12e] sm:$0xff] }
  0xe4   : > { %v1035_v39 = vmul.f32 %v5951_v60, %v6838_v21  ;;  %v1493_v57 = vadd.f32 %v1477_v40, %v1441_v22  ;;  %v1832_v7 = vadd.f32 %v1816_v19, %v1780_v35  ;;  %v2155_v4 = vmul.f32 %v6695_v13, %v1118_v52 }
  0xe5   : > { %v2119_v51 = vadd.f32 %v2103_v30, %v2067_v17  ;;  %v3175_v18 = vadd.f32 %v3159_v27, %v3127_v49  ;;  %v3207_v24 = vmul.f32 %v1118_v52, %v10002_v20  ;;  %v1087_v14 = vmul.f32 %v5955_v61, %v6846_v47  ;;  %v5556_v49 = vld [vmem:[#allocation2 + $0x130] sm:$0xff] }
  0xe6   : > { %v1051_v10 = vadd.f32 %v1035_v39, %v999_v36  ;;  %v1198_v50 = vadd.f32 %v1182_v9, %v1154_v45  ;;  %v2016_v56 = vadd.f32 %v2000_v29, %v10033_v28  ;;  %v2199_v44 = vmul.f32 %v5555_v1, %v6703_v46 }
  0xe7   : > { %v1374_v40 = vmul.f32 %v6176_v0, %v6838_v21  ;;  %v3064_v22 = vmul.f32 %v5555_v1, %v5822_v8  ;;  %v3223_v35 = vadd.f32 %v3207_v24, %v3175_v18  ;;  %v3247_v27 = vmul.f32 %v5555_v1, %v10003_v34  ;;  %v393_v24 = vld [vmem:[%s5812_s9 + $0x1b8] sm:$0xf] }
  0xe8   : > { %v1103_v19 = vadd.f32 %v1087_v14, %v1051_v10  ;;  %v1537_v52 = vadd.f32 %v1521_v2, %v1493_v57  ;;  %v2171_v36 = vadd.f32 %v2155_v4, %v2119_v51  ;;  %v1426_v9 = vmul.f32 %v6180_v25, %v6846_v47  ;;  %457 = vst [vmem:[#allocation2 + $0x1b8] sm:$0xf] %v393_v24 }
  0xe9   : > { %v1390_v17 = vadd.f32 %v1374_v40, %v1338_v54  ;;  %v1876_v42 = vadd.f32 %v1860_v5, %v1832_v7  ;;  %v1139_v29 = vmul.f32 %v5959_v62, %v1119_v16  ;;  %v1226_v45 = vmul.f32 %v5974_v11, %v6838_v21 }
  0xea   : > { %v1713_v30 = vmul.f32 %v6404_v26, %v6838_v21  ;;  %v1183_v1 = vmul.f32 %v5556_v49, %v5963_v63  ;;  %v1270_v14 = vmul.f32 %v5978_v15, %v6846_v47  ;;  %v1565_v2 = vmul.f32 %v6238_v53, %v6838_v21 }
  0xeb   : > { %v1442_v10 = vadd.f32 %v1426_v9, %v1390_v17  ;;  %v1155_v5 = vadd.f32 %v1139_v29, %v1103_v19  ;;  %v1242_v54 = vadd.f32 %v1226_v45, %v1198_v50  ;;  %v1765_v57 = vmul.f32 %v9980_v55, %v6846_v47 }
  0xec   : > { %v1729_v39 = vadd.f32 %v1713_v30, %v1677_v3  ;;  %v6876_v7 = vadd.f32 %v2199_v44, %v2171_v36  ;;  %v1478_v51 = vmul.f32 %v6184_v58, %v1119_v16  ;;  %v1581_v4 = vadd.f32 %v1565_v2, %v1537_v52 }
  0xed   : > { %v2052_v18 = vmul.f32 %v6667_v37, %v6838_v21  ;;  %v3263_v28 = vadd.f32 %v3247_v27, %v3223_v35  ;;  %v1522_v40 = vmul.f32 %v5556_v49, %v9978_v6  ;;  %v1609_v19 = vmul.f32 %v6247_v41, %v6846_v47 }
  0xee   : > { %10034 = vst [vmem:[#allocation37_spill] sm:$0xff] %v6876_v7  ;;  %v1781_v50 = vadd.f32 %v1765_v57, %v1729_v39  ;;  %v1494_v3 = vadd.f32 %v1478_v51, %v1442_v10  ;;  %v1817_v44 = vmul.f32 %v6422_v38, %v1119_v16  ;;  %v1904_v36 = vmul.f32 %v6479_v12, %v6838_v21 }
  0xef   : > { %v2068_v52 = vadd.f32 %v2052_v18, %v2016_v56  ;;  %v1199_v17 = vadd.f32 %v1183_v1, %v1155_v5  ;;  %v6888_v9 = vadd.f32 %v1270_v14, %v1242_v54  ;;  %v2104_v35 = vmul.f32 %v6674_v33, %v6846_v47  ;;  %v394_v14 = vld [vmem:[%s5812_s9 + $0x1c0] sm:$0xff] }
  0xf0   : > { %v3112_v27 = vmul.f32 %v6838_v21, %v9999_v59  ;;  %v6894_v29 = vadd.f32 %v1609_v19, %v1581_v4  ;;  %v1833_v45 = vadd.f32 %v1817_v44, %v1781_v50  ;;  %v1861_v30 = vmul.f32 %v5556_v49, %v6426_v43  ;;  %458 = vst [vmem:[#allocation2 + $0x1c0] sm:$0xff] %v394_v14  ;;  %v395_v4 = vld [vmem:[%s5812_s9 + $0x1c8] sm:$0xff]  ;;  %v1207_v19 = vld [vmem:[#allocation2 + $0x132] sm:$0xff] }
  0xf1   : > { %10035 = vst [vmem:[#allocation38_spill] sm:$0xff] %v6888_v9  ;;  %v1920_v10 = vadd.f32 %v1904_v36, %v1876_v42  ;;  %v2120_v2 = vadd.f32 %v2104_v35, %v2068_v52  ;;  %v3160_v56 = vmul.f32 %v6846_v47, %v5847_v23  ;;  %v3287_v1 = vmul.f32 %v6838_v21, %v5871_v31 }
  0xf2   : > { %10036 = vst [vmem:[#allocation39_spill] sm:$0xff] %v6894_v29  ;;  %v3128_v39 = vadd.f32 %v3112_v27, %v3064_v22  ;;  %v1538_v5 = vadd.f32 %v1522_v40, %v1494_v3  ;;  %v1948_v54 = vmul.f32 %v6483_v48, %v6846_v47  ;;  %v2156_v57 = vmul.f32 %v6695_v13, %v1119_v16  ;;  %v10039_v3 = vld [vmem:[#allocation42_spill] sm:$0xff] }
  0xf3   : > { %v3208_v51 = vmul.f32 %v1119_v16, %v10002_v20  ;;  %v3248_v22 = vmul.f32 %v5556_v49, %v10003_v34  ;;  %v3303_v18 = vadd.f32 %v3287_v1, %v3263_v28  ;;  %v3327_v24 = vmul.f32 %v6846_v47, %v5874_v32  ;;  %459 = vst [vmem:[#allocation2 + $0x1c8] sm:$0xff] %v395_v4  ;;  %v10041_v16 = vld [vmem:[#allocation44_spill] sm:$0xff]  ;;  %v5557_v1 = vld [vmem:[#allocation2 + $0x140] sm:$0xff] }
  0xf4   : > { %v3176_v42 = vadd.f32 %v3160_v56, %v3128_v39  ;;  %v6910_v50 = vadd.f32 %v1948_v54, %v1920_v10  ;;  %v6913_v40 = vmul.f32 %v5556_v49, %v6703_v46  ;;  %v6917_v44 = vmul.f32 %v10039_v3, %v6838_v21  ;;  %v1251_v39 = vld [vmem:[#allocation2 + $0x134] sm:$0xff]  ;;  %v10045_v21 = vld [vmem:[#allocation19_spill] sm:$0xff]  ;;  %v10050_v29 = vld [vmem:[#allocation18_spill] sm:$0xff] }
  0xf5   : > { %v6921_v36 = vmul.f32 %v10041_v16, %v6846_v47  ;;  %v1877_v52 = vadd.f32 %v1861_v30, %v1833_v45  ;;  %v6923_v28 = vadd.f32 %v2156_v57, %v2120_v2  ;;  %v6925_v27 = vadd.f32 %v3327_v24, %v3303_v18  ;;  %v1355_v54 = vld [vmem:[#allocation2 + $0x142] sm:$0xff]  ;;  %v10047_v2 = vld [vmem:[#allocation32_spill] sm:$0xff] }
  0xf6   : > { %10037 = vst [vmem:[#allocation40_spill] sm:$0xff] %v6910_v50  ;;  %10038 = vst [vmem:[#allocation41_spill] sm:$0xff] %v6913_v40  ;;  %v3224_v35 = vadd.f32 %v3208_v51, %v3176_v42  ;;  %v1227_v10 = vmul.f32 %v5974_v11, %v1207_v19  ;;  %v1566_v49 = vmul.f32 %v6238_v53, %v1207_v19  ;;  %v10046_v45 = vld [vmem:[#allocation23_spill] sm:$0xff] }
  0xf7   : > { %10040 = vst [vmem:[#allocation52_spill] sm:$0xff] %v6917_v44  ;;  %10042 = vst [vmem:[#allocation53_spill] sm:$0xff] %v6921_v36  ;;  %v1905_v56 = vmul.f32 %v6479_v12, %v1207_v19  ;;  %v1323_v14 = vmul.f32 %v5557_v1, %v10045_v21  ;;  %v3288_v47 = vmul.f32 %v1207_v19, %v5871_v31  ;;  %v10048_v24 = vld [vmem:[#allocation31_spill] sm:$0xff] }
  0xf8   : > { %10043 = vst [vmem:[#allocation54_spill] sm:$0xff] %v6923_v28  ;;  %10044 = vst [vmem:[#allocation55_spill] sm:$0xff] %v6925_v27  ;;  %v3264_v4 = vadd.f32 %v3248_v22, %v3224_v35  ;;  %v1662_v30 = vmul.f32 %v5557_v1, %v10046_v45  ;;  %v2001_v57 = vmul.f32 %v5557_v1, %v10047_v2  ;;  %v1407_v44 = vld [vmem:[#allocation2 + $0x144] sm:$0xff]  ;;  %v10049_v35 = vld [vmem:[#allocation20_spill] sm:$0xff] }
  0xf9   : > { %v1243_v51 = vadd.f32 %v1227_v10, %v1199_v17  ;;  %v1271_v42 = vmul.f32 %v5978_v15, %v1251_v39  ;;  %v1582_v18 = vadd.f32 %v1566_v49, %v1538_v5  ;;  %v1339_v36 = vadd.f32 %v1323_v14, %v10048_v24  ;;  %v6941_v16 = vld [vmem:[#allocation2 + $0x148] sm:$0xff]  ;;  %v10052_v10 = vld [vmem:[#allocation45_spill] sm:$0xff] }
  0xfa   : > { %v1610_v7 = vmul.f32 %v6247_v41, %v1251_v39  ;;  %v1921_v40 = vadd.f32 %v1905_v56, %v1877_v52  ;;  %v3304_v28 = vadd.f32 %v3288_v47, %v3264_v4  ;;  %v1375_v27 = vmul.f32 %v6176_v0, %v1355_v54 }
  0xfb   : > { %v1949_v22 = vmul.f32 %v6483_v48, %v1251_v39  ;;  %v1678_v50 = vadd.f32 %v1662_v30, %v10049_v35  ;;  %v3376_v9 = vmul.f32 %v5557_v1, %v10050_v29  ;;  %v1324_v17 = vmul.f32 %v6941_v16, %v10045_v21  ;;  %v1459_v30 = vld [vmem:[#allocation2 + $0x146] sm:$0xff] }
  0xfc   : > { %v6946_v5 = vmul.f32 %v10039_v3, %v1207_v19  ;;  %v2017_v49 = vadd.f32 %v2001_v57, %v10052_v10  ;;  %v1391_v52 = vadd.f32 %v1375_v27, %v1339_v36  ;;  %v1427_v56 = vmul.f32 %v6180_v25, %v1407_v44  ;;  %v10056_v10 = vld [vmem:[#allocation47_spill] sm:$0xff]  ;;  %v10057_v27 = vld [vmem:[#allocation34_spill] sm:$0xff] }
  0xfd   : > { %v6950_v14 = vadd.f32 %v1271_v42, %v1243_v51  ;;  %v6952_v4 = vadd.f32 %v1610_v7, %v1582_v18  ;;  %v3328_v47 = vmul.f32 %v1251_v39, %v5874_v32  ;;  %v1714_v24 = vmul.f32 %v6404_v26, %v1355_v54  ;;  %v396_v42 = vld [vmem:[%s5812_s9 + $0x1d0] sm:$0xff] }
  0xfe   : > { %10051 = vst [vmem:[#allocation31_spill] sm:$0xff] %v6946_v5  ;;  %v6956_v35 = vadd.f32 %v1949_v22, %v1921_v40  ;;  %v3065_v19 = vmul.f32 %v5557_v1, %v5822_v8  ;;  %v1443_v5 = vadd.f32 %v1427_v56, %v1391_v52  ;;  %v2053_v57 = vmul.f32 %v6667_v37, %v1355_v54 }
  0xff   : > { %10053 = vst [vmem:[#allocation20_spill] sm:$0xff] %v6950_v14  ;;  %10054 = vst [vmem:[#allocation45_spill] sm:$0xff] %v6952_v4  ;;  %v3392_v36 = vadd.f32 %v3376_v9, %v10056_v10  ;;  %v1340_v15 = vadd.f32 %v1324_v17, %v10057_v27  ;;  %v1663_v7 = vmul.f32 %v6941_v16, %v10046_v45  ;;  %v6976_v27 = vld [vmem:[#allocation2 + $0x14a] sm:$0xff]  ;;  %v10060_v45 = vld [vmem:[#allocation50_spill] sm:$0xff] }
 0x100   : > { %10055 = vst [vmem:[#allocation56_spill] sm:$0xff] %v6956_v35  ;;  %v1730_v51 = vadd.f32 %v1714_v24, %v1678_v50  ;;  %v1479_v39 = vmul.f32 %v6184_v58, %v1459_v30  ;;  %v1766_v18 = vmul.f32 %v9980_v55, %v1407_v44  ;;  %v2069_v40 = vadd.f32 %v2053_v57, %v2017_v49  ;;  %v10059_v49 = vld [vmem:[#allocation36_spill] sm:$0xff] }
 0x101   : > { %v2105_v22 = vmul.f32 %v6674_v33, %v1407_v44  ;;  %460 = vst [vmem:[#allocation2 + $0x1d0] sm:$0xff] %v396_v42  ;;  %v6968_v1 = vadd.f32 %v3328_v47, %v3304_v28  ;;  %v1523_v9 = vmul.f32 %v6941_v16, %v9978_v6  ;;  %v1818_v17 = vmul.f32 %v6422_v38, %v1459_v30 }
 0x102   : > { %v3113_v52 = vmul.f32 %v1355_v54, %v9999_v59  ;;  %v1495_v56 = vadd.f32 %v1479_v39, %v1443_v5  ;;  %v1782_v50 = vadd.f32 %v1766_v18, %v1730_v51  ;;  %v1862_v24 = vmul.f32 %v6941_v16, %v6426_v43  ;;  %v6987_v39 = vld [vmem:[#allocation2 + $0x14c] sm:$0xff] }
 0x103   : > { %10058 = vst [vmem:[#allocation47_spill] sm:$0xff] %v6968_v1  ;;  %v2121_v10 = vadd.f32 %v2105_v22, %v2069_v40  ;;  %v1679_v57 = vadd.f32 %v1663_v7, %v10059_v49  ;;  %v3161_v28 = vmul.f32 %v1407_v44, %v5847_v23  ;;  %v3424_v47 = vmul.f32 %v1355_v54, %v5951_v60 }
 0x104   : > { %v3129_v42 = vadd.f32 %v3113_v52, %v3065_v19  ;;  %v2002_v1 = vmul.f32 %v6941_v16, %v10047_v2  ;;  %v2157_v35 = vmul.f32 %v6695_v13, %v1459_v30  ;;  %v3209_v5 = vmul.f32 %v1459_v30, %v10002_v20 }
 0x105   : > { %v3377_v51 = vmul.f32 %v6941_v16, %v10050_v29  ;;  %v3440_v40 = vadd.f32 %v3424_v47, %v3392_v36  ;;  %v3472_v19 = vmul.f32 %v1407_v44, %v5955_v61  ;;  %v1376_v7 = vmul.f32 %v6176_v0, %v6976_v27 }
 0x106   : > { %v3177_v18 = vadd.f32 %v3161_v28, %v3129_v42  ;;  %v1539_v54 = vadd.f32 %v1523_v9, %v1495_v56  ;;  %v1834_v22 = vadd.f32 %v1818_v17, %v1782_v50  ;;  %v2173_v52 = vadd.f32 %v2157_v35, %v2121_v10  ;;  %v1460_v28 = vld [vmem:[#allocation2 + $0x14e] sm:$0xff] }
 0x107   : > { %v2201_v49 = vmul.f32 %v6941_v16, %v6703_v46  ;;  %v3488_v14 = vadd.f32 %v3472_v19, %v3440_v40  ;;  %v1392_v2 = vadd.f32 %v1376_v7, %v1340_v15  ;;  %v1428_v29 = vmul.f32 %v6180_v25, %v6987_v39  ;;  %v10061_v17 = vld [vmem:[#allocation51_spill] sm:$0xff] }
 0x108   : > { %v3225_v4 = vadd.f32 %v3209_v5, %v3177_v18  ;;  %v2018_v42 = vadd.f32 %v2002_v1, %v10060_v45  ;;  %v3249_v44 = vmul.f32 %v6941_v16, %v10003_v34  ;;  %v3520_v36 = vmul.f32 %v1459_v30, %v5959_v62 }
 0x109   : > { %v1715_v35 = vmul.f32 %v6404_v26, %v6976_v27  ;;  %v3066_v9 = vmul.f32 %v6941_v16, %v5822_v8  ;;  %v3393_v56 = vadd.f32 %v3377_v51, %v10061_v17  ;;  %v1444_v15 = vadd.f32 %v1428_v29, %v1392_v2  ;;  %v5559_v29 = vld [vmem:[#allocation2 + $0x150] sm:$0xff] }
 0x10a   : > { %v1567_v50 = vmul.f32 %v6238_v53, %v6976_v27  ;;  %v1878_v10 = vadd.f32 %v1862_v24, %v1834_v22  ;;  %v3536_v45 = vadd.f32 %v3520_v36, %v3488_v14  ;;  %v3560_v1 = vmul.f32 %v6941_v16, %v5963_v63 }
 0x10b   : > { %v1731_v47 = vadd.f32 %v1715_v35, %v1679_v57  ;;  %v7009_v30 = vadd.f32 %v2201_v49, %v2173_v52  ;;  %v1480_v5 = vmul.f32 %v6184_v58, %v1460_v28  ;;  %v1767_v40 = vmul.f32 %v9980_v55, %v6987_v39  ;;  %v397_v49 = vld [vmem:[%s5812_s9 + $0x1d8] sm:$0xf] }
 0x10c   : > { %v1583_v18 = vadd.f32 %v1567_v50, %v1539_v54  ;;  %v3265_v51 = vadd.f32 %v3249_v44, %v3225_v4  ;;  %v1524_v2 = vmul.f32 %v5559_v29, %v9978_v6  ;;  %v1611_v14 = vmul.f32 %v6247_v41, %v6987_v39  ;;  %461 = vst [vmem:[#allocation2 + $0x1d8] sm:$0xf] %v397_v49 }
 0x10d   : > { %10062 = vst [vmem:[#allocation34_spill] sm:$0xff] %v7009_v30  ;;  %v1819_v24 = vmul.f32 %v6422_v38, %v1460_v28  ;;  %v1496_v16 = vadd.f32 %v1480_v5, %v1444_v15  ;;  %v1783_v57 = vadd.f32 %v1767_v40, %v1731_v47  ;;  %v1863_v19 = vmul.f32 %v5559_v29, %v6426_v43 }
 0x10e   : > { %v1906_v7 = vmul.f32 %v6479_v12, %v6976_v27  ;;  %v3576_v54 = vadd.f32 %v3560_v1, %v3536_v45  ;;  %v1950_v22 = vmul.f32 %v6483_v48, %v6987_v39  ;;  %v2054_v4 = vmul.f32 %v6667_v37, %v6976_v27 }
 0x10f   : > { %v3114_v52 = vmul.f32 %v6976_v27, %v9999_v59  ;;  %v7028_v44 = vadd.f32 %v1611_v14, %v1583_v18  ;;  %v2106_v35 = vmul.f32 %v6674_v33, %v6987_v39  ;;  %v2158_v17 = vmul.f32 %v6695_v13, %v1460_v28 }
 0x110   : > { %v1922_v36 = vadd.f32 %v1906_v7, %v1878_v10  ;;  %v2070_v15 = vadd.f32 %v2054_v4, %v2018_v42  ;;  %v3162_v45 = vmul.f32 %v6987_v39, %v5847_v23  ;;  %v3289_v1 = vmul.f32 %v6976_v27, %v5871_v31  ;;  %v398_v4 = vld [vmem:[%s5812_s9 + $0x1e0] sm:$0xff] }
 0x111   : > { %10063 = vst [vmem:[#allocation36_spill] sm:$0xff] %v7028_v44  ;;  %v3130_v50 = vadd.f32 %v3114_v52, %v3066_v9  ;;  %v1540_v47 = vadd.f32 %v1524_v2, %v1496_v16  ;;  %v1835_v5 = vadd.f32 %v1819_v24, %v1783_v57  ;;  %v3210_v18 = vmul.f32 %v1460_v28, %v10002_v20  ;;  %v1549_v9 = vld [vmem:[#allocation2 + $0x152] sm:$0xff] }
 0x112   : > { %v3425_v10 = vmul.f32 %v6976_v27, %v5951_v60  ;;  %v3250_v14 = vmul.f32 %v5559_v29, %v10003_v34  ;;  %v3305_v7 = vadd.f32 %v3289_v1, %v3265_v51  ;;  %v3329_v42 = vmul.f32 %v6987_v39, %v5874_v32  ;;  %462 = vst [vmem:[#allocation2 + $0x1e0] sm:$0xff] %v398_v4 }
 0x113   : > { %v3178_v40 = vadd.f32 %v3162_v45, %v3130_v50  ;;  %v7045_v52 = vmul.f32 %v5559_v29, %v6703_v46  ;;  %v7049_v2 = vmul.f32 %v10039_v3, %v6976_v27  ;;  %v3473_v16 = vmul.f32 %v6987_v39, %v5955_v61  ;;  %v399_v45 = vld [vmem:[%s5812_s9 + $0x1e8] sm:$0xff] }
 0x114   : > { %v3441_v24 = vadd.f32 %v3425_v10, %v3393_v56  ;;  %v7053_v57 = vadd.f32 %v1950_v22, %v1922_v36  ;;  %v2122_v51 = vadd.f32 %v2106_v35, %v2070_v15  ;;  %v7055_v50 = vadd.f32 %v3329_v42, %v3305_v7  ;;  %463 = vst [vmem:[#allocation2 + $0x1e8] sm:$0xff] %v399_v45  ;;  %v1593_v22 = vld [vmem:[#allocation2 + $0x154] sm:$0xff] }
 0x115   : > { %10064 = vst [vmem:[#allocation50_spill] sm:$0xff] %v7045_v52  ;;  %10065 = vst [vmem:[#allocation51_spill] sm:$0xff] %v7049_v2  ;;  %v3226_v49 = vadd.f32 %v3210_v18, %v3178_v40  ;;  %v3521_v30 = vmul.f32 %v1460_v28, %v5959_v62  ;;  %v3600_v52 = vmul.f32 %v6976_v27, %v5974_v11  ;;  %v10068_v35 = vld [vmem:[#allocation44_spill] sm:$0xff] }
 0x116   : > { %10066 = vst [vmem:[#allocation57_spill] sm:$0xff] %v7053_v57  ;;  %10067 = vst [vmem:[#allocation58_spill] sm:$0xff] %v7055_v50  ;;  %v3489_v1 = vadd.f32 %v3473_v16, %v3441_v24  ;;  %v1568_v2 = vmul.f32 %v6238_v53, %v1549_v9  ;;  %v1879_v56 = vadd.f32 %v1863_v19, %v1835_v5  ;;  %v5560_v24 = vld [vmem:[#allocation2 + $0x160] sm:$0xff]  ;;  %v10078_v50 = vld [vmem:[#allocation39_spill] sm:$0xff] }
 0x117   : > { %v3266_v10 = vadd.f32 %v3250_v14, %v3226_v49  ;;  %v3561_v4 = vmul.f32 %v5559_v29, %v5963_v63  ;;  %v3290_v36 = vmul.f32 %v1549_v9, %v5871_v31  ;;  %v7066_v15 = vmul.f32 %v10068_v35, %v6987_v39  ;;  %v1357_v5 = vld [vmem:[#allocation2 + $0x162] sm:$0xff]  ;;  %v1462_v35 = vld [vmem:[#allocation2 + $0x16e] sm:$0xff] }
 0x118   : > { %v3537_v18 = vadd.f32 %v3521_v30, %v3489_v1  ;;  %v3616_v40 = vadd.f32 %v3600_v52, %v3576_v54  ;;  %v1584_v28 = vadd.f32 %v1568_v2, %v1540_v47  ;;  %v7068_v7 = vadd.f32 %v2158_v17, %v2122_v51  ;;  %v10071_v29 = vld [vmem:[#allocation27_spill] sm:$0xff]  ;;  %v10074_v52 = vld [vmem:[#allocation38_spill] sm:$0xff] }
 0x119   : > { %10069 = vst [vmem:[#allocation59_spill] sm:$0xff] %v7066_v15  ;;  %v1907_v27 = vmul.f32 %v6479_v12, %v1549_v9  ;;  %v3306_v42 = vadd.f32 %v3290_v36, %v3266_v10  ;;  %v1325_v19 = vmul.f32 %v5560_v24, %v10045_v21  ;;  %v3640_v14 = vmul.f32 %v6987_v39, %v10071_v29  ;;  %v10072_v49 = vld [vmem:[#allocation23_spill] sm:$0xff]  ;;  %v10073_v15 = vld [vmem:[#allocation32_spill] sm:$0xff] }
 0x11a   : > { %10070 = vst [vmem:[#allocation60_spill] sm:$0xff] %v7068_v7  ;;  %v1612_v16 = vmul.f32 %v6247_v41, %v1593_v22  ;;  %v1664_v45 = vmul.f32 %v5560_v24, %v10072_v49  ;;  %v2003_v30 = vmul.f32 %v5560_v24, %v10073_v15  ;;  %v3577_v54 = vadd.f32 %v3561_v4, %v3537_v18  ;;  %v1409_v51 = vld [vmem:[#allocation2 + $0x164] sm:$0xff] }
 0x11b   : > { %v1923_v47 = vadd.f32 %v1907_v27, %v1879_v56  ;;  %v1951_v17 = vmul.f32 %v6483_v48, %v1593_v22  ;;  %v1341_v2 = vadd.f32 %v1325_v19, %v10074_v52  ;;  %v7079_v1 = vadd.f32 %v3640_v14, %v3616_v40  ;;  %v10079_v4 = vld [vmem:[#allocation18_spill] sm:$0xff]  ;;  %v5561_v18 = vld [vmem:[#allocation2 + $0x168] sm:$0xff]  ;;  %v10080_v40 = vld [vmem:[#allocation40_spill] sm:$0xff] }
 0x11c   : > { %v7081_v10 = vadd.f32 %v1612_v16, %v1584_v28  ;;  %v7084_v36 = vmul.f32 %v10039_v3, %v1549_v9  ;;  %v1377_v39 = vmul.f32 %v6176_v0, %v1357_v5  ;;  %v3601_v7 = vmul.f32 %v1549_v9, %v5974_v11  ;;  %v10087_v11 = vld [vmem:[#allocation56_spill] sm:$0xff] }
 0x11d   : > { %10075 = vst [vmem:[#allocation38_spill] sm:$0xff] %v7079_v1  ;;  %v1680_v57 = vadd.f32 %v1664_v45, %v10078_v50  ;;  %v3378_v56 = vmul.f32 %v5560_v24, %v10079_v4  ;;  %v1326_v27 = vmul.f32 %v5561_v18, %v10045_v21  ;;  %v3330_v19 = vmul.f32 %v1593_v22, %v5874_v32 }
 0x11e   : > { %10076 = vst [vmem:[#allocation61_spill] sm:$0xff] %v7081_v10  ;;  %10077 = vst [vmem:[#allocation62_spill] sm:$0xff] %v7084_v36  ;;  %v2019_v14 = vadd.f32 %v2003_v30, %v10080_v40  ;;  %v1393_v28 = vadd.f32 %v1377_v39, %v1341_v2  ;;  %v1429_v16 = vmul.f32 %v6180_v25, %v1409_v51  ;;  %v1461_v10 = vld [vmem:[#allocation2 + $0x166] sm:$0xff]  ;;  %v10084_v2 = vld [vmem:[#allocation20_spill] sm:$0xff] }
 0x11f   : > { %v7094_v52 = vadd.f32 %v1951_v17, %v1923_v47  ;;  %v3617_v36 = vadd.f32 %v3601_v7, %v3577_v54  ;;  %v3641_v9 = vmul.f32 %v1593_v22, %v10071_v29  ;;  %v1716_v50 = vmul.f32 %v6404_v26, %v1357_v5  ;;  %v10083_v30 = vld [vmem:[#allocation55_spill] sm:$0xff]  ;;  %v400_v7 = vld [vmem:[%s5812_s9 + $0x1f0] sm:$0xff] }
 0x120   : > { %v7098_v45 = vadd.f32 %v3330_v19, %v3306_v42  ;;  %v3067_v1 = vmul.f32 %v5560_v24, %v5822_v8  ;;  %v1445_v21 = vadd.f32 %v1429_v16, %v1393_v28  ;;  %v2055_v44 = vmul.f32 %v6667_v37, %v1357_v5  ;;  %464 = vst [vmem:[#allocation2 + $0x1f0] sm:$0xff] %v400_v7 }
 0x121   : > { %10081 = vst [vmem:[#allocation39_spill] sm:$0xff] %v7094_v52  ;;  %v3394_v40 = vadd.f32 %v3378_v56, %v10083_v30  ;;  %v1342_v39 = vadd.f32 %v1326_v27, %v10084_v2  ;;  %v1665_v47 = vmul.f32 %v5561_v18, %v10072_v49  ;;  %v1732_v17 = vadd.f32 %v1716_v50, %v1680_v57  ;;  %v7115_v30 = vld [vmem:[#allocation2 + $0x16a] sm:$0xff]  ;;  %v10086_v2 = vld [vmem:[#allocation45_spill] sm:$0xff] }
 0x122   : > { %10082 = vst [vmem:[#allocation40_spill] sm:$0xff] %v7098_v45  ;;  %v1481_v22 = vmul.f32 %v6184_v58, %v1461_v10  ;;  %v1768_v54 = vmul.f32 %v9980_v55, %v1409_v51  ;;  %v2071_v52 = vadd.f32 %v2055_v44, %v2019_v14  ;;  %v2107_v42 = vmul.f32 %v6674_v33, %v1409_v51 }
 0x123   : > { %v7109_v24 = vadd.f32 %v3641_v9, %v3617_v36  ;;  %v1525_v19 = vmul.f32 %v5561_v18, %v9978_v6  ;;  %v1820_v56 = vmul.f32 %v6422_v38, %v1461_v10  ;;  %v3115_v27 = vmul.f32 %v1357_v5, %v9999_v59 }
 0x124   : > { %v1497_v28 = vadd.f32 %v1481_v22, %v1445_v21  ;;  %v1784_v16 = vadd.f32 %v1768_v54, %v1732_v17  ;;  %v1864_v57 = vmul.f32 %v5561_v18, %v6426_v43  ;;  %v2123_v50 = vadd.f32 %v2107_v42, %v2071_v52  ;;  %v7124_v17 = vld [vmem:[#allocation2 + $0x16c] sm:$0xff] }
 0x125   : > { %10085 = vst [vmem:[#allocation55_spill] sm:$0xff] %v7109_v24  ;;  %v1681_v44 = vadd.f32 %v1665_v47, %v10086_v2  ;;  %v3131_v14 = vadd.f32 %v3115_v27, %v3067_v1  ;;  %v3163_v7 = vmul.f32 %v1409_v51, %v5847_v23  ;;  %v3426_v36 = vmul.f32 %v1357_v5, %v5951_v60 }
 0x126   : > { %v2004_v9 = vmul.f32 %v5561_v18, %v10073_v15  ;;  %v2159_v24 = vmul.f32 %v6695_v13, %v1461_v10  ;;  %v2203_v45 = vmul.f32 %v5561_v18, %v6703_v46  ;;  %v3211_v21 = vmul.f32 %v1461_v10, %v10002_v20 }
 0x127   : > { %v3179_v52 = vadd.f32 %v3163_v7, %v3131_v14  ;;  %v3442_v22 = vadd.f32 %v3426_v36, %v3394_v40  ;;  %v3474_v54 = vmul.f32 %v1409_v51, %v5955_v61  ;;  %v1378_v1 = vmul.f32 %v6176_v0, %v7115_v30 }
 0x128   : > { %v1541_v47 = vadd.f32 %v1525_v19, %v1497_v28  ;;  %v1836_v42 = vadd.f32 %v1820_v56, %v1784_v16  ;;  %v2175_v5 = vadd.f32 %v2159_v24, %v2123_v50  ;;  %v3379_v27 = vmul.f32 %v5561_v18, %v10079_v4 }
 0x129   : > { %v3227_v2 = vadd.f32 %v3211_v21, %v3179_v52  ;;  %v3490_v15 = vadd.f32 %v3474_v54, %v3442_v22  ;;  %v1394_v49 = vadd.f32 %v1378_v1, %v1342_v39  ;;  %v1430_v29 = vmul.f32 %v6180_v25, %v7124_v17  ;;  %v5562_v54 = vld [vmem:[#allocation2 + $0x170] sm:$0xff] }
 0x12a   : > { %v2020_v14 = vadd.f32 %v2004_v9, %v10087_v11  ;;  %v3522_v40 = vmul.f32 %v1461_v10, %v5959_v62  ;;  %v1569_v51 = vmul.f32 %v6238_v53, %v7115_v30  ;;  %v1717_v19 = vmul.f32 %v6404_v26, %v7115_v30  ;;  %v10089_v9 = vld [vmem:[#allocation47_spill] sm:$0xff] }
 0x12b   : > { %v3068_v24 = vmul.f32 %v5561_v18, %v5822_v8  ;;  %v3251_v56 = vmul.f32 %v5561_v18, %v10003_v34  ;;  %v3562_v39 = vmul.f32 %v5561_v18, %v5963_v63  ;;  %v1446_v28 = vadd.f32 %v1430_v29, %v1394_v49 }
 0x12c   : > { %v3538_v16 = vadd.f32 %v3522_v40, %v3490_v15  ;;  %v1482_v50 = vmul.f32 %v6184_v58, %v1462_v35  ;;  %v1585_v7 = vadd.f32 %v1569_v51, %v1541_v47  ;;  %v1733_v11 = vadd.f32 %v1717_v19, %v1681_v44 }
 0x12d   : > { %v1880_v36 = vadd.f32 %v1864_v57, %v1836_v42  ;;  %v7142_v10 = vadd.f32 %v2203_v45, %v2175_v5  ;;  %v3395_v21 = vadd.f32 %v3379_v27, %v10089_v9  ;;  %v1769_v52 = vmul.f32 %v9980_v55, %v7124_v17  ;;  %v401_v27 = vld [vmem:[%s5812_s9 + $0x1f8] sm:$0xf]  ;;  %s5491_s9 = sshll.u32 %s5704_s18, 12  ;;  %s5634_s18 = scalar_lea.vmem %s9741_s10, 4096 }
 0x12e   : > { %v1498_v22 = vadd.f32 %v1482_v50, %v1446_v28  ;;  %v1526_v1 = vmul.f32 %v5562_v54, %v9978_v6  ;;  %v1613_v15 = vmul.f32 %v6247_v41, %v7124_v17  ;;  %v1821_v29 = vmul.f32 %v6422_v38, %v1462_v35  ;;  %465 = vst [vmem:[#allocation2 + $0x1f8] sm:$0xf] %v401_v27  ;;  %s9739_s14 = scalar_lea.hbm %s9797_s4, %s5491_s9  ;;  %p5635_p12 = scmp.ne.s32.totalorder %s9741_s10, %s5634_s18 }
 0x12f   : > { %10088 = vst [vmem:[#allocation20_spill] sm:$0xff] %v7142_v10  ;;  %v3267_v49 = vadd.f32 %v3251_v56, %v3227_v2  ;;  %v1785_v18 = vadd.f32 %v1769_v52, %v1733_v11  ;;  %v1865_v45 = vmul.f32 %v5562_v54, %v6426_v43  ;;  %v1908_v57 = vmul.f32 %v6479_v12, %v7115_v30  ;;  %p5642_p2 = scmp.lt.s32.totalorder %s5640_s30, %s5634_s18 }
 0x130   : > { %v3578_v44 = vadd.f32 %v3562_v39, %v3538_v16  ;;  %v7154_v47 = vadd.f32 %v1613_v15, %v1585_v7  ;;  %v1952_v42 = vmul.f32 %v6483_v48, %v7124_v17  ;;  %v3116_v5 = vmul.f32 %v7115_v30, %v9999_v59  ;;  %p5636_p13 = pnand %p5635_p12, %p5782_p4 }
 0x131   : > { %v1924_v40 = vadd.f32 %v1908_v57, %v1880_v36  ;;  %v2056_v2 = vmul.f32 %v6667_v37, %v7115_v30  ;;  %v2108_v51 = vmul.f32 %v6674_v33, %v7124_v17  ;;  %v2160_v19 = vmul.f32 %v6695_v13, %v1462_v35  ;;  %p5643_p3 = por %p5642_p2, %p5641_p1 }
 0x132   : > { %10090 = vst [vmem:[#allocation45_spill] sm:$0xff] %v7154_v47  ;;  %v1542_v56 = vadd.f32 %v1526_v1, %v1498_v22  ;;  %v3132_v39 = vadd.f32 %v3116_v5, %v3068_v24  ;;  %v3164_v28 = vmul.f32 %v7124_v17, %v5847_v23  ;;  %v3291_v16 = vmul.f32 %v7115_v30, %v5871_v31  ;;  %p5637_p0 = pneg %p5636_p13 }
 0x133   : > { %v1837_v50 = vadd.f32 %v1821_v29, %v1785_v18  ;;  %v2072_v7 = vadd.f32 %v2056_v2, %v2020_v14  ;;  %v3212_v11 = vmul.f32 %v1462_v35, %v10002_v20  ;;  %v3427_v36 = vmul.f32 %v7115_v30, %v5951_v60  ;;  %v1550_v18 = vld [vmem:[#allocation2 + $0x172] sm:$0xff] }
 0x134   : > { %v3180_v9 = vadd.f32 %v3164_v28, %v3132_v39  ;;  %v3252_v52 = vmul.f32 %v5562_v54, %v10003_v34  ;;  %v3307_v15 = vadd.f32 %v3291_v16, %v3267_v49  ;;  %v3331_v24 = vmul.f32 %v7124_v17, %v5874_v32  ;;  %v10095_v49 = vld [vmem:[#allocation26_spill] sm:$0xff]  ;;  %p5644_p5 = pnand %p5643_p3, %p5637_p0 }
 0x135   : > { %v7177_v22 = vmul.f32 %v5562_v54, %v6703_v46  ;;  %v7181_v1 = vmul.f32 %v10039_v3, %v7115_v30  ;;  %v3443_v14 = vadd.f32 %v3427_v36, %v3395_v21  ;;  %v3475_v29 = vmul.f32 %v7124_v17, %v5955_v61  ;;  %v1594_v36 = vld [vmem:[#allocation2 + $0x174] sm:$0xff] }
 0x136   : > { %v7185_v57 = vadd.f32 %v1952_v42, %v1924_v40  ;;  %v3228_v5 = vadd.f32 %v3212_v11, %v3180_v9  ;;  %v7187_v27 = vadd.f32 %v3331_v24, %v3307_v15  ;;  %v3602_v2 = vmul.f32 %v7115_v30, %v10095_v49  ;;  %v10096_v42 = vld [vmem:[#allocation44_spill] sm:$0xff]  ;;  %v1698_v15 = vld [vmem:[#allocation2 + $0x182] sm:$0xff] }
 0x137   : > { %10091 = vst [vmem:[#allocation56_spill] sm:$0xff] %v7177_v22  ;;  %10092 = vst [vmem:[#allocation47_spill] sm:$0xff] %v7181_v1  ;;  %v1881_v39 = vadd.f32 %v1865_v45, %v1837_v50  ;;  %v2124_v28 = vadd.f32 %v2108_v51, %v2072_v7  ;;  %v3491_v16 = vadd.f32 %v3475_v29, %v3443_v14  ;;  %v10098_v45 = vld [vmem:[#allocation27_spill] sm:$0xff] }
 0x138   : > { %10093 = vst [vmem:[#allocation63_spill] sm:$0xff] %v7185_v57  ;;  %10094 = vst [vmem:[#allocation64_spill] sm:$0xff] %v7187_v27  ;;  %v3523_v10 = vmul.f32 %v1462_v35, %v5959_v62  ;;  %v3268_v22 = vadd.f32 %v3252_v52, %v3228_v5  ;;  %v3618_v1 = vadd.f32 %v3602_v2, %v3578_v44  ;;  %v5563_v44 = vld [vmem:[#allocation2 + $0x180] sm:$0xff]  ;;  %v10099_v7 = vld [vmem:[#allocation23_spill] sm:$0xff] }
 0x139   : > { %v1570_v21 = vmul.f32 %v6238_v53, %v1550_v18  ;;  %v3292_v47 = vmul.f32 %v1550_v18, %v5871_v31  ;;  %v7196_v40 = vmul.f32 %v10096_v42, %v7124_v17  ;;  %v3563_v9 = vmul.f32 %v5562_v54, %v5963_v63  ;;  %v10101_v5 = vld [vmem:[#allocation32_spill] sm:$0xff]  ;;  %v10110_v27 = vld [vmem:[#allocation58_spill] sm:$0xff] }
 0x13a   : > { %v3539_v11 = vadd.f32 %v3523_v10, %v3491_v16  ;;  %v1909_v30 = vmul.f32 %v6479_v12, %v1550_v18  ;;  %v3642_v51 = vmul.f32 %v7124_v17, %v10098_v45  ;;  %v1666_v52 = vmul.f32 %v5563_v44, %v10099_v7  ;;  %v10104_v17 = vld [vmem:[#allocation36_spill] sm:$0xff] }
 0x13b   : > { %10097 = vst [vmem:[#allocation26_spill] sm:$0xff] %v7196_v40  ;;  %v1586_v35 = vadd.f32 %v1570_v21, %v1542_v56  ;;  %v3308_v50 = vadd.f32 %v3292_v47, %v3268_v22  ;;  %v7203_v24 = vadd.f32 %v2160_v19, %v2124_v28  ;;  %v1614_v14 = vmul.f32 %v6247_v41, %v1594_v36  ;;  %v10105_v21 = vld [vmem:[#allocation19_spill] sm:$0xff] }
 0x13c   : > { %v1925_v29 = vadd.f32 %v1909_v30, %v1881_v39  ;;  %v2005_v10 = vmul.f32 %v5563_v44, %v10101_v5  ;;  %v7207_v2 = vadd.f32 %v3642_v51, %v3618_v1  ;;  %v1953_v54 = vmul.f32 %v6483_v48, %v1594_v36  ;;  %v1750_v39 = vld [vmem:[#allocation2 + $0x184] sm:$0xff]  ;;  %v10107_v51 = vld [vmem:[#allocation57_spill] sm:$0xff] }
 0x13d   : > { %10100 = vst [vmem:[#allocation27_spill] sm:$0xff] %v7203_v24  ;;  %v7211_v16 = vmul.f32 %v10039_v3, %v1550_v18  ;;  %v1682_v47 = vadd.f32 %v1666_v52, %v10104_v17  ;;  %v3579_v56 = vadd.f32 %v3563_v9, %v3539_v11  ;;  %v3380_v22 = vmul.f32 %v5563_v44, %v10079_v4  ;;  %v7221_v24 = vld [vmem:[#allocation2 + $0x188] sm:$0xff] }
 0x13e   : > { %10102 = vst [vmem:[#allocation65_spill] sm:$0xff] %v7207_v2  ;;  %v3691_v19 = vmul.f32 %v5563_v44, %v10105_v21  ;;  %v1718_v28 = vmul.f32 %v6404_v26, %v1698_v15  ;;  %v7217_v30 = vadd.f32 %v1614_v14, %v1586_v35  ;;  %v3332_v1 = vmul.f32 %v1594_v36, %v5874_v32 }
 0x13f   : > { %10103 = vst [vmem:[#allocation66_spill] sm:$0xff] %v7211_v16  ;;  %v2021_v40 = vadd.f32 %v2005_v10, %v10107_v51  ;;  %v1667_v52 = vmul.f32 %v7221_v24, %v10099_v7  ;;  %v7225_v11 = vadd.f32 %v1953_v54, %v1925_v29  ;;  %v3603_v9 = vmul.f32 %v1550_v18, %v10095_v49  ;;  %v10111_v54 = vld [vmem:[#allocation38_spill] sm:$0xff] }
 0x140   : > { %10106 = vst [vmem:[#allocation36_spill] sm:$0xff] %v7217_v30  ;;  %v3069_v17 = vmul.f32 %v5563_v44, %v5822_v8  ;;  %v1734_v16 = vadd.f32 %v1718_v28, %v1682_v47  ;;  %v7229_v2 = vadd.f32 %v3332_v1, %v3308_v50  ;;  %v3643_v35 = vmul.f32 %v1594_v36, %v10098_v45  ;;  %v1802_v30 = vld [vmem:[#allocation2 + $0x186] sm:$0xff]  ;;  %v10112_v36 = vld [vmem:[#allocation61_spill] sm:$0xff] }
 0x141   : > { %10108 = vst [vmem:[#allocation57_spill] sm:$0xff] %v7225_v11  ;;  %v1770_v14 = vmul.f32 %v9980_v55, %v1750_v39  ;;  %v2057_v10 = vmul.f32 %v6667_v37, %v1698_v15  ;;  %v3619_v51 = vadd.f32 %v3603_v9, %v3579_v56  ;;  %v3396_v29 = vadd.f32 %v3380_v22, %v10110_v27  ;;  %v466_v28 = vld [vmem:[%s7242_s7] sm:$0xff]  ;;  %v467_v27 = vld [vmem:[%s7242_s7 + $0x8] sm:$0xff]  ;;  %v468_v22 = vld [vmem:[%s7242_s7 + $0x10] sm:$0xff] }
 0x142   : > { %10109 = vst [vmem:[#allocation67_spill] sm:$0xff] %v7229_v2  ;;  %v3707_v11 = vadd.f32 %v3691_v19, %v10111_v54  ;;  %v3117_v18 = vmul.f32 %v1698_v15, %v9999_v59  ;;  %v1683_v50 = vadd.f32 %v1667_v52, %v10112_v36  ;;  %v2109_v56 = vmul.f32 %v6674_v33, %v1750_v39  ;;  %v7259_v2 = vld [vmem:[#allocation2 + $0x18a] sm:$0xff] }
 0x143   : > { %v1786_v44 = vadd.f32 %v1770_v14, %v1734_v16  ;;  %v2073_v47 = vadd.f32 %v2057_v10, %v2021_v40  ;;  %v1822_v19 = vmul.f32 %v6422_v38, %v1802_v30  ;;  %v3165_v9 = vmul.f32 %v1750_v39, %v5847_v23  ;;  %531 = vst [vmem:[#allocation2 + $0x200] sm:$0xff] %v466_v28 }
 0x144   : > { %v3133_v1 = vadd.f32 %v3117_v18, %v3069_v17  ;;  %v3428_v54 = vmul.f32 %v1698_v15, %v5951_v60  ;;  %532 = vst [vmem:[#allocation2 + $0x208] sm:$0xff] %v467_v27  ;;  %533 = vst [vmem:[#allocation2 + $0x210] sm:$0xff] %v468_v22  ;;  %v1866_v52 = vmul.f32 %v7221_v24, %v6426_v43 }
 0x145   : > { %v2006_v40 = vmul.f32 %v7221_v24, %v10101_v5  ;;  %v2125_v16 = vadd.f32 %v2109_v56, %v2073_v47  ;;  %v2161_v14 = vmul.f32 %v6695_v13, %v1802_v30  ;;  %v3213_v36 = vmul.f32 %v1802_v30, %v10002_v20  ;;  %v7273_v5 = vld [vmem:[#allocation2 + $0x18c] sm:$0xff] }
 0x146   : > { %v3181_v10 = vadd.f32 %v3165_v9, %v3133_v1  ;;  %v3444_v17 = vadd.f32 %v3428_v54, %v3396_v29  ;;  %v3476_v18 = vmul.f32 %v1750_v39, %v5955_v61  ;;  %v1838_v28 = vadd.f32 %v1822_v19, %v1786_v44 }
 0x147   : > { %v2205_v27 = vmul.f32 %v7221_v24, %v6703_v46  ;;  %v3253_v22 = vmul.f32 %v7221_v24, %v10003_v34  ;;  %v3739_v57 = vmul.f32 %v1698_v15, %v6176_v0  ;;  %v3381_v56 = vmul.f32 %v7221_v24, %v10079_v4  ;;  %v10114_v15 = vld [vmem:[#allocation39_spill] sm:$0xff] }
 0x148   : > { %v3229_v47 = vadd.f32 %v3213_v36, %v3181_v10  ;;  %v3492_v1 = vadd.f32 %v3476_v18, %v3444_v17  ;;  %v3524_v29 = vmul.f32 %v1802_v30, %v5959_v62  ;;  %v2177_v9 = vadd.f32 %v2161_v14, %v2125_v16  ;;  %v1803_v18 = vld [vmem:[#allocation2 + $0x18e] sm:$0xff] }
 0x149   : > { %v3692_v54 = vmul.f32 %v7221_v24, %v10105_v21  ;;  %v3755_v44 = vadd.f32 %v3739_v57, %v3707_v11  ;;  %v1719_v19 = vmul.f32 %v6404_v26, %v7259_v2  ;;  %v7275_v41 = vadd.f32 %v3643_v35, %v3619_v51  ;;  %v10115_v21 = vld [vmem:[#allocation40_spill] sm:$0xff] }
 0x14a   : > { %v2022_v10 = vadd.f32 %v2006_v40, %v10114_v15  ;;  %v3070_v36 = vmul.f32 %v7221_v24, %v5822_v8  ;;  %v3787_v17 = vmul.f32 %v1750_v39, %v6180_v25  ;;  %v1882_v16 = vadd.f32 %v1866_v52, %v1838_v28  ;;  %v470_v28 = vld [vmem:[%s7242_s7 + $0x20] sm:$0xff] }
 0x14b   : > { %10113 = vst [vmem:[#allocation58_spill] sm:$0xff] %v7275_v41  ;;  %v3540_v14 = vadd.f32 %v3524_v29, %v3492_v1  ;;  %v3564_v57 = vmul.f32 %v7221_v24, %v5963_v63  ;;  %v1735_v11 = vadd.f32 %v1719_v19, %v1683_v50  ;;  %v3397_v26 = vadd.f32 %v3381_v56, %v10115_v21  ;;  %v10117_v41 = vld [vmem:[#allocation55_spill] sm:$0xff]  ;;  %v5565_v21 = vld [vmem:[#allocation2 + $0x190] sm:$0xff] }
 0x14c   : > { %v3803_v4 = vadd.f32 %v3787_v17, %v3755_v44  ;;  %v3835_v35 = vmul.f32 %v1802_v30, %v6184_v58  ;;  %v1771_v51 = vmul.f32 %v9980_v55, %v7273_v5  ;;  %v7287_v40 = vadd.f32 %v2205_v27, %v2177_v9  ;;  %535 = vst [vmem:[#allocation2 + $0x220] sm:$0xff] %v470_v28  ;;  %v471_v44 = vld [vmem:[%s7242_s7 + $0x28] sm:$0xff] }
 0x14d   : > { %v3269_v15 = vadd.f32 %v3253_v22, %v3229_v47  ;;  %v3708_v39 = vadd.f32 %v3692_v54, %v10117_v41  ;;  %v3875_v52 = vmul.f32 %v7221_v24, %v9978_v6  ;;  %v1823_v1 = vmul.f32 %v6422_v38, %v1803_v18  ;;  %536 = vst [vmem:[#allocation2 + $0x228] sm:$0xff] %v471_v44 }
 0x14e   : > { %10116 = vst [vmem:[#allocation38_spill] sm:$0xff] %v7287_v40  ;;  %v1787_v50 = vadd.f32 %v1771_v51, %v1735_v11  ;;  %v1867_v56 = vmul.f32 %v5565_v21, %v6426_v43  ;;  %v1910_v30 = vmul.f32 %v6479_v12, %v7259_v2  ;;  %v3580_v27 = vadd.f32 %v3564_v57, %v3540_v14 }
 0x14f   : > { %v1954_v22 = vmul.f32 %v6483_v48, %v7273_v5  ;;  %v2058_v41 = vmul.f32 %v6667_v37, %v7259_v2  ;;  %v3118_v24 = vmul.f32 %v7259_v2, %v9999_v59  ;;  %v3851_v47 = vadd.f32 %v3835_v35, %v3803_v4 }
 0x150   : > { %v1926_v29 = vadd.f32 %v1910_v30, %v1882_v16  ;;  %v2110_v9 = vmul.f32 %v6674_v33, %v7273_v5  ;;  %v2162_v54 = vmul.f32 %v6695_v13, %v1803_v18  ;;  %v3166_v14 = vmul.f32 %v7273_v5, %v5847_v23 }
 0x151   : > { %v2074_v19 = vadd.f32 %v2058_v41, %v2022_v10  ;;  %v3134_v17 = vadd.f32 %v3118_v24, %v3070_v36  ;;  %v3293_v57 = vmul.f32 %v7259_v2, %v5871_v31  ;;  %v1839_v11 = vadd.f32 %v1823_v1, %v1787_v50 }
 0x152   : > { %v7312_v51 = vmul.f32 %v5565_v21, %v6703_v46  ;;  %v3214_v4 = vmul.f32 %v1803_v18, %v10002_v20  ;;  %v3429_v16 = vmul.f32 %v7259_v2, %v5951_v60  ;;  %v3254_v10 = vmul.f32 %v5565_v21, %v10003_v34 }
 0x153   : > { %v3182_v35 = vadd.f32 %v3166_v14, %v3134_v17  ;;  %v3309_v36 = vadd.f32 %v3293_v57, %v3269_v15  ;;  %v3333_v28 = vmul.f32 %v7273_v5, %v5874_v32  ;;  %v3891_v30 = vadd.f32 %v3875_v52, %v3851_v47  ;;  %v1892_v52 = vld [vmem:[#allocation2 + $0x192] sm:$0xff] }
 0x154   : > { %10118 = vst [vmem:[#allocation61_spill] sm:$0xff] %v7312_v51  ;;  %v3445_v41 = vadd.f32 %v3429_v16, %v3397_v26  ;;  %v3477_v50 = vmul.f32 %v7273_v5, %v5955_v61  ;;  %v3740_v1 = vmul.f32 %v7259_v2, %v6176_v0  ;;  %v2126_v24 = vadd.f32 %v2110_v9, %v2074_v19  ;;  %v472_v9 = vld [vmem:[%s7242_s7 + $0x30] sm:$0xff] }
 0x155   : > { %v3230_v44 = vadd.f32 %v3214_v4, %v3182_v35  ;;  %v7324_v40 = vadd.f32 %v3333_v28, %v3309_v36  ;;  %v3604_v17 = vmul.f32 %v7259_v2, %v10095_v49  ;;  %v3525_v14 = vmul.f32 %v1803_v18, %v5959_v62  ;;  %537 = vst [vmem:[#allocation2 + $0x230] sm:$0xff] %v472_v9  ;;  %v10125_v9 = vld [vmem:[#allocation22_spill] sm:$0xff] }
 0x156   : > { %v3493_v15 = vadd.f32 %v3477_v50, %v3445_v41  ;;  %v3756_v57 = vadd.f32 %v3740_v1, %v3708_v39  ;;  %v3788_v26 = vmul.f32 %v7273_v5, %v6180_v25  ;;  %v1883_v47 = vadd.f32 %v1867_v56, %v1839_v11 }
 0x157   : > { %10119 = vst [vmem:[#allocation39_spill] sm:$0xff] %v7324_v40  ;;  %v3270_v16 = vadd.f32 %v3254_v10, %v3230_v44  ;;  %v3565_v51 = vmul.f32 %v5565_v21, %v5963_v63  ;;  %v3620_v34 = vadd.f32 %v3604_v17, %v3580_v27  ;;  %v3836_v35 = vmul.f32 %v1803_v18, %v6184_v58  ;;  %v1936_v44 = vld [vmem:[#allocation2 + $0x194] sm:$0xff] }
 0x158   : > { %v3541_v19 = vadd.f32 %v3525_v14, %v3493_v15  ;;  %v3804_v4 = vadd.f32 %v3788_v26, %v3756_v57  ;;  %v3876_v36 = vmul.f32 %v5565_v21, %v9978_v6  ;;  %v7337_v39 = vmul.f32 %v10039_v3, %v7259_v2  ;;  %v5566_v26 = vld [vmem:[#allocation2 + $0x1a0] sm:$0xff] }
 0x159   : > { %v7341_v28 = vmul.f32 %v10096_v42, %v7273_v5  ;;  %v3644_v56 = vmul.f32 %v7273_v5, %v10098_v45  ;;  %v3294_v27 = vmul.f32 %v1892_v52, %v5871_v31  ;;  %v7346_v11 = vadd.f32 %v1954_v22, %v1926_v29  ;;  %v1700_v29 = vld [vmem:[#allocation2 + $0x1a2] sm:$0xff] }
 0x15a   : > { %10120 = vst [vmem:[#allocation40_spill] sm:$0xff] %v7337_v39  ;;  %v3852_v10 = vadd.f32 %v3836_v35, %v3804_v4  ;;  %v3915_v18 = vmul.f32 %v7259_v2, %v6238_v53  ;;  %v1911_v21 = vmul.f32 %v6479_v12, %v1892_v52  ;;  %v7351_v41 = vadd.f32 %v2162_v54, %v2126_v24  ;;  %v10126_v24 = vld [vmem:[#allocation32_spill] sm:$0xff]  ;;  %v10133_v39 = vld [vmem:[#allocation63_spill] sm:$0xff] }
 0x15b   : > { %10121 = vst [vmem:[#allocation55_spill] sm:$0xff] %v7341_v28  ;;  %10122 = vst [vmem:[#allocation68_spill] sm:$0xff] %v7346_v11  ;;  %v3581_v50 = vadd.f32 %v3565_v51, %v3541_v19  ;;  %v7353_v1 = vadd.f32 %v3644_v56, %v3620_v34  ;;  %v3310_v17 = vadd.f32 %v3294_v27, %v3270_v16  ;;  %v10129_v56 = vld [vmem:[#allocation18_spill] sm:$0xff]  ;;  %v7414_v11 = vld [vmem:[#allocation2 + $0x1ac] sm:$0xff] }
 0x15c   : > { %10123 = vst [vmem:[#allocation69_spill] sm:$0xff] %v7351_v41  ;;  %v3892_v15 = vadd.f32 %v3876_v36, %v3852_v10  ;;  %v3931_v14 = vadd.f32 %v3915_v18, %v3891_v30  ;;  %v1927_v57 = vadd.f32 %v1911_v21, %v1883_v47  ;;  %v1668_v22 = vmul.f32 %v5566_v26, %v10099_v7  ;;  %v10128_v47 = vld [vmem:[#allocation45_spill] sm:$0xff]  ;;  %v1752_v18 = vld [vmem:[#allocation2 + $0x1a4] sm:$0xff] }
 0x15d   : > { %10124 = vst [vmem:[#allocation70_spill] sm:$0xff] %v7353_v1  ;;  %v3955_v4 = vmul.f32 %v7273_v5, %v10125_v9  ;;  %v3605_v2 = vmul.f32 %v1892_v52, %v10095_v49  ;;  %v3916_v54 = vmul.f32 %v1892_v52, %v6238_v53  ;;  %v2007_v51 = vmul.f32 %v5566_v26, %v10126_v24  ;;  %v10130_v5 = vld [vmem:[#allocation25_spill] sm:$0xff]  ;;  %v10134_v1 = vld [vmem:[#allocation19_spill] sm:$0xff] }
 0x15e   : > { %v1955_v34 = vmul.f32 %v6483_v48, %v1936_v44  ;;  %v7363_v16 = vmul.f32 %v10039_v3, %v1892_v52  ;;  %v3334_v30 = vmul.f32 %v1936_v44, %v5874_v32  ;;  %v1684_v19 = vadd.f32 %v1668_v22, %v10128_v47  ;;  %v10139_v47 = vld [vmem:[#allocation65_spill] sm:$0xff] }
 0x15f   : > { %v3621_v35 = vadd.f32 %v3605_v2, %v3581_v50  ;;  %v3932_v36 = vadd.f32 %v3916_v54, %v3892_v15  ;;  %v3382_v27 = vmul.f32 %v5566_v26, %v10129_v56  ;;  %v1720_v10 = vmul.f32 %v10130_v5, %v1700_v29  ;;  %v5567_v2 = vld [vmem:[#allocation2 + $0x1a8] sm:$0xff] }
 0x160   : > { %10127 = vst [vmem:[#allocation71_spill] sm:$0xff] %v7363_v16  ;;  %v7369_v21 = vadd.f32 %v3955_v4, %v3931_v14  ;;  %v7371_v28 = vadd.f32 %v1955_v34, %v1927_v57  ;;  %v2023_v41 = vadd.f32 %v2007_v51, %v10133_v39  ;;  %v3693_v52 = vmul.f32 %v5566_v26, %v10134_v1  ;;  %v1804_v4 = vld [vmem:[#allocation2 + $0x1a6] sm:$0xff]  ;;  %v10138_v34 = vld [vmem:[#allocation64_spill] sm:$0xff] }
 0x161   : > { %v3645_v16 = vmul.f32 %v1936_v44, %v10098_v45  ;;  %v3956_v40 = vmul.f32 %v1936_v44, %v10125_v9  ;;  %v3071_v50 = vmul.f32 %v5566_v26, %v5822_v8  ;;  %v1736_v15 = vadd.f32 %v1720_v10, %v1684_v19 }
 0x162   : > { %10131 = vst [vmem:[#allocation45_spill] sm:$0xff] %v7369_v21  ;;  %10132 = vst [vmem:[#allocation72_spill] sm:$0xff] %v7371_v28  ;;  %v7378_v22 = vadd.f32 %v3334_v30, %v3310_v17  ;;  %v1669_v14 = vmul.f32 %v5567_v2, %v10099_v7  ;;  %v1772_v57 = vmul.f32 %v9980_v55, %v1752_v18 }
 0x163   : > { %v2059_v39 = vmul.f32 %v6667_v37, %v1700_v29  ;;  %v7383_v54 = vadd.f32 %v3645_v16, %v3621_v35  ;;  %v7385_v51 = vadd.f32 %v3956_v40, %v3932_v36  ;;  %v3398_v44 = vadd.f32 %v3382_v27, %v10138_v34  ;;  %v10140_v35 = vld [vmem:[#allocation36_spill] sm:$0xff] }
 0x164   : > { %10135 = vst [vmem:[#allocation63_spill] sm:$0xff] %v7378_v22  ;;  %v3119_v26 = vmul.f32 %v1700_v29, %v9999_v59  ;;  %v3709_v19 = vadd.f32 %v3693_v52, %v10139_v47  ;;  %v1788_v17 = vadd.f32 %v1772_v57, %v1736_v15  ;;  %v2111_v10 = vmul.f32 %v6674_v33, %v1752_v18  ;;  %v469_v22 = vld [vmem:[%s7242_s7 + $0x18] sm:$0xf] }
 0x165   : > { %10136 = vst [vmem:[#allocation73_spill] sm:$0xff] %v7383_v54  ;;  %10137 = vst [vmem:[#allocation74_spill] sm:$0xff] %v7385_v51  ;;  %v2075_v30 = vadd.f32 %v2059_v39, %v2023_v41  ;;  %v1824_v28 = vmul.f32 %v6422_v38, %v1804_v4  ;;  %v3167_v16 = vmul.f32 %v1752_v18, %v5847_v23  ;;  %v473_v47 = vld [vmem:[%s7242_s7 + $0x38] sm:$0xf] }
 0x166   : > { %v3135_v21 = vadd.f32 %v3119_v26, %v3071_v50  ;;  %v3430_v40 = vmul.f32 %v1700_v29, %v5951_v60  ;;  %534 = vst [vmem:[#allocation2 + $0x218] sm:$0xf] %v469_v22  ;;  %v1685_v36 = vadd.f32 %v1669_v14, %v10140_v35  ;;  %v1868_v27 = vmul.f32 %v5567_v2, %v6426_v43  ;;  %v7404_v14 = vld [vmem:[#allocation2 + $0x1aa] sm:$0xff] }
 0x167   : > { %v2008_v52 = vmul.f32 %v5567_v2, %v10126_v24  ;;  %v2127_v15 = vadd.f32 %v2111_v10, %v2075_v30  ;;  %v3215_v57 = vmul.f32 %v1804_v4, %v10002_v20  ;;  %v3478_v34 = vmul.f32 %v1752_v18, %v5955_v61  ;;  %538 = vst [vmem:[#allocation2 + $0x238] sm:$0xf] %v473_v47 }
 0x168   : > { %v3183_v41 = vadd.f32 %v3167_v16, %v3135_v21  ;;  %v3446_v39 = vadd.f32 %v3430_v40, %v3398_v44  ;;  %v1840_v50 = vadd.f32 %v1824_v28, %v1788_v17  ;;  %v2163_v26 = vmul.f32 %v6695_v13, %v1804_v4  ;;  %v10141_v16 = vld [vmem:[#allocation14_spill] sm:$0xff] }
 0x169   : > { %v3383_v51 = vmul.f32 %v5567_v2, %v10129_v56  ;;  %v3741_v22 = vmul.f32 %v1700_v29, %v6176_v0  ;;  %v2207_v35 = vmul.f32 %v5567_v2, %v6703_v46  ;;  %v3526_v10 = vmul.f32 %v1804_v4, %v5959_v62  ;;  %v1805_v56 = vld [vmem:[#allocation2 + $0x1ae] sm:$0xff] }
 0x16a   : > { %v3231_v30 = vadd.f32 %v3215_v57, %v3183_v41  ;;  %v3494_v21 = vadd.f32 %v3478_v34, %v3446_v39  ;;  %v2179_v44 = vadd.f32 %v2163_v26, %v2127_v15  ;;  %v3255_v40 = vmul.f32 %v5567_v2, %v10141_v16  ;;  %v10142_v57 = vld [vmem:[#allocation57_spill] sm:$0xff]  ;;  %v10143_v34 = vld [vmem:[#allocation67_spill] sm:$0xff] }
 0x16b   : > { %v3694_v28 = vmul.f32 %v5567_v2, %v10134_v1  ;;  %v3757_v17 = vadd.f32 %v3741_v22, %v3709_v19  ;;  %v3566_v7 = vmul.f32 %v5567_v2, %v5963_v63  ;;  %v3789_v29 = vmul.f32 %v1752_v18, %v6180_v25 }
 0x16c   : > { %v3542_v54 = vadd.f32 %v3526_v10, %v3494_v21  ;;  %v1721_v47 = vmul.f32 %v10130_v5, %v7404_v14  ;;  %v1884_v41 = vadd.f32 %v1868_v27, %v1840_v50  ;;  %v2024_v39 = vadd.f32 %v2008_v52, %v10142_v57  ;;  %v10145_v5 = vld [vmem:[#allocation58_spill] sm:$0xff]  ;;  %v5568_v57 = vld [vmem:[#allocation2 + $0x1b0] sm:$0xff] }
 0x16d   : > { %v3072_v15 = vmul.f32 %v5567_v2, %v5822_v8  ;;  %v3399_v26 = vadd.f32 %v3383_v51, %v10143_v34  ;;  %v3805_v1 = vadd.f32 %v3789_v29, %v3757_v17  ;;  %v3837_v19 = vmul.f32 %v1804_v4, %v6184_v58 }
 0x16e   : > { %v3877_v22 = vmul.f32 %v5567_v2, %v9978_v6  ;;  %v1737_v21 = vadd.f32 %v1721_v47, %v1685_v36  ;;  %v7421_v18 = vadd.f32 %v2207_v35, %v2179_v44  ;;  %v3271_v10 = vadd.f32 %v3255_v40, %v3231_v30 }
 0x16f   : > { %v3710_v9 = vadd.f32 %v3694_v28, %v10145_v5  ;;  %v1773_v27 = vmul.f32 %v9980_v55, %v7414_v11  ;;  %v3582_v52 = vadd.f32 %v3566_v7, %v3542_v54  ;;  %v1825_v50 = vmul.f32 %v6422_v38, %v1805_v56 }
 0x170   : > { %10144 = vst [vmem:[#allocation64_spill] sm:$0xff] %v7421_v18  ;;  %v1869_v51 = vmul.f32 %v5568_v57, %v6426_v43  ;;  %v1912_v4 = vmul.f32 %v6479_v12, %v7404_v14  ;;  %v1956_v2 = vmul.f32 %v6483_v48, %v7414_v11  ;;  %v2060_v36 = vmul.f32 %v6667_v37, %v7404_v14 }
 0x171   : > { %v2112_v5 = vmul.f32 %v6674_v33, %v7414_v11  ;;  %v3120_v7 = vmul.f32 %v7404_v14, %v9999_v59  ;;  %v3853_v54 = vadd.f32 %v3837_v19, %v3805_v1  ;;  %v1789_v35 = vadd.f32 %v1773_v27, %v1737_v21 }
 0x172   : > { %v1928_v30 = vadd.f32 %v1912_v4, %v1884_v41  ;;  %v2164_v44 = vmul.f32 %v6695_v13, %v1805_v56  ;;  %v2076_v40 = vadd.f32 %v2060_v36, %v2024_v39  ;;  %v3168_v17 = vmul.f32 %v7414_v11, %v5847_v23 }
 0x173   : > { %v3136_v28 = vadd.f32 %v3120_v7, %v3072_v15  ;;  %v3295_v29 = vmul.f32 %v7404_v14, %v5871_v31  ;;  %v7444_v47 = vmul.f32 %v5568_v57, %v6703_v46  ;;  %v7448_v34 = vmul.f32 %v10039_v3, %v7404_v14 }
 0x174   : > { %v3216_v1 = vmul.f32 %v1805_v56, %v10002_v20  ;;  %v3431_v41 = vmul.f32 %v7404_v14, %v5951_v60  ;;  %v3256_v15 = vmul.f32 %v5568_v57, %v10141_v16  ;;  %v3335_v21 = vmul.f32 %v7414_v11, %v5874_v32 }
 0x175   : > { %10146 = vst [vmem:[#allocation65_spill] sm:$0xff] %v7444_v47  ;;  %10147 = vst [vmem:[#allocation36_spill] sm:$0xff] %v7448_v34  ;;  %v3184_v39 = vadd.f32 %v3168_v17, %v3136_v28  ;;  %v3311_v19 = vadd.f32 %v3295_v29, %v3271_v10  ;;  %v1841_v27 = vadd.f32 %v1825_v50, %v1789_v35  ;;  %v1893_v35 = vld [vmem:[#allocation2 + $0x1b2] sm:$0xff]  ;;  %v475_v47 = vld [vmem:[%s7242_s7 + $0x48] sm:$0xff] }
 0x176   : > { %v3447_v4 = vadd.f32 %v3431_v41, %v3399_v26  ;;  %v3479_v36 = vmul.f32 %v7414_v11, %v5955_v61  ;;  %v3742_v7 = vmul.f32 %v7404_v14, %v6176_v0  ;;  %v3527_v28 = vmul.f32 %v1805_v56, %v5959_v62  ;;  %v474_v41 = vld [vmem:[%s7242_s7 + $0x40] sm:$0xff]  ;;  %540 = vst [vmem:[#allocation2 + $0x248] sm:$0xff] %v475_v47 }
 0x177   : > { %v3232_v34 = vadd.f32 %v3216_v1, %v3184_v39  ;;  %v7460_v18 = vadd.f32 %v3335_v21, %v3311_v19  ;;  %v3606_v10 = vmul.f32 %v7404_v14, %v10095_v49  ;;  %v3567_v29 = vmul.f32 %v5568_v57, %v5963_v63  ;;  %539 = vst [vmem:[#allocation2 + $0x240] sm:$0xff] %v474_v41 }
 0x178   : > { %v3495_v17 = vadd.f32 %v3479_v36, %v3447_v4  ;;  %v3758_v50 = vadd.f32 %v3742_v7, %v3710_v9  ;;  %v3790_v26 = vmul.f32 %v7414_v11, %v6180_v25  ;;  %v3893_v43 = vadd.f32 %v3877_v22, %v3853_v54  ;;  %v476_v9 = vld [vmem:[%s7242_s7 + $0x50] sm:$0xff] }
 0x179   : > { %10148 = vst [vmem:[#allocation14_spill] sm:$0xff] %v7460_v18  ;;  %v2128_v1 = vadd.f32 %v2112_v5, %v2076_v40  ;;  %v3272_v39 = vadd.f32 %v3256_v15, %v3232_v34  ;;  %v3622_v19 = vadd.f32 %v3606_v10, %v3582_v52  ;;  %v3838_v4 = vmul.f32 %v1805_v56, %v6184_v58  ;;  %v1937_v40 = vld [vmem:[#allocation2 + $0x1b4] sm:$0xff] }
 0x17a   : > { %v3543_v21 = vadd.f32 %v3527_v28, %v3495_v17  ;;  %v3806_v18 = vadd.f32 %v3790_v26, %v3758_v50  ;;  %v3878_v36 = vmul.f32 %v5568_v57, %v9978_v6  ;;  %v1885_v7 = vadd.f32 %v1869_v51, %v1841_v27  ;;  %541 = vst [vmem:[#allocation2 + $0x250] sm:$0xff] %v476_v9  ;;  %v478_v27 = vld [vmem:[%s7242_s7 + $0x60] sm:$0xff] }
 0x17b   : > { %v7475_v38 = vmul.f32 %v10096_v42, %v7414_v11  ;;  %v3917_v22 = vmul.f32 %v7404_v14, %v6238_v53  ;;  %v3296_v52 = vmul.f32 %v1893_v35, %v5871_v31  ;;  %v7480_v5 = vadd.f32 %v1956_v2, %v1928_v30  ;;  %v5569_v2 = vld [vmem:[#allocation2 + $0x1c0] sm:$0xff]  ;;  %543 = vst [vmem:[#allocation2 + $0x260] sm:$0xff] %v478_v27 }
 0x17c   : > { %v3583_v54 = vadd.f32 %v3567_v29, %v3543_v21  ;;  %v3646_v56 = vmul.f32 %v7414_v11, %v10098_v45  ;;  %v3854_v57 = vadd.f32 %v3838_v4, %v3806_v18  ;;  %v7484_v47 = vadd.f32 %v2164_v44, %v2128_v1  ;;  %v7492_v17 = vld [vmem:[#allocation2 + $0x1c2] sm:$0xff] }
 0x17d   : > { %10149 = vst [vmem:[#allocation57_spill] sm:$0xff] %v7475_v38  ;;  %v3933_v51 = vadd.f32 %v3917_v22, %v3893_v43  ;;  %v1913_v34 = vmul.f32 %v6479_v12, %v1893_v35  ;;  %v3312_v15 = vadd.f32 %v3296_v52, %v3272_v39  ;;  %v3607_v10 = vmul.f32 %v1893_v35, %v10095_v49  ;;  %v10152_v18 = vld [vmem:[#allocation22_spill] sm:$0xff]  ;;  %v479_v52 = vld [vmem:[%s7242_s7 + $0x68] sm:$0xff] }
 0x17e   : > { %10150 = vst [vmem:[#allocation67_spill] sm:$0xff] %v7484_v47  ;;  %v7488_v28 = vadd.f32 %v3646_v56, %v3622_v19  ;;  %v3894_v14 = vadd.f32 %v3878_v36, %v3854_v57  ;;  %v2009_v30 = vmul.f32 %v5569_v2, %v10126_v24  ;;  %v3957_v44 = vmul.f32 %v7414_v11, %v10152_v18  ;;  %v10153_v50 = vld [vmem:[#allocation18_spill] sm:$0xff]  ;;  %v10155_v19 = vld [vmem:[#allocation68_spill] sm:$0xff]  ;;  %v10157_v11 = vld [vmem:[#allocation19_spill] sm:$0xff] }
 0x17f   : > { %v1929_v43 = vadd.f32 %v1913_v34, %v1885_v7  ;;  %v1957_v29 = vmul.f32 %v6483_v48, %v1937_v40  ;;  %v3384_v26 = vmul.f32 %v5569_v2, %v10153_v50  ;;  %v7499_v41 = vmul.f32 %v10039_v3, %v1893_v35  ;;  %v7503_v4 = vld [vmem:[#allocation2 + $0x1c4] sm:$0xff]  ;;  %544 = vst [vmem:[#allocation2 + $0x268] sm:$0xff] %v479_v52  ;;  %v10166_v47 = vld [vmem:[#allocation72_spill] sm:$0xff] }
 0x180   : > { %10151 = vst [vmem:[#allocation58_spill] sm:$0xff] %v7488_v28  ;;  %v3623_v1 = vadd.f32 %v3607_v10, %v3583_v54  ;;  %v3918_v39 = vmul.f32 %v1893_v35, %v6238_v53  ;;  %v2025_v21 = vadd.f32 %v2009_v30, %v10155_v19  ;;  %v7505_v36 = vadd.f32 %v3957_v44, %v3933_v51  ;;  %v10158_v35 = vld [vmem:[#allocation23_spill] sm:$0xff] }
 0x181   : > { %10154 = vst [vmem:[#allocation22_spill] sm:$0xff] %v7499_v41  ;;  %v3336_v9 = vmul.f32 %v1937_v40, %v5874_v32  ;;  %v3695_v7 = vmul.f32 %v5569_v2, %v10157_v11  ;;  %v2061_v22 = vmul.f32 %v6667_v37, %v7492_v17  ;;  %v3647_v56 = vmul.f32 %v1937_v40, %v10098_v45  ;;  %v10160_v51 = vld [vmem:[#allocation39_spill] sm:$0xff]  ;;  %v10163_v41 = vld [vmem:[#allocation70_spill] sm:$0xff] }
 0x182   : > { %10156 = vst [vmem:[#allocation18_spill] sm:$0xff] %v7505_v36  ;;  %v3934_v57 = vadd.f32 %v3918_v39, %v3894_v14  ;;  %v3073_v54 = vmul.f32 %v5569_v2, %v5822_v8  ;;  %v4006_v34 = vmul.f32 %v5569_v2, %v10158_v35  ;;  %v7515_v27 = vadd.f32 %v1957_v29, %v1929_v43  ;;  %v2145_v39 = vld [vmem:[#allocation2 + $0x1c6] sm:$0xff] }
 0x183   : > { %v3400_v10 = vadd.f32 %v3384_v26, %v10160_v51  ;;  %v2077_v30 = vadd.f32 %v2061_v22, %v2025_v21  ;;  %v2113_v44 = vmul.f32 %v6674_v33, %v7503_v4  ;;  %v7520_v19 = vadd.f32 %v3336_v9, %v3312_v15  ;;  %v5570_v43 = vld [vmem:[#allocation2 + $0x1c8] sm:$0xff]  ;;  %v480_v22 = vld [vmem:[%s7242_s7 + $0x70] sm:$0xff] }
 0x184   : > { %10159 = vst [vmem:[#allocation68_spill] sm:$0xff] %v7515_v27  ;;  %v7522_v38 = vadd.f32 %v3647_v56, %v3623_v1  ;;  %v3958_v14 = vmul.f32 %v1937_v40, %v10152_v18  ;;  %v3121_v2 = vmul.f32 %v7492_v17, %v9999_v59  ;;  %v3711_v52 = vadd.f32 %v3695_v7, %v10163_v41  ;;  %v10165_v1 = vld [vmem:[#allocation45_spill] sm:$0xff] }
 0x185   : > { %10161 = vst [vmem:[#allocation39_spill] sm:$0xff] %v7520_v19  ;;  %v2010_v29 = vmul.f32 %v5570_v43, %v10126_v24  ;;  %v2129_v26 = vadd.f32 %v2113_v44, %v2077_v30  ;;  %v3432_v21 = vmul.f32 %v7492_v17, %v5951_v60  ;;  %v4022_v9 = vadd.f32 %v4006_v34, %v10165_v1 }
 0x186   : > { %10162 = vst [vmem:[#allocation75_spill] sm:$0xff] %v7522_v38  ;;  %v7532_v15 = vadd.f32 %v3958_v14, %v3934_v57  ;;  %v3137_v56 = vadd.f32 %v3121_v2, %v3073_v54  ;;  %v3169_v40 = vmul.f32 %v7503_v4, %v5847_v23  ;;  %545 = vst [vmem:[#allocation2 + $0x270] sm:$0xff] %v480_v22 }
 0x187   : > { %v2165_v51 = vmul.f32 %v6695_v13, %v2145_v39  ;;  %v3448_v41 = vadd.f32 %v3432_v21, %v3400_v10  ;;  %v3480_v7 = vmul.f32 %v7503_v4, %v5955_v61  ;;  %v3743_v30 = vmul.f32 %v7492_v17, %v6176_v0 }
 0x188   : > { %10164 = vst [vmem:[#allocation70_spill] sm:$0xff] %v7532_v15  ;;  %v2209_v44 = vmul.f32 %v5570_v43, %v6703_v46  ;;  %v3185_v57 = vadd.f32 %v3169_v40, %v3137_v56  ;;  %v3217_v14 = vmul.f32 %v2145_v39, %v10002_v20  ;;  %v3385_v54 = vmul.f32 %v5570_v43, %v10153_v50 }
 0x189   : > { %v2181_v34 = vadd.f32 %v2165_v51, %v2129_v26  ;;  %v3496_v2 = vadd.f32 %v3480_v7, %v3448_v41  ;;  %v3696_v22 = vmul.f32 %v5570_v43, %v10157_v11  ;;  %v3759_v1 = vadd.f32 %v3743_v30, %v3711_v52  ;;  %v10167_v51 = vld [vmem:[#allocation63_spill] sm:$0xff] }
 0x18a   : > { %v2026_v10 = vadd.f32 %v2010_v29, %v10166_v47  ;;  %v3233_v21 = vadd.f32 %v3217_v14, %v3185_v57  ;;  %v3528_v15 = vmul.f32 %v2145_v39, %v5959_v62  ;;  %v3791_v38 = vmul.f32 %v7503_v4, %v6180_v25  ;;  %v10168_v47 = vld [vmem:[#allocation25_spill] sm:$0xff]  ;;  %v7557_v30 = vld [vmem:[#allocation2 + $0x1ca] sm:$0xff] }
 0x18b   : > { %v3074_v19 = vmul.f32 %v5570_v43, %v5822_v8  ;;  %v3257_v56 = vmul.f32 %v5570_v43, %v10141_v16  ;;  %v3568_v40 = vmul.f32 %v5570_v43, %v5963_v63  ;;  %v4007_v26 = vmul.f32 %v5570_v43, %v10158_v35  ;;  %v10170_v14 = vld [vmem:[#allocation73_spill] sm:$0xff]  ;;  %v7564_v8 = vld [vmem:[#allocation2 + $0x1cc] sm:$0xff] }
 0x18c   : > { %v3401_v41 = vadd.f32 %v3385_v54, %v10167_v51  ;;  %v3544_v52 = vadd.f32 %v3528_v15, %v3496_v2  ;;  %v3807_v7 = vadd.f32 %v3791_v38, %v3759_v1  ;;  %v4054_v29 = vmul.f32 %v7492_v17, %v10168_v47  ;;  %v2146_v35 = vld [vmem:[#allocation2 + $0x1ce] sm:$0xff]  ;;  %v10173_v51 = vld [vmem:[#allocation74_spill] sm:$0xff] }
 0x18d   : > { %v7559_v57 = vadd.f32 %v2209_v44, %v2181_v34  ;;  %v3712_v27 = vadd.f32 %v3696_v22, %v10170_v14  ;;  %v3839_v36 = vmul.f32 %v2145_v39, %v6184_v58  ;;  %v3879_v28 = vmul.f32 %v5570_v43, %v9978_v6  ;;  %v10171_v15 = vld [vmem:[#allocation35_spill] sm:$0xff]  ;;  %v10172_v2 = vld [vmem:[#allocation28_spill] sm:$0xff]  ;;  %v477_v44 = vld [vmem:[%s7242_s7 + $0x58] sm:$0xf] }
 0x18e   : > { %v4070_v54 = vadd.f32 %v4054_v29, %v4022_v9  ;;  %v4102_v38 = vmul.f32 %v7503_v4, %v9980_v55  ;;  %v4150_v17 = vmul.f32 %v2145_v39, %v10171_v15  ;;  %v4190_v1 = vmul.f32 %v5570_v43, %v10172_v2  ;;  %542 = vst [vmem:[#allocation2 + $0x258] sm:$0xf] %v477_v44  ;;  %v481_v29 = vld [vmem:[%s7242_s7 + $0x78] sm:$0xf] }
 0x18f   : > { %10169 = vst [vmem:[#allocation45_spill] sm:$0xff] %v7559_v57  ;;  %v3273_v34 = vadd.f32 %v3257_v56, %v3233_v21  ;;  %v4023_v22 = vadd.f32 %v4007_v26, %v10173_v51  ;;  %v2062_v14 = vmul.f32 %v6667_v37, %v7557_v30  ;;  %v3122_v57 = vmul.f32 %v7557_v30, %v9999_v59 }
 0x190   : > { %v3584_v11 = vadd.f32 %v3568_v40, %v3544_v52  ;;  %v3855_v9 = vadd.f32 %v3839_v36, %v3807_v7  ;;  %v2114_v4 = vmul.f32 %v6674_v33, %v7564_v8  ;;  %v2166_v39 = vmul.f32 %v6695_v13, %v2146_v35  ;;  %546 = vst [vmem:[#allocation2 + $0x278] sm:$0xf] %v481_v29 }
 0x191   : > { %v3138_v43 = vadd.f32 %v3122_v57, %v3074_v19  ;;  %v3170_v21 = vmul.f32 %v7564_v8, %v5847_v23  ;;  %v3297_v56 = vmul.f32 %v7557_v30, %v5871_v31  ;;  %v3433_v26 = vmul.f32 %v7557_v30, %v5951_v60  ;;  %v5571_v23 = vld [vmem:[#allocation2 + $0x1d0] sm:$0xff] }
 0x192   : > { %v4118_v44 = vadd.f32 %v4102_v38, %v4070_v54  ;;  %v2078_v40 = vadd.f32 %v2062_v14, %v2026_v10  ;;  %v3218_v36 = vmul.f32 %v2146_v35, %v10002_v20  ;;  %v3337_v52 = vmul.f32 %v7564_v8, %v5874_v32 }
 0x193   : > { %v3186_v7 = vadd.f32 %v3170_v21, %v3138_v43  ;;  %v3313_v51 = vadd.f32 %v3297_v56, %v3273_v34  ;;  %v3449_v19 = vadd.f32 %v3433_v26, %v3401_v41  ;;  %v3481_v57 = vmul.f32 %v7564_v8, %v5955_v61 }
 0x194   : > { %v3895_v13 = vadd.f32 %v3879_v28, %v3855_v9  ;;  %v7592_v59 = vmul.f32 %v5571_v23, %v6703_v46  ;;  %v7596_v54 = vmul.f32 %v10039_v3, %v7557_v30  ;;  %v3744_v10 = vmul.f32 %v7557_v30, %v6176_v0 }
 0x195   : > { %v3234_v38 = vadd.f32 %v3218_v36, %v3186_v7  ;;  %v3258_v14 = vmul.f32 %v5571_v23, %v10141_v16  ;;  %v7601_v34 = vadd.f32 %v3337_v52, %v3313_v51  ;;  %v3497_v41 = vadd.f32 %v3481_v57, %v3449_v19 }
 0x196   : > { %10174 = vst [vmem:[#allocation72_spill] sm:$0xff] %v7592_v59  ;;  %10175 = vst [vmem:[#allocation63_spill] sm:$0xff] %v7596_v54  ;;  %v4166_v29 = vadd.f32 %v4150_v17, %v4118_v44  ;;  %v2130_v43 = vadd.f32 %v2114_v4, %v2078_v40  ;;  %v3760_v28 = vadd.f32 %v3744_v10, %v3712_v27  ;;  %v2235_v4 = vld [vmem:[#allocation2 + $0x1d2] sm:$0xff] }
 0x197   : > { %10176 = vst [vmem:[#allocation25_spill] sm:$0xff] %v7601_v34  ;;  %v3792_v9 = vmul.f32 %v7564_v8, %v6180_v25  ;;  %v3529_v21 = vmul.f32 %v2146_v35, %v5959_v62  ;;  %v3569_v56 = vmul.f32 %v5571_v23, %v5963_v63  ;;  %v3608_v26 = vmul.f32 %v7557_v30, %v10095_v49 }
 0x198   : > { %v4055_v36 = vmul.f32 %v7557_v30, %v10168_v47  ;;  %v3840_v52 = vmul.f32 %v2146_v35, %v6184_v58  ;;  %v3880_v17 = vmul.f32 %v5571_v23, %v9978_v6  ;;  %v3919_v27 = vmul.f32 %v7557_v30, %v6238_v53 }
 0x199   : > { %v3808_v7 = vadd.f32 %v3792_v9, %v3760_v28  ;;  %v3274_v44 = vadd.f32 %v3258_v14, %v3234_v38  ;;  %v3545_v40 = vadd.f32 %v3529_v21, %v3497_v41  ;;  %v4103_v19 = vmul.f32 %v7564_v8, %v9980_v55 }
 0x19a   : > { %v4071_v51 = vadd.f32 %v4055_v36, %v4023_v22  ;;  %v4206_v57 = vadd.f32 %v4190_v1, %v4166_v29  ;;  %v3624_v10 = vadd.f32 %v3608_v26, %v3584_v11  ;;  %v3935_v59 = vadd.f32 %v3919_v27, %v3895_v13  ;;  %v2279_v26 = vld [vmem:[#allocation2 + $0x1d4] sm:$0xff] }
 0x19b   : > { %v3856_v54 = vadd.f32 %v3840_v52, %v3808_v7  ;;  %v4151_v28 = vmul.f32 %v2146_v35, %v10171_v15  ;;  %v4191_v9 = vmul.f32 %v5571_v23, %v10172_v2  ;;  %v3298_v6 = vmul.f32 %v2235_v4, %v5871_v31 }
 0x19c   : > { %v4119_v34 = vadd.f32 %v4103_v19, %v4071_v51  ;;  %v7622_v58 = vmul.f32 %v10096_v42, %v7564_v8  ;;  %v3648_v22 = vmul.f32 %v7564_v8, %v10098_v45  ;;  %v3959_v1 = vmul.f32 %v7564_v8, %v10152_v18  ;;  %v484_v19 = vld [vmem:[%s7242_s7 + $0x90] sm:$0xff] }
 0x19d   : > { %v4230_v13 = vmul.f32 %v7557_v30, %v6479_v12  ;;  %v3585_v11 = vadd.f32 %v3569_v56, %v3545_v40  ;;  %v3896_v35 = vadd.f32 %v3880_v17, %v3856_v54  ;;  %v3314_v38 = vadd.f32 %v3298_v6, %v3274_v44  ;;  %v5572_v30 = vld [vmem:[#allocation2 + $0x1e0] sm:$0xff]  ;;  %549 = vst [vmem:[#allocation2 + $0x290] sm:$0xff] %v484_v19 }
 0x19e   : > { %10177 = vst [vmem:[#allocation73_spill] sm:$0xff] %v7622_v58  ;;  %v4167_v23 = vadd.f32 %v4151_v28, %v4119_v34  ;;  %v7630_v14 = vadd.f32 %v2166_v39, %v2130_v43  ;;  %v7632_v41 = vadd.f32 %v3648_v22, %v3624_v10  ;;  %v7634_v29 = vadd.f32 %v3959_v1, %v3935_v59  ;;  %v7639_v6 = vld [vmem:[#allocation2 + $0x1e2] sm:$0xff] }
 0x19f   : > { %v4246_v21 = vadd.f32 %v4230_v13, %v4206_v57  ;;  %v3609_v7 = vmul.f32 %v2235_v4, %v10095_v49  ;;  %v3920_v52 = vmul.f32 %v2235_v4, %v6238_v53  ;;  %v2011_v54 = vmul.f32 %v5572_v30, %v10126_v24  ;;  %v482_v39 = vld [vmem:[%s7242_s7 + $0x80] sm:$0xff]  ;;  %v483_v34 = vld [vmem:[%s7242_s7 + $0x88] sm:$0xff] }
 0x1a0   : > { %10178 = vst [vmem:[#allocation35_spill] sm:$0xff] %v7630_v14  ;;  %10179 = vst [vmem:[#allocation28_spill] sm:$0xff] %v7632_v41  ;;  %v4207_v36 = vadd.f32 %v4191_v9, %v4167_v23  ;;  %v4270_v59 = vmul.f32 %v7564_v8, %v6483_v48  ;;  %v7646_v43 = vmul.f32 %v10039_v3, %v2235_v4  ;;  %v486_v57 = vld [vmem:[%s7242_s7 + $0xa0] sm:$0xff]  ;;  %v487_v10 = vld [vmem:[%s7242_s7 + $0xa8] sm:$0xff] }
 0x1a1   : > { %10180 = vst [vmem:[#allocation74_spill] sm:$0xff] %v7634_v29  ;;  %v4231_v56 = vmul.f32 %v2235_v4, %v6479_v12  ;;  %v3386_v17 = vmul.f32 %v5572_v30, %v10153_v50  ;;  %547 = vst [vmem:[#allocation2 + $0x280] sm:$0xff] %v482_v39  ;;  %v3338_v27 = vmul.f32 %v2279_v26, %v5874_v32  ;;  %v10182_v9 = vld [vmem:[#allocation19_spill] sm:$0xff]  ;;  %v10187_v39 = vld [vmem:[#allocation14_spill] sm:$0xff] }
 0x1a2   : > { %10181 = vst [vmem:[#allocation76_spill] sm:$0xff] %v7646_v43  ;;  %548 = vst [vmem:[#allocation2 + $0x288] sm:$0xff] %v483_v34  ;;  %v3625_v44 = vadd.f32 %v3609_v7, %v3585_v11  ;;  %v3936_v40 = vadd.f32 %v3920_v52, %v3896_v35  ;;  %v2027_v51 = vadd.f32 %v2011_v54, %v7480_v5  ;;  %v2095_v1 = vld [vmem:[#allocation2 + $0x1e4] sm:$0xff]  ;;  %v488_v52 = vld [vmem:[%s7242_s7 + $0xb0] sm:$0xff] }
 0x1a3   : > { %v3649_v8 = vmul.f32 %v2279_v26, %v10098_v45  ;;  %v4247_v28 = vadd.f32 %v4231_v56, %v4207_v36  ;;  %v3697_v22 = vmul.f32 %v5572_v30, %v10182_v9  ;;  %v2063_v4 = vmul.f32 %v6667_v37, %v7639_v6  ;;  %551 = vst [vmem:[#allocation2 + $0x2a0] sm:$0xff] %v486_v57  ;;  %v10184_v11 = vld [vmem:[#allocation10_spill] sm:$0xff]  ;;  %v10185_v23 = vld [vmem:[#allocation23_spill] sm:$0xff] }
 0x1a4   : > { %552 = vst [vmem:[#allocation2 + $0x2a8] sm:$0xff] %v487_v10  ;;  %v7659_v13 = vadd.f32 %v4270_v59, %v4246_v21  ;;  %v3960_v5 = vmul.f32 %v2279_v26, %v10152_v18  ;;  %v3075_v35 = vmul.f32 %v5572_v30, %v10184_v11  ;;  %v4008_v7 = vmul.f32 %v5572_v30, %v10185_v23  ;;  %v2147_v59 = vld [vmem:[#allocation2 + $0x1e6] sm:$0xff]  ;;  %v10190_v10 = vld [vmem:[#allocation16_spill] sm:$0xff] }
 0x1a5   : > { %v7665_v54 = vadd.f32 %v3338_v27, %v3314_v38  ;;  %v4271_v36 = vmul.f32 %v2279_v26, %v6483_v48  ;;  %v3402_v34 = vadd.f32 %v3386_v17, %v10187_v39  ;;  %v2079_v56 = vadd.f32 %v2063_v4, %v2027_v51  ;;  %553 = vst [vmem:[#allocation2 + $0x2b0] sm:$0xff] %v488_v52  ;;  %v10192_v38 = vld [vmem:[#allocation58_spill] sm:$0xff]  ;;  %v5573_v43 = vld [vmem:[#allocation2 + $0x1e8] sm:$0xff]  ;;  %v10194_v4 = vld [vmem:[#allocation17_spill] sm:$0xff] }
 0x1a6   : > { %10183 = vst [vmem:[#allocation77_spill] sm:$0xff] %v7659_v13  ;;  %v7669_v19 = vadd.f32 %v3649_v8, %v3625_v44  ;;  %v7671_v57 = vadd.f32 %v3960_v5, %v3936_v40  ;;  %v2115_v21 = vmul.f32 %v6674_v33, %v2095_v1  ;;  %v3123_v58 = vmul.f32 %v7639_v6, %v10190_v10  ;;  %v10193_v44 = vld [vmem:[#allocation18_spill] sm:$0xff]  ;;  %v10195_v52 = vld [vmem:[#allocation29_spill] sm:$0xff] }
 0x1a7   : > { %10186 = vst [vmem:[#allocation10_spill] sm:$0xff] %v7665_v54  ;;  %v7676_v30 = vadd.f32 %v4271_v36, %v4247_v28  ;;  %v3713_v27 = vadd.f32 %v3697_v22, %v10192_v38  ;;  %v2012_v26 = vmul.f32 %v5573_v43, %v10126_v24  ;;  %v3434_v17 = vmul.f32 %v7639_v6, %v5951_v60  ;;  %v489_v54 = vld [vmem:[%s7242_s7 + $0xb8] sm:$0xf] }
 0x1a8   : > { %10188 = vst [vmem:[#allocation14_spill] sm:$0xff] %v7669_v19  ;;  %10189 = vst [vmem:[#allocation78_spill] sm:$0xff] %v7671_v57  ;;  %v4024_v51 = vadd.f32 %v4008_v7, %v10193_v44  ;;  %v2131_v40 = vadd.f32 %v2115_v21, %v2079_v56  ;;  %v3139_v8 = vadd.f32 %v3123_v58, %v3075_v35  ;;  %v485_v19 = vld [vmem:[%s7242_s7 + $0x98] sm:$0xf] }
 0x1a9   : > { %10191 = vst [vmem:[#allocation16_spill] sm:$0xff] %v7676_v30  ;;  %v3171_v5 = vmul.f32 %v2095_v1, %v10194_v4  ;;  %v2167_v39 = vmul.f32 %v10195_v52, %v2147_v59  ;;  %v3450_v14 = vadd.f32 %v3434_v17, %v3402_v34  ;;  %v3482_v28 = vmul.f32 %v2095_v1, %v5955_v61  ;;  %v10199_v24 = vld [vmem:[#allocation21_spill] sm:$0xff] }
 0x1aa   : > { %v3745_v22 = vmul.f32 %v7639_v6, %v6176_v0  ;;  %v2211_v36 = vmul.f32 %v5573_v43, %v6703_v46  ;;  %v3219_v30 = vmul.f32 %v2147_v59, %v10002_v20  ;;  %v3387_v7 = vmul.f32 %v5573_v43, %v10153_v50  ;;  %550 = vst [vmem:[#allocation2 + $0x298] sm:$0xf] %v485_v19 }
 0x1ab   : > { %v3187_v38 = vadd.f32 %v3171_v5, %v3139_v8  ;;  %v3498_v58 = vadd.f32 %v3482_v28, %v3450_v14  ;;  %v3530_v35 = vmul.f32 %v2147_v59, %v5959_v62  ;;  %v3698_v56 = vmul.f32 %v5573_v43, %v10182_v9  ;;  %v10196_v8 = vld [vmem:[#allocation68_spill] sm:$0xff]  ;;  %554 = vst [vmem:[#allocation2 + $0x2b8] sm:$0xf] %v489_v54  ;;  %v10201_v54 = vld [vmem:[#allocation33_spill] sm:$0xff] }
 0x1ac   : > { %v3761_v21 = vadd.f32 %v3745_v22, %v3713_v27  ;;  %v2183_v34 = vadd.f32 %v2167_v39, %v2131_v40  ;;  %v3793_v44 = vmul.f32 %v2095_v1, %v6180_v25  ;;  %v4056_v57 = vmul.f32 %v7639_v6, %v10168_v47  ;;  %v7703_v22 = vld [vmem:[#allocation2 + $0x1ea] sm:$0xff] }
 0x1ad   : > { %v3235_v17 = vadd.f32 %v3219_v30, %v3187_v38  ;;  %v2028_v5 = vadd.f32 %v2012_v26, %v10196_v8  ;;  %v3259_v13 = vmul.f32 %v5573_v43, %v10141_v16  ;;  %v3570_v14 = vmul.f32 %v5573_v43, %v5963_v63  ;;  %v10197_v38 = vld [vmem:[#allocation39_spill] sm:$0xff] }
 0x1ae   : > { %v4009_v28 = vmul.f32 %v5573_v43, %v10185_v23  ;;  %v3546_v27 = vadd.f32 %v3530_v35, %v3498_v58  ;;  %v3809_v40 = vadd.f32 %v3793_v44, %v3761_v21  ;;  %v4072_v30 = vadd.f32 %v4056_v57, %v4024_v51  ;;  %v10198_v26 = vld [vmem:[#allocation75_spill] sm:$0xff]  ;;  %v10202_v51 = vld [vmem:[#allocation70_spill] sm:$0xff] }
 0x1af   : > { %v4104_v39 = vmul.f32 %v2095_v1, %v9980_v55  ;;  %v3076_v6 = vmul.f32 %v5573_v43, %v10184_v11  ;;  %v3403_v29 = vadd.f32 %v3387_v7, %v10197_v38  ;;  %v3714_v8 = vadd.f32 %v3698_v56, %v10198_v26  ;;  %v7709_v9 = vld [vmem:[#allocation2 + $0x1ec] sm:$0xff] }
 0x1b0   : > { %v3841_v41 = vmul.f32 %v2147_v59, %v10199_v24  ;;  %v7711_v23 = vadd.f32 %v2211_v36, %v2183_v34  ;;  %v3881_v19 = vmul.f32 %v5573_v43, %v10201_v54  ;;  %v4152_v57 = vmul.f32 %v2147_v59, %v10171_v15  ;;  %v7717_v21 = vld [vmem:[#allocation2 + $0x1ee] sm:$0xff] }
 0x1b1   : > { %v4120_v58 = vadd.f32 %v4104_v39, %v4072_v30  ;;  %v3275_v1 = vadd.f32 %v3259_v13, %v3235_v17  ;;  %v4025_v35 = vadd.f32 %v4009_v28, %v10202_v51  ;;  %v4192_v11 = vmul.f32 %v5573_v43, %v10172_v2  ;;  %v5574_v38 = vld [vmem:[#allocation2 + $0x1f0] sm:$0xff] }
 0x1b2   : > { %10200 = vst [vmem:[#allocation58_spill] sm:$0xff] %v7711_v23  ;;  %v3124_v7 = vmul.f32 %v7703_v22, %v10190_v10  ;;  %v3586_v56 = vadd.f32 %v3570_v14, %v3546_v27  ;;  %v3857_v44 = vadd.f32 %v3841_v41, %v3809_v40  ;;  %v2064_v36 = vmul.f32 %v6667_v37, %v7703_v22  ;;  %v7846_v23 = vld [vmem:[#allocation2 + $0x20a] sm:$0xff] }
 0x1b3   : > { %v2116_v34 = vmul.f32 %v6674_v33, %v7709_v9  ;;  %v3172_v13 = vmul.f32 %v7709_v9, %v10194_v4  ;;  %v3299_v43 = vmul.f32 %v7703_v22, %v5871_v31  ;;  %v3435_v59 = vmul.f32 %v7703_v22, %v5951_v60 }
 0x1b4   : > { %v3140_v30 = vadd.f32 %v3124_v7, %v3076_v6  ;;  %v4168_v17 = vadd.f32 %v4152_v57, %v4120_v58  ;;  %v2080_v10 = vadd.f32 %v2064_v36, %v2028_v5  ;;  %v3220_v41 = vmul.f32 %v7717_v21, %v10002_v20 }
 0x1b5   : > { %v3339_v14 = vmul.f32 %v7709_v9, %v5874_v32  ;;  %v3315_v27 = vadd.f32 %v3299_v43, %v3275_v1  ;;  %v3451_v40 = vadd.f32 %v3435_v59, %v3403_v29  ;;  %v3483_v4 = vmul.f32 %v7709_v9, %v5955_v61  ;;  %v490_v59 = vld [vmem:[%s7242_s7 + $0xc0] sm:$0xff] }
 0x1b6   : > { %v3188_v28 = vadd.f32 %v3172_v13, %v3140_v30  ;;  %v3897_v39 = vadd.f32 %v3881_v19, %v3857_v44  ;;  %v2168_v6 = vmul.f32 %v10195_v52, %v7717_v21  ;;  %v7740_v26 = vmul.f32 %v5574_v38, %v6703_v46  ;;  %555 = vst [vmem:[#allocation2 + $0x2c0] sm:$0xff] %v490_v59 }
 0x1b7   : > { %v3746_v20 = vmul.f32 %v7703_v22, %v6176_v0  ;;  %v3260_v58 = vmul.f32 %v5574_v38, %v10141_v16  ;;  %v7745_v57 = vadd.f32 %v3339_v14, %v3315_v27  ;;  %v3499_v29 = vadd.f32 %v3483_v4, %v3451_v40  ;;  %v494_v27 = vld [vmem:[%s7242_s7 + $0xe0] sm:$0xff]  ;;  %v495_v40 = vld [vmem:[%s7242_s7 + $0xe8] sm:$0xff] }
 0x1b8   : > { %10203 = vst [vmem:[#allocation18_spill] sm:$0xff] %v7740_v26  ;;  %v3236_v5 = vadd.f32 %v3220_v41, %v3188_v28  ;;  %v2132_v1 = vadd.f32 %v2116_v34, %v2080_v10  ;;  %v3610_v19 = vmul.f32 %v7703_v22, %v10095_v49  ;;  %v3794_v7 = vmul.f32 %v7709_v9, %v6180_v25  ;;  %v500_v26 = vld [vmem:[%s7242_s7 + $0x110] sm:$0xff] }
 0x1b9   : > { %v3762_v51 = vadd.f32 %v3746_v20, %v3714_v8  ;;  %v4208_v44 = vadd.f32 %v4192_v11, %v4168_v17  ;;  %v3531_v36 = vmul.f32 %v7717_v21, %v5959_v62  ;;  %v3571_v16 = vmul.f32 %v5574_v38, %v5963_v63  ;;  %v2236_v11 = vld [vmem:[#allocation2 + $0x1f2] sm:$0xff]  ;;  %v491_v17 = vld [vmem:[%s7242_s7 + $0xc8] sm:$0xff]  ;;  %559 = vst [vmem:[#allocation2 + $0x2e0] sm:$0xff] %v494_v27 }
 0x1ba   : > { %v4057_v30 = vmul.f32 %v7703_v22, %v10168_v47  ;;  %v3626_v34 = vadd.f32 %v3610_v19, %v3586_v56  ;;  %v3842_v8 = vmul.f32 %v7717_v21, %v10199_v24  ;;  %v3921_v43 = vmul.f32 %v7703_v22, %v6238_v53  ;;  %556 = vst [vmem:[#allocation2 + $0x2c8] sm:$0xff] %v491_v17  ;;  %v492_v56 = vld [vmem:[%s7242_s7 + $0xd0] sm:$0xff]  ;;  %v497_v19 = vld [vmem:[%s7242_s7 + $0xf8] sm:$0xf] }
 0x1bb   : > { %v3810_v13 = vadd.f32 %v3794_v7, %v3762_v51  ;;  %v3276_v10 = vadd.f32 %v3260_v58, %v3236_v5  ;;  %v3547_v41 = vadd.f32 %v3531_v36, %v3499_v29  ;;  %v4105_v28 = vmul.f32 %v7709_v9, %v9980_v55  ;;  %557 = vst [vmem:[#allocation2 + $0x2d0] sm:$0xff] %v492_v56  ;;  %v493_v29 = vld [vmem:[%s7242_s7 + $0xd8] sm:$0xf] }
 0x1bc   : > { %v4073_v14 = vadd.f32 %v4057_v30, %v4025_v35  ;;  %v7769_v4 = vmul.f32 %v10039_v3, %v7703_v22  ;;  %v3650_v20 = vmul.f32 %v7709_v9, %v10098_v45  ;;  %v3882_v5 = vmul.f32 %v5574_v38, %v10201_v54  ;;  %560 = vst [vmem:[#allocation2 + $0x2e8] sm:$0xff] %v495_v40  ;;  %v496_v35 = vld [vmem:[%s7242_s7 + $0xf0] sm:$0xff] }
 0x1bd   : > { %v3937_v58 = vadd.f32 %v3921_v43, %v3897_v39  ;;  %v3858_v51 = vadd.f32 %v3842_v8, %v3810_v13  ;;  %v4232_v36 = vmul.f32 %v7703_v22, %v6479_v12  ;;  %v3300_v30 = vmul.f32 %v2236_v11, %v5871_v31  ;;  %561 = vst [vmem:[#allocation2 + $0x2f0] sm:$0xff] %v496_v35  ;;  %v2280_v8 = vld [vmem:[#allocation2 + $0x1f4] sm:$0xff] }
 0x1be   : > { %10204 = vst [vmem:[#allocation17_spill] sm:$0xff] %v7769_v4  ;;  %v4121_v7 = vadd.f32 %v4105_v28, %v4073_v14  ;;  %558 = vst [vmem:[#allocation2 + $0x2d8] sm:$0xf] %v493_v29  ;;  %v7780_v59 = vadd.f32 %v2168_v6, %v2132_v1  ;;  %v7784_v39 = vmul.f32 %v10096_v42, %v7709_v9  ;;  %v10215_v4 = vld [vmem:[#allocation74_spill] sm:$0xff] }
 0x1bf   : > { %562 = vst [vmem:[#allocation2 + $0x2f8] sm:$0xf] %v497_v19  ;;  %v7786_v43 = vadd.f32 %v3650_v20, %v3626_v34  ;;  %v3961_v13 = vmul.f32 %v7709_v9, %v10152_v18  ;;  %v3587_v17 = vadd.f32 %v3571_v16, %v3547_v41  ;;  %v4153_v22 = vmul.f32 %v7717_v21, %v10171_v15  ;;  %v5575_v16 = vld [vmem:[#allocation2 + $0x200] sm:$0xff] }
 0x1c0   : > { %10205 = vst [vmem:[#allocation29_spill] sm:$0xff] %v7780_v59  ;;  %10206 = vst [vmem:[#allocation68_spill] sm:$0xff] %v7784_v39  ;;  %v4248_v31 = vadd.f32 %v4232_v36, %v4208_v44  ;;  %v3316_v14 = vadd.f32 %v3300_v30, %v3276_v10  ;;  %v4193_v6 = vmul.f32 %v5574_v38, %v10172_v2  ;;  %v7802_v21 = vld [vmem:[#allocation2 + $0x202] sm:$0xff]  ;;  %v10213_v30 = vld [vmem:[#allocation28_spill] sm:$0xff] }
 0x1c1   : > { %v7792_v28 = vadd.f32 %v3961_v13, %v3937_v58  ;;  %v4272_v1 = vmul.f32 %v7709_v9, %v6483_v48  ;;  %v7798_v34 = vmul.f32 %v10039_v3, %v2236_v11  ;;  %v3898_v56 = vadd.f32 %v3882_v5, %v3858_v51  ;;  %v10209_v38 = vld [vmem:[#allocation19_spill] sm:$0xff]  ;;  %v502_v59 = vld [vmem:[%s7242_s7 + $0x120] sm:$0xff]  ;;  %565 = vst [vmem:[#allocation2 + $0x310] sm:$0xff] %v500_v26  ;;  %v504_v3 = vld [vmem:[%s7242_s7 + $0x130] sm:$0xff] }
 0x1c2   : > { %v4169_v27 = vadd.f32 %v4153_v22, %v4121_v7  ;;  %v3340_v40 = vmul.f32 %v2280_v8, %v5874_v32  ;;  %v3388_v41 = vmul.f32 %v5575_v16, %v10153_v50  ;;  %v3611_v44 = vmul.f32 %v2236_v11, %v10095_v49  ;;  %v10210_v58 = vld [vmem:[#allocation23_spill] sm:$0xff]  ;;  %v10212_v32 = vld [vmem:[#allocation25_spill] sm:$0xff]  ;;  %567 = vst [vmem:[#allocation2 + $0x320] sm:$0xff] %v502_v59  ;;  %v508_v26 = vld [vmem:[%s7242_s7 + $0x150] sm:$0xff] }
 0x1c3   : > { %10207 = vst [vmem:[#allocation39_spill] sm:$0xff] %v7792_v28  ;;  %10208 = vst [vmem:[#allocation75_spill] sm:$0xff] %v7798_v34  ;;  %v3651_v10 = vmul.f32 %v2280_v8, %v10098_v45  ;;  %v3699_v20 = vmul.f32 %v5575_v16, %v10209_v38  ;;  %v4010_v9 = vmul.f32 %v5575_v16, %v10210_v58  ;;  %v7813_v51 = vld [vmem:[#allocation2 + $0x204] sm:$0xff] }
 0x1c4   : > { %v7808_v35 = vadd.f32 %v4272_v1, %v4248_v31  ;;  %v3922_v5 = vmul.f32 %v2236_v11, %v6238_v53  ;;  %v3962_v29 = vmul.f32 %v2280_v8, %v10152_v18  ;;  %v3404_v19 = vadd.f32 %v3388_v41, %v10212_v32  ;;  %v7819_v31 = vld [vmem:[#allocation2 + $0x206] sm:$0xff]  ;;  %v10214_v41 = vld [vmem:[#allocation32_spill] sm:$0xff]  ;;  %569 = vst [vmem:[#allocation2 + $0x330] sm:$0xff] %v504_v3 }
 0x1c5   : > { %v3627_v7 = vadd.f32 %v3611_v44, %v3587_v17  ;;  %v4233_v36 = vmul.f32 %v2236_v11, %v6479_v12  ;;  %v3715_v13 = vadd.f32 %v3699_v20, %v10213_v30  ;;  %v3436_v22 = vmul.f32 %v7802_v21, %v5951_v60  ;;  %v7830_v30 = vld [vmem:[#allocation2 + $0x208] sm:$0xff]  ;;  %573 = vst [vmem:[#allocation2 + $0x350] sm:$0xff] %v508_v26  ;;  %v510_v3 = vld [vmem:[%s7242_s7 + $0x160] sm:$0xff] }
 0x1c6   : > { %10211 = vst [vmem:[#allocation21_spill] sm:$0xff] %v7808_v35  ;;  %v4209_v1 = vadd.f32 %v4193_v6, %v4169_v27  ;;  %v3938_v39 = vadd.f32 %v3922_v5, %v3898_v56  ;;  %v7822_v34 = vmul.f32 %v2280_v8, %v6483_v48  ;;  %v4321_v32 = vmul.f32 %v5575_v16, %v10214_v41  ;;  %v498_v27 = vld [vmem:[%s7242_s7 + $0x100] sm:$0xff]  ;;  %v499_v16 = vld [vmem:[%s7242_s7 + $0x108] sm:$0xff] }
 0x1c7   : > { %v4026_v17 = vadd.f32 %v4010_v9, %v10215_v4  ;;  %v3452_v44 = vadd.f32 %v3436_v22, %v3404_v19  ;;  %v3484_v11 = vmul.f32 %v7813_v51, %v5955_v61  ;;  %v3747_v20 = vmul.f32 %v7802_v21, %v6176_v0  ;;  %563 = vst [vmem:[#allocation2 + $0x300] sm:$0xff] %v498_v27  ;;  %v503_v35 = vld [vmem:[%s7242_s7 + $0x128] sm:$0xff]  ;;  %v501_v27 = vld [vmem:[%s7242_s7 + $0x118] sm:$0xf] }
 0x1c8   : > { %v3389_v8 = vmul.f32 %v7830_v30, %v10153_v50  ;;  %v3532_v6 = vmul.f32 %v7819_v31, %v5959_v62  ;;  %v3700_v4 = vmul.f32 %v7830_v30, %v10209_v38  ;;  %v3795_v56 = vmul.f32 %v7813_v51, %v6180_v25  ;;  %564 = vst [vmem:[#allocation2 + $0x308] sm:$0xff] %v499_v16  ;;  %v505_v16 = vld [vmem:[%s7242_s7 + $0x138] sm:$0xf] }
 0x1c9   : > { %v3500_v9 = vadd.f32 %v3484_v11, %v3452_v44  ;;  %v3763_v5 = vadd.f32 %v3747_v20, %v3715_v13  ;;  %v4011_v19 = vmul.f32 %v7830_v30, %v10210_v58  ;;  %v4058_v22 = vmul.f32 %v7802_v21, %v10168_v47  ;;  %v10216_v11 = vld [vmem:[#allocation77_spill] sm:$0xff]  ;;  %568 = vst [vmem:[#allocation2 + $0x328] sm:$0xff] %v503_v35  ;;  %v10217_v35 = vld [vmem:[#allocation10_spill] sm:$0xff] }
 0x1ca   : > { %v7851_v42 = vadd.f32 %v3340_v40, %v3316_v14  ;;  %v7853_v44 = vadd.f32 %v3651_v10, %v3627_v7  ;;  %v7855_v13 = vadd.f32 %v3962_v29, %v3938_v39  ;;  %v4337_v20 = vadd.f32 %v4321_v32, %v10216_v11  ;;  %566 = vst [vmem:[#allocation2 + $0x318] sm:$0xf] %v501_v27  ;;  %v506_v39 = vld [vmem:[%s7242_s7 + $0x140] sm:$0xff]  ;;  %v507_v29 = vld [vmem:[%s7242_s7 + $0x148] sm:$0xff]  ;;  %v513_v27 = vld [vmem:[%s7242_s7 + $0x178] sm:$0xf] }
 0x1cb   : > { %v3548_v28 = vadd.f32 %v3532_v6, %v3500_v9  ;;  %v3572_v14 = vmul.f32 %v7830_v30, %v5963_v63  ;;  %v3811_v40 = vadd.f32 %v3795_v56, %v3763_v5  ;;  %v4074_v10 = vadd.f32 %v4058_v22, %v4026_v17  ;;  %570 = vst [vmem:[#allocation2 + $0x338] sm:$0xf] %v505_v16  ;;  %v511_v17 = vld [vmem:[%s7242_s7 + $0x168] sm:$0xff]  ;;  %v512_v56 = vld [vmem:[%s7242_s7 + $0x170] sm:$0xff]  ;;  %v10218_v9 = vld [vmem:[#allocation14_spill] sm:$0xff] }
 0x1cc   : > { %v4249_v59 = vadd.f32 %v4233_v36, %v4209_v1  ;;  %v3405_v7 = vadd.f32 %v3389_v8, %v10217_v35  ;;  %v3843_v32 = vmul.f32 %v7819_v31, %v10199_v24  ;;  %v4369_v6 = vmul.f32 %v7802_v21, %v6667_v37  ;;  %571 = vst [vmem:[#allocation2 + $0x340] sm:$0xff] %v506_v39  ;;  %v10219_v1 = vld [vmem:[#allocation78_spill] sm:$0xff]  ;;  %v7880_v11 = vld [vmem:[#allocation2 + $0x20c] sm:$0xff]  ;;  %v509_v21 = vld [vmem:[%s7242_s7 + $0x158] sm:$0xf] }
 0x1cd   : > { %572 = vst [vmem:[#allocation2 + $0x348] sm:$0xff] %v507_v29  ;;  %v3716_v5 = vadd.f32 %v3700_v4, %v10218_v9  ;;  %v3883_v36 = vmul.f32 %v7830_v30, %v10201_v54  ;;  %v4027_v8 = vadd.f32 %v4011_v19, %v10219_v1  ;;  %v4106_v22 = vmul.f32 %v7813_v51, %v9980_v55 }
 0x1ce   : > { %575 = vst [vmem:[#allocation2 + $0x360] sm:$0xff] %v510_v3  ;;  %576 = vst [vmem:[#allocation2 + $0x368] sm:$0xff] %v511_v17  ;;  %v3859_v16 = vadd.f32 %v3843_v32, %v3811_v40  ;;  %v4385_v39 = vadd.f32 %v4369_v6, %v4337_v20  ;;  %v4417_v4 = vmul.f32 %v7813_v51, %v6674_v33  ;;  %v3517_v40 = vld [vmem:[#allocation2 + $0x20e] sm:$0xff] }
 0x1cf   : > { %577 = vst [vmem:[#allocation2 + $0x370] sm:$0xff] %v512_v56  ;;  %v3437_v29 = vmul.f32 %v7846_v23, %v5951_v60  ;;  %574 = vst [vmem:[#allocation2 + $0x358] sm:$0xf] %v509_v21  ;;  %v3588_v19 = vadd.f32 %v3572_v14, %v3548_v28  ;;  %v4122_v26 = vadd.f32 %v4106_v22, %v4074_v10 }
 0x1d0   : > { %578 = vst [vmem:[#allocation2 + $0x378] sm:$0xf] %v513_v27  ;;  %v4154_v35 = vmul.f32 %v7819_v31, %v10171_v15  ;;  %v4194_v3 = vmul.f32 %v7830_v30, %v10172_v2  ;;  %v4433_v17 = vadd.f32 %v4417_v4, %v4385_v39  ;;  %v3485_v20 = vmul.f32 %v7880_v11, %v5955_v61  ;;  %v5577_v4 = vld [vmem:[#allocation2 + $0x210] sm:$0xff] }
 0x1d1   : > { %v3453_v56 = vadd.f32 %v3437_v29, %v3405_v7  ;;  %v3748_v51 = vmul.f32 %v7846_v23, %v6176_v0  ;;  %v4322_v32 = vmul.f32 %v7830_v30, %v10214_v41  ;;  %v4465_v28 = vmul.f32 %v7819_v31, %v10195_v52 }
 0x1d2   : > { %v4505_v14 = vmul.f32 %v7830_v30, %v6703_v46  ;;  %v3612_v10 = vmul.f32 %v7846_v23, %v10095_v49  ;;  %v3899_v7 = vadd.f32 %v3883_v36, %v3859_v16  ;;  %v3796_v1 = vmul.f32 %v7880_v11, %v6180_v25 }
 0x1d3   : > { %v3501_v6 = vadd.f32 %v3485_v20, %v3453_v56  ;;  %v3764_v9 = vadd.f32 %v3748_v51, %v3716_v5  ;;  %v4170_v22 = vadd.f32 %v4154_v35, %v4122_v26  ;;  %v3533_v21 = vmul.f32 %v3517_v40, %v5959_v62  ;;  %v10220_v56 = vld [vmem:[#allocation16_spill] sm:$0xff] }
 0x1d4   : > { %v3628_v27 = vadd.f32 %v3612_v10, %v3588_v19  ;;  %v4059_v39 = vmul.f32 %v7846_v23, %v10168_v47  ;;  %v4481_v31 = vadd.f32 %v4465_v28, %v4433_v17  ;;  %v3573_v30 = vmul.f32 %v5577_v4, %v5963_v63 }
 0x1d5   : > { %v3812_v29 = vadd.f32 %v3796_v1, %v3764_v9  ;;  %v3923_v36 = vmul.f32 %v7846_v23, %v6238_v53  ;;  %v3549_v16 = vadd.f32 %v3533_v21, %v3501_v6  ;;  %v3652_v5 = vmul.f32 %v7880_v11, %v10098_v45 }
 0x1d6   : > { %v3844_v26 = vmul.f32 %v3517_v40, %v10199_v24  ;;  %v4075_v35 = vadd.f32 %v4059_v39, %v4027_v8  ;;  %v7916_v19 = vadd.f32 %v7822_v34, %v4249_v59  ;;  %v4338_v20 = vadd.f32 %v4322_v32, %v10220_v56 }
 0x1d7   : > { %v3939_v17 = vadd.f32 %v3923_v36, %v3899_v7  ;;  %v4107_v51 = vmul.f32 %v7880_v11, %v9980_v55  ;;  %v4210_v28 = vadd.f32 %v4194_v3, %v4170_v22  ;;  %v7921_v10 = vadd.f32 %v3652_v5, %v3628_v27  ;;  %v3422_v22 = vld [vmem:[#allocation2 + $0x222] sm:$0xff] }
 0x1d8   : > { %v3860_v9 = vadd.f32 %v3844_v26, %v3812_v29  ;;  %v3884_v6 = vmul.f32 %v5577_v4, %v10201_v54  ;;  %v7924_v1 = vadd.f32 %v4505_v14, %v4481_v31  ;;  %v3963_v8 = vmul.f32 %v7880_v11, %v10152_v18  ;;  %v5578_v14 = vld [vmem:[#allocation2 + $0x220] sm:$0xff] }
 0x1d9   : > { %v4123_v21 = vadd.f32 %v4107_v51, %v4075_v35  ;;  %v4155_v34 = vmul.f32 %v3517_v40, %v10171_v15  ;;  %v7929_v59 = vadd.f32 %v3573_v30, %v3549_v16  ;;  %v4195_v32 = vmul.f32 %v5577_v4, %v10172_v2  ;;  %v3470_v26 = vld [vmem:[#allocation2 + $0x224] sm:$0xff] }
 0x1da   : > { %10221 = vst [vmem:[#allocation33_spill] sm:$0xff] %v7924_v1  ;;  %v4234_v3 = vmul.f32 %v7846_v23, %v6479_v12  ;;  %v4274_v7 = vmul.f32 %v7880_v11, %v6483_v48  ;;  %v7936_v27 = vadd.f32 %v3963_v8, %v3939_v17  ;;  %v3390_v39 = vmul.f32 %v5578_v14, %v10153_v50 }
 0x1db   : > { %v3701_v31 = vmul.f32 %v5578_v14, %v10209_v38  ;;  %v4012_v29 = vmul.f32 %v5578_v14, %v10210_v58  ;;  %v7941_v30 = vadd.f32 %v3884_v6, %v3860_v9  ;;  %v4370_v16 = vmul.f32 %v7846_v23, %v6667_v37  ;;  %v10224_v6 = vld [vmem:[#allocation39_spill] sm:$0xff] }
 0x1dc   : > { %10222 = vst [vmem:[#allocation70_spill] sm:$0xff] %v7936_v27  ;;  %v4250_v36 = vadd.f32 %v4234_v3, %v4210_v28  ;;  %v4418_v5 = vmul.f32 %v7880_v11, %v6674_v33  ;;  %v4171_v35 = vadd.f32 %v4155_v34, %v4123_v21  ;;  %v3406_v56 = vadd.f32 %v3390_v39, %v7745_v57  ;;  %v5579_v27 = vld [vmem:[#allocation2 + $0x228] sm:$0xff] }
 0x1dd   : > { %v4323_v17 = vmul.f32 %v5578_v14, %v10214_v41  ;;  %v3438_v51 = vmul.f32 %v3422_v22, %v5951_v60  ;;  %v4386_v8 = vadd.f32 %v4370_v16, %v4338_v20  ;;  %v7951_v1 = vmul.f32 %v3517_v40, %v10195_v52  ;;  %v3518_v14 = vld [vmem:[#allocation2 + $0x226] sm:$0xff]  ;;  %v10228_v16 = vld [vmem:[#allocation44_spill] sm:$0xff] }
 0x1de   : > { %v7954_v28 = vmul.f32 %v5577_v4, %v6703_v46  ;;  %v3717_v9 = vadd.f32 %v3701_v31, %v7786_v43  ;;  %v4028_v3 = vadd.f32 %v4012_v29, %v10224_v6  ;;  %v3391_v21 = vmul.f32 %v5579_v27, %v10153_v50  ;;  %v10226_v20 = vld [vmem:[#allocation42_spill] sm:$0xff]  ;;  %v10230_v29 = vld [vmem:[#allocation21_spill] sm:$0xff] }
 0x1df   : > { %v3454_v34 = vadd.f32 %v3438_v51, %v3406_v56  ;;  %v3486_v57 = vmul.f32 %v3470_v26, %v5955_v61  ;;  %v7960_v39 = vadd.f32 %v4274_v7, %v4250_v36  ;;  %v7964_v40 = vmul.f32 %v7846_v23, %v10226_v20 }
 0x1e0   : > { %10223 = vst [vmem:[#allocation19_spill] sm:$0xff] %v7954_v28  ;;  %v7968_v4 = vmul.f32 %v7880_v11, %v10228_v16  ;;  %v3749_v43 = vmul.f32 %v3422_v22, %v6176_v0  ;;  %v7971_v31 = vadd.f32 %v4195_v32, %v4171_v35  ;;  %v4339_v50 = vadd.f32 %v4323_v17, %v10230_v29  ;;  %v7981_v35 = vld [vmem:[#allocation2 + $0x22a] sm:$0xff] }
 0x1e1   : > { %10225 = vst [vmem:[#allocation23_spill] sm:$0xff] %v7960_v39  ;;  %10227 = vst [vmem:[#allocation25_spill] sm:$0xff] %v7964_v40  ;;  %v3502_v56 = vadd.f32 %v3486_v57, %v3454_v34  ;;  %v4060_v51 = vmul.f32 %v3422_v22, %v10168_v47  ;;  %v3534_v7 = vmul.f32 %v3518_v14, %v5959_v62 }
 0x1e2   : > { %10229 = vst [vmem:[#allocation28_spill] sm:$0xff] %v7968_v4  ;;  %v3702_v36 = vmul.f32 %v5579_v27, %v10209_v38  ;;  %v3765_v6 = vadd.f32 %v3749_v43, %v3717_v9  ;;  %v3797_v23 = vmul.f32 %v3470_v26, %v6180_v25  ;;  %v3407_v40 = vadd.f32 %v3391_v21, %v7851_v42  ;;  %v7987_v42 = vld [vmem:[#allocation2 + $0x22c] sm:$0xff] }
 0x1e3   : > { %v3574_v11 = vmul.f32 %v5579_v27, %v5963_v63  ;;  %v4076_v4 = vadd.f32 %v4060_v51, %v4028_v3  ;;  %v4108_v32 = vmul.f32 %v3470_v26, %v9980_v55  ;;  %v3550_v17 = vadd.f32 %v3534_v7, %v3502_v56 }
 0x1e4   : > { %v3813_v34 = vadd.f32 %v3797_v23, %v3765_v6  ;;  %v4013_v57 = vmul.f32 %v5579_v27, %v10210_v58  ;;  %v4371_v29 = vmul.f32 %v3422_v22, %v6667_v37  ;;  %v4434_v28 = vadd.f32 %v4418_v5, %v4386_v8 }
 0x1e5   : > { %v3845_v9 = vmul.f32 %v3518_v14, %v10199_v24  ;;  %v3885_v43 = vmul.f32 %v5579_v27, %v10201_v54  ;;  %v4124_v39 = vadd.f32 %v4108_v32, %v4076_v4  ;;  %v3718_v3 = vadd.f32 %v3702_v36, %v7853_v44  ;;  %v3519_v36 = vld [vmem:[#allocation2 + $0x22e] sm:$0xff] }
 0x1e6   : > { %v4324_v21 = vmul.f32 %v5579_v27, %v10214_v41  ;;  %v4387_v51 = vadd.f32 %v4371_v29, %v4339_v50  ;;  %v3439_v56 = vmul.f32 %v7981_v35, %v5951_v60  ;;  %v4156_v6 = vmul.f32 %v3518_v14, %v10171_v15 }
 0x1e7   : > { %v3861_v7 = vadd.f32 %v3845_v9, %v3813_v34  ;;  %v4196_v22 = vmul.f32 %v5579_v27, %v10172_v2  ;;  %v4419_v5 = vmul.f32 %v3470_v26, %v6674_v33  ;;  %v3590_v8 = vadd.f32 %v3574_v11, %v3550_v17  ;;  %v5580_v17 = vld [vmem:[#allocation2 + $0x230] sm:$0xff] }
 0x1e8   : > { %v4029_v4 = vadd.f32 %v4013_v57, %v7855_v13  ;;  %v3455_v23 = vadd.f32 %v3439_v56, %v3407_v40  ;;  %v3487_v44 = vmul.f32 %v7987_v42, %v5955_v61  ;;  %v4172_v32 = vadd.f32 %v4156_v6, %v4124_v39 }
 0x1e9   : > { %v4435_v50 = vadd.f32 %v4419_v5, %v4387_v51  ;;  %v4467_v29 = vmul.f32 %v3518_v14, %v10195_v52  ;;  %v3750_v60 = vmul.f32 %v7981_v35, %v6176_v0  ;;  %v4340_v34 = vadd.f32 %v4324_v21, %v7916_v19 }
 0x1ea   : > { %v4507_v9 = vmul.f32 %v5579_v27, %v6703_v46  ;;  %v3503_v26 = vadd.f32 %v3487_v44, %v3455_v23  ;;  %v3614_v13 = vmul.f32 %v7981_v35, %v10095_v49  ;;  %v3901_v40 = vadd.f32 %v3885_v43, %v3861_v7 }
 0x1eb   : > { %v3535_v11 = vmul.f32 %v3519_v36, %v5959_v62  ;;  %v3766_v61 = vadd.f32 %v3750_v60, %v3718_v3  ;;  %v3798_v39 = vmul.f32 %v7987_v42, %v6180_v25  ;;  %v3575_v14 = vmul.f32 %v5580_v17, %v5963_v63 }
 0x1ec   : > { %v3630_v57 = vadd.f32 %v3614_v13, %v3590_v8  ;;  %v3654_v19 = vmul.f32 %v7987_v42, %v10098_v45  ;;  %v4061_v27 = vmul.f32 %v7981_v35, %v10168_v47  ;;  %v4212_v21 = vadd.f32 %v4196_v22, %v4172_v32 }
 0x1ed   : > { %v4483_v51 = vadd.f32 %v4467_v29, %v4435_v50  ;;  %v3814_v56 = vadd.f32 %v3798_v39, %v3766_v61  ;;  %v3925_v62 = vmul.f32 %v7981_v35, %v6238_v53  ;;  %v3551_v43 = vadd.f32 %v3535_v11, %v3503_v26 }
 0x1ee   : > { %v3846_v3 = vmul.f32 %v3519_v36, %v10199_v24  ;;  %v4077_v7 = vadd.f32 %v4061_v27, %v4029_v4  ;;  %v4109_v63 = vmul.f32 %v7987_v42, %v9980_v55  ;;  %v8020_v6 = vadd.f32 %v7951_v1, %v4434_v28  ;;  %v3598_v4 = vld [vmem:[#allocation2 + $0x212] sm:$0xff] }
 0x1ef   : > { %v3886_v5 = vmul.f32 %v5580_v17, %v10201_v54  ;;  %v3941_v8 = vadd.f32 %v3925_v62, %v3901_v40  ;;  %v4372_v22 = vmul.f32 %v7981_v35, %v6667_v37  ;;  %v8025_v23 = vadd.f32 %v3654_v19, %v3630_v57  ;;  %v3638_v19 = vld [vmem:[#allocation2 + $0x214] sm:$0xff] }
 0x1f0   : > { %v3862_v44 = vadd.f32 %v3846_v3, %v3814_v56  ;;  %v4125_v32 = vadd.f32 %v4109_v63, %v4077_v7  ;;  %v4236_v50 = vmul.f32 %v7981_v35, %v6479_v12  ;;  %v8029_v29 = vadd.f32 %v4507_v9, %v4483_v51  ;;  %v8053_v3 = vld [vmem:[#allocation2 + $0x232] sm:$0xff] }
 0x1f1   : > { %v3965_v1 = vmul.f32 %v7987_v42, %v10152_v18  ;;  %v4157_v28 = vmul.f32 %v3519_v36, %v10171_v15  ;;  %v4388_v60 = vadd.f32 %v4372_v22, %v4340_v34  ;;  %v3591_v26 = vadd.f32 %v3575_v14, %v3551_v43 }
 0x1f2   : > { %10231 = vst [vmem:[#allocation32_spill] sm:$0xff] %v8029_v29  ;;  %v4197_v13 = vmul.f32 %v5580_v17, %v10172_v2  ;;  %v4252_v40 = vadd.f32 %v4236_v50, %v4212_v21  ;;  %v4420_v11 = vmul.f32 %v7987_v42, %v6674_v33  ;;  %v4276_v9 = vmul.f32 %v7987_v42, %v6483_v48 }
 0x1f3   : > { %v8037_v61 = vadd.f32 %v3965_v1, %v3941_v8  ;;  %v4173_v39 = vadd.f32 %v4157_v28, %v4125_v32  ;;  %v3613_v57 = vmul.f32 %v3598_v4, %v10095_v49  ;;  %v3902_v27 = vadd.f32 %v3886_v5, %v3862_v44  ;;  %v3735_v44 = vld [vmem:[#allocation2 + $0x242] sm:$0xff] }
 0x1f4   : > { %v4436_v51 = vadd.f32 %v4420_v11, %v4388_v60  ;;  %v4468_v34 = vmul.f32 %v3519_v36, %v10195_v52  ;;  %v8044_v14 = vmul.f32 %v5580_v17, %v6703_v46  ;;  %v8048_v21 = vmul.f32 %v7981_v35, %v10226_v20  ;;  %v3639_v35 = vld [vmem:[#allocation2 + $0x234] sm:$0xff]  ;;  %v5581_v1 = vld [vmem:[#allocation2 + $0x240] sm:$0xff] }
 0x1f5   : > { %v3629_v56 = vadd.f32 %v3613_v57, %v7929_v59  ;;  %v3924_v62 = vmul.f32 %v3598_v4, %v6238_v53  ;;  %v4235_v43 = vmul.f32 %v3598_v4, %v6479_v12  ;;  %v8055_v7 = vadd.f32 %v4276_v9, %v4252_v40  ;;  %v3783_v40 = vld [vmem:[#allocation2 + $0x244] sm:$0xff] }
 0x1f6   : > { %10232 = vst [vmem:[#allocation74_spill] sm:$0xff] %v8044_v14  ;;  %10233 = vst [vmem:[#allocation77_spill] sm:$0xff] %v8048_v21  ;;  %v8059_v36 = vmul.f32 %v7987_v42, %v10228_v16  ;;  %v3653_v17 = vmul.f32 %v3638_v19, %v10098_v45  ;;  %v3964_v63 = vmul.f32 %v3638_v19, %v10152_v18  ;;  %v3831_v9 = vld [vmem:[#allocation2 + $0x246] sm:$0xff] }
 0x1f7   : > { %v4213_v5 = vadd.f32 %v4197_v13, %v4173_v39  ;;  %v3940_v59 = vadd.f32 %v3924_v62, %v7941_v30  ;;  %v4251_v8 = vadd.f32 %v4235_v43, %v7971_v31  ;;  %v4275_v22 = vmul.f32 %v3638_v19, %v6483_v48  ;;  %v10236_v43 = vld [vmem:[#allocation23_spill] sm:$0xff] }
 0x1f8   : > { %10234 = vst [vmem:[#allocation10_spill] sm:$0xff] %v8059_v36  ;;  %v8066_v32 = vadd.f32 %v4468_v34, %v4436_v51  ;;  %v8069_v50 = vmul.f32 %v3598_v4, %v10226_v20  ;;  %v3615_v42 = vmul.f32 %v8053_v3, %v10095_v49  ;;  %v3703_v28 = vmul.f32 %v5581_v1, %v10209_v38  ;;  %v10235_v51 = vld [vmem:[#allocation70_spill] sm:$0xff] }
 0x1f9   : > { %v3669_v60 = vadd.f32 %v3653_v17, %v3629_v56  ;;  %v3655_v13 = vmul.f32 %v3639_v35, %v10098_v45  ;;  %v4014_v30 = vmul.f32 %v5581_v1, %v10210_v58  ;;  %v4325_v31 = vmul.f32 %v5581_v1, %v10214_v41  ;;  %v5582_v45 = vld [vmem:[#allocation2 + $0x248] sm:$0xff] }
 0x1fa   : > { %v3926_v11 = vmul.f32 %v8053_v3, %v6238_v53  ;;  %v3966_v4 = vmul.f32 %v3639_v35, %v10152_v18  ;;  %v3719_v39 = vadd.f32 %v3703_v28, %v7921_v10  ;;  %v3751_v49 = vmul.f32 %v3735_v44, %v6176_v0 }
 0x1fb   : > { %v3980_v57 = vadd.f32 %v3964_v63, %v3940_v59  ;;  %v4291_v19 = vadd.f32 %v4275_v22, %v4251_v8  ;;  %v4030_v34 = vadd.f32 %v4014_v30, %v10235_v51  ;;  %v3704_v56 = vmul.f32 %v5582_v45, %v10209_v38 }
 0x1fc   : > { %v3631_v62 = vadd.f32 %v3615_v42, %v3591_v26  ;;  %v4341_v17 = vadd.f32 %v4325_v31, %v10236_v43  ;;  %v3767_v1 = vadd.f32 %v3751_v49, %v3719_v39  ;;  %v3799_v36 = vmul.f32 %v3783_v40, %v6180_v25  ;;  %v8093_v42 = vld [vmem:[#allocation2 + $0x24a] sm:$0xff] }
 0x1fd   : > { %v3942_v21 = vadd.f32 %v3926_v11, %v3902_v27  ;;  %v4237_v10 = vmul.f32 %v8053_v3, %v6479_v12  ;;  %v3847_v28 = vmul.f32 %v3831_v9, %v10199_v24  ;;  %v4062_v63 = vmul.f32 %v3735_v44, %v10168_v47 }
 0x1fe   : > { %v3815_v59 = vadd.f32 %v3799_v36, %v3767_v1  ;;  %v3887_v8 = vmul.f32 %v5582_v45, %v10201_v54  ;;  %v4015_v22 = vmul.f32 %v5582_v45, %v10210_v58  ;;  %v4373_v26 = vmul.f32 %v3735_v44, %v6667_v37  ;;  %v8098_v36 = vld [vmem:[#allocation2 + $0x24c] sm:$0xff] }
 0x1ff   : > { %v4277_v30 = vmul.f32 %v3639_v35, %v6483_v48  ;;  %v3720_v31 = vadd.f32 %v3704_v56, %v3669_v60  ;;  %v4078_v27 = vadd.f32 %v4062_v63, %v4030_v34  ;;  %v4110_v11 = vmul.f32 %v3783_v40, %v9980_v55 }
 0x200   : > { %v4253_v39 = vadd.f32 %v4237_v10, %v4213_v5  ;;  %v3863_v49 = vadd.f32 %v3847_v28, %v3815_v59  ;;  %v4389_v51 = vadd.f32 %v4373_v26, %v4341_v17  ;;  %v4421_v43 = vmul.f32 %v3783_v40, %v6674_v33  ;;  %v3832_v26 = vld [vmem:[#allocation2 + $0x24e] sm:$0xff] }
 0x201   : > { %v4126_v1 = vadd.f32 %v4110_v11, %v4078_v27  ;;  %v4158_v29 = vmul.f32 %v3831_v9, %v10171_v15  ;;  %v4326_v44 = vmul.f32 %v5582_v45, %v10214_v41  ;;  %v3752_v14 = vmul.f32 %v8093_v42, %v6176_v0 }
 0x202   : > { %v3903_v35 = vadd.f32 %v3887_v8, %v3863_v49  ;;  %v4031_v60 = vadd.f32 %v4015_v22, %v3980_v57  ;;  %v4437_v34 = vadd.f32 %v4421_v43, %v4389_v51  ;;  %v4469_v56 = vmul.f32 %v3831_v9, %v10195_v52  ;;  %v5583_v51 = vld [vmem:[#allocation2 + $0x250] sm:$0xff] }
 0x203   : > { %v4198_v5 = vmul.f32 %v5582_v45, %v10172_v2  ;;  %v3768_v17 = vadd.f32 %v3752_v14, %v3720_v31  ;;  %v3800_v40 = vmul.f32 %v8098_v36, %v6180_v25  ;;  %v3927_v10 = vmul.f32 %v8093_v42, %v6238_v53 }
 0x204   : > { %v4174_v28 = vadd.f32 %v4158_v29, %v4126_v1  ;;  %v4485_v63 = vadd.f32 %v4469_v56, %v4437_v34  ;;  %v4509_v59 = vmul.f32 %v5582_v45, %v6703_v46  ;;  %v4063_v57 = vmul.f32 %v8093_v42, %v10168_v47 }
 0x205   : > { %v3671_v8 = vadd.f32 %v3655_v13, %v3631_v62  ;;  %v8115_v9 = vmul.f32 %v8053_v3, %v10226_v20  ;;  %v3816_v14 = vadd.f32 %v3800_v40, %v3768_v17  ;;  %v3943_v22 = vadd.f32 %v3927_v10, %v3903_v35  ;;  %v5585_v10 = vld [vmem:[#allocation2 + $0x268] sm:$0xff] }
 0x206   : > { %v3982_v31 = vadd.f32 %v3966_v4, %v3942_v21  ;;  %v8117_v27 = vadd.f32 %v4277_v30, %v4253_v39  ;;  %v4342_v11 = vadd.f32 %v4326_v44, %v4291_v19  ;;  %v4079_v49 = vadd.f32 %v4063_v57, %v4031_v60  ;;  %v3737_v19 = vld [vmem:[#allocation2 + $0x262] sm:$0xff] }
 0x207   : > { %10237 = vst [vmem:[#allocation14_spill] sm:$0xff] %v8115_v9  ;;  %v3848_v29 = vmul.f32 %v3832_v26, %v10199_v24  ;;  %v3888_v45 = vmul.f32 %v5583_v51, %v10201_v54  ;;  %v3967_v43 = vmul.f32 %v8098_v36, %v10152_v18  ;;  %v4111_v13 = vmul.f32 %v8098_v36, %v9980_v55  ;;  %v5584_v60 = vld [vmem:[#allocation2 + $0x260] sm:$0xff] }
 0x208   : > { %v4214_v3 = vadd.f32 %v4198_v5, %v4174_v28  ;;  %v8125_v62 = vadd.f32 %v4509_v59, %v4485_v63  ;;  %v4159_v21 = vmul.f32 %v3832_v26, %v10171_v15  ;;  %v8129_v4 = vmul.f32 %v5583_v51, %v10172_v2  ;;  %v3785_v59 = vld [vmem:[#allocation2 + $0x264] sm:$0xff] }
 0x209   : > { %v3864_v30 = vadd.f32 %v3848_v29, %v3816_v14  ;;  %v8131_v39 = vadd.f32 %v3967_v43, %v3943_v22  ;;  %v4238_v1 = vmul.f32 %v8093_v42, %v6479_v12  ;;  %v4278_v44 = vmul.f32 %v8098_v36, %v6483_v48  ;;  %v3833_v29 = vld [vmem:[#allocation2 + $0x266] sm:$0xff] }
 0x20a   : > { %10238 = vst [vmem:[#allocation78_spill] sm:$0xff] %v8125_v62  ;;  %v4127_v35 = vadd.f32 %v4111_v13, %v4079_v49  ;;  %v3705_v34 = vmul.f32 %v5584_v60, %v10209_v38  ;;  %v4016_v56 = vmul.f32 %v5584_v60, %v10210_v58  ;;  %v4327_v5 = vmul.f32 %v5584_v60, %v10214_v41 }
 0x20b   : > { %v4374_v17 = vmul.f32 %v8093_v42, %v6667_v37  ;;  %v4422_v40 = vmul.f32 %v8098_v36, %v6674_v33  ;;  %v3706_v28 = vmul.f32 %v5585_v10, %v10209_v38  ;;  %v3753_v63 = vmul.f32 %v3737_v19, %v6176_v0 }
 0x20c   : > { %v4254_v57 = vadd.f32 %v4238_v1, %v4214_v3  ;;  %v4470_v14 = vmul.f32 %v3832_v26, %v10195_v52  ;;  %v3721_v22 = vadd.f32 %v3705_v34, %v8025_v23  ;;  %v4032_v49 = vadd.f32 %v4016_v56, %v8037_v61  ;;  %v8162_v1 = vld [vmem:[#allocation2 + $0x26a] sm:$0xff] }
 0x20d   : > { %v4390_v43 = vadd.f32 %v4374_v17, %v4342_v11  ;;  %v8150_v13 = vmul.f32 %v5583_v51, %v6703_v46  ;;  %v8154_v60 = vmul.f32 %v8093_v42, %v10226_v20  ;;  %v4343_v38 = vadd.f32 %v4327_v5, %v8055_v7  ;;  %v3786_v17 = vld [vmem:[#allocation2 + $0x26c] sm:$0xff] }
 0x20e   : > { %v4175_v62 = vadd.f32 %v4159_v21, %v4127_v35  ;;  %v3769_v9 = vadd.f32 %v3753_v63, %v3721_v22  ;;  %v3801_v3 = vmul.f32 %v3785_v59, %v6180_v25  ;;  %v4064_v26 = vmul.f32 %v3737_v19, %v10168_v47 }
 0x20f   : > { %10239 = vst [vmem:[#allocation16_spill] sm:$0xff] %v8154_v60  ;;  %v3722_v23 = vadd.f32 %v3706_v28, %v3671_v8  ;;  %v3849_v61 = vmul.f32 %v3833_v29, %v10199_v24  ;;  %v4017_v11 = vmul.f32 %v5585_v10, %v10210_v58  ;;  %v4375_v51 = vmul.f32 %v3737_v19, %v6667_v37 }
 0x210   : > { %v3817_v34 = vadd.f32 %v3801_v3, %v3769_v9  ;;  %v3889_v42 = vmul.f32 %v5585_v10, %v10201_v54  ;;  %v4080_v56 = vadd.f32 %v4064_v26, %v4032_v49  ;;  %v4112_v7 = vmul.f32 %v3785_v59, %v9980_v55 }
 0x211   : > { %v4438_v21 = vadd.f32 %v4422_v40, %v4390_v43  ;;  %v4160_v35 = vmul.f32 %v3833_v29, %v10171_v15  ;;  %v4391_v5 = vadd.f32 %v4375_v51, %v4343_v38  ;;  %v4423_v8 = vmul.f32 %v3785_v59, %v6674_v33 }
 0x212   : > { %v3865_v28 = vadd.f32 %v3849_v61, %v3817_v34  ;;  %v4128_v63 = vadd.f32 %v4112_v7, %v4080_v56  ;;  %v4200_v22 = vmul.f32 %v5585_v10, %v10172_v2  ;;  %v3754_v19 = vmul.f32 %v8162_v1, %v6176_v0  ;;  %v3834_v34 = vld [vmem:[#allocation2 + $0x26e] sm:$0xff] }
 0x213   : > { %v4033_v9 = vadd.f32 %v4017_v11, %v3982_v31  ;;  %v4328_v3 = vmul.f32 %v5585_v10, %v10214_v41  ;;  %v4439_v49 = vadd.f32 %v4423_v8, %v4391_v5  ;;  %v4471_v26 = vmul.f32 %v3833_v29, %v10195_v52  ;;  %v3913_v7 = vld [vmem:[#allocation2 + $0x252] sm:$0xff] }
 0x214   : > { %v3905_v40 = vadd.f32 %v3889_v42, %v3865_v28  ;;  %v4176_v43 = vadd.f32 %v4160_v35, %v4128_v63  ;;  %v3770_v60 = vadd.f32 %v3754_v19, %v3722_v23  ;;  %v3802_v38 = vmul.f32 %v3786_v17, %v6180_v25  ;;  %v5586_v35 = vld [vmem:[#allocation2 + $0x270] sm:$0xff] }
 0x215   : > { %v3904_v59 = vadd.f32 %v3888_v45, %v3864_v30  ;;  %v8174_v51 = vadd.f32 %v4278_v44, %v4254_v57  ;;  %v8178_v61 = vmul.f32 %v8098_v36, %v10228_v16  ;;  %v4065_v0 = vmul.f32 %v8162_v1, %v10168_v47  ;;  %v3953_v8 = vld [vmem:[#allocation2 + $0x254] sm:$0xff] }
 0x216   : > { %v4487_v31 = vadd.f32 %v4471_v26, %v4439_v49  ;;  %v4511_v11 = vmul.f32 %v5585_v10, %v6703_v46  ;;  %v3818_v29 = vadd.f32 %v3802_v38, %v3770_v60  ;;  %v3929_v23 = vmul.f32 %v8162_v1, %v6238_v53  ;;  %v3914_v49 = vld [vmem:[#allocation2 + $0x272] sm:$0xff] }
 0x217   : > { %v4215_v25 = vadd.f32 %v8129_v4, %v4175_v62  ;;  %v8186_v45 = vadd.f32 %v4470_v14, %v4438_v21  ;;  %v4081_v30 = vadd.f32 %v4065_v0, %v4033_v9  ;;  %v4113_v44 = vmul.f32 %v3786_v17, %v9980_v55 }
 0x218   : > { %v4216_v36 = vadd.f32 %v4200_v22, %v4176_v43  ;;  %v4344_v57 = vadd.f32 %v4328_v3, %v8117_v27  ;;  %v3850_v42 = vmul.f32 %v3834_v34, %v10199_v24  ;;  %v3945_v56 = vadd.f32 %v3929_v23, %v3905_v40  ;;  %v4050_v23 = vld [vmem:[#allocation2 + $0x282] sm:$0xff] }
 0x219   : > { %v3890_v10 = vmul.f32 %v5586_v35, %v10201_v54  ;;  %v3969_v60 = vmul.f32 %v3786_v17, %v10152_v18  ;;  %v4129_v5 = vadd.f32 %v4113_v44, %v4081_v30  ;;  %v4161_v62 = vmul.f32 %v3834_v34, %v10171_v15 }
 0x21a   : > { %v8194_v4 = vadd.f32 %v4511_v11, %v4487_v31  ;;  %v3866_v14 = vadd.f32 %v3850_v42, %v3818_v29  ;;  %v4201_v21 = vmul.f32 %v5586_v35, %v10172_v2  ;;  %v4240_v27 = vmul.f32 %v8162_v1, %v6479_v12 }
 0x21b   : > { %v4177_v24 = vadd.f32 %v4161_v62, %v4129_v5  ;;  %v4280_v28 = vmul.f32 %v3786_v17, %v6483_v48  ;;  %v4376_v54 = vmul.f32 %v8162_v1, %v6667_v37  ;;  %v3928_v63 = vmul.f32 %v3913_v7, %v6238_v53 }
 0x21c   : > { %10240 = vst [vmem:[#allocation39_spill] sm:$0xff] %v8194_v4  ;;  %v8203_v22 = vadd.f32 %v3969_v60, %v3945_v56  ;;  %v4256_v19 = vadd.f32 %v4240_v27, %v4216_v36  ;;  %v4424_v9 = vmul.f32 %v3786_v17, %v6674_v33  ;;  %v4472_v3 = vmul.f32 %v3834_v34, %v10195_v52  ;;  %v3954_v36 = vld [vmem:[#allocation2 + $0x274] sm:$0xff]  ;;  %v4098_v60 = vld [vmem:[#allocation2 + $0x284] sm:$0xff] }
 0x21d   : > { %v4392_v26 = vadd.f32 %v4376_v54, %v4344_v57  ;;  %v8208_v40 = vmul.f32 %v5586_v35, %v6703_v46  ;;  %v3944_v43 = vadd.f32 %v3928_v63, %v3904_v59  ;;  %v3968_v38 = vmul.f32 %v3953_v8, %v10152_v18  ;;  %v5587_v57 = vld [vmem:[#allocation2 + $0x280] sm:$0xff]  ;;  %v8528_v4 = vld [vmem:[#allocation2 + $0x1a8] sm:$0xff] }
 0x21e   : > { %v3906_v0 = vadd.f32 %v3890_v10, %v3866_v14  ;;  %v4217_v31 = vadd.f32 %v4201_v21, %v4177_v24  ;;  %v8213_v11 = vmul.f32 %v8162_v1, %v10226_v20  ;;  %v4239_v29 = vmul.f32 %v3913_v7, %v6479_v12  ;;  %v5588_v1 = vld [vmem:[#allocation2 + $0x288] sm:$0xff] }
 0x21f   : > { %10241 = vst [vmem:[#allocation42_spill] sm:$0xff] %v8208_v40  ;;  %v8217_v30 = vmul.f32 %v3786_v17, %v10228_v16  ;;  %v3984_v34 = vadd.f32 %v3968_v38, %v3944_v43  ;;  %v3930_v44 = vmul.f32 %v3914_v49, %v6238_v53  ;;  %v4018_v59 = vmul.f32 %v5587_v57, %v10210_v58  ;;  %v8227_v14 = vld [vmem:[#allocation2 + $0x28a] sm:$0xff] }
 0x220   : > { %10242 = vst [vmem:[#allocation44_spill] sm:$0xff] %v8213_v11  ;;  %v4255_v42 = vadd.f32 %v4239_v29, %v4215_v25  ;;  %v4241_v56 = vmul.f32 %v3914_v49, %v6479_v12  ;;  %v4329_v35 = vmul.f32 %v5587_v57, %v10214_v41  ;;  %v4019_v10 = vmul.f32 %v5588_v1, %v10210_v58 }
 0x221   : > { %10243 = vst [vmem:[#allocation21_spill] sm:$0xff] %v8217_v30  ;;  %v4440_v5 = vadd.f32 %v4424_v9, %v4392_v26  ;;  %v4279_v17 = vmul.f32 %v3953_v8, %v6483_v48  ;;  %v4034_v62 = vadd.f32 %v4018_v59, %v8131_v39  ;;  %v4066_v53 = vmul.f32 %v4050_v23, %v10168_v47  ;;  %v4146_v39 = vld [vmem:[#allocation2 + $0x286] sm:$0xff] }
 0x222   : > { %v3946_v21 = vadd.f32 %v3930_v44, %v3906_v0  ;;  %v3970_v25 = vmul.f32 %v3954_v36, %v10152_v18  ;;  %v4257_v27 = vadd.f32 %v4241_v56, %v4217_v31  ;;  %v4345_v24 = vadd.f32 %v4329_v35, %v8174_v51 }
 0x223   : > { %v4035_v54 = vadd.f32 %v4019_v10, %v3984_v34  ;;  %v4082_v63 = vadd.f32 %v4066_v53, %v4034_v62  ;;  %v4114_v43 = vmul.f32 %v4098_v60, %v9980_v55  ;;  %v4377_v9 = vmul.f32 %v4050_v23, %v6667_v37  ;;  %v4099_v34 = vld [vmem:[#allocation2 + $0x28c] sm:$0xff] }
 0x224   : > { %v4295_v26 = vadd.f32 %v4279_v17, %v4255_v42  ;;  %v4281_v8 = vmul.f32 %v3954_v36, %v6483_v48  ;;  %v4330_v38 = vmul.f32 %v5588_v1, %v10214_v41  ;;  %v4067_v0 = vmul.f32 %v8227_v14, %v10168_v47  ;;  %v4147_v36 = vld [vmem:[#allocation2 + $0x28e] sm:$0xff] }
 0x225   : > { %v4296_v29 = vadd.f32 %v4280_v28, %v4256_v19  ;;  %v8238_v18 = vmul.f32 %v3913_v7, %v10226_v20  ;;  %v4130_v51 = vadd.f32 %v4114_v43, %v4082_v63  ;;  %v4393_v31 = vadd.f32 %v4377_v9, %v4345_v24  ;;  %v5589_v62 = vld [vmem:[#allocation2 + $0x290] sm:$0xff]  ;;  %v5591_v9 = vld [vmem:[#allocation2 + $0x2a8] sm:$0xff] }
 0x226   : > { %v8240_v44 = vadd.f32 %v4472_v3, %v4440_v5  ;;  %v3986_v57 = vadd.f32 %v3970_v25, %v3946_v21  ;;  %v4297_v23 = vadd.f32 %v4281_v8, %v4257_v27  ;;  %v8243_v59 = vmul.f32 %v3914_v49, %v10226_v20  ;;  %v4052_v21 = vld [vmem:[#allocation2 + $0x2a2] sm:$0xff] }
 0x227   : > { %v4162_v42 = vmul.f32 %v4146_v39, %v10171_v15  ;;  %v4202_v56 = vmul.f32 %v5588_v1, %v10172_v2  ;;  %v4425_v28 = vmul.f32 %v4098_v60, %v6674_v33  ;;  %v4083_v19 = vadd.f32 %v4067_v0, %v4035_v54  ;;  %v5590_v27 = vld [vmem:[#allocation2 + $0x2a0] sm:$0xff] }
 0x228   : > { %10244 = vst [vmem:[#allocation70_spill] sm:$0xff] %v8240_v44  ;;  %10245 = vst [vmem:[#allocation23_spill] sm:$0xff] %v8243_v59  ;;  %v4346_v7 = vadd.f32 %v4330_v38, %v4295_v26  ;;  %v4473_v35 = vmul.f32 %v4146_v39, %v10195_v52  ;;  %v4513_v10 = vmul.f32 %v5588_v1, %v6703_v46  ;;  %v4100_v8 = vld [vmem:[#allocation2 + $0x2a4] sm:$0xff] }
 0x229   : > { %v4115_v3 = vmul.f32 %v4099_v34, %v9980_v55  ;;  %v4178_v5 = vadd.f32 %v4162_v42, %v4130_v51  ;;  %v4441_v17 = vadd.f32 %v4425_v28, %v4393_v31  ;;  %v4163_v49 = vmul.f32 %v4147_v36, %v10171_v15  ;;  %v10295_v44 = vld [vmem:[#allocation59_spill] sm:$0xff] }
 0x22a   : > { %v4203_v53 = vmul.f32 %v5589_v62, %v10172_v2  ;;  %v4242_v25 = vmul.f32 %v8227_v14, %v6479_v12  ;;  %v4282_v60 = vmul.f32 %v4099_v34, %v6483_v48  ;;  %v4020_v24 = vmul.f32 %v5590_v27, %v10210_v58 }
 0x22b   : > { %v4331_v1 = vmul.f32 %v5590_v27, %v10214_v41  ;;  %v4131_v54 = vadd.f32 %v4115_v3, %v4083_v19  ;;  %v4378_v63 = vmul.f32 %v8227_v14, %v6667_v37  ;;  %v4426_v43 = vmul.f32 %v4099_v34, %v6674_v33  ;;  %v4148_v3 = vld [vmem:[#allocation2 + $0x2a6] sm:$0xff] }
 0x22c   : > { %v4021_v26 = vmul.f32 %v5591_v9, %v10210_v58  ;;  %v4474_v39 = vmul.f32 %v4147_v36, %v10195_v52  ;;  %v8264_v38 = vmul.f32 %v5589_v62, %v6703_v46  ;;  %v4036_v0 = vadd.f32 %v4020_v24, %v8203_v22  ;;  %v8268_v27 = vld [vmem:[#allocation2 + $0x2aa] sm:$0xff] }
 0x22d   : > { %v4068_v51 = vmul.f32 %v4052_v21, %v10168_v47  ;;  %v4218_v31 = vadd.f32 %v4202_v56, %v4178_v5  ;;  %v4489_v42 = vadd.f32 %v4473_v35, %v4441_v17  ;;  %v4394_v28 = vadd.f32 %v4378_v63, %v4346_v7  ;;  %v4149_v17 = vld [vmem:[#allocation2 + $0x2ae] sm:$0xff] }
 0x22e   : > { %10246 = vst [vmem:[#allocation79_spill] sm:$0xff] %v8264_v38  ;;  %v4347_v19 = vadd.f32 %v4331_v1, %v4296_v29  ;;  %v4037_v30 = vadd.f32 %v4021_v26, %v3986_v57  ;;  %v4116_v58 = vmul.f32 %v4100_v8, %v9980_v55  ;;  %v4332_v36 = vmul.f32 %v5591_v9, %v10214_v41  ;;  %v4101_v29 = vld [vmem:[#allocation2 + $0x2ac] sm:$0xff] }
 0x22f   : > { %v4084_v59 = vadd.f32 %v4068_v51, %v4036_v0  ;;  %v4179_v11 = vadd.f32 %v4163_v49, %v4131_v54  ;;  %v8274_v62 = vmul.f32 %v8227_v14, %v10226_v20  ;;  %v8277_v22 = vmul.f32 %v4099_v34, %v10228_v16  ;;  %v4228_v26 = vld [vmem:[#allocation2 + $0x292] sm:$0xff] }
 0x230   : > { %v4379_v56 = vmul.f32 %v4052_v21, %v6667_v37  ;;  %v4164_v35 = vmul.f32 %v4148_v3, %v10171_v15  ;;  %v4204_v57 = vmul.f32 %v5591_v9, %v10172_v2  ;;  %v4069_v5 = vmul.f32 %v8268_v27, %v10168_v47 }
 0x231   : > { %10247 = vst [vmem:[#allocation80_spill] sm:$0xff] %v8274_v62  ;;  %10248 = vst [vmem:[#allocation81_spill] sm:$0xff] %v8277_v22  ;;  %v4132_v7 = vadd.f32 %v4116_v58, %v4084_v59  ;;  %v4258_v49 = vadd.f32 %v4242_v25, %v4218_v31  ;;  %v4442_v24 = vadd.f32 %v4426_v43, %v4394_v28  ;;  %v5592_v58 = vld [vmem:[#allocation2 + $0x2b0] sm:$0xff]  ;;  %v4365_v28 = vld [vmem:[#allocation2 + $0x2c2] sm:$0xff] }
 0x232   : > { %v4395_v1 = vadd.f32 %v4379_v56, %v4347_v19  ;;  %v4427_v14 = vmul.f32 %v4100_v8, %v6674_v33  ;;  %v4348_v34 = vadd.f32 %v4332_v36, %v4297_v23  ;;  %v4085_v63 = vadd.f32 %v4069_v5, %v4037_v30  ;;  %v4268_v31 = vld [vmem:[#allocation2 + $0x294] sm:$0xff]  ;;  %v4366_v5 = vld [vmem:[#allocation2 + $0x2ca] sm:$0xff] }
 0x233   : > { %v4180_v54 = vadd.f32 %v4164_v35, %v4132_v7  ;;  %v4117_v21 = vmul.f32 %v4101_v29, %v9980_v55  ;;  %v8286_v59 = vadd.f32 %v4513_v10, %v4489_v42  ;;  %v4219_v0 = vadd.f32 %v4203_v53, %v4179_v11  ;;  %v4229_v10 = vld [vmem:[#allocation2 + $0x2b2] sm:$0xff] }
 0x234   : > { %v4165_v51 = vmul.f32 %v4149_v17, %v10171_v15  ;;  %v4205_v47 = vmul.f32 %v5592_v58, %v10172_v2  ;;  %v4443_v25 = vadd.f32 %v4427_v14, %v4395_v1  ;;  %v4380_v8 = vmul.f32 %v8268_v27, %v6667_v37  ;;  %v5594_v1 = vld [vmem:[#allocation2 + $0x2c8] sm:$0xff]  ;;  %v8504_v62 = vld [vmem:[#allocation2 + $0x190] sm:$0xff] }
 0x235   : > { %10249 = vst [vmem:[#allocation82_spill] sm:$0xff] %v8286_v59  ;;  %v4220_v22 = vadd.f32 %v4204_v57, %v4180_v54  ;;  %v4133_v43 = vadd.f32 %v4117_v21, %v4085_v63  ;;  %v4298_v23 = vadd.f32 %v4282_v60, %v4258_v49  ;;  %v8292_v30 = vadd.f32 %v4474_v39, %v4442_v24  ;;  %v5593_v24 = vld [vmem:[#allocation2 + $0x2c0] sm:$0xff] }
 0x236   : > { %v4244_v55 = vmul.f32 %v8268_v27, %v6479_v12  ;;  %v4243_v11 = vmul.f32 %v4228_v26, %v6479_v12  ;;  %v4475_v15 = vmul.f32 %v4148_v3, %v10195_v52  ;;  %v4515_v2 = vmul.f32 %v5591_v9, %v6703_v46  ;;  %v4269_v3 = vld [vmem:[#allocation2 + $0x2b4] sm:$0xff] }
 0x237   : > { %10250 = vst [vmem:[#allocation83_spill] sm:$0xff] %v8292_v30  ;;  %v4181_v53 = vadd.f32 %v4165_v51, %v4133_v43  ;;  %v4396_v42 = vadd.f32 %v4380_v8, %v4348_v34  ;;  %v4284_v36 = vmul.f32 %v4101_v29, %v6483_v48  ;;  %v4283_v60 = vmul.f32 %v4268_v31, %v6483_v48 }
 0x238   : > { %v4260_v19 = vadd.f32 %v4244_v55, %v4220_v22  ;;  %v4259_v56 = vadd.f32 %v4243_v11, %v4219_v0  ;;  %v4491_v39 = vadd.f32 %v4475_v15, %v4443_v25  ;;  %v4428_v35 = vmul.f32 %v4101_v29, %v6674_v33  ;;  %v4367_v55 = vld [vmem:[#allocation2 + $0x2e2] sm:$0xff] }
 0x239   : > { %v4221_v7 = vadd.f32 %v4205_v47, %v4181_v53  ;;  %v4245_v57 = vmul.f32 %v4229_v10, %v6479_v12  ;;  %v4333_v9 = vmul.f32 %v5593_v24, %v10214_v41  ;;  %v4334_v22 = vmul.f32 %v5594_v1, %v10214_v41  ;;  %v4413_v47 = vld [vmem:[#allocation2 + $0x2c4] sm:$0xff] }
 0x23a   : > { %v4299_v49 = vadd.f32 %v4283_v60, %v4259_v56  ;;  %v4381_v14 = vmul.f32 %v4365_v28, %v6667_v37  ;;  %v4444_v54 = vadd.f32 %v4428_v35, %v4396_v42  ;;  %v4476_v34 = vmul.f32 %v4149_v17, %v10195_v52  ;;  %v4461_v15 = vld [vmem:[#allocation2 + $0x2c6] sm:$0xff]  ;;  %v4462_v42 = vld [vmem:[#allocation2 + $0x2ce] sm:$0xff] }
 0x23b   : > { %v8308_v63 = vmul.f32 %v5592_v58, %v6703_v46  ;;  %v4261_v21 = vadd.f32 %v4245_v57, %v4221_v7  ;;  %v4300_v0 = vadd.f32 %v4284_v36, %v4260_v19  ;;  %v4349_v12 = vadd.f32 %v4333_v9, %v4298_v23  ;;  %v4414_v58 = vld [vmem:[#allocation2 + $0x2cc] sm:$0xff]  ;;  %v5595_v28 = vld [vmem:[#allocation2 + $0x2e0] sm:$0xff] }
 0x23c   : > { %v4350_v51 = vadd.f32 %v4334_v22, %v4299_v49  ;;  %v4382_v25 = vmul.f32 %v4366_v5, %v6667_v37  ;;  %v8313_v43 = vmul.f32 %v8268_v27, %v10226_v20  ;;  %v8316_v8 = vmul.f32 %v4101_v29, %v10228_v16  ;;  %v4415_v7 = vld [vmem:[#allocation2 + $0x2e4] sm:$0xff] }
 0x23d   : > { %10251 = vst [vmem:[#allocation84_spill] sm:$0xff] %v8308_v63  ;;  %v8319_v31 = vmul.f32 %v4228_v26, %v10226_v20  ;;  %v4285_v17 = vmul.f32 %v4269_v3, %v6483_v48  ;;  %v8322_v11 = vadd.f32 %v4515_v2, %v4491_v39  ;;  %v4397_v23 = vadd.f32 %v4381_v14, %v4349_v12  ;;  %v5596_v26 = vld [vmem:[#allocation2 + $0x2e8] sm:$0xff] }
 0x23e   : > { %10252 = vst [vmem:[#allocation85_spill] sm:$0xff] %v8313_v43  ;;  %10253 = vst [vmem:[#allocation86_spill] sm:$0xff] %v8316_v8  ;;  %v4398_v53 = vadd.f32 %v4382_v25, %v4350_v51  ;;  %v4335_v27 = vmul.f32 %v5595_v28, %v10214_v41  ;;  %v8325_v19 = vadd.f32 %v4476_v34, %v4444_v54  ;;  %v4463_v35 = vld [vmem:[#allocation2 + $0x2e6] sm:$0xff] }
 0x23f   : > { %10254 = vst [vmem:[#allocation87_spill] sm:$0xff] %v8319_v31  ;;  %10255 = vst [vmem:[#allocation88_spill] sm:$0xff] %v8322_v11  ;;  %v4301_v29 = vadd.f32 %v4285_v17, %v4261_v21  ;;  %v4429_v36 = vmul.f32 %v4413_v47, %v6674_v33  ;;  %v4336_v56 = vmul.f32 %v5596_v26, %v10214_v41  ;;  %v4368_v57 = vld [vmem:[#allocation2 + $0x2ea] sm:$0xff] }
 0x240   : > { %10256 = vst [vmem:[#allocation89_spill] sm:$0xff] %v8325_v19  ;;  %v8330_v48 = vmul.f32 %v4229_v10, %v10226_v20  ;;  %v4430_v2 = vmul.f32 %v4414_v58, %v6674_v33  ;;  %v4351_v60 = vadd.f32 %v4335_v27, %v4300_v0  ;;  %v4383_v39 = vmul.f32 %v4367_v55, %v6667_v37  ;;  %v4416_v41 = vld [vmem:[#allocation2 + $0x2ec] sm:$0xff] }
 0x241   : > { %v4445_v49 = vadd.f32 %v4429_v36, %v4397_v23  ;;  %v4477_v3 = vmul.f32 %v4461_v15, %v10195_v52  ;;  %v8336_v24 = vmul.f32 %v5594_v1, %v6703_v46  ;;  %v4478_v9 = vmul.f32 %v4462_v42, %v10195_v52  ;;  %v5597_v10 = vld [vmem:[#allocation2 + $0x2d0] sm:$0xff]  ;;  %v10264_v42 = vld [vmem:[#allocation46_spill] sm:$0xff]  ;;  %v2321_v27 = vld [vmem:[#allocation2 + $0x148] sm:$0xff] }
 0x242   : > { %10257 = vst [vmem:[#allocation90_spill] sm:$0xff] %v8330_v48  ;;  %v4446_v22 = vadd.f32 %v4430_v2, %v4398_v53  ;;  %v8340_v14 = vmul.f32 %v5597_v10, %v6703_v46  ;;  %v8343_v54 = vmul.f32 %v4366_v5, %v10226_v20  ;;  %v8346_v34 = vmul.f32 %v4414_v58, %v10228_v16  ;;  %v4464_v21 = vld [vmem:[#allocation2 + $0x2ee] sm:$0xff]  ;;  %v10263_v53 = vld [vmem:[#allocation30_spill] sm:$0xff] }
 0x243   : > { %v4352_v0 = vadd.f32 %v4336_v56, %v4301_v29  ;;  %v4431_v12 = vmul.f32 %v4415_v7, %v6674_v33  ;;  %v4479_v1 = vmul.f32 %v4463_v35, %v10195_v52  ;;  %v4384_v51 = vmul.f32 %v4368_v57, %v6667_v37  ;;  %v10261_v55 = vld [vmem:[#allocation24_spill] sm:$0xff]  ;;  %v10262_v5 = vld [vmem:[#allocation43_spill] sm:$0xff]  ;;  %v5598_v37 = vld [vmem:[%s9795_s2 + $0x20] sm:$0xff] }
 0x244   : > { %10258 = vst [vmem:[#allocation91_spill] sm:$0xff] %v8340_v14  ;;  %10259 = vst [vmem:[#allocation92_spill] sm:$0xff] %v8343_v54  ;;  %v4399_v47 = vadd.f32 %v4383_v39, %v4351_v60  ;;  %v8352_v25 = vmul.f32 %v5596_v26, %v6703_v46  ;;  %v4432_v17 = vmul.f32 %v4416_v41, %v6674_v33  ;;  %v10265_v29 = vld [vmem:[#allocation11_spill] sm:$0xff]  ;;  %v10267_v33 = vld [vmem:[#allocation49_spill] sm:$0xff] }
 0x245   : > { %10260 = vst [vmem:[#allocation93_spill] sm:$0xff] %v8346_v34  ;;  %v2214_v23 = vadd.f32 %v10262_v5, %v10261_v55  ;;  %v4493_v15 = vadd.f32 %v4477_v3, %v4445_v49  ;;  %v4480_v58 = vmul.f32 %v4464_v21, %v10195_v52  ;;  %v2257_v28 = vadd.f32 %v10264_v42, %v10263_v53  ;;  %v5599_v2 = vld [vmem:[#allocation2 + $0x114] sm:$0xff]  ;;  %v2372_v39 = vld [vmem:[#allocation2 + $0x142] sm:$0xff]  ;;  %v2373_v5 = vld [vmem:[#allocation2 + $0x14a] sm:$0xff] }
 0x246   : > { %v8364_v36 = vrot.slane %v5598_v37, %v10265_v29  ;;  %v8366_v26 = vadd.f32 %v4478_v9, %v4446_v22  ;;  %v2286_v60 = vmul.f32 %v5599_v2, %v10228_v16  ;;  %v10268_v52 = vld [vmem:[#allocation9_spill] sm:$0xff]  ;;  %v4400_v35 = vadd.f32 %v4384_v51, %v4352_v0  ;;  %v10269_v3 = vld [vmem:[#allocation48_spill] sm:$0xff]  ;;  %v5600_v21 = vld [vmem:[#allocation2 + $0x140] sm:$0xff] }
 0x247   : > { %v2258_v56 = vadd.f32 %v10267_v33, %v2214_v23  ;;  %v8371_v7 = vrot.slane %v5598_v37, %v10268_v52  ;;  %v4543_v49 = vld [vmem:[#allocation2 + $0x2d2] sm:$0xff]  ;;  %v2301_v10 = vadd.f32 %v10269_v3, %v2257_v28  ;;  %v4447_v22 = vadd.f32 %v4431_v12, %v4399_v47  ;;  %v2424_v34 = vld [vmem:[#allocation2 + $0x144] sm:$0xff] }
 0x248   : > { %10266 = vst [vmem:[#allocation24_spill] sm:$0xff] %v8366_v26  ;;  %v2340_v55 = vmul.f32 %v5600_v21, %v8364_v36  ;;  %v10270_v53 = vld [vmem:[#allocation12_spill] sm:$0xff]  ;;  %v2341_v2 = vmul.f32 %v8364_v36, %v2321_v27  ;;  %v8383_v0 = vmul.f32 %v4368_v57, %v10226_v20  ;;  %v8388_v51 = vld [vmem:[%s9795_s2 + $0x28] sm:$0xff]  ;;  %v10273_v47 = vld [vmem:[#allocation13_spill] sm:$0xff] }
 0x249   : > { %v8376_v9 = vrot.slane %v5598_v37, %v10270_v53  ;;  %v5601_v23 = vld [vmem:[#allocation2 + $0x2f0] sm:$0xff]  ;;  %v2302_v33 = vadd.f32 %v2286_v60, %v2258_v56  ;;  %v2392_v3 = vmul.f32 %v8371_v7, %v2372_v39  ;;  %v8392_v21 = vrot.slane %v5598_v37, %v10273_v47  ;;  %v2478_v19 = vld [vmem:[#allocation2 + $0x166] sm:$0xff] }
 0x24a   : > { %v8379_v42 = vmul.f32 %v5601_v23, %v6703_v46  ;;  %10272 = vst [vmem:[#allocation30_spill] sm:$0xff] %v8383_v0  ;;  %v2356_v28 = vadd.f32 %v2340_v55, %v2301_v10  ;;  %v2425_v12 = vld [vmem:[#allocation2 + $0x14c] sm:$0xff]  ;;  %v8395_v46 = vmul.f32 %v4416_v41, %v10228_v16  ;;  %v8398_v56 = vmul.f32 %v4543_v49, %v10226_v20 }
 0x24b   : > { %v2357_v57 = vadd.f32 %v2341_v2, %v2302_v33  ;;  %v2393_v60 = vmul.f32 %v8371_v7, %v2373_v5  ;;  %v2476_v23 = vld [vmem:[#allocation2 + $0x146] sm:$0xff]  ;;  %v4448_v0 = vadd.f32 %v4432_v17, %v4400_v35  ;;  %v2444_v10 = vmul.f32 %v8376_v9, %v2424_v34  ;;  %v2477_v39 = vld [vmem:[#allocation2 + $0x14e] sm:$0xff] }
 0x24c   : > { %10271 = vst [vmem:[#allocation43_spill] sm:$0xff] %v8379_v42  ;;  %10274 = vst [vmem:[#allocation46_spill] sm:$0xff] %v8395_v46  ;;  %v4544_v42 = vld [vmem:[#allocation2 + $0x2f2] sm:$0xff]  ;;  %v2408_v54 = vadd.f32 %v2392_v3, %v2356_v28  ;;  %v10276_v55 = vld [vmem:[#allocation15_spill] sm:$0xff]  ;;  %v4495_v26 = vadd.f32 %v4479_v1, %v4447_v22  ;;  %v2445_v41 = vmul.f32 %v8376_v9, %v2425_v12 }
 0x24d   : > { %10275 = vst [vmem:[#allocation11_spill] sm:$0xff] %v8398_v56  ;;  %v8403_v14 = vrot.slane %v5598_v37, %v10276_v55  ;;  %v2409_v8 = vadd.f32 %v2393_v60, %v2357_v57  ;;  %v10277_v46 = vld [vmem:[#allocation6_spill] sm:$0xff]  ;;  %v8411_v33 = vadd.f32 %v8336_v24, %v4493_v15  ;;  %v2496_v35 = vmul.f32 %v8392_v21, %v2476_v23  ;;  %v2528_v2 = vld [vmem:[#allocation2 + $0x150] sm:$0xff]  ;;  %v10279_v34 = vld [vmem:[#allocation7_spill] sm:$0xff] }
 0x24e   : > { %v8408_v49 = vrot.slane %v8388_v51, %v10277_v46  ;;  %v2460_v17 = vadd.f32 %v2444_v10, %v2408_v54  ;;  %v8416_v28 = vrot.slane %v8388_v51, %v10279_v34  ;;  %v8419_v1 = vmul.f32 %v4544_v42, %v10226_v20  ;;  %v2572_v3 = vld [vmem:[#allocation2 + $0x152] sm:$0xff]  ;;  %v2663_v23 = vld [vmem:[#allocation2 + $0x180] sm:$0xff]  ;;  %v8429_v10 = vld [vmem:[#allocation2 + $0x188] sm:$0xff] }
 0x24f   : > { %10278 = vst [vmem:[#allocation49_spill] sm:$0xff] %v8411_v33  ;;  %v2461_v37 = vadd.f32 %v2445_v41, %v2409_v8  ;;  %v2497_v22 = vmul.f32 %v8392_v21, %v2477_v39  ;;  %v10281_v46 = vld [vmem:[#allocation8_spill] sm:$0xff]  ;;  %v8426_v24 = vadd.f32 %v4480_v58, %v4448_v0  ;;  %v2540_v15 = vmul.f32 %v8403_v14, %v2321_v27  ;;  %v8440_v0 = vld [vmem:[#allocation2 + $0x182] sm:$0xff] }
 0x250   : > { %10280 = vst [vmem:[#allocation9_spill] sm:$0xff] %v8419_v1  ;;  %v8424_v57 = vrot.slane %v8388_v51, %v10281_v46  ;;  %v2512_v54 = vadd.f32 %v2496_v35, %v2460_v17  ;;  %v2616_v60 = vld [vmem:[#allocation2 + $0x154] sm:$0xff]  ;;  %v8433_v20 = vrot.slane %v8388_v51, %v10265_v29  ;;  %v8436_v8 = vadd.f32 %v8352_v25, %v4495_v26  ;;  %v8444_v35 = vld [vmem:[#allocation2 + $0x18a] sm:$0xff] }
 0x251   : > { %10282 = vst [vmem:[#allocation48_spill] sm:$0xff] %v8426_v24  ;;  %v2513_v42 = vadd.f32 %v2497_v22, %v2461_v37  ;;  %v2541_v39 = vmul.f32 %v8403_v14, %v2528_v2  ;;  %v2584_v58 = vmul.f32 %v8408_v49, %v2373_v5  ;;  %v2585_v27 = vmul.f32 %v8408_v49, %v2572_v3  ;;  %v8454_v34 = vld [vmem:[#allocation2 + $0x184] sm:$0xff] }
 0x252   : > { %10283 = vst [vmem:[#allocation12_spill] sm:$0xff] %v8436_v8  ;;  %v2556_v41 = vadd.f32 %v2540_v15, %v2512_v54  ;;  %v2628_v17 = vmul.f32 %v8416_v28, %v2425_v12  ;;  %v8448_v29 = vrot.slane %v8388_v51, %v10268_v52  ;;  %v2629_v26 = vmul.f32 %v8416_v28, %v2616_v60  ;;  %v8468_v54 = vld [vmem:[#allocation2 + $0x18c] sm:$0xff]  ;;  %v10284_v60 = vld [vmem:[#allocation54_spill] sm:$0xff] }
 0x253   : > { %v2557_v25 = vadd.f32 %v2541_v39, %v2513_v42  ;;  %v2683_v2 = vmul.f32 %v8424_v57, %v2663_v23  ;;  %v2684_v5 = vmul.f32 %v8424_v57, %v8429_v10  ;;  %v2735_v12 = vmul.f32 %v8433_v20, %v8440_v0  ;;  %v8470_v15 = vld [vmem:[#allocation2 + $0x186] sm:$0xff]  ;;  %v10285_v23 = vld [vmem:[#allocation41_spill] sm:$0xff] }
 0x254   : > { %v2600_v37 = vadd.f32 %v2584_v58, %v2556_v41  ;;  %v8460_v22 = vrot.slane %v8388_v51, %v10270_v53  ;;  %v8464_v52 = vrot.slane %v8388_v51, %v10273_v47  ;;  %v2736_v46 = vmul.f32 %v8433_v20, %v8444_v35  ;;  %v10286_v39 = vld [vmem:[#allocation37_spill] sm:$0xff]  ;;  %v10287_v58 = vld [vmem:[#allocation52_spill] sm:$0xff]  ;;  %v2323_v53 = vld [vmem:[#allocation2 + $0x168] sm:$0xff] }
 0x255   : > { %v2601_v3 = vadd.f32 %v2585_v27, %v2557_v25  ;;  %v2216_v42 = vadd.f32 %v10285_v23, %v10284_v60  ;;  %v2259_v41 = vadd.f32 %v10287_v58, %v10286_v39  ;;  %v2787_v47 = vmul.f32 %v8448_v29, %v8454_v34  ;;  %v5602_v25 = vld [vmem:[#allocation2 + $0x160] sm:$0xff]  ;;  %v10288_v33 = vld [vmem:[#allocation31_spill] sm:$0xff]  ;;  %v5603_v60 = vld [vmem:[#allocation2 + $0x134] sm:$0xff] }
 0x256   : > { %v2644_v1 = vadd.f32 %v2628_v17, %v2600_v37  ;;  %v8480_v27 = vrot.slane %v8388_v51, %v10276_v55  ;;  %v2342_v8 = vmul.f32 %v5602_v25, %v8364_v36  ;;  %v2374_v24 = vld [vmem:[#allocation2 + $0x162] sm:$0xff]  ;;  %v2288_v23 = vmul.f32 %v5603_v60, %v10228_v16  ;;  %v10289_v39 = vld [vmem:[#allocation53_spill] sm:$0xff]  ;;  %v2375_v17 = vld [vmem:[#allocation2 + $0x16a] sm:$0xff] }
 0x257   : > { %v2645_v56 = vadd.f32 %v2629_v26, %v2601_v3  ;;  %v2260_v48 = vadd.f32 %v10288_v33, %v2216_v42  ;;  %v2303_v58 = vadd.f32 %v10289_v39, %v2259_v41  ;;  %v2788_v43 = vmul.f32 %v8448_v29, %v8468_v54  ;;  %v2426_v25 = vld [vmem:[#allocation2 + $0x164] sm:$0xff]  ;;  %v8494_v33 = vld [vmem:[%s9795_s2 + $0x30] ss:$0 sm:$0xff] }
 0x258   : > { %v2699_v37 = vadd.f32 %v2683_v2, %v2644_v1  ;;  %v2839_v51 = vmul.f32 %v8460_v22, %v8470_v15  ;;  %v2343_v55 = vmul.f32 %v8364_v36, %v2323_v53  ;;  %v8496_v3 = vld [vmem:[#allocation2 + $0x18e] sm:$0xff]  ;;  %v2394_v1 = vmul.f32 %v8371_v7, %v2374_v24 }
 0x259   : > { %v2700_v26 = vadd.f32 %v2684_v5, %v2645_v56  ;;  %v2304_v42 = vadd.f32 %v2288_v23, %v2260_v48  ;;  %v2358_v41 = vadd.f32 %v2342_v8, %v2303_v58  ;;  %v2427_v2 = vld [vmem:[#allocation2 + $0x16c] sm:$0xff]  ;;  %v2883_v39 = vmul.f32 %v8464_v52, %v8429_v10 }
 0x25a   : > { %v2751_v60 = vadd.f32 %v2735_v12, %v2699_v37  ;;  %v2927_v11 = vmul.f32 %v8480_v27, %v8444_v35  ;;  %v2395_v63 = vmul.f32 %v8371_v7, %v2375_v17  ;;  %v8506_v56 = vld [vmem:[#allocation2 + $0x192] sm:$0xff]  ;;  %v2446_v24 = vmul.f32 %v8376_v9, %v2426_v25 }
 0x25b   : > { %v2752_v31 = vadd.f32 %v2736_v46, %v2700_v26  ;;  %v2359_v48 = vadd.f32 %v2343_v55, %v2304_v42  ;;  %v2410_v8 = vadd.f32 %v2394_v1, %v2358_v41  ;;  %v2479_v5 = vld [vmem:[#allocation2 + $0x16e] sm:$0xff]  ;;  %v2971_v23 = vmul.f32 %v8494_v33, %v8468_v54 }
 0x25c   : > { %v2803_v12 = vadd.f32 %v2787_v47, %v2751_v60  ;;  %v2840_v58 = vmul.f32 %v8460_v22, %v8496_v3  ;;  %v2447_v37 = vmul.f32 %v8376_v9, %v2427_v2  ;;  %v8514_v26 = vld [vmem:[#allocation2 + $0x194] sm:$0xff]  ;;  %v2498_v55 = vmul.f32 %v8392_v21, %v2478_v19  ;;  %v2665_v19 = vld [vmem:[#allocation2 + $0x1a0] sm:$0xff] }
 0x25d   : > { %v2804_v46 = vadd.f32 %v2788_v43, %v2752_v31  ;;  %v2411_v59 = vadd.f32 %v2395_v63, %v2359_v48  ;;  %v2462_v38 = vadd.f32 %v2446_v24, %v2410_v8  ;;  %v2529_v42 = vld [vmem:[#allocation2 + $0x170] sm:$0xff]  ;;  %v2884_v47 = vmul.f32 %v8464_v52, %v8504_v62 }
 0x25e   : > { %v2855_v25 = vadd.f32 %v2839_v51, %v2803_v12  ;;  %v2928_v41 = vmul.f32 %v8480_v27, %v8506_v56  ;;  %v2499_v1 = vmul.f32 %v8392_v21, %v2479_v5  ;;  %v2573_v60 = vld [vmem:[#allocation2 + $0x172] sm:$0xff]  ;;  %v2542_v63 = vmul.f32 %v8403_v14, %v2323_v53 }
 0x25f   : > { %v2856_v30 = vadd.f32 %v2840_v58, %v2804_v46  ;;  %v2463_v43 = vadd.f32 %v2447_v37, %v2411_v59  ;;  %v2514_v31 = vadd.f32 %v2498_v55, %v2462_v38  ;;  %v2617_v48 = vld [vmem:[#allocation2 + $0x174] sm:$0xff]  ;;  %v2972_v51 = vmul.f32 %v8494_v33, %v8514_v26  ;;  %v8531_v38 = vld [vmem:[#allocation2 + $0x1a2] sm:$0xff] }
 0x260   : > { %v2899_v8 = vadd.f32 %v2883_v39, %v2855_v25  ;;  %v2543_v24 = vmul.f32 %v8403_v14, %v2529_v42  ;;  %v2586_v12 = vmul.f32 %v8408_v49, %v2375_v17  ;;  %v2587_v59 = vmul.f32 %v8408_v49, %v2573_v60  ;;  %v10291_v60 = vld [vmem:[#allocation50_spill] sm:$0xff] }
 0x261   : > { %v2900_v5 = vadd.f32 %v2884_v47, %v2856_v30  ;;  %v2515_v40 = vadd.f32 %v2499_v1, %v2463_v43  ;;  %v2558_v58 = vadd.f32 %v2542_v63, %v2514_v31  ;;  %v2630_v39 = vmul.f32 %v8416_v28, %v2427_v2  ;;  %v8543_v30 = vld [vmem:[%s9796_s3] ss:$0 sm:$0xff]  ;;  %v8547_v1 = vld [vmem:[#allocation2 + $0x1aa] sm:$0xff] }
 0x262   : > { %v2943_v53 = vadd.f32 %v2927_v11, %v2899_v8  ;;  %v2631_v37 = vmul.f32 %v8416_v28, %v2617_v48  ;;  %v2685_v46 = vmul.f32 %v8424_v57, %v2665_v19  ;;  %v2686_v25 = vmul.f32 %v8424_v57, %v8528_v4  ;;  %v10290_v2 = vld [vmem:[#allocation60_spill] sm:$0xff]  ;;  %v10292_v31 = vld [vmem:[#allocation34_spill] sm:$0xff]  ;;  %v10293_v63 = vld [vmem:[#allocation51_spill] sm:$0xff] }
 0x263   : > { %v2944_v17 = vadd.f32 %v2928_v41, %v2900_v5  ;;  %v2559_v55 = vadd.f32 %v2543_v24, %v2515_v40  ;;  %v2602_v42 = vadd.f32 %v2586_v12, %v2558_v58  ;;  %v2737_v11 = vmul.f32 %v8433_v20, %v8531_v38  ;;  %v5604_v8 = vld [vmem:[#allocation2 + $0x154] sm:$0xff]  ;;  %v8557_v12 = vld [vmem:[#allocation2 + $0x1a4] sm:$0xff]  ;;  %v8559_v5 = vld [vmem:[#allocation2 + $0x1ac] sm:$0xff] }
 0x264   : > { %v2987_v47 = vadd.f32 %v2971_v23, %v2943_v53  ;;  %v2218_v43 = vadd.f32 %v10291_v60, %v10290_v2  ;;  %v2261_v48 = vadd.f32 %v10293_v63, %v10292_v31  ;;  %v2290_v24 = vmul.f32 %v5604_v8, %v10228_v16  ;;  %v10294_v58 = vld [vmem:[#allocation62_spill] sm:$0xff] }
 0x265   : > { %v2988_v19 = vadd.f32 %v2972_v51, %v2944_v17  ;;  %v2603_v41 = vadd.f32 %v2587_v59, %v2559_v55  ;;  %v2646_v40 = vadd.f32 %v2630_v39, %v2602_v42  ;;  %v5605_v60 = vld [vmem:[#allocation2 + $0x180] sm:$0xff]  ;;  %v2738_v17 = vmul.f32 %v8433_v20, %v8547_v1 }
 0x266   : > { %v3009_v23 = vadd.f32 %v8543_v30, %v2987_v47  ;;  %v2262_v53 = vadd.f32 %v10294_v58, %v2218_v43  ;;  %v2305_v2 = vadd.f32 %v10295_v44, %v2261_v48  ;;  %v2344_v31 = vmul.f32 %v5605_v60, %v8364_v36  ;;  %v8571_v55 = vld [vmem:[#allocation2 + $0x1a6] sm:$0xff]  ;;  %v8592_v58 = vld [vmem:[#allocation2 + $0x1b0] sm:$0xff] }
 0x267   : > { %v3010_v51 = vadd.f32 %v8543_v30, %v2988_v19  ;;  %v2647_v59 = vadd.f32 %v2631_v37, %v2603_v41  ;;  %v2701_v39 = vadd.f32 %v2685_v46, %v2646_v40  ;;  %v2345_v44 = vmul.f32 %v8429_v10, %v8364_v36  ;;  %v8582_v19 = vld [vmem:[#allocation2 + $0x1ae] sm:$0xff] }
 0x268   : > { %3027 = vst [vmem:[%s8568_s22] sm:$0xff] %v3009_v23  ;;  %v2306_v42 = vadd.f32 %v2290_v24, %v2262_v53  ;;  %v2360_v47 = vadd.f32 %v2344_v31, %v2305_v2  ;;  %v2396_v43 = vmul.f32 %v8440_v0, %v8371_v7  ;;  %v2789_v63 = vmul.f32 %v8448_v29, %v8557_v12 }
 0x269   : > { %3028 = vst [vmem:[%s8568_s22 + $0x8] sm:$0xff] %v3010_v51  ;;  %v2702_v37 = vadd.f32 %v2686_v25, %v2647_v59  ;;  %v2753_v46 = vadd.f32 %v2737_v11, %v2701_v39  ;;  %v2790_v48 = vmul.f32 %v8448_v29, %v8559_v5  ;;  %v2397_v40 = vmul.f32 %v8444_v35, %v8371_v7 }
 0x26a   : > { %v2361_v41 = vadd.f32 %v2345_v44, %v2306_v42  ;;  %v2412_v8 = vadd.f32 %v2396_v43, %v2360_v47  ;;  %v2448_v24 = vmul.f32 %v8454_v34, %v8376_v9  ;;  %v2841_v25 = vmul.f32 %v8460_v22, %v8571_v55  ;;  %v8604_v42 = vld [vmem:[#allocation2 + $0x1b4] sm:$0xff] }
 0x26b   : > { %v2754_v0 = vadd.f32 %v2738_v17, %v2702_v37  ;;  %v2805_v23 = vadd.f32 %v2789_v63, %v2753_v46  ;;  %v2885_v11 = vmul.f32 %v8464_v52, %v8528_v4  ;;  %v2449_v2 = vmul.f32 %v8468_v54, %v8376_v9  ;;  %v8602_v17 = vld [vmem:[#allocation2 + $0x1b2] sm:$0xff] }
 0x26c   : > { %v2413_v53 = vadd.f32 %v2397_v40, %v2361_v41  ;;  %v2464_v60 = vadd.f32 %v2448_v24, %v2412_v8  ;;  %v2500_v31 = vmul.f32 %v8470_v15, %v8392_v21  ;;  %v2929_v59 = vmul.f32 %v8480_v27, %v8547_v1  ;;  %v2667_v24 = vld [vmem:[#allocation2 + $0x1c0] sm:$0xff] }
 0x26d   : > { %v2806_v51 = vadd.f32 %v2790_v48, %v2754_v0  ;;  %v2857_v34 = vadd.f32 %v2841_v25, %v2805_v23  ;;  %v2842_v39 = vmul.f32 %v8460_v22, %v8582_v19  ;;  %v2501_v47 = vmul.f32 %v8496_v3, %v8392_v21 }
 0x26e   : > { %v2465_v44 = vadd.f32 %v2449_v2, %v2413_v53  ;;  %v2516_v43 = vadd.f32 %v2500_v31, %v2464_v60  ;;  %v2544_v15 = vmul.f32 %v8429_v10, %v8403_v14  ;;  %v2973_v46 = vmul.f32 %v8494_v33, %v8559_v5  ;;  %v8624_v53 = vld [vmem:[#allocation2 + $0x1c2] sm:$0xff] }
 0x26f   : > { %v2901_v37 = vadd.f32 %v2885_v11, %v2857_v34  ;;  %v2858_v63 = vadd.f32 %v2842_v39, %v2806_v51  ;;  %v2886_v48 = vmul.f32 %v8464_v52, %v8592_v58  ;;  %v2545_v40 = vmul.f32 %v8504_v62, %v8403_v14  ;;  %v8622_v11 = vld [vmem:[#allocation2 + $0x1c8] sm:$0xff] }
 0x270   : > { %v2517_v41 = vadd.f32 %v2501_v47, %v2465_v44  ;;  %v2560_v8 = vadd.f32 %v2544_v15, %v2516_v43  ;;  %v2588_v3 = vmul.f32 %v8444_v35, %v8408_v49  ;;  %v2930_v10 = vmul.f32 %v8480_v27, %v8602_v17  ;;  %v8633_v39 = vld [vmem:[#allocation2 + $0x1ca] sm:$0xff] }
 0x271   : > { %v2945_v0 = vadd.f32 %v2929_v59, %v2901_v37  ;;  %v2902_v23 = vadd.f32 %v2886_v48, %v2858_v63  ;;  %v2974_v25 = vmul.f32 %v8494_v33, %v8604_v42  ;;  %v2589_v62 = vmul.f32 %v8506_v56, %v8408_v49  ;;  %v8640_v37 = vld [vmem:[#allocation2 + $0x1c4] sm:$0xff]  ;;  %v10297_v63 = vld [vmem:[#allocation56_spill] sm:$0xff] }
 0x272   : > { %v2561_v2 = vadd.f32 %v2545_v40, %v2517_v41  ;;  %v2604_v60 = vadd.f32 %v2588_v3, %v2560_v8  ;;  %v2632_v35 = vmul.f32 %v8468_v54, %v8416_v28  ;;  %v2633_v34 = vmul.f32 %v8514_v26, %v8416_v28  ;;  %v10296_v26 = vld [vmem:[#allocation27_spill] sm:$0xff]  ;;  %v10298_v41 = vld [vmem:[#allocation20_spill] sm:$0xff] }
 0x273   : > { %v2989_v31 = vadd.f32 %v2973_v46, %v2945_v0  ;;  %v2946_v51 = vadd.f32 %v2930_v10, %v2902_v23  ;;  %v2687_v59 = vmul.f32 %v8424_v57, %v2667_v24  ;;  %v2688_v43 = vmul.f32 %v8424_v57, %v8622_v11  ;;  %v8642_v46 = vld [vmem:[#allocation2 + $0x1cc] sm:$0xff]  ;;  %v5606_v23 = vld [vmem:[#allocation2 + $0x1a0] sm:$0xff] }
 0x274   : > { %v2605_v44 = vadd.f32 %v2589_v62, %v2561_v2  ;;  %v2648_v47 = vadd.f32 %v2632_v35, %v2604_v60  ;;  %v2739_v56 = vmul.f32 %v8433_v20, %v8624_v53  ;;  %v2220_v48 = vadd.f32 %v10297_v63, %v10296_v26  ;;  %v10299_v40 = vld [vmem:[#allocation47_spill] sm:$0xff]  ;;  %v10300_v62 = vld [vmem:[#allocation66_spill] sm:$0xff]  ;;  %v5607_v35 = vld [vmem:[#allocation2 + $0x174] sm:$0xff] }
 0x275   : > { %v3011_v54 = vadd.f32 %v8543_v30, %v2989_v31  ;;  %v2990_v15 = vadd.f32 %v2974_v25, %v2946_v51  ;;  %v2263_v8 = vadd.f32 %v10299_v40, %v10298_v41  ;;  %v2740_v0 = vmul.f32 %v8433_v20, %v8633_v39  ;;  %v8653_v2 = vld [vmem:[#allocation2 + $0x1c6] sm:$0xff] }
 0x276   : > { %v2649_v3 = vadd.f32 %v2633_v34, %v2605_v44  ;;  %v2703_v24 = vadd.f32 %v2687_v59, %v2648_v47  ;;  %v2346_v10 = vmul.f32 %v5606_v23, %v8364_v36  ;;  %v2264_v60 = vadd.f32 %v10300_v62, %v2220_v48  ;;  %v10301_v51 = vld [vmem:[#allocation26_spill] sm:$0xff] }
 0x277   : > { %3029 = vst [vmem:[%s8568_s22 + $0x10] sm:$0xff] %v3011_v54  ;;  %v3012_v25 = vadd.f32 %v8543_v30, %v2990_v15  ;;  %v2292_v31 = vmul.f32 %v5607_v35, %v10228_v16  ;;  %v2307_v34 = vadd.f32 %v10301_v51, %v2263_v8  ;;  %v2791_v47 = vmul.f32 %v8448_v29, %v8640_v37  ;;  %v8663_v54 = vld [vmem:[#allocation2 + $0x1ce] sm:$0xff] }
 0x278   : > { %v2704_v44 = vadd.f32 %v2688_v43, %v2649_v3  ;;  %v2755_v59 = vadd.f32 %v2739_v56, %v2703_v24  ;;  %v2792_v26 = vmul.f32 %v8448_v29, %v8642_v46  ;;  %v2347_v63 = vmul.f32 %v8528_v4, %v8364_v36  ;;  %v8673_v3 = vld [vmem:[#allocation2 + $0x1d0] sm:$0xff] }
 0x279   : > { %3030 = vst [vmem:[%s8568_s22 + $0x18] sm:$0xff] %v3012_v25  ;;  %v2308_v15 = vadd.f32 %v2292_v31, %v2264_v60  ;;  %v2362_v48 = vadd.f32 %v2346_v10, %v2307_v34  ;;  %v2398_v41 = vmul.f32 %v8531_v38, %v8371_v7  ;;  %v2843_v56 = vmul.f32 %v8460_v22, %v8653_v2  ;;  %v8683_v35 = vld [vmem:[#allocation2 + $0x1d2] sm:$0xff] }
 0x27a   : > { %v2756_v40 = vadd.f32 %v2740_v0, %v2704_v44  ;;  %v2807_v43 = vadd.f32 %v2791_v47, %v2755_v59  ;;  %v2887_v8 = vmul.f32 %v8464_v52, %v8622_v11  ;;  %v2399_v23 = vmul.f32 %v8547_v1, %v8371_v7  ;;  %v8685_v31 = vld [vmem:[#allocation2 + $0x1d4] sm:$0xff] }
 0x27b   : > { %v2363_v24 = vadd.f32 %v2347_v63, %v2308_v15  ;;  %v2414_v25 = vadd.f32 %v2398_v41, %v2362_v48  ;;  %v2450_v10 = vmul.f32 %v8557_v12, %v8376_v9  ;;  %v2931_v0 = vmul.f32 %v8480_v27, %v8633_v39 }
 0x27c   : > { %v2808_v62 = vadd.f32 %v2792_v26, %v2756_v40  ;;  %v2859_v38 = vadd.f32 %v2843_v56, %v2807_v43  ;;  %v2844_v60 = vmul.f32 %v8460_v22, %v8663_v54  ;;  %v2451_v34 = vmul.f32 %v8559_v5, %v8376_v9 }
 0x27d   : > { %v2415_v51 = vadd.f32 %v2399_v23, %v2363_v24  ;;  %v2466_v44 = vadd.f32 %v2450_v10, %v2414_v25  ;;  %v2502_v12 = vmul.f32 %v8571_v55, %v8392_v21  ;;  %v2975_v47 = vmul.f32 %v8494_v33, %v8642_v46  ;;  %v2669_v24 = vld [vmem:[#allocation2 + $0x1e0] sm:$0xff] }
 0x27e   : > { %v2903_v59 = vadd.f32 %v2887_v8, %v2859_v38  ;;  %v2860_v26 = vadd.f32 %v2844_v60, %v2808_v62  ;;  %v2888_v15 = vmul.f32 %v8464_v52, %v8673_v3  ;;  %v2503_v48 = vmul.f32 %v8582_v19, %v8392_v21  ;;  %v8707_v62 = vld [vmem:[#allocation2 + $0x1e8] sm:$0xff] }
 0x27f   : > { %v2467_v63 = vadd.f32 %v2451_v34, %v2415_v51  ;;  %v2518_v41 = vadd.f32 %v2502_v12, %v2466_v44  ;;  %v2546_v40 = vmul.f32 %v8528_v4, %v8403_v14  ;;  %v2932_v55 = vmul.f32 %v8480_v27, %v8683_v35  ;;  %v8709_v4 = vld [vmem:[#allocation2 + $0x1e2] sm:$0xff]  ;;  %v8718_v12 = vld [vmem:[#allocation2 + $0x1ea] sm:$0xff] }
 0x280   : > { %v2947_v43 = vadd.f32 %v2931_v0, %v2903_v59  ;;  %v2904_v56 = vadd.f32 %v2888_v15, %v2860_v26  ;;  %v2976_v8 = vmul.f32 %v8494_v33, %v8685_v31  ;;  %v2547_v25 = vmul.f32 %v8592_v58, %v8403_v14 }
 0x281   : > { %v2519_v23 = vadd.f32 %v2503_v48, %v2467_v63  ;;  %v2562_v10 = vadd.f32 %v2546_v40, %v2518_v41  ;;  %v2590_v19 = vmul.f32 %v8547_v1, %v8408_v49  ;;  %v2591_v60 = vmul.f32 %v8602_v17, %v8408_v49  ;;  %v8725_v63 = vld [vmem:[#allocation2 + $0x1e4] sm:$0xff]  ;;  %v8727_v48 = vld [vmem:[#allocation2 + $0x1ec] sm:$0xff]  ;;  %v10303_v41 = vld [vmem:[#allocation61_spill] sm:$0xff] }
 0x282   : > { %v2991_v38 = vadd.f32 %v2975_v47, %v2947_v43  ;;  %v2948_v0 = vadd.f32 %v2932_v55, %v2904_v56  ;;  %v2634_v51 = vmul.f32 %v8559_v5, %v8416_v28  ;;  %v2635_v58 = vmul.f32 %v8604_v42, %v8416_v28  ;;  %v10302_v42 = vld [vmem:[#allocation69_spill] sm:$0xff]  ;;  %v10304_v43 = vld [vmem:[#allocation38_spill] sm:$0xff]  ;;  %v10305_v56 = vld [vmem:[#allocation40_spill] sm:$0xff] }
 0x283   : > { %v2563_v34 = vadd.f32 %v2547_v25, %v2519_v23  ;;  %v2606_v44 = vadd.f32 %v2590_v19, %v2562_v10  ;;  %v2689_v1 = vmul.f32 %v8424_v57, %v2669_v24  ;;  %v2690_v26 = vmul.f32 %v8424_v57, %v8707_v62  ;;  %v5608_v23 = vld [vmem:[#allocation2 + $0x194] sm:$0xff]  ;;  %v5609_v10 = vld [vmem:[#allocation2 + $0x1c0] sm:$0xff] }
 0x284   : > { %v3013_v59 = vadd.f32 %v8543_v30, %v2991_v38  ;;  %v2992_v47 = vadd.f32 %v2976_v8, %v2948_v0  ;;  %v2741_v17 = vmul.f32 %v8433_v20, %v8709_v4  ;;  %v2222_v40 = vadd.f32 %v10303_v41, %v10302_v42 }
 0x285   : > { %v2607_v5 = vadd.f32 %v2591_v60, %v2563_v34  ;;  %v2650_v15 = vadd.f32 %v2634_v51, %v2606_v44  ;;  %v2265_v55 = vadd.f32 %v10305_v56, %v10304_v43  ;;  %v2742_v24 = vmul.f32 %v8433_v20, %v8718_v12  ;;  %v8739_v60 = vld [vmem:[#allocation2 + $0x1e6] sm:$0xff] }
 0x286   : > { %3031 = vst [vmem:[%s8568_s22 + $0x20] sm:$0xff] %v3013_v59  ;;  %v3014_v8 = vadd.f32 %v8543_v30, %v2992_v47  ;;  %v2294_v25 = vmul.f32 %v5608_v23, %v10228_v16  ;;  %v2348_v19 = vmul.f32 %v5609_v10, %v8364_v36  ;;  %v10306_v51 = vld [vmem:[#allocation71_spill] sm:$0xff]  ;;  %v2793_v59 = vmul.f32 %v8448_v29, %v8725_v63 }
 0x287   : > { %v2651_v38 = vadd.f32 %v2635_v58, %v2607_v5  ;;  %v2705_v0 = vadd.f32 %v2689_v1, %v2650_v15  ;;  %v2266_v34 = vadd.f32 %v10306_v51, %v2222_v40  ;;  %v10307_v44 = vld [vmem:[#allocation55_spill] sm:$0xff]  ;;  %v2794_v47 = vmul.f32 %v8448_v29, %v8727_v48 }
 0x288   : > { %v2309_v42 = vadd.f32 %v10307_v44, %v2265_v55  ;;  %3032 = vst [vmem:[%s8568_s22 + $0x28] sm:$0xff] %v3014_v8  ;;  %v2349_v41 = vmul.f32 %v8622_v11, %v8364_v36  ;;  %v2400_v58 = vmul.f32 %v8624_v53, %v8371_v7  ;;  %v8752_v15 = vld [vmem:[#allocation2 + $0x1ee] sm:$0xff]  ;;  %v2845_v56 = vmul.f32 %v8460_v22, %v8739_v60 }
 0x289   : > { %v2706_v1 = vadd.f32 %v2690_v26, %v2651_v38  ;;  %v2757_v5 = vadd.f32 %v2741_v17, %v2705_v0  ;;  %v2310_v40 = vadd.f32 %v2294_v25, %v2266_v34  ;;  %v2889_v55 = vmul.f32 %v8464_v52, %v8707_v62  ;;  %v8762_v26 = vld [vmem:[#allocation2 + $0x1f0] sm:$0xff] }
 0x28a   : > { %v2364_v43 = vadd.f32 %v2348_v19, %v2309_v42  ;;  %v2401_v8 = vmul.f32 %v8633_v39, %v8371_v7  ;;  %v2452_v23 = vmul.f32 %v8640_v37, %v8376_v9  ;;  %v2933_v25 = vmul.f32 %v8480_v27, %v8718_v12  ;;  %v8774_v44 = vld [vmem:[#allocation2 + $0x1f4] sm:$0xff] }
 0x28b   : > { %v2758_v10 = vadd.f32 %v2742_v24, %v2706_v1  ;;  %v2809_v53 = vadd.f32 %v2793_v59, %v2757_v5  ;;  %v2365_v17 = vadd.f32 %v2349_v41, %v2310_v40  ;;  %v2846_v19 = vmul.f32 %v8460_v22, %v8752_v15  ;;  %v8772_v24 = vld [vmem:[#allocation2 + $0x1f2] sm:$0xff] }
 0x28c   : > { %v2416_v38 = vadd.f32 %v2400_v58, %v2364_v43  ;;  %v2453_v0 = vmul.f32 %v8642_v46, %v8376_v9  ;;  %v2504_v51 = vmul.f32 %v8653_v2, %v8392_v21  ;;  %v2977_v41 = vmul.f32 %v8494_v33, %v8727_v48 }
 0x28d   : > { %v2810_v34 = vadd.f32 %v2794_v47, %v2758_v10  ;;  %v2861_v37 = vadd.f32 %v2845_v56, %v2809_v53  ;;  %v2417_v42 = vadd.f32 %v2401_v8, %v2365_v17  ;;  %v2890_v58 = vmul.f32 %v8464_v52, %v8762_v26  ;;  %v2671_v56 = vld [vmem:[#allocation2 + $0x200] sm:$0xff] }
 0x28e   : > { %v2468_v59 = vadd.f32 %v2452_v23, %v2416_v38  ;;  %v2505_v1 = vmul.f32 %v8663_v54, %v8392_v21  ;;  %v2548_v2 = vmul.f32 %v8622_v11, %v8403_v14  ;;  %v2934_v8 = vmul.f32 %v8480_v27, %v8772_v24  ;;  %v8792_v38 = vld [vmem:[#allocation2 + $0x208] sm:$0xff] }
 0x28f   : > { %v2905_v47 = vadd.f32 %v2889_v55, %v2861_v37  ;;  %v2862_v5 = vadd.f32 %v2846_v19, %v2810_v34  ;;  %v2469_v40 = vadd.f32 %v2453_v0, %v2417_v42  ;;  %v2978_v23 = vmul.f32 %v8494_v33, %v8774_v44  ;;  %v8794_v19 = vld [vmem:[#allocation2 + $0x202] sm:$0xff] }
 0x290   : > { %v2520_v43 = vadd.f32 %v2504_v51, %v2468_v59  ;;  %v2549_v10 = vmul.f32 %v8673_v3, %v8403_v14  ;;  %v2592_v54 = vmul.f32 %v8633_v39, %v8408_v49  ;;  %v2593_v0 = vmul.f32 %v8683_v35, %v8408_v49 }
 0x291   : > { %v2949_v53 = vadd.f32 %v2933_v25, %v2905_v47  ;;  %v2906_v17 = vadd.f32 %v2890_v58, %v2862_v5  ;;  %v2521_v11 = vadd.f32 %v2505_v1, %v2469_v40  ;;  %v2636_v51 = vmul.f32 %v8642_v46, %v8416_v28  ;;  %v8805_v58 = vld [vmem:[#allocation2 + $0x20a] sm:$0xff]  ;;  %v10309_v46 = vld [vmem:[#allocation65_spill] sm:$0xff] }
 0x292   : > { %v2564_v55 = vadd.f32 %v2548_v2, %v2520_v43  ;;  %v2637_v3 = vmul.f32 %v8685_v31, %v8416_v28  ;;  %v2691_v34 = vmul.f32 %v8424_v57, %v2671_v56  ;;  %v2692_v59 = vmul.f32 %v8424_v57, %v8792_v38  ;;  %v10308_v1 = vld [vmem:[#allocation67_spill] sm:$0xff]  ;;  %v10310_v47 = vld [vmem:[#allocation64_spill] sm:$0xff] }
 0x293   : > { %v2993_v39 = vadd.f32 %v2977_v41, %v2949_v53  ;;  %v2950_v25 = vadd.f32 %v2934_v8, %v2906_v17  ;;  %v2565_v37 = vadd.f32 %v2549_v10, %v2521_v11  ;;  %v2743_v35 = vmul.f32 %v8433_v20, %v8794_v19  ;;  %v10311_v31 = vld [vmem:[#allocation36_spill] sm:$0xff]  ;;  %v8814_v8 = vld [vmem:[#allocation2 + $0x204] sm:$0xff] }
 0x294   : > { %v2608_v42 = vadd.f32 %v2592_v54, %v2564_v55  ;;  %v2224_v2 = vadd.f32 %v10309_v46, %v10308_v1  ;;  %v2267_v5 = vadd.f32 %v10311_v31, %v10310_v47  ;;  %v8816_v10 = vld [vmem:[#allocation2 + $0x20c] sm:$0xff]  ;;  %v10312_v54 = vld [vmem:[#allocation22_spill] sm:$0xff]  ;;  %v5610_v17 = vld [vmem:[#allocation2 + $0x1b4] sm:$0xff]  ;;  %v2402_v31 = vmul.f32 %v8709_v4, %v8371_v7 }
 0x295   : > { %v3015_v41 = vadd.f32 %v8543_v30, %v2993_v39  ;;  %v2994_v40 = vadd.f32 %v2978_v23, %v2950_v25  ;;  %v2609_v43 = vadd.f32 %v2593_v0, %v2565_v37  ;;  %v2296_v11 = vmul.f32 %v5610_v17, %v10228_v16  ;;  %v10313_v55 = vld [vmem:[#allocation57_spill] sm:$0xff]  ;;  %v5611_v46 = vld [vmem:[#allocation2 + $0x1e0] sm:$0xff] }
 0x296   : > { %v2652_v56 = vadd.f32 %v2636_v51, %v2608_v42  ;;  %v2268_v53 = vadd.f32 %v10312_v54, %v2224_v2  ;;  %v2311_v1 = vadd.f32 %v10313_v55, %v2267_v5  ;;  %v2350_v47 = vmul.f32 %v5611_v46, %v8364_v36  ;;  %v8826_v25 = vld [vmem:[#allocation2 + $0x206] sm:$0xff] }
 0x297   : > { %3033 = vst [vmem:[%s8568_s22 + $0x30] sm:$0xff] %v3015_v41  ;;  %v3016_v23 = vadd.f32 %v8543_v30, %v2994_v40  ;;  %v2653_v0 = vadd.f32 %v2637_v3, %v2609_v43  ;;  %v2744_v39 = vmul.f32 %v8433_v20, %v8805_v58  ;;  %v2351_v42 = vmul.f32 %v8707_v62, %v8364_v36  ;;  %v8837_v40 = vld [vmem:[#allocation2 + $0x20e] sm:$0xff] }
 0x298   : > { %v2707_v51 = vadd.f32 %v2691_v34, %v2652_v56  ;;  %v2312_v37 = vadd.f32 %v2296_v11, %v2268_v53  ;;  %v2366_v2 = vadd.f32 %v2350_v47, %v2311_v1  ;;  %v2795_v3 = vmul.f32 %v8448_v29, %v8814_v8  ;;  %v8847_v11 = vld [vmem:[#allocation2 + $0x210] sm:$0xff] }
 0x299   : > { %3034 = vst [vmem:[%s8568_s22 + $0x38] sm:$0xff] %v3016_v23  ;;  %v2708_v5 = vadd.f32 %v2692_v59, %v2653_v0  ;;  %v2796_v34 = vmul.f32 %v8448_v29, %v8816_v10  ;;  %v2403_v56 = vmul.f32 %v8718_v12, %v8371_v7  ;;  %v2454_v53 = vmul.f32 %v8725_v63, %v8376_v9 }
 0x29a   : > { %v2759_v41 = vadd.f32 %v2743_v35, %v2707_v51  ;;  %v2367_v43 = vadd.f32 %v2351_v42, %v2312_v37  ;;  %v2418_v54 = vadd.f32 %v2402_v31, %v2366_v2  ;;  %v2847_v59 = vmul.f32 %v8460_v22, %v8826_v25  ;;  %v8859_v37 = vld [vmem:[#allocation2 + $0x214] sm:$0xff] }
 0x29b   : > { %v2760_v4 = vadd.f32 %v2744_v39, %v2708_v5  ;;  %v2891_v35 = vmul.f32 %v8464_v52, %v8792_v38  ;;  %v2455_v1 = vmul.f32 %v8727_v48, %v8376_v9  ;;  %v2506_v47 = vmul.f32 %v8739_v60, %v8392_v21  ;;  %v8857_v39 = vld [vmem:[#allocation2 + $0x212] sm:$0xff] }
 0x29c   : > { %v2811_v17 = vadd.f32 %v2795_v3, %v2759_v41  ;;  %v2419_v55 = vadd.f32 %v2403_v56, %v2367_v43  ;;  %v2470_v46 = vadd.f32 %v2454_v53, %v2418_v54  ;;  %v2935_v0 = vmul.f32 %v8480_v27, %v8805_v58  ;;  %v2673_v53 = vld [vmem:[#allocation2 + $0x220] sm:$0xff] }
 0x29d   : > { %v2812_v23 = vadd.f32 %v2796_v34, %v2760_v4  ;;  %v2848_v51 = vmul.f32 %v8460_v22, %v8837_v40  ;;  %v2507_v2 = vmul.f32 %v8752_v15, %v8392_v21  ;;  %v2550_v60 = vmul.f32 %v8707_v62, %v8403_v14 }
 0x29e   : > { %v2863_v63 = vadd.f32 %v2847_v59, %v2811_v17  ;;  %v2471_v42 = vadd.f32 %v2455_v1, %v2419_v55  ;;  %v2522_v31 = vadd.f32 %v2506_v47, %v2470_v46  ;;  %v2979_v41 = vmul.f32 %v8494_v33, %v8816_v10  ;;  %v8879_v55 = vld [vmem:[#allocation2 + $0x222] sm:$0xff] }
 0x29f   : > { %v2864_v3 = vadd.f32 %v2848_v51, %v2812_v23  ;;  %v2892_v34 = vmul.f32 %v8464_v52, %v8847_v11  ;;  %v2551_v56 = vmul.f32 %v8762_v26, %v8403_v14  ;;  %v2594_v15 = vmul.f32 %v8718_v12, %v8408_v49  ;;  %v8888_v51 = vld [vmem:[#allocation2 + $0x22a] sm:$0xff] }
 0x2a0   : > { %v2907_v5 = vadd.f32 %v2891_v35, %v2863_v63  ;;  %v2523_v43 = vadd.f32 %v2507_v2, %v2471_v42  ;;  %v2566_v54 = vadd.f32 %v2550_v60, %v2522_v31  ;;  %v2936_v62 = vmul.f32 %v8480_v27, %v8857_v39  ;;  %v8877_v35 = vld [vmem:[#allocation2 + $0x228] sm:$0xff] }
 0x2a1   : > { %v2908_v17 = vadd.f32 %v2892_v34, %v2864_v3  ;;  %v2980_v59 = vmul.f32 %v8494_v33, %v8859_v37  ;;  %v2595_v26 = vmul.f32 %v8772_v24, %v8408_v49  ;;  %v2638_v12 = vmul.f32 %v8727_v48, %v8416_v28  ;;  %v10315_v3 = vld [vmem:[#allocation72_spill] sm:$0xff] }
 0x2a2   : > { %v2951_v4 = vadd.f32 %v2935_v0, %v2907_v5  ;;  %v2567_v1 = vadd.f32 %v2551_v56, %v2523_v43  ;;  %v2610_v46 = vadd.f32 %v2594_v15, %v2566_v54  ;;  %v2639_v63 = vmul.f32 %v8774_v44, %v8416_v28  ;;  %v8895_v5 = vld [vmem:[#allocation2 + $0x224] sm:$0xff]  ;;  %v10316_v43 = vld [vmem:[#allocation45_spill] sm:$0xff] }
 0x2a3   : > { %v2952_v23 = vadd.f32 %v2936_v62, %v2908_v17  ;;  %v2693_v0 = vmul.f32 %v8424_v57, %v2673_v53  ;;  %v2694_v31 = vmul.f32 %v8424_v57, %v8877_v35  ;;  %v2745_v24 = vmul.f32 %v8433_v20, %v8879_v55  ;;  %v10314_v44 = vld [vmem:[#allocation35_spill] sm:$0xff]  ;;  %v5612_v17 = vld [vmem:[#allocation2 + $0x200] sm:$0xff] }
 0x2a4   : > { %v2995_v47 = vadd.f32 %v2979_v41, %v2951_v4  ;;  %v2611_v42 = vadd.f32 %v2595_v26, %v2567_v1  ;;  %v2654_v2 = vadd.f32 %v2638_v12, %v2610_v46  ;;  %v8897_v41 = vld [vmem:[#allocation2 + $0x22c] sm:$0xff]  ;;  %v2226_v34 = vadd.f32 %v10315_v3, %v10314_v44  ;;  %v5613_v12 = vld [vmem:[#allocation2 + $0x1d4] sm:$0xff] }
 0x2a5   : > { %v2996_v60 = vadd.f32 %v2980_v59, %v2952_v23  ;;  %v10317_v56 = vld [vmem:[#allocation63_spill] sm:$0xff]  ;;  %v2746_v4 = vmul.f32 %v8433_v20, %v8888_v51  ;;  %v2352_v62 = vmul.f32 %v5612_v17, %v8364_v36  ;;  %v10318_v26 = vld [vmem:[#allocation76_spill] sm:$0xff]  ;;  %v10319_v23 = vld [vmem:[#allocation73_spill] sm:$0xff]  ;;  %v2798_v44 = vmul.f32 %v8448_v29, %v8897_v41 }
 0x2a6   : > { %v3017_v48 = vadd.f32 %v8543_v30, %v2995_v47  ;;  %v2269_v54 = vadd.f32 %v10317_v56, %v10316_v43  ;;  %v2655_v15 = vadd.f32 %v2639_v63, %v2611_v42  ;;  %v2709_v53 = vadd.f32 %v2693_v0, %v2654_v2  ;;  %v8908_v1 = vld [vmem:[#allocation2 + $0x226] sm:$0xff] }
 0x2a7   : > { %v3018_v59 = vadd.f32 %v8543_v30, %v2996_v60  ;;  %v2270_v46 = vadd.f32 %v10318_v26, %v2226_v34  ;;  %v2298_v47 = vmul.f32 %v5613_v12, %v10228_v16  ;;  %v2797_v2 = vmul.f32 %v8448_v29, %v8895_v5  ;;  %v8938_v12 = vld [vmem:[#allocation2 + $0x232] sm:$0xff] }
 0x2a8   : > { %3035 = vst [vmem:[%s8568_s22 + $0x40] sm:$0xff] %v3017_v48  ;;  %v2313_v63 = vadd.f32 %v10319_v23, %v2269_v54  ;;  %v2710_v42 = vadd.f32 %v2694_v31, %v2655_v15  ;;  %v2761_v0 = vadd.f32 %v2745_v24, %v2709_v53  ;;  %v8918_v48 = vld [vmem:[#allocation2 + $0x22e] sm:$0xff]  ;;  %v2353_v3 = vmul.f32 %v8792_v38, %v8364_v36 }
 0x2a9   : > { %3036 = vst [vmem:[%s8568_s22 + $0x48] sm:$0xff] %v3018_v59  ;;  %v2314_v60 = vadd.f32 %v2298_v47, %v2270_v46  ;;  %v2404_v43 = vmul.f32 %v8794_v19, %v8371_v7  ;;  %v2849_v24 = vmul.f32 %v8460_v22, %v8908_v1  ;;  %v2893_v54 = vmul.f32 %v8464_v52, %v8877_v35  ;;  %v8928_v15 = vld [vmem:[#allocation2 + $0x230] sm:$0xff] }
 0x2aa   : > { %v2368_v34 = vadd.f32 %v2352_v62, %v2313_v63  ;;  %v2762_v56 = vadd.f32 %v2746_v4, %v2710_v42  ;;  %v2813_v31 = vadd.f32 %v2797_v2, %v2761_v0  ;;  %v2405_v17 = vmul.f32 %v8805_v58, %v8371_v7  ;;  %v8940_v47 = vld [vmem:[#allocation2 + $0x234] sm:$0xff] }
 0x2ab   : > { %v2369_v53 = vadd.f32 %v2353_v3, %v2314_v60  ;;  %v2456_v62 = vmul.f32 %v8814_v8, %v8376_v9  ;;  %v2937_v4 = vmul.f32 %v8480_v27, %v8888_v51  ;;  %v2850_v46 = vmul.f32 %v8460_v22, %v8918_v48 }
 0x2ac   : > { %v2420_v59 = vadd.f32 %v2404_v43, %v2368_v34  ;;  %v2814_v26 = vadd.f32 %v2798_v44, %v2762_v56  ;;  %v2865_v19 = vadd.f32 %v2849_v24, %v2813_v31  ;;  %v2457_v63 = vmul.f32 %v8816_v10, %v8376_v9 }
 0x2ad   : > { %v2421_v23 = vadd.f32 %v2405_v17, %v2369_v53  ;;  %v2508_v8 = vmul.f32 %v8826_v25, %v8392_v21  ;;  %v2981_v2 = vmul.f32 %v8494_v33, %v8897_v41  ;;  %v2894_v60 = vmul.f32 %v8464_v52, %v8928_v15  ;;  %v2675_v53 = vld [vmem:[#allocation2 + $0x240] sm:$0xff] }
 0x2ae   : > { %v2472_v42 = vadd.f32 %v2456_v62, %v2420_v59  ;;  %v2909_v0 = vadd.f32 %v2893_v54, %v2865_v19  ;;  %v2866_v44 = vadd.f32 %v2850_v46, %v2814_v26  ;;  %v2509_v34 = vmul.f32 %v8837_v40, %v8392_v21  ;;  %v8962_v26 = vld [vmem:[#allocation2 + $0x248] sm:$0xff] }
 0x2af   : > { %v2473_v3 = vadd.f32 %v2457_v63, %v2421_v23  ;;  %v2552_v56 = vmul.f32 %v8792_v38, %v8403_v14  ;;  %v2938_v25 = vmul.f32 %v8480_v27, %v8938_v12  ;;  %v2982_v54 = vmul.f32 %v8494_v33, %v8940_v47  ;;  %v8964_v38 = vld [vmem:[#allocation2 + $0x242] sm:$0xff] }
 0x2b0   : > { %v2524_v43 = vadd.f32 %v2508_v8, %v2472_v42  ;;  %v2953_v31 = vadd.f32 %v2937_v4, %v2909_v0  ;;  %v2910_v24 = vadd.f32 %v2894_v60, %v2866_v44  ;;  %v2553_v59 = vmul.f32 %v8847_v11, %v8403_v14  ;;  %v8973_v8 = vld [vmem:[#allocation2 + $0x24a] sm:$0xff] }
 0x2b1   : > { %v2525_v17 = vadd.f32 %v2509_v34, %v2473_v3  ;;  %v2596_v40 = vmul.f32 %v8805_v58, %v8408_v49  ;;  %v2597_v46 = vmul.f32 %v8857_v39, %v8408_v49  ;;  %v2640_v23 = vmul.f32 %v8816_v10, %v8416_v28  ;;  %v8980_v3 = vld [vmem:[#allocation2 + $0x244] sm:$0xff]  ;;  %v8982_v34 = vld [vmem:[#allocation2 + $0x24c] sm:$0xff] }
 0x2b2   : > { %v2568_v62 = vadd.f32 %v2552_v56, %v2524_v43  ;;  %v2997_v19 = vadd.f32 %v2981_v2, %v2953_v31  ;;  %v2954_v4 = vadd.f32 %v2938_v25, %v2910_v24  ;;  %v2641_v11 = vmul.f32 %v8859_v37, %v8416_v28  ;;  %v10320_v37 = vld [vmem:[#allocation29_spill] sm:$0xff]  ;;  %v10321_v43 = vld [vmem:[#allocation18_spill] sm:$0xff] }
 0x2b3   : > { %v2569_v63 = vadd.f32 %v2553_v59, %v2525_v17  ;;  %v2695_v58 = vmul.f32 %v8424_v57, %v2675_v53  ;;  %v2696_v44 = vmul.f32 %v8424_v57, %v8962_v26  ;;  %v2747_v39 = vmul.f32 %v8433_v20, %v8964_v38  ;;  %v10322_v31 = vld [vmem:[#allocation58_spill] sm:$0xff]  ;;  %v10323_v24 = vld [vmem:[#allocation17_spill] sm:$0xff] }
 0x2b4   : > { %v2612_v42 = vadd.f32 %v2596_v40, %v2568_v62  ;;  %v3019_v0 = vadd.f32 %v8543_v30, %v2997_v19  ;;  %v2998_v2 = vadd.f32 %v2982_v54, %v2954_v4  ;;  %v2228_v56 = vadd.f32 %v10321_v43, %v10320_v37  ;;  %v5614_v17 = vld [vmem:[#allocation2 + $0x1f4] sm:$0xff]  ;;  %v5615_v62 = vld [vmem:[#allocation2 + $0x220] sm:$0xff] }
 0x2b5   : > { %v2613_v10 = vadd.f32 %v2597_v46, %v2569_v63  ;;  %v2271_v25 = vadd.f32 %v10323_v24, %v10322_v31  ;;  %v2748_v53 = vmul.f32 %v8433_v20, %v8973_v8  ;;  %v2300_v59 = vmul.f32 %v5614_v17, %v10228_v16  ;;  %v8994_v46 = vld [vmem:[#allocation2 + $0x246] sm:$0xff] }
 0x2b6   : > { %v2656_v60 = vadd.f32 %v2640_v23, %v2612_v42  ;;  %3037 = vst [vmem:[%s8568_s22 + $0x50] sm:$0xff] %v3019_v0  ;;  %v3020_v54 = vadd.f32 %v8543_v30, %v2998_v2  ;;  %v2354_v40 = vmul.f32 %v5615_v62, %v8364_v36  ;;  %v10324_v23 = vld [vmem:[#allocation75_spill] sm:$0xff]  ;;  %v10325_v42 = vld [vmem:[#allocation68_spill] sm:$0xff]  ;;  %v2799_v0 = vmul.f32 %v8448_v29, %v8980_v3 }
 0x2b7   : > { %v2657_v19 = vadd.f32 %v2641_v11, %v2613_v10  ;;  %v2272_v63 = vadd.f32 %v10324_v23, %v2228_v56  ;;  %v2315_v37 = vadd.f32 %v10325_v42, %v2271_v25  ;;  %v2800_v2 = vmul.f32 %v8448_v29, %v8982_v34  ;;  %v9029_v42 = vld [vmem:[#allocation2 + $0x254] sm:$0xff] }
 0x2b8   : > { %v2711_v4 = vadd.f32 %v2695_v58, %v2656_v60  ;;  %3038 = vst [vmem:[%s8568_s22 + $0x58] sm:$0xff] %v3020_v54  ;;  %v2355_v43 = vmul.f32 %v8877_v35, %v8364_v36  ;;  %v2406_v11 = vmul.f32 %v8879_v55, %v8371_v7  ;;  %v9007_v60 = vld [vmem:[#allocation2 + $0x24e] sm:$0xff]  ;;  %v2851_v24 = vmul.f32 %v8460_v22, %v8994_v46 }
 0x2b9   : > { %v2712_v58 = vadd.f32 %v2696_v44, %v2657_v19  ;;  %v2316_v56 = vadd.f32 %v2300_v59, %v2272_v63  ;;  %v2370_v31 = vadd.f32 %v2354_v40, %v2315_v37  ;;  %v2895_v25 = vmul.f32 %v8464_v52, %v8962_v26  ;;  %v9017_v44 = vld [vmem:[#allocation2 + $0x250] sm:$0xff] }
 0x2ba   : > { %v2763_v10 = vadd.f32 %v2747_v39, %v2711_v4  ;;  %v2407_v54 = vmul.f32 %v8888_v51, %v8371_v7  ;;  %v2458_v17 = vmul.f32 %v8895_v5, %v8376_v9  ;;  %v2939_v59 = vmul.f32 %v8480_v27, %v8973_v8 }
 0x2bb   : > { %v2764_v62 = vadd.f32 %v2748_v53, %v2712_v58  ;;  %v2371_v39 = vadd.f32 %v2355_v43, %v2316_v56  ;;  %v2422_v19 = vadd.f32 %v2406_v11, %v2370_v31  ;;  %v2852_v40 = vmul.f32 %v8460_v22, %v9007_v60  ;;  %v9027_v53 = vld [vmem:[#allocation2 + $0x252] sm:$0xff] }
 0x2bc   : > { %v2815_v55 = vadd.f32 %v2799_v0, %v2763_v10  ;;  %v2459_v4 = vmul.f32 %v8897_v41, %v8376_v9  ;;  %v2510_v23 = vmul.f32 %v8908_v1, %v8392_v21  ;;  %v2983_v43 = vmul.f32 %v8494_v33, %v8982_v34 }
 0x2bd   : > { %v2816_v63 = vadd.f32 %v2800_v2, %v2764_v62  ;;  %v2423_v37 = vadd.f32 %v2407_v54, %v2371_v39  ;;  %v2474_v0 = vadd.f32 %v2458_v17, %v2422_v19  ;;  %v2896_v11 = vmul.f32 %v8464_v52, %v9017_v44  ;;  %v9047_v19 = vld [vmem:[#allocation2 + $0x268] sm:$0xff] }
 0x2be   : > { %v2867_v5 = vadd.f32 %v2851_v24, %v2815_v55  ;;  %v2511_v58 = vmul.f32 %v8918_v48, %v8392_v21  ;;  %v2554_v1 = vmul.f32 %v8877_v35, %v8403_v14  ;;  %v2677_v24 = vld [vmem:[#allocation2 + $0x260] sm:$0xff]  ;;  %v2940_v54 = vmul.f32 %v8480_v27, %v9027_v53 }
 0x2bf   : > { %v2868_v10 = vadd.f32 %v2852_v40, %v2816_v63  ;;  %v2475_v56 = vadd.f32 %v2459_v4, %v2423_v37  ;;  %v2526_v31 = vadd.f32 %v2510_v23, %v2474_v0  ;;  %v2984_v17 = vmul.f32 %v8494_v33, %v9029_v42  ;;  %v9049_v40 = vld [vmem:[#allocation2 + $0x262] sm:$0xff]  ;;  %v9060_v0 = vld [vmem:[#allocation2 + $0x26a] sm:$0xff] }
 0x2c0   : > { %v2911_v2 = vadd.f32 %v2895_v25, %v2867_v5  ;;  %v2555_v62 = vmul.f32 %v8928_v15, %v8403_v14  ;;  %v2598_v48 = vmul.f32 %v8888_v51, %v8408_v49  ;;  %v2599_v4 = vmul.f32 %v8938_v12, %v8408_v49 }
 0x2c1   : > { %v2912_v39 = vadd.f32 %v2896_v11, %v2868_v10  ;;  %v2527_v35 = vadd.f32 %v2511_v58, %v2475_v56  ;;  %v2570_v25 = vadd.f32 %v2554_v1, %v2526_v31  ;;  %v2642_v33 = vmul.f32 %v8897_v41, %v8416_v28  ;;  %v10326_v41 = vld [vmem:[#allocation19_spill] sm:$0xff]  ;;  %v10327_v58 = vld [vmem:[#allocation33_spill] sm:$0xff] }
 0x2c2   : > { %v2955_v55 = vadd.f32 %v2939_v59, %v2911_v2  ;;  %v2643_v15 = vmul.f32 %v8940_v47, %v8416_v28  ;;  %v2697_v23 = vmul.f32 %v8424_v57, %v2677_v24  ;;  %v2698_v37 = vmul.f32 %v8424_v57, %v9047_v19  ;;  %v10328_v47 = vld [vmem:[#allocation25_spill] sm:$0xff]  ;;  %v9069_v31 = vld [vmem:[#allocation2 + $0x264] sm:$0xff]  ;;  %v9071_v24 = vld [vmem:[#allocation2 + $0x26c] sm:$0xff] }
 0x2c3   : > { %v2956_v59 = vadd.f32 %v2940_v54, %v2912_v39  ;;  %v2571_v63 = vadd.f32 %v2555_v62, %v2527_v35  ;;  %v2614_v5 = vadd.f32 %v2598_v48, %v2570_v25  ;;  %v2749_v12 = vmul.f32 %v8433_v20, %v9049_v40  ;;  %v5616_v62 = vld [vmem:[#allocation2 + $0x214] sm:$0xff]  ;;  %v5617_v39 = vld [vmem:[#allocation2 + $0x240] sm:$0xff] }
 0x2c4   : > { %v2999_v51 = vadd.f32 %v2983_v43, %v2955_v55  ;;  %v4522_v11 = vadd.f32 %v10326_v41, %v8020_v6  ;;  %v4561_v1 = vadd.f32 %v10328_v47, %v10327_v58  ;;  %v4586_v48 = vmul.f32 %v5616_v62, %v10228_v16  ;;  %v10329_v55 = vld [vmem:[#allocation28_spill] sm:$0xff] }
 0x2c5   : > { %v3000_v2 = vadd.f32 %v2984_v17, %v2956_v59  ;;  %v2615_v10 = vadd.f32 %v2599_v4, %v2571_v63  ;;  %v2658_v56 = vadd.f32 %v2642_v33, %v2614_v5  ;;  %v4636_v35 = vmul.f32 %v5617_v39, %v8364_v36 }
 0x2c6   : > { %v3021_v43 = vadd.f32 %v8543_v30, %v2999_v51  ;;  %v4562_v54 = vadd.f32 %v8069_v50, %v4522_v11  ;;  %v4601_v6 = vadd.f32 %v10329_v55, %v4561_v1  ;;  %v2750_v33 = vmul.f32 %v8433_v20, %v9060_v0  ;;  %v9081_v51 = vld [vmem:[#allocation2 + $0x266] sm:$0xff] }
 0x2c7   : > { %v3022_v17 = vadd.f32 %v8543_v30, %v3000_v2  ;;  %v2659_v25 = vadd.f32 %v2643_v15, %v2615_v10  ;;  %v2713_v4 = vadd.f32 %v2697_v23, %v2658_v56  ;;  %v4637_v59 = vmul.f32 %v8962_v26, %v8364_v36  ;;  %v9092_v23 = vld [vmem:[#allocation2 + $0x26e] sm:$0xff] }
 0x2c8   : > { %3039 = vst [vmem:[%s8568_s22 + $0x60] sm:$0xff] %v3021_v43  ;;  %v4602_v50 = vadd.f32 %v4586_v48, %v4562_v54  ;;  %v4652_v63 = vadd.f32 %v4636_v35, %v4601_v6  ;;  %v4684_v5 = vmul.f32 %v8964_v38, %v8371_v7  ;;  %v2801_v30 = vmul.f32 %v8448_v29, %v9069_v31  ;;  %v9102_v10 = vld [vmem:[#allocation2 + $0x270] sm:$0xff] }
 0x2c9   : > { %3040 = vst [vmem:[%s8568_s22 + $0x68] sm:$0xff] %v3022_v17  ;;  %v2714_v41 = vadd.f32 %v2698_v37, %v2659_v25  ;;  %v2765_v11 = vadd.f32 %v2749_v12, %v2713_v4  ;;  %v2802_v15 = vmul.f32 %v8448_v29, %v9071_v24  ;;  %v4685_v47 = vmul.f32 %v8973_v8, %v8371_v7  ;;  %v9112_v35 = vld [vmem:[#allocation2 + $0x272] sm:$0xff] }
 0x2ca   : > { %v4653_v58 = vadd.f32 %v4637_v59, %v4602_v50  ;;  %v4700_v1 = vadd.f32 %v4684_v5, %v4652_v63  ;;  %v4732_v43 = vmul.f32 %v8980_v3, %v8376_v9  ;;  %v2853_v37 = vmul.f32 %v8460_v22, %v9081_v51  ;;  %v9114_v17 = vld [vmem:[#allocation2 + $0x274] sm:$0xff]  ;;  %v9123_v59 = vld [vmem:[%s9795_s2 + $0x30] ss:$0 sm:$0xff] }
 0x2cb   : > { %v2766_v38 = vadd.f32 %v2750_v33, %v2714_v41  ;;  %v2817_v2 = vadd.f32 %v2801_v30, %v2765_v11  ;;  %v2897_v12 = vmul.f32 %v8464_v52, %v9047_v19  ;;  %v4733_v54 = vmul.f32 %v8982_v34, %v8376_v9 }
 0x2cc   : > { %v4701_v56 = vadd.f32 %v4685_v47, %v4653_v58  ;;  %v4748_v62 = vadd.f32 %v4732_v43, %v4700_v1  ;;  %v4780_v48 = vmul.f32 %v8994_v46, %v8392_v21  ;;  %v2941_v6 = vmul.f32 %v8480_v27, %v9060_v0 }
 0x2cd   : > { %v2818_v55 = vadd.f32 %v2802_v15, %v2766_v38  ;;  %v2869_v3 = vadd.f32 %v2853_v37, %v2817_v2  ;;  %v2854_v39 = vmul.f32 %v8460_v22, %v9092_v23  ;;  %v4781_v4 = vmul.f32 %v9007_v60, %v8392_v21  ;;  %v4935_v15 = vld [vmem:[#allocation2 + $0x280] sm:$0xff]  ;;  %v9137_v38 = vld [vmem:[#allocation2 + $0x288] sm:$0xff] }
 0x2ce   : > { %v4749_v25 = vadd.f32 %v4733_v54, %v4701_v56  ;;  %v4796_v33 = vadd.f32 %v4780_v48, %v4748_v62  ;;  %v4820_v46 = vmul.f32 %v8962_v26, %v8403_v14  ;;  %v2985_v63 = vmul.f32 %v9123_v59, %v9071_v24  ;;  %v9139_v2 = vld [vmem:[#allocation2 + $0x282] sm:$0xff] }
 0x2cf   : > { %v2913_v50 = vadd.f32 %v2897_v12, %v2869_v3  ;;  %v2870_v5 = vadd.f32 %v2854_v39, %v2818_v55  ;;  %v2898_v41 = vmul.f32 %v8464_v52, %v9102_v10  ;;  %v4821_v60 = vmul.f32 %v9017_v44, %v8403_v14  ;;  %v9148_v55 = vld [vmem:[#allocation2 + $0x28a] sm:$0xff] }
 0x2d0   : > { %v4797_v11 = vadd.f32 %v4781_v4, %v4749_v25  ;;  %v4836_v30 = vadd.f32 %v4820_v46, %v4796_v33  ;;  %v4860_v26 = vmul.f32 %v8973_v8, %v8408_v49  ;;  %v2942_v1 = vmul.f32 %v8480_v27, %v9112_v35  ;;  %v9160_v4 = vld [vmem:[#allocation2 + $0x284] sm:$0xff]  ;;  %v9162_v33 = vld [vmem:[#allocation2 + $0x28c] sm:$0xff] }
 0x2d1   : > { %v2957_v58 = vadd.f32 %v2941_v6, %v2913_v50  ;;  %v2914_v47 = vadd.f32 %v2898_v41, %v2870_v5  ;;  %v2986_v43 = vmul.f32 %v9123_v59, %v9114_v17  ;;  %v4861_v44 = vmul.f32 %v9027_v53, %v8408_v49  ;;  %v10330_v46 = vld [vmem:[#allocation74_spill] sm:$0xff]  ;;  %v10332_v5 = vld [vmem:[#allocation77_spill] sm:$0xff] }
 0x2d2   : > { %v4837_v37 = vadd.f32 %v4821_v60, %v4797_v11  ;;  %v4876_v12 = vadd.f32 %v4860_v26, %v4836_v30  ;;  %v4900_v8 = vmul.f32 %v8982_v34, %v8416_v28  ;;  %v4901_v62 = vmul.f32 %v9029_v42, %v8416_v28  ;;  %v9157_v34 = vld [vmem:[%s9796_s3] ss:$0 sm:$0xff] }
 0x2d3   : > { %v3001_v56 = vadd.f32 %v2985_v63, %v2957_v58  ;;  %v2958_v54 = vadd.f32 %v2942_v1, %v2914_v47  ;;  %v4951_v48 = vmul.f32 %v4935_v15, %v8424_v57  ;;  %v4952_v39 = vmul.f32 %v9137_v38, %v8424_v57  ;;  %v10331_v63 = vld [vmem:[#allocation32_spill] sm:$0xff]  ;;  %v5620_v26 = vld [vmem:[#allocation2 + $0x260] sm:$0xff] }
 0x2d4   : > { %v4877_v3 = vadd.f32 %v4861_v44, %v4837_v37  ;;  %v4916_v6 = vadd.f32 %v4900_v8, %v4876_v12  ;;  %v4999_v53 = vmul.f32 %v9139_v2, %v8433_v20  ;;  %v4524_v50 = vadd.f32 %v10330_v46, %v8066_v32  ;;  %v9173_v47 = vld [vmem:[#allocation2 + $0x286] sm:$0xff]  ;;  %v5621_v32 = vld [vmem:[#allocation2 + $0x234] sm:$0xff] }
 0x2d5   : > { %v3023_v42 = vadd.f32 %v9157_v34, %v3001_v56  ;;  %v3002_v25 = vadd.f32 %v2986_v43, %v2958_v54  ;;  %v4563_v41 = vadd.f32 %v10332_v5, %v10331_v63  ;;  %v5000_v30 = vmul.f32 %v9148_v55, %v8433_v20  ;;  %v10333_v1 = vld [vmem:[#allocation14_spill] sm:$0xff]  ;;  %v9195_v5 = vld [vmem:[#allocation2 + $0x292] sm:$0xff] }
 0x2d6   : > { %v4917_v11 = vadd.f32 %v4901_v62, %v4877_v3  ;;  %v4967_v60 = vadd.f32 %v4951_v48, %v4916_v6  ;;  %v4638_v15 = vmul.f32 %v5620_v26, %v8364_v36  ;;  %v4564_v43 = vadd.f32 %v10333_v1, %v4524_v50  ;;  %v10334_v44 = vld [vmem:[#allocation10_spill] sm:$0xff]  ;;  %v9182_v48 = vld [vmem:[#allocation2 + $0x28e] sm:$0xff] }
 0x2d7   : > { %3041 = vst [vmem:[%s8568_s22 + $0x70] sm:$0xff] %v3023_v42  ;;  %v3024_v58 = vadd.f32 %v9157_v34, %v3002_v25  ;;  %v4588_v37 = vmul.f32 %v5621_v32, %v10228_v16  ;;  %v4603_v12 = vadd.f32 %v10334_v44, %v4563_v41  ;;  %v5047_v54 = vmul.f32 %v9160_v4, %v8448_v29  ;;  %v9185_v3 = vld [vmem:[#allocation2 + $0x290] sm:$0xff] }
 0x2d8   : > { %v4968_v8 = vadd.f32 %v4952_v39, %v4917_v11  ;;  %v5015_v56 = vadd.f32 %v4999_v53, %v4967_v60  ;;  %v5048_v62 = vmul.f32 %v9162_v33, %v8448_v29  ;;  %v4639_v42 = vmul.f32 %v9047_v19, %v8364_v36  ;;  %v9197_v41 = vld [vmem:[#allocation2 + $0x294] sm:$0xff] }
 0x2d9   : > { %3042 = vst [vmem:[%s8568_s22 + $0x78] sm:$0xff] %v3024_v58  ;;  %v4604_v6 = vadd.f32 %v4588_v37, %v4564_v43  ;;  %v4654_v25 = vadd.f32 %v4638_v15, %v4603_v12  ;;  %v4686_v39 = vmul.f32 %v9049_v40, %v8371_v7  ;;  %v5095_v50 = vmul.f32 %v9173_v47, %v8460_v22 }
 0x2da   : > { %v5016_v53 = vadd.f32 %v5000_v30, %v4968_v8  ;;  %v5063_v46 = vadd.f32 %v5047_v54, %v5015_v56  ;;  %v5135_v63 = vmul.f32 %v9137_v38, %v8464_v52  ;;  %v4687_v60 = vmul.f32 %v9060_v0, %v8371_v7 }
 0x2db   : > { %v4655_v11 = vadd.f32 %v4639_v42, %v4604_v6  ;;  %v4702_v26 = vadd.f32 %v4686_v39, %v4654_v25  ;;  %v4734_v40 = vmul.f32 %v9069_v31, %v8376_v9  ;;  %v5175_v58 = vmul.f32 %v9148_v55, %v8480_v27 }
 0x2dc   : > { %v5064_v30 = vadd.f32 %v5048_v62, %v5016_v53  ;;  %v5111_v15 = vadd.f32 %v5095_v50, %v5063_v46  ;;  %v5096_v1 = vmul.f32 %v9182_v48, %v8460_v22  ;;  %v4735_v32 = vmul.f32 %v9071_v24, %v8376_v9  ;;  %v4937_v46 = vld [vmem:[#allocation2 + $0x2a0] sm:$0xff] }
 0x2dd   : > { %v4703_v43 = vadd.f32 %v4687_v60, %v4655_v11  ;;  %v4750_v37 = vadd.f32 %v4734_v40, %v4702_v26  ;;  %v4782_v44 = vmul.f32 %v9081_v51, %v8392_v21  ;;  %v5215_v31 = vmul.f32 %v9123_v59, %v9162_v33  ;;  %v9227_v60 = vld [vmem:[#allocation2 + $0x2a8] sm:$0xff] }
 0x2de   : > { %v5151_v12 = vadd.f32 %v5135_v63, %v5111_v15  ;;  %v5112_v8 = vadd.f32 %v5096_v1, %v5064_v30  ;;  %v5136_v56 = vmul.f32 %v9185_v3, %v8464_v52  ;;  %v4783_v62 = vmul.f32 %v9092_v23, %v8392_v21 }
 0x2df   : > { %v4751_v54 = vadd.f32 %v4735_v32, %v4703_v43  ;;  %v4798_v6 = vadd.f32 %v4782_v44, %v4750_v37  ;;  %v4822_v42 = vmul.f32 %v9047_v19, %v8403_v14  ;;  %v5176_v51 = vmul.f32 %v9195_v5, %v8480_v27  ;;  %v9229_v19 = vld [vmem:[#allocation2 + $0x2a2] sm:$0xff]  ;;  %v9238_v43 = vld [vmem:[#allocation2 + $0x2aa] sm:$0xff] }
 0x2e0   : > { %v5191_v25 = vadd.f32 %v5175_v58, %v5151_v12  ;;  %v5152_v39 = vadd.f32 %v5136_v56, %v5112_v8  ;;  %v5216_v53 = vmul.f32 %v9123_v59, %v9197_v41  ;;  %v4823_v63 = vmul.f32 %v9102_v10, %v8403_v14  ;;  %v9247_v8 = vld [vmem:[#allocation2 + $0x2ac] sm:$0xff]  ;;  %v10335_v56 = vld [vmem:[#allocation78_spill] sm:$0xff] }
 0x2e1   : > { %v4799_v50 = vadd.f32 %v4783_v62, %v4751_v54  ;;  %v4838_v11 = vadd.f32 %v4822_v42, %v4798_v6  ;;  %v4862_v23 = vmul.f32 %v9060_v0, %v8408_v49  ;;  %v4863_v30 = vmul.f32 %v9112_v35, %v8408_v49  ;;  %v10336_v54 = vld [vmem:[#allocation16_spill] sm:$0xff] }
 0x2e2   : > { %v5231_v26 = vadd.f32 %v5215_v31, %v5191_v25  ;;  %v5192_v40 = vadd.f32 %v5176_v51, %v5152_v39  ;;  %v4902_v15 = vmul.f32 %v9071_v24, %v8416_v28  ;;  %v4903_v10 = vmul.f32 %v9114_v17, %v8416_v28  ;;  %v9245_v31 = vld [vmem:[#allocation2 + $0x2a4] sm:$0xff]  ;;  %v5622_v25 = vld [vmem:[#allocation2 + $0x254] sm:$0xff] }
 0x2e3   : > { %v4839_v58 = vadd.f32 %v4823_v63, %v4799_v50  ;;  %v4878_v1 = vadd.f32 %v4862_v23, %v4838_v11  ;;  %v4953_v0 = vmul.f32 %v4937_v46, %v8424_v57  ;;  %v4954_v44 = vmul.f32 %v9227_v60, %v8424_v57  ;;  %v5623_v51 = vld [vmem:[#allocation2 + $0x280] sm:$0xff] }
 0x2e4   : > { %v5247_v32 = vadd.f32 %v9157_v34, %v5231_v26  ;;  %v5232_v37 = vadd.f32 %v5216_v53, %v5192_v40  ;;  %v5001_v35 = vmul.f32 %v9229_v19, %v8433_v20  ;;  %v4526_v17 = vadd.f32 %v8150_v13, %v8186_v45  ;;  %v9259_v63 = vld [vmem:[#allocation2 + $0x2a6] sm:$0xff] }
 0x2e5   : > { %v4879_v24 = vadd.f32 %v4863_v30, %v4839_v58  ;;  %v4918_v12 = vadd.f32 %v4902_v15, %v4878_v1  ;;  %v4565_v62 = vadd.f32 %v10336_v54, %v10335_v56  ;;  %v5002_v42 = vmul.f32 %v9238_v43, %v8433_v20  ;;  %v9272_v58 = vld [vmem:[#allocation2 + $0x2ae] sm:$0xff] }
 0x2e6   : > { %5467 = vst [vmem:[%s8568_s22 + $0x80] sm:$0xff] %v5247_v32  ;;  %v5248_v6 = vadd.f32 %v9157_v34, %v5232_v37  ;;  %v4590_v39 = vmul.f32 %v5622_v25, %v10228_v16  ;;  %v4640_v53 = vmul.f32 %v5623_v51, %v8364_v36  ;;  %v4566_v13 = vadd.f32 %v8238_v18, %v4526_v17 }
 0x2e7   : > { %v4919_v46 = vadd.f32 %v4903_v10, %v4879_v24  ;;  %v4969_v50 = vadd.f32 %v4953_v0, %v4918_v12  ;;  %v4605_v45 = vadd.f32 %v8178_v61, %v4565_v62  ;;  %v5049_v11 = vmul.f32 %v9245_v31, %v8448_v29 }
 0x2e8   : > { %5468 = vst [vmem:[%s8568_s22 + $0x88] sm:$0xff] %v5248_v6  ;;  %v5050_v23 = vmul.f32 %v9247_v8, %v8448_v29  ;;  %v4641_v26 = vmul.f32 %v9137_v38, %v8364_v36  ;;  %v4688_v40 = vmul.f32 %v9139_v2, %v8371_v7  ;;  %v4606_v18 = vadd.f32 %v4590_v39, %v4566_v13  ;;  %v9292_v6 = vld [vmem:[#allocation2 + $0x2b2] sm:$0xff] }
 0x2e9   : > { %v4970_v30 = vadd.f32 %v4954_v44, %v4919_v46  ;;  %v5017_v15 = vadd.f32 %v5001_v35, %v4969_v50  ;;  %v4656_v1 = vadd.f32 %v4640_v53, %v4605_v45  ;;  %v5097_v61 = vmul.f32 %v9259_v63, %v8460_v22  ;;  %v9282_v44 = vld [vmem:[#allocation2 + $0x2b0] sm:$0xff] }
 0x2ea   : > { %v5137_v10 = vmul.f32 %v9227_v60, %v8464_v52  ;;  %v4689_v0 = vmul.f32 %v9148_v55, %v8371_v7  ;;  %v4736_v32 = vmul.f32 %v9160_v4, %v8376_v9  ;;  %v4657_v35 = vadd.f32 %v4641_v26, %v4606_v18 }
 0x2eb   : > { %v5018_v37 = vadd.f32 %v5002_v42, %v4970_v30  ;;  %v5065_v2 = vadd.f32 %v5049_v11, %v5017_v15  ;;  %v4704_v24 = vadd.f32 %v4688_v40, %v4656_v1  ;;  %v5177_v12 = vmul.f32 %v9238_v43, %v8480_v27  ;;  %v9294_v42 = vld [vmem:[#allocation2 + $0x2b4] sm:$0xff] }
 0x2ec   : > { %v5098_v17 = vmul.f32 %v9272_v58, %v8460_v22  ;;  %v4737_v56 = vmul.f32 %v9162_v33, %v8376_v9  ;;  %v4784_v54 = vmul.f32 %v9173_v47, %v8392_v21  ;;  %v4705_v25 = vadd.f32 %v4689_v0, %v4657_v35 }
 0x2ed   : > { %v5066_v62 = vadd.f32 %v5050_v23, %v5018_v37  ;;  %v5113_v4 = vadd.f32 %v5097_v61, %v5065_v2  ;;  %v4752_v39 = vadd.f32 %v4736_v32, %v4704_v24  ;;  %v5217_v51 = vmul.f32 %v9123_v59, %v9247_v8  ;;  %v4939_v23 = vld [vmem:[#allocation2 + $0x2c0] sm:$0xff]  ;;  %v9312_v61 = vld [vmem:[#allocation2 + $0x2c8] sm:$0xff] }
 0x2ee   : > { %v5138_v53 = vmul.f32 %v9282_v44, %v8464_v52  ;;  %v4785_v46 = vmul.f32 %v9182_v48, %v8392_v21  ;;  %v4824_v47 = vmul.f32 %v9137_v38, %v8403_v14  ;;  %v4753_v45 = vadd.f32 %v4737_v56, %v4705_v25  ;;  %v10337_v56 = vld [vmem:[#allocation70_spill] sm:$0xff] }
 0x2ef   : > { %v5153_v50 = vadd.f32 %v5137_v10, %v5113_v4  ;;  %v5114_v13 = vadd.f32 %v5098_v17, %v5066_v62  ;;  %v4800_v11 = vadd.f32 %v4784_v54, %v4752_v39  ;;  %v5178_v26 = vmul.f32 %v9292_v6, %v8480_v27  ;;  %v9314_v10 = vld [vmem:[#allocation2 + $0x2c2] sm:$0xff]  ;;  %v9325_v17 = vld [vmem:[#allocation2 + $0x2ca] sm:$0xff] }
 0x2f0   : > { %v5218_v40 = vmul.f32 %v9123_v59, %v9294_v42  ;;  %v4825_v30 = vmul.f32 %v9185_v3, %v8403_v14  ;;  %v4864_v48 = vmul.f32 %v9148_v55, %v8408_v49  ;;  %v4801_v38 = vadd.f32 %v4785_v46, %v4753_v45  ;;  %v10339_v62 = vld [vmem:[#allocation39_spill] sm:$0xff]  ;;  %v5624_v45 = vld [vmem:[#allocation2 + $0x274] sm:$0xff] }
 0x2f1   : > { %v5193_v15 = vadd.f32 %v5177_v12, %v5153_v50  ;;  %v5154_v18 = vadd.f32 %v5138_v53, %v5114_v13  ;;  %v4840_v1 = vadd.f32 %v4824_v47, %v4800_v11  ;;  %v4865_v0 = vmul.f32 %v9195_v5, %v8408_v49  ;;  %v9334_v46 = vld [vmem:[#allocation2 + $0x2c4] sm:$0xff]  ;;  %v9336_v47 = vld [vmem:[#allocation2 + $0x2cc] sm:$0xff] }
 0x2f2   : > { %v4904_v32 = vmul.f32 %v9162_v33, %v8416_v28  ;;  %v4905_v3 = vmul.f32 %v9197_v41, %v8416_v28  ;;  %v4955_v37 = vmul.f32 %v4939_v23, %v8424_v57  ;;  %v4841_v35 = vadd.f32 %v4825_v30, %v4801_v38  ;;  %v10338_v33 = vld [vmem:[#allocation42_spill] sm:$0xff]  ;;  %v10340_v41 = vld [vmem:[#allocation44_spill] sm:$0xff]  ;;  %v10341_v50 = vld [vmem:[#allocation23_spill] sm:$0xff] }
 0x2f3   : > { %v5233_v55 = vadd.f32 %v5217_v51, %v5193_v15  ;;  %v5194_v2 = vadd.f32 %v5178_v26, %v5154_v18  ;;  %v4880_v24 = vadd.f32 %v4864_v48, %v4840_v1  ;;  %v4956_v12 = vmul.f32 %v9312_v61, %v8424_v57  ;;  %v10342_v23 = vld [vmem:[#allocation21_spill] sm:$0xff]  ;;  %v5625_v30 = vld [vmem:[#allocation2 + $0x2a0] sm:$0xff] }
 0x2f4   : > { %v5003_v5 = vmul.f32 %v9314_v10, %v8433_v20  ;;  %v4528_v54 = vadd.f32 %v10338_v33, %v10337_v56  ;;  %v4567_v4 = vadd.f32 %v10340_v41, %v10339_v62  ;;  %v4881_v51 = vadd.f32 %v4865_v0, %v4841_v35  ;;  %v9346_v1 = vld [vmem:[#allocation2 + $0x2c6] sm:$0xff]  ;;  %v9357_v56 = vld [vmem:[#allocation2 + $0x2ce] sm:$0xff] }
 0x2f5   : > { %v5249_v25 = vadd.f32 %v9157_v34, %v5233_v55  ;;  %v5234_v39 = vadd.f32 %v5218_v40, %v5194_v2  ;;  %v4920_v53 = vadd.f32 %v4904_v32, %v4880_v24  ;;  %v4592_v11 = vmul.f32 %v5624_v45, %v10228_v16 }
 0x2f6   : > { %v4568_v13 = vadd.f32 %v10341_v50, %v4528_v54  ;;  %v4607_v26 = vadd.f32 %v10342_v23, %v4567_v4  ;;  %v4642_v48 = vmul.f32 %v5625_v30, %v8364_v36  ;;  %v4921_v15 = vadd.f32 %v4905_v3, %v4881_v51  ;;  %v9377_v23 = vld [vmem:[#allocation2 + $0x2d2] sm:$0xff] }
 0x2f7   : > { %5469 = vst [vmem:[%s8568_s22 + $0x90] sm:$0xff] %v5249_v25  ;;  %v5250_v40 = vadd.f32 %v9157_v34, %v5234_v39  ;;  %v4971_v18 = vadd.f32 %v4955_v37, %v4920_v53  ;;  %v5004_v38 = vmul.f32 %v9325_v17, %v8433_v20  ;;  %v4643_v32 = vmul.f32 %v9227_v60, %v8364_v36  ;;  %v9367_v25 = vld [vmem:[#allocation2 + $0x2d0] sm:$0xff] }
 0x2f8   : > { %v4608_v0 = vadd.f32 %v4592_v11, %v4568_v13  ;;  %v4658_v55 = vadd.f32 %v4642_v48, %v4607_v26  ;;  %v4690_v2 = vmul.f32 %v9229_v19, %v8371_v7  ;;  %v4972_v35 = vadd.f32 %v4956_v12, %v4921_v15  ;;  %v9379_v26 = vld [vmem:[#allocation2 + $0x2d4] sm:$0xff] }
 0x2f9   : > { %5470 = vst [vmem:[%s8568_s22 + $0x98] sm:$0xff] %v5250_v40  ;;  %v5019_v24 = vadd.f32 %v5003_v5, %v4971_v18  ;;  %v5051_v3 = vmul.f32 %v9334_v46, %v8448_v29  ;;  %v5052_v37 = vmul.f32 %v9336_v47, %v8448_v29  ;;  %v4691_v54 = vmul.f32 %v9238_v43, %v8371_v7 }
 0x2fa   : > { %v4659_v33 = vadd.f32 %v4643_v32, %v4608_v0  ;;  %v4706_v62 = vadd.f32 %v4690_v2, %v4658_v55  ;;  %v4738_v41 = vmul.f32 %v9245_v31, %v8376_v9  ;;  %v5020_v19 = vadd.f32 %v5004_v38, %v4972_v35  ;;  %v4941_v35 = vld [vmem:[#allocation2 + $0x2e0] sm:$0xff] }
 0x2fb   : > { %v5067_v4 = vadd.f32 %v5051_v3, %v5019_v24  ;;  %v5099_v12 = vmul.f32 %v9346_v1, %v8460_v22  ;;  %v5139_v5 = vmul.f32 %v9312_v61, %v8464_v52  ;;  %v4739_v51 = vmul.f32 %v9247_v8, %v8376_v9 }
 0x2fc   : > { %v4707_v39 = vadd.f32 %v4691_v54, %v4659_v33  ;;  %v4754_v53 = vadd.f32 %v4738_v41, %v4706_v62  ;;  %v4786_v50 = vmul.f32 %v9259_v63, %v8392_v21  ;;  %v5068_v13 = vadd.f32 %v5052_v37, %v5020_v19  ;;  %v9397_v33 = vld [vmem:[#allocation2 + $0x2e8] sm:$0xff] }
 0x2fd   : > { %v5115_v31 = vadd.f32 %v5099_v12, %v5067_v4  ;;  %v5179_v45 = vmul.f32 %v9325_v17, %v8480_v27  ;;  %v5100_v11 = vmul.f32 %v9357_v56, %v8460_v22  ;;  %v4787_v48 = vmul.f32 %v9272_v58, %v8392_v21  ;;  %v9399_v54 = vld [vmem:[#allocation2 + $0x2e2] sm:$0xff] }
 0x2fe   : > { %v4755_v30 = vadd.f32 %v4739_v51, %v4707_v39  ;;  %v4802_v40 = vadd.f32 %v4786_v50, %v4754_v53  ;;  %v4826_v63 = vmul.f32 %v9227_v60, %v8403_v14  ;;  %v5219_v18 = vmul.f32 %v9123_v59, %v9336_v47  ;;  %v9408_v39 = vld [vmem:[#allocation2 + $0x2ea] sm:$0xff] }
 0x2ff   : > { %v5155_v15 = vadd.f32 %v5139_v5, %v5115_v31  ;;  %v5116_v38 = vadd.f32 %v5100_v11, %v5068_v13  ;;  %v5140_v0 = vmul.f32 %v9367_v25, %v8464_v52  ;;  %v4827_v55 = vmul.f32 %v9282_v44, %v8403_v14  ;;  %v9415_v31 = vld [vmem:[#allocation2 + $0x2e4] sm:$0xff] }
 0x300   : > { %v4803_v32 = vadd.f32 %v4787_v48, %v4755_v30  ;;  %v4842_v2 = vadd.f32 %v4826_v63, %v4802_v40  ;;  %v4866_v58 = vmul.f32 %v9238_v43, %v8408_v49  ;;  %v5180_v60 = vmul.f32 %v9377_v23, %v8480_v27  ;;  %v10344_v11 = vld [vmem:[#allocation79_spill] sm:$0xff]  ;;  %v10345_v48 = vld [vmem:[#allocation82_spill] sm:$0xff]  ;;  %v10346_v40 = vld [vmem:[#allocation80_spill] sm:$0xff] }
 0x301   : > { %v5195_v24 = vadd.f32 %v5179_v45, %v5155_v15  ;;  %v5156_v3 = vadd.f32 %v5140_v0, %v5116_v38  ;;  %v5220_v37 = vmul.f32 %v9123_v59, %v9379_v26  ;;  %v4867_v44 = vmul.f32 %v9292_v6, %v8408_v49  ;;  %v9417_v45 = vld [vmem:[#allocation2 + $0x2ec] sm:$0xff]  ;;  %v5626_v0 = vld [vmem:[#allocation2 + $0x2c0] sm:$0xff] }
 0x302   : > { %v4843_v62 = vadd.f32 %v4827_v55, %v4803_v32  ;;  %v4882_v41 = vadd.f32 %v4866_v58, %v4842_v2  ;;  %v4906_v43 = vmul.f32 %v9247_v8, %v8416_v28  ;;  %v4907_v12 = vmul.f32 %v9294_v42, %v8416_v28  ;;  %v10343_v42 = vld [vmem:[#allocation83_spill] sm:$0xff] }
 0x303   : > { %v5235_v19 = vadd.f32 %v5219_v18, %v5195_v24  ;;  %v5196_v4 = vadd.f32 %v5180_v60, %v5156_v3  ;;  %v4957_v5 = vmul.f32 %v4941_v35, %v8424_v57  ;;  %v4958_v50 = vmul.f32 %v9397_v33, %v8424_v57  ;;  %v9428_v2 = vld [vmem:[#allocation2 + $0x2e6] sm:$0xff]  ;;  %v5627_v24 = vld [vmem:[#allocation2 + $0x294] sm:$0xff] }
 0x304   : > { %v4883_v51 = vadd.f32 %v4867_v44, %v4843_v62  ;;  %v4922_v53 = vadd.f32 %v4906_v43, %v4882_v41  ;;  %v5005_v6 = vmul.f32 %v9399_v54, %v8433_v20  ;;  %v4530_v30 = vadd.f32 %v10344_v11, %v10343_v42  ;;  %v10347_v58 = vld [vmem:[#allocation87_spill] sm:$0xff]  ;;  %v10348_v60 = vld [vmem:[#allocation81_spill] sm:$0xff] }
 0x305   : > { %v5251_v8 = vadd.f32 %v9157_v34, %v5235_v19  ;;  %v5236_v13 = vadd.f32 %v5220_v37, %v5196_v4  ;;  %v4569_v63 = vadd.f32 %v10346_v40, %v10345_v48  ;;  %v5006_v38 = vmul.f32 %v9408_v39, %v8433_v20  ;;  %v9438_v19 = vld [vmem:[#allocation2 + $0x2ee] sm:$0xff] }
 0x306   : > { %v4923_v15 = vadd.f32 %v4907_v12, %v4883_v51  ;;  %v4973_v18 = vadd.f32 %v4957_v5, %v4922_v53  ;;  %v4644_v32 = vmul.f32 %v5626_v0, %v8364_v36  ;;  %v4570_v35 = vadd.f32 %v10347_v58, %v4530_v30 }
 0x307   : > { %5471 = vst [vmem:[%s8568_s22 + $0xa0] sm:$0xff] %v5251_v8  ;;  %v5252_v55 = vadd.f32 %v9157_v34, %v5236_v13  ;;  %v4594_v3 = vmul.f32 %v5627_v24, %v10228_v16  ;;  %v4609_v37 = vadd.f32 %v10348_v60, %v4569_v63  ;;  %v5053_v41 = vmul.f32 %v9415_v31, %v8448_v29  ;;  %v9448_v13 = vld [vmem:[#allocation2 + $0x2f0] sm:$0xff] }
 0x308   : > { %v4974_v62 = vadd.f32 %v4958_v50, %v4923_v15  ;;  %v5021_v44 = vadd.f32 %v5005_v6, %v4973_v18  ;;  %v5054_v43 = vmul.f32 %v9417_v45, %v8448_v29  ;;  %v4645_v12 = vmul.f32 %v9312_v61, %v8364_v36  ;;  %v9458_v18 = vld [vmem:[#allocation2 + $0x2f2] sm:$0xff] }
 0x309   : > { %5472 = vst [vmem:[%s8568_s22 + $0xa8] sm:$0xff] %v5252_v55  ;;  %v4610_v4 = vadd.f32 %v4594_v3, %v4570_v35  ;;  %v4660_v5 = vadd.f32 %v4644_v32, %v4609_v37  ;;  %v4692_v51 = vmul.f32 %v9314_v10, %v8371_v7  ;;  %v5101_v6 = vmul.f32 %v9428_v2, %v8460_v22 }
 0x30a   : > { %v5022_v53 = vadd.f32 %v5006_v38, %v4974_v62  ;;  %v5069_v50 = vadd.f32 %v5053_v41, %v5021_v44  ;;  %v5141_v8 = vmul.f32 %v9397_v33, %v8464_v52  ;;  %v4693_v11 = vmul.f32 %v9325_v17, %v8371_v7  ;;  %v9460_v38 = vld [vmem:[#allocation2 + $0x2f4] sm:$0xff] }
 0x30b   : > { %v4661_v42 = vadd.f32 %v4645_v12, %v4610_v4  ;;  %v4708_v30 = vadd.f32 %v4692_v51, %v4660_v5  ;;  %v4740_v48 = vmul.f32 %v9334_v46, %v8376_v9  ;;  %v5181_v63 = vmul.f32 %v9408_v39, %v8480_v27  ;;  %v4943_v12 = vld [vmem:[#allocation2 + $0x300] sm:$0xff] }
 0x30c   : > { %v5070_v40 = vadd.f32 %v5054_v43, %v5022_v53  ;;  %v5117_v10 = vadd.f32 %v5101_v6, %v5069_v50  ;;  %v5102_v15 = vmul.f32 %v9438_v19, %v8460_v22  ;;  %v4741_v32 = vmul.f32 %v9336_v47, %v8376_v9  ;;  %v9482_v50 = vld [vmem:[#allocation2 + $0x308] sm:$0xff] }
 0x30d   : > { %v4709_v0 = vadd.f32 %v4693_v11, %v4661_v42  ;;  %v4756_v55 = vadd.f32 %v4740_v48, %v4708_v30  ;;  %v4788_v46 = vmul.f32 %v9346_v1, %v8392_v21  ;;  %v5221_v35 = vmul.f32 %v9123_v59, %v9417_v45 }
 0x30e   : > { %v5157_v58 = vadd.f32 %v5141_v8, %v5117_v10  ;;  %v5118_v24 = vadd.f32 %v5102_v15, %v5070_v40  ;;  %v5142_v3 = vmul.f32 %v9448_v13, %v8464_v52  ;;  %v4789_v37 = vmul.f32 %v9357_v56, %v8392_v21  ;;  %v9493_v40 = vld [vmem:[#allocation2 + $0x30a] sm:$0xff] }
 0x30f   : > { %v4757_v60 = vadd.f32 %v4741_v32, %v4709_v0  ;;  %v4804_v62 = vadd.f32 %v4788_v46, %v4756_v55  ;;  %v4828_v44 = vmul.f32 %v9312_v61, %v8403_v14  ;;  %v5182_v1 = vmul.f32 %v9458_v18, %v8480_v27  ;;  %v9484_v61 = vld [vmem:[#allocation2 + $0x302] sm:$0xff]  ;;  %v9502_v55 = vld [vmem:[#allocation2 + $0x30c] sm:$0xff] }
 0x310   : > { %v5197_v41 = vadd.f32 %v5181_v63, %v5157_v58  ;;  %v5158_v43 = vadd.f32 %v5142_v3, %v5118_v24  ;;  %v5222_v4 = vmul.f32 %v9123_v59, %v9460_v38  ;;  %v4829_v51 = vmul.f32 %v9367_v25, %v8403_v14  ;;  %v9500_v32 = vld [vmem:[#allocation2 + $0x304] sm:$0xff]  ;;  %v10350_v46 = vld [vmem:[#allocation84_spill] sm:$0xff]  ;;  %v10352_v24 = vld [vmem:[#allocation85_spill] sm:$0xff] }
 0x311   : > { %v4805_v5 = vadd.f32 %v4789_v37, %v4757_v60  ;;  %v4844_v53 = vadd.f32 %v4828_v44, %v4804_v62  ;;  %v4868_v56 = vmul.f32 %v9325_v17, %v8408_v49  ;;  %v4869_v42 = vmul.f32 %v9377_v23, %v8408_v49  ;;  %v5628_v62 = vld [vmem:[#allocation2 + $0x2b4] sm:$0xff] }
 0x312   : > { %v5237_v6 = vadd.f32 %v5221_v35, %v5197_v41  ;;  %v5198_v8 = vadd.f32 %v5182_v1, %v5158_v43  ;;  %v4908_v11 = vmul.f32 %v9336_v47, %v8416_v28  ;;  %v4909_v25 = vmul.f32 %v9379_v26, %v8416_v28  ;;  %v10349_v26 = vld [vmem:[#allocation89_spill] sm:$0xff]  ;;  %v10351_v35 = vld [vmem:[#allocation88_spill] sm:$0xff]  ;;  %v5629_v41 = vld [vmem:[#allocation2 + $0x2e0] sm:$0xff] }
 0x313   : > { %v4845_v30 = vadd.f32 %v4829_v51, %v4805_v5  ;;  %v4884_v48 = vadd.f32 %v4868_v56, %v4844_v53  ;;  %v4959_v17 = vmul.f32 %v4943_v12, %v8424_v57  ;;  %v4960_v15 = vmul.f32 %v9482_v50, %v8424_v57  ;;  %v9514_v12 = vld [vmem:[#allocation2 + $0x306] sm:$0xff] }
 0x314   : > { %v5253_v10 = vadd.f32 %v9157_v34, %v5237_v6  ;;  %v5238_v63 = vadd.f32 %v5222_v4, %v5198_v8  ;;  %v5007_v23 = vmul.f32 %v9484_v61, %v8433_v20  ;;  %v4532_v58 = vadd.f32 %v10350_v46, %v10349_v26  ;;  %v10353_v5 = vld [vmem:[#allocation90_spill] sm:$0xff] }
 0x315   : > { %v4885_v47 = vadd.f32 %v4869_v42, %v4845_v30  ;;  %v4924_v0 = vadd.f32 %v4908_v11, %v4884_v48  ;;  %v4571_v3 = vadd.f32 %v10352_v24, %v10351_v35  ;;  %v5008_v37 = vmul.f32 %v9493_v40, %v8433_v20  ;;  %v10354_v53 = vld [vmem:[#allocation86_spill] sm:$0xff] }
 0x316   : > { %5473 = vst [vmem:[%s8568_s22 + $0xb0] sm:$0xff] %v5253_v10  ;;  %v5254_v60 = vadd.f32 %v9157_v34, %v5238_v63  ;;  %v4596_v44 = vmul.f32 %v5628_v62, %v10228_v16  ;;  %v4646_v43 = vmul.f32 %v5629_v41, %v8364_v36  ;;  %v4572_v51 = vadd.f32 %v10353_v5, %v4532_v58 }
 0x317   : > { %v4925_v1 = vadd.f32 %v4909_v25, %v4885_v47  ;;  %v4975_v4 = vadd.f32 %v4959_v17, %v4924_v0  ;;  %v4611_v56 = vadd.f32 %v10354_v53, %v4571_v3  ;;  %v5055_v6 = vmul.f32 %v9500_v32, %v8448_v29  ;;  %v9527_v25 = vld [vmem:[#allocation2 + $0x30e] sm:$0xff] }
 0x318   : > { %5474 = vst [vmem:[%s8568_s22 + $0xb8] sm:$0xff] %v5254_v60  ;;  %v5056_v8 = vmul.f32 %v9502_v55, %v8448_v29  ;;  %v4647_v42 = vmul.f32 %v9397_v33, %v8364_v36  ;;  %v4694_v11 = vmul.f32 %v9399_v54, %v8371_v7  ;;  %v4612_v17 = vadd.f32 %v4596_v44, %v4572_v51  ;;  %v9549_v44 = vld [vmem:[#allocation2 + $0x314] sm:$0xff] }
 0x319   : > { %v4976_v30 = vadd.f32 %v4960_v15, %v4925_v1  ;;  %v5023_v48 = vadd.f32 %v5007_v23, %v4975_v4  ;;  %v4662_v10 = vadd.f32 %v4646_v43, %v4611_v56  ;;  %v5103_v63 = vmul.f32 %v9514_v12, %v8460_v22  ;;  %v9537_v15 = vld [vmem:[#allocation2 + $0x310] sm:$0xff] }
 0x31a   : > { %v5143_v47 = vmul.f32 %v9482_v50, %v8464_v52  ;;  %v4695_v0 = vmul.f32 %v9408_v39, %v8371_v7  ;;  %v4742_v26 = vmul.f32 %v9415_v31, %v8376_v9  ;;  %v4663_v23 = vadd.f32 %v4647_v42, %v4612_v17 }
 0x31b   : > { %v5024_v46 = vadd.f32 %v5008_v37, %v4976_v30  ;;  %v5071_v54 = vadd.f32 %v5055_v6, %v5023_v48  ;;  %v4710_v58 = vadd.f32 %v4694_v11, %v4662_v10  ;;  %v5183_v35 = vmul.f32 %v9493_v40, %v8480_v27  ;;  %v9547_v37 = vld [vmem:[#allocation2 + $0x312] sm:$0xff] }
 0x31c   : > { %v5104_v24 = vmul.f32 %v9527_v25, %v8460_v22  ;;  %v4743_v3 = vmul.f32 %v9417_v45, %v8376_v9  ;;  %v4790_v60 = vmul.f32 %v9428_v2, %v8392_v21  ;;  %v4711_v41 = vadd.f32 %v4695_v0, %v4663_v23 }
 0x31d   : > { %v5072_v62 = vadd.f32 %v5056_v8, %v5024_v46  ;;  %v5119_v31 = vadd.f32 %v5103_v63, %v5071_v54  ;;  %v4758_v43 = vadd.f32 %v4742_v26, %v4710_v58  ;;  %v5223_v1 = vmul.f32 %v9123_v59, %v9502_v55  ;;  %v4945_v8 = vld [vmem:[#allocation2 + $0x320] sm:$0xff]  ;;  %v9567_v63 = vld [vmem:[#allocation2 + $0x328] sm:$0xff] }
 0x31e   : > { %v5144_v4 = vmul.f32 %v9537_v15, %v8464_v52  ;;  %v4791_v5 = vmul.f32 %v9438_v19, %v8392_v21  ;;  %v4830_v2 = vmul.f32 %v9397_v33, %v8403_v14  ;;  %v4759_v56 = vadd.f32 %v4743_v3, %v4711_v41  ;;  %v10355_v3 = vld [vmem:[#allocation24_spill] sm:$0xff] }
 0x31f   : > { %v5159_v51 = vadd.f32 %v5143_v47, %v5119_v31  ;;  %v5120_v53 = vadd.f32 %v5104_v24, %v5072_v62  ;;  %v4806_v6 = vadd.f32 %v4790_v60, %v4758_v43  ;;  %v5184_v42 = vmul.f32 %v9547_v37, %v8480_v27  ;;  %v9569_v47 = vld [vmem:[#allocation2 + $0x322] sm:$0xff]  ;;  %v10357_v62 = vld [vmem:[#allocation49_spill] sm:$0xff]  ;;  %v10358_v31 = vld [vmem:[#allocation92_spill] sm:$0xff] }
 0x320   : > { %v5224_v11 = vmul.f32 %v9123_v59, %v9549_v44  ;;  %v4831_v30 = vmul.f32 %v9448_v13, %v8403_v14  ;;  %v4870_v19 = vmul.f32 %v9408_v39, %v8408_v49  ;;  %v4807_v33 = vadd.f32 %v4791_v5, %v4759_v56  ;;  %v4583_v39 = vld [vmem:[#allocation2 + $0x2d4] sm:$0xff]  ;;  %v10356_v60 = vld [vmem:[#allocation91_spill] sm:$0xff] }
 0x321   : > { %v5199_v48 = vadd.f32 %v5183_v35, %v5159_v51  ;;  %v5160_v17 = vadd.f32 %v5144_v4, %v5120_v53  ;;  %v4846_v10 = vadd.f32 %v4830_v2, %v4806_v6  ;;  %v4871_v0 = vmul.f32 %v9458_v18, %v8408_v49  ;;  %v9587_v5 = vld [vmem:[#allocation2 + $0x32a] sm:$0xff] }
 0x322   : > { %v4910_v26 = vmul.f32 %v9417_v45, %v8416_v28  ;;  %v4911_v13 = vmul.f32 %v9460_v38, %v8416_v28  ;;  %v4961_v46 = vmul.f32 %v4945_v8, %v8424_v57  ;;  %v4847_v58 = vadd.f32 %v4831_v30, %v4807_v33  ;;  %v9589_v2 = vld [vmem:[#allocation2 + $0x324] sm:$0xff]  ;;  %v9591_v51 = vld [vmem:[#allocation2 + $0x32c] sm:$0xff]  ;;  %v10360_v8 = vld [vmem:[#allocation93_spill] sm:$0xff] }
 0x323   : > { %v5239_v54 = vadd.f32 %v5223_v1, %v5199_v48  ;;  %v5200_v23 = vadd.f32 %v5184_v42, %v5160_v17  ;;  %v4886_v35 = vadd.f32 %v4870_v19, %v4846_v10  ;;  %v4962_v24 = vmul.f32 %v9567_v63, %v8424_v57  ;;  %v10359_v53 = vld [vmem:[#allocation11_spill] sm:$0xff]  ;;  %v5630_v30 = vld [vmem:[#allocation2 + $0x300] sm:$0xff] }
 0x324   : > { %v5009_v18 = vmul.f32 %v9569_v47, %v8433_v20  ;;  %v4534_v45 = vadd.f32 %v10356_v60, %v10355_v3  ;;  %v4573_v38 = vadd.f32 %v10358_v31, %v10357_v62  ;;  %v4887_v1 = vadd.f32 %v4871_v0, %v4847_v58  ;;  %v9603_v0 = vld [vmem:[#allocation2 + $0x326] sm:$0xff] }
 0x325   : > { %v5255_v41 = vadd.f32 %v9157_v34, %v5239_v54  ;;  %v5240_v43 = vadd.f32 %v5224_v11, %v5200_v23  ;;  %v4926_v4 = vadd.f32 %v4910_v26, %v4886_v35  ;;  %v4598_v6 = vmul.f32 %v4583_v39, %v10228_v16  ;;  %v9612_v35 = vld [vmem:[#allocation2 + $0x32e] sm:$0xff] }
 0x326   : > { %v4574_v56 = vadd.f32 %v10359_v53, %v4534_v45  ;;  %v4613_v42 = vadd.f32 %v10360_v8, %v4573_v38  ;;  %v4648_v19 = vmul.f32 %v5630_v30, %v8364_v36  ;;  %v4927_v48 = vadd.f32 %v4911_v13, %v4887_v1  ;;  %v9622_v38 = vld [vmem:[#allocation2 + $0x330] sm:$0xff] }
 0x327   : > { %5475 = vst [vmem:[%s8568_s22 + $0xc0] sm:$0xff] %v5255_v41  ;;  %v5256_v11 = vadd.f32 %v9157_v34, %v5240_v43  ;;  %v4977_v17 = vadd.f32 %v4961_v46, %v4926_v4  ;;  %v4649_v33 = vmul.f32 %v9482_v50, %v8364_v36  ;;  %v5010_v10 = vmul.f32 %v9587_v5, %v8433_v20  ;;  %v9632_v8 = vld [vmem:[#allocation2 + $0x332] sm:$0xff] }
 0x328   : > { %v4614_v26 = vadd.f32 %v4598_v6, %v4574_v56  ;;  %v4664_v39 = vadd.f32 %v4648_v19, %v4613_v42  ;;  %v4696_v54 = vmul.f32 %v9484_v61, %v8371_v7  ;;  %v4978_v23 = vadd.f32 %v4962_v24, %v4927_v48 }
 0x329   : > { %5476 = vst [vmem:[%s8568_s22 + $0xc8] sm:$0xff] %v5256_v11  ;;  %v5025_v58 = vadd.f32 %v5009_v18, %v4977_v17  ;;  %v5057_v13 = vmul.f32 %v9589_v2, %v8448_v29  ;;  %v5058_v46 = vmul.f32 %v9591_v51, %v8448_v29  ;;  %v4697_v60 = vmul.f32 %v9493_v40, %v8371_v7 }
 0x32a   : > { %v4665_v3 = vadd.f32 %v4649_v33, %v4614_v26  ;;  %v4712_v45 = vadd.f32 %v4696_v54, %v4664_v39  ;;  %v4744_v62 = vmul.f32 %v9500_v32, %v8376_v9  ;;  %v5026_v61 = vadd.f32 %v5010_v10, %v4978_v23  ;;  %v4947_v10 = vld [vmem:[#allocation2 + $0x340] sm:$0xff]  ;;  %v9642_v26 = vld [vmem:[#allocation2 + $0x334] sm:$0xff] }
 0x32b   : > { %v5073_v31 = vadd.f32 %v5057_v13, %v5025_v58  ;;  %v5105_v24 = vmul.f32 %v9603_v0, %v8460_v22  ;;  %v5145_v18 = vmul.f32 %v9567_v63, %v8464_v52  ;;  %v4745_v43 = vmul.f32 %v9502_v55, %v8376_v9 }
 0x32c   : > { %v4713_v41 = vadd.f32 %v4697_v60, %v4665_v3  ;;  %v4760_v1 = vadd.f32 %v4744_v62, %v4712_v45  ;;  %v4792_v4 = vmul.f32 %v9514_v12, %v8392_v21  ;;  %v5074_v53 = vadd.f32 %v5058_v46, %v5026_v61  ;;  %v4948_v46 = vld [vmem:[#allocation2 + $0x348] sm:$0xff]  ;;  %v4584_v61 = vld [vmem:[#allocation2 + $0x2f4] sm:$0xff] }
 0x32d   : > { %v5121_v32 = vadd.f32 %v5105_v24, %v5073_v31  ;;  %v5185_v56 = vmul.f32 %v9587_v5, %v8480_v27  ;;  %v5106_v6 = vmul.f32 %v9612_v35, %v8460_v22  ;;  %v4793_v30 = vmul.f32 %v9527_v25, %v8392_v21  ;;  %v4995_v3 = vld [vmem:[#allocation2 + $0x342] sm:$0xff]  ;;  %v9658_v24 = vld [vmem:[%s9795_s2 + $0x30] ss:$0 sm:$0xff] }
 0x32e   : > { %v4761_v42 = vadd.f32 %v4745_v43, %v4713_v41  ;;  %v4808_v19 = vadd.f32 %v4792_v4, %v4760_v1  ;;  %v4832_v11 = vmul.f32 %v9482_v50, %v8403_v14  ;;  %v5225_v12 = vmul.f32 %v9123_v59, %v9591_v51 }
 0x32f   : > { %v5161_v48 = vadd.f32 %v5145_v18, %v5121_v32  ;;  %v5122_v17 = vadd.f32 %v5106_v6, %v5074_v53  ;;  %v5146_v33 = vmul.f32 %v9622_v38, %v8464_v52  ;;  %v4833_v54 = vmul.f32 %v9537_v15, %v8403_v14  ;;  %v4996_v32 = vld [vmem:[#allocation2 + $0x34a] sm:$0xff] }
 0x330   : > { %v4809_v39 = vadd.f32 %v4793_v30, %v4761_v42  ;;  %v4848_v25 = vadd.f32 %v4832_v11, %v4808_v19  ;;  %v4872_v23 = vmul.f32 %v9493_v40, %v8408_v49  ;;  %v5186_v59 = vmul.f32 %v9632_v8, %v8480_v27  ;;  %v10361_v6 = vld [vmem:[#allocation48_spill] sm:$0xff]  ;;  %v10362_v42 = vld [vmem:[#allocation43_spill] sm:$0xff]  ;;  %v10364_v11 = vld [vmem:[#allocation30_spill] sm:$0xff] }
 0x331   : > { %v5201_v50 = vadd.f32 %v5185_v56, %v5161_v48  ;;  %v5162_v58 = vadd.f32 %v5146_v33, %v5122_v17  ;;  %v4873_v13 = vmul.f32 %v9547_v37, %v8408_v49  ;;  %v4912_v62 = vmul.f32 %v9502_v55, %v8416_v28  ;;  %v5043_v56 = vld [vmem:[#allocation2 + $0x344] sm:$0xff]  ;;  %v10363_v19 = vld [vmem:[#allocation12_spill] sm:$0xff] }
 0x332   : > { %v4849_v60 = vadd.f32 %v4833_v54, %v4809_v39  ;;  %v4888_v45 = vadd.f32 %v4872_v23, %v4848_v25  ;;  %v4963_v15 = vmul.f32 %v4947_v10, %v8424_v57  ;;  %v5226_v37 = vmul.f32 %v9658_v24, %v9642_v26  ;;  %v5632_v33 = vld [vmem:[#allocation2 + $0x320] sm:$0xff]  ;;  %v5044_v54 = vld [vmem:[#allocation2 + $0x34c] sm:$0xff]  ;;  %v10365_v23 = vld [vmem:[#allocation9_spill] sm:$0xff] }
 0x333   : > { %v5241_v31 = vadd.f32 %v5225_v12, %v5201_v50  ;;  %v5202_v40 = vadd.f32 %v5186_v59, %v5162_v58  ;;  %v4913_v18 = vmul.f32 %v9549_v44, %v8416_v28  ;;  %v4964_v55 = vmul.f32 %v4948_v46, %v8424_v57  ;;  %v5091_v25 = vld [vmem:[#allocation2 + $0x346] sm:$0xff] }
 0x334   : > { %v4889_v41 = vadd.f32 %v4873_v13, %v4849_v60  ;;  %v4928_v43 = vadd.f32 %v4912_v62, %v4888_v45  ;;  %v5011_v1 = vmul.f32 %v4995_v3, %v8433_v20  ;;  %v4536_v30 = vadd.f32 %v10362_v42, %v10361_v6  ;;  %v10366_v58 = vld [vmem:[#allocation46_spill] sm:$0xff]  ;;  %v5092_v62 = vld [vmem:[#allocation2 + $0x34e] sm:$0xff] }
 0x335   : > { %v5257_v4 = vadd.f32 %v9157_v34, %v5241_v31  ;;  %v5242_v53 = vadd.f32 %v5226_v37, %v5202_v40  ;;  %v4575_v48 = vadd.f32 %v10364_v11, %v10363_v19  ;;  %v4600_v17 = vmul.f32 %v4584_v61, %v10228_v16  ;;  %v5173_v6 = vld [vmem:[#allocation2 + $0x352] sm:$0xff] }
 0x336   : > { %v4929_v12 = vadd.f32 %v4913_v18, %v4889_v41  ;;  %v4979_v44 = vadd.f32 %v4963_v15, %v4928_v43  ;;  %v4650_v10 = vmul.f32 %v5632_v33, %v8364_v36  ;;  %v4576_v50 = vadd.f32 %v10365_v23, %v4536_v30  ;;  %v4949_v23 = vld [vmem:[#allocation2 + $0x360] sm:$0xff] }
 0x337   : > { %5477 = vst [vmem:[%s8568_s22 + $0xd0] sm:$0xff] %v5257_v4  ;;  %v5258_v39 = vadd.f32 %v9157_v34, %v5242_v53  ;;  %v4615_v59 = vadd.f32 %v10366_v58, %v4575_v48  ;;  %v4651_v13 = vmul.f32 %v9567_v63, %v8364_v36  ;;  %v5012_v60 = vmul.f32 %v4996_v32, %v8433_v20  ;;  %v5133_v36 = vld [vmem:[#allocation2 + $0x350] sm:$0xff] }
 0x338   : > { %v4980_v3 = vadd.f32 %v4964_v55, %v4929_v12  ;;  %v5027_v45 = vadd.f32 %v5011_v1, %v4979_v44  ;;  %v5059_v16 = vmul.f32 %v5043_v56, %v8448_v29  ;;  %v4616_v15 = vadd.f32 %v4600_v17, %v4576_v50  ;;  %v5213_v44 = vld [vmem:[#allocation2 + $0x354] sm:$0xff] }
 0x339   : > { %5478 = vst [vmem:[%s8568_s22 + $0xd8] sm:$0xff] %v5258_v39  ;;  %v4666_v61 = vadd.f32 %v4650_v10, %v4615_v59  ;;  %v4698_v34 = vmul.f32 %v9569_v47, %v8371_v7  ;;  %v5060_v40 = vmul.f32 %v5044_v54, %v8448_v29  ;;  %v5107_v18 = vmul.f32 %v5091_v25, %v8460_v22 }
 0x33a   : > { %v5028_v31 = vadd.f32 %v5012_v60, %v4980_v3  ;;  %v5075_v37 = vadd.f32 %v5059_v16, %v5027_v45  ;;  %v4667_v41 = vadd.f32 %v4651_v13, %v4616_v15  ;;  %v4699_v43 = vmul.f32 %v9587_v5, %v8371_v7  ;;  %v4950_v13 = vld [vmem:[#allocation2 + $0x368] sm:$0xff] }
 0x33b   : > { %v4714_v55 = vadd.f32 %v4698_v34, %v4666_v61  ;;  %v4746_v1 = vmul.f32 %v9589_v2, %v8376_v9  ;;  %v5147_v56 = vmul.f32 %v4948_v46, %v8464_v52  ;;  %v5108_v47 = vmul.f32 %v5092_v62, %v8460_v22  ;;  %v4997_v62 = vld [vmem:[#allocation2 + $0x362] sm:$0xff] }
 0x33c   : > { %v5076_v4 = vadd.f32 %v5060_v40, %v5028_v31  ;;  %v5123_v53 = vadd.f32 %v5107_v18, %v5075_v37  ;;  %v4715_v42 = vadd.f32 %v4699_v43, %v4667_v41  ;;  %v4747_v30 = vmul.f32 %v9591_v51, %v8376_v9  ;;  %v5045_v31 = vld [vmem:[#allocation2 + $0x364] sm:$0xff] }
 0x33d   : > { %v4762_v19 = vadd.f32 %v4746_v1, %v4714_v55  ;;  %v4794_v11 = vmul.f32 %v9603_v0, %v8392_v21  ;;  %v5187_v48 = vmul.f32 %v4996_v32, %v8480_v27  ;;  %v5148_v2 = vmul.f32 %v5133_v36, %v8464_v52  ;;  %v5046_v36 = vld [vmem:[#allocation2 + $0x36c] sm:$0xff] }
 0x33e   : > { %v5163_v7 = vadd.f32 %v5147_v56, %v5123_v53  ;;  %v5124_v12 = vadd.f32 %v5108_v47, %v5076_v4  ;;  %v4763_v17 = vadd.f32 %v4747_v30, %v4715_v42  ;;  %v4795_v46 = vmul.f32 %v9612_v35, %v8392_v21  ;;  %v5093_v41 = vld [vmem:[#allocation2 + $0x366] sm:$0xff]  ;;  %v5134_v47 = vld [vmem:[#allocation2 + $0x370] sm:$0xff] }
 0x33f   : > { %v4810_v33 = vadd.f32 %v4794_v11, %v4762_v19  ;;  %v4834_v10 = vmul.f32 %v9567_v63, %v8403_v14  ;;  %v5227_v39 = vmul.f32 %v9658_v24, %v5044_v54  ;;  %v5188_v0 = vmul.f32 %v5173_v6, %v8480_v27 }
 0x340   : > { %v5203_v9 = vadd.f32 %v5187_v48, %v5163_v7  ;;  %v5164_v25 = vadd.f32 %v5148_v2, %v5124_v12  ;;  %v4811_v32 = vadd.f32 %v4795_v46, %v4763_v17  ;;  %v4835_v50 = vmul.f32 %v9622_v38, %v8403_v14  ;;  %v5214_v12 = vld [vmem:[#allocation2 + $0x374] sm:$0xff] }
 0x341   : > { %v4850_v58 = vadd.f32 %v4834_v10, %v4810_v33  ;;  %v4874_v59 = vmul.f32 %v9587_v5, %v8408_v49  ;;  %v5228_v63 = vmul.f32 %v9658_v24, %v5213_v44  ;;  %v4875_v54 = vmul.f32 %v9632_v8, %v8408_v49  ;;  %v5633_v5 = vld [vmem:[%s9796_s3] ss:$0 sm:$0xff] }
 0x342   : > { %v5243_v21 = vadd.f32 %v5227_v39, %v5203_v9  ;;  %v5204_v35 = vadd.f32 %v5188_v0, %v5164_v25  ;;  %v4851_v3 = vadd.f32 %v4835_v50, %v4811_v32  ;;  %v4914_v45 = vmul.f32 %v9591_v51, %v8416_v28  ;;  %v4998_v51 = vld [vmem:[#allocation2 + $0x36a] sm:$0xff] }
 0x343   : > { %v4890_v60 = vadd.f32 %v4874_v59, %v4850_v58  ;;  %v4965_v14 = vmul.f32 %v4949_v23, %v8424_v57  ;;  %v4915_v49 = vmul.f32 %v9642_v26, %v8416_v28  ;;  %v4966_v61 = vmul.f32 %v4950_v13, %v8424_v57  ;;  %v5094_v26 = vld [vmem:[#allocation2 + $0x36e] sm:$0xff] }
 0x344   : > { %v5259_v38 = vadd.f32 %v5633_v5, %v5243_v21  ;;  %v5244_v16 = vadd.f32 %v5228_v63, %v5204_v35  ;;  %v4891_v15 = vadd.f32 %v4875_v54, %v4851_v3  ;;  %v5013_v18 = vmul.f32 %v4997_v62, %v8433_v20 }
 0x345   : > { %v4930_v8 = vadd.f32 %v4914_v45, %v4890_v60  ;;  %v5014_v55 = vmul.f32 %v4998_v51, %v8433_v20  ;;  %v5061_v28 = vmul.f32 %v5045_v31, %v8448_v29  ;;  %v5062_v57 = vmul.f32 %v5046_v36, %v8448_v29  ;;  %v5174_v20 = vld [vmem:[#allocation2 + $0x372] sm:$0xff] }
 0x346   : > { %5479 = vst [vmem:[%s8568_s22 + $0xe0] sm:$0xff] %v5259_v38  ;;  %v5260_v34 = vadd.f32 %v5633_v5, %v5244_v16  ;;  %v4931_v40 = vadd.f32 %v4915_v49, %v4891_v15  ;;  %v5109_v56 = vmul.f32 %v5093_v41, %v8460_v22  ;;  %v5149_v30 = vmul.f32 %v4950_v13, %v8464_v52 }
 0x347   : > { %v4981_v37 = vadd.f32 %v4965_v14, %v4930_v8  ;;  %v5110_v19 = vmul.f32 %v5094_v26, %v8460_v22  ;;  %v5189_v7 = vmul.f32 %v4998_v51, %v8480_v27  ;;  %v5150_v29 = vmul.f32 %v5134_v47, %v8464_v52 }
 0x348   : > { %5480 = vst [vmem:[%s8568_s22 + $0xe8] sm:$0xff] %v5260_v34  ;;  %v4982_v43 = vadd.f32 %v4966_v61, %v4931_v40  ;;  %v5229_v44 = vmul.f32 %v9658_v24, %v5046_v36  ;;  %v5190_v46 = vmul.f32 %v5174_v20, %v8480_v27  ;;  %v5230_v10 = vmul.f32 %v9658_v24, %v5214_v12 }
 0x349   : > { %v5029_v1 = vadd.f32 %v5013_v18, %v4981_v37 }
 0x34a   : > { %v5030_v4 = vadd.f32 %v5014_v55, %v4982_v43 }
 0x34b   : > { %v5077_v53 = vadd.f32 %v5061_v28, %v5029_v1 }
 0x34c   : > { %v5078_v6 = vadd.f32 %v5062_v57, %v5030_v4 }
 0x34d   : > { %v5125_v42 = vadd.f32 %v5109_v56, %v5077_v53 }
 0x34e   : > { %v5126_v48 = vadd.f32 %v5110_v19, %v5078_v6 }
 0x34f   : > { %v5165_v11 = vadd.f32 %v5149_v30, %v5125_v42 }
 0x350   : > { %v5166_v17 = vadd.f32 %v5150_v29, %v5126_v48 }
 0x351   : > { %v5205_v2 = vadd.f32 %v5189_v7, %v5165_v11 }
 0x352   : > { %v5206_v22 = vadd.f32 %v5190_v46, %v5166_v17 }
 0x353   : > { %v5245_v33 = vadd.f32 %v5229_v44, %v5205_v2 }
 0x354   : > { %v5246_v39 = vadd.f32 %v5230_v10, %v5206_v22 }
 0x355   : > { %v5261_v9 = vadd.f32 %v5633_v5, %v5245_v33 }
 0x356   : > { %v5262_v52 = vadd.f32 %v5633_v5, %v5246_v39 }
 0x357   : > { %5481 = vst [vmem:[%s8568_s22 + $0xf0] sm:$0xff] %v5261_v9 }
 0x358   : > { %5482 = vst [vmem:[%s8568_s22 + $0xf8] sm:$0xff] %v5262_v52 }
 0x359   : > { %5647 = shalt.err (!%p5644_p5)
}
 0x35a   : > { %s5648_s12 = scalar_lea.hbm %s9739_s14, 4096  ;;  %s5652_s7 = scalar_lea.hbm %s9797_s4, 8192 }
 0x35b   : > { %p5649_p6 = scmp.ne.s32.totalorder %s9739_s14, %s5648_s12  ;;  %p5653_p10 = scmp.lt.u32.totalorder %s9739_s14, %s9797_s4 }
 0x35c   : > { %p5654_p11 = scmp.lt.u32.totalorder %s5652_s7, %s5648_s12  ;;  %p5656_p13 = scmp.lt.u32.totalorder %s5648_s12, %s9739_s14 }
 0x35d   : > { %p5650_p7 = pnand %p5649_p6, %p5782_p4 }
 0x35e   : > { %p5655_p12 = por %p5654_p11, %p5653_p10 }
 0x35f   : > { %p5651_p9 = pneg %p5650_p7 }
 0x360   : > { %p5657_p0 = por %p5656_p13, %p5655_p12 }
 0x362   : > { %p5658_p1 = pnand %p5657_p0, %p5651_p9 }
 0x364   : > { %5661 = shalt.err (!%p5658_p1)
}
 0x365   : > { %s5715_s8 = smov 128   ;;  %s5716_s9 = smov 8  }
 0x366   : > { %5493 = dma.vmem_to_hbm [thread:$0]  (%p5782_p4), %s9741_s10, 4096, %s9739_s14, %s9747_s21, %s5715_s8, %s5715_s8, %s5716_s9  }
 0x367 PF: > { %p5499_p2 = scmp.ge.s32.totalorder %s5712_s20, 2  ;;  %s5314_s11 = sand.u32 1, %s5692_s15  }
 0x368   : > { %s5315_s13 = scalar_lea.sflag [#allocation4], %s5314_s11 }
 0x369   : > { %p5496_p3 = pnand %p5499_p2, %p5789_p8 }
 0x36b   : > { %5687 = dma.done.wait (!%p5496_p3), %s5315_s13, 4096  }
 0x36c   : > { %5689 = vsyncadd (!%p5496_p3), %s5315_s13, 4294963200  ;;  %s17_s20 = sadd.s32 1, %s5712_s20   ;;  %s10367_s15 = smov %s5696_s16 }
 0x36d   : > { %p14_p5 = scmp.ge.s32.totalorder %s17_s20, 4   ;;  %s10368_s16 = smov %s5700_s17 }
 0x36e   : > { %s10369_s17 = smov %s5795_s28  ;;  %s10370_s18 = smov %s5708_s19 }
 0x36f   : > { %s10371_s19 = smov %s10373_s23  ;;  %16 = sbr.rel (!%p14_p5) target bundleno = 4 (0x4), region = 97 }
 0x376   :  { %5320 = vsyncpa [#allocation4], 1 }
 0x377   :  { %5322 = vsyncpa [#allocation4 + $0x1], 1 }

</bundles_post_ra>
